<compile_context>
chip_gen: v6e
topology: v6e:2x2x1
jax: 0.10.0
libtpu: 0.0.40
codegen_flags: <defaults>
</compile_context>

<pallas_src>
import functools

import numpy as np
import jax
import jax.numpy as jnp
from jax import lax
from jax.experimental import pallas as pl
from jax.experimental.pallas import tpu as pltpu

K = 4     # conv kernel size (fixed by the module)
PAD = 1   # conv padding (fixed by the module)


# ----------------------------------------------------------------------------
# Fused kernel: runs the whole discriminator for one batch sample.
# ----------------------------------------------------------------------------
def _disc_kernel(*refs, layer_flags, eps, slope):
    # refs layout: [patches0T, w0T, b0, (selT, wT, b) * n_inner, out]
    p0_ref, w0_ref, b0_ref = refs[0], refs[1], refs[2]
    o_ref = refs[-1]
    inner_refs = refs[3:-1]
    n_inner = len(inner_refs) // 3

    def post(y, do_norm, do_lrelu):
        if do_norm:
            # InstanceNorm2d(affine=False): per-channel stats over spatial
            # (the lane axis), biased variance, eps=1e-5.
            mean = jnp.mean(y, axis=1, keepdims=True)
            var = jnp.mean(jnp.square(y - mean), axis=1, keepdims=True)
            y = (y - mean) * lax.rsqrt(var + eps)
        if do_lrelu:
            y = jnp.where(y > 0, y, slope * y)
        return y

    # ---- Layer 0: one (C0, K*K*Cin) @ (K*K*Cin, P0) matmul on patches. ----
    a = jnp.dot(w0_ref[...], p0_ref[0], preferred_element_type=jnp.float32)
    a = a + b0_ref[...]
    a = post(a, *layer_flags[0])

    # ---- Layers 1..n: in-kernel patch gather via 0/1 selection matmuls. ----
    for l in range(n_inner):
        sel_ref = inner_refs[3 * l + 0]   # (K*K, P_prev, P_out)
        w_ref = inner_refs[3 * l + 1]     # (K*K, C_out, C_prev)
        b_ref = inner_refs[3 * l + 2]     # (C_out, 1)
        c_out = w_ref.shape[1]
        p_out = sel_ref.shape[2]

        acc = jnp.zeros((c_out, p_out), jnp.float32)
        for j in range(K * K):
            # Gather (and zero-pad) the pixels tap j needs: (C_prev, P_out).
            patch = jnp.dot(a, sel_ref[j], preferred_element_type=jnp.float32)
            # Accumulate this tap's contribution: (C_out, P_out).
            acc = acc + jnp.dot(w_ref[j], patch,
                                preferred_element_type=jnp.float32)
        a = post(acc + b_ref[...], *layer_flags[l + 1])

    o_ref[...] = a.reshape(o_ref.shape).astype(o_ref.dtype)


# ----------------------------------------------------------------------------
# Host-side, one-time preparation (selection matrices + weight relayout).
# ----------------------------------------------------------------------------
def _sel_matrices(h_in, w_in, stride):
    """0/1 gather matrices: sel[j, q, p]==1 iff output pixel p's tap j reads
    (unpadded) input pixel q; columns that fall in the conv padding stay 0."""
    h_out = (h_in + 2 * PAD - K) // stride + 1
    w_out = (w_in + 2 * PAD - K) // stride + 1
    sel = np.zeros((K * K, h_in * w_in, h_out * w_out), np.float32)
    for kh in range(K):
        for kw in range(K):
            j = kh * K + kw
            for ho in range(h_out):
                hi = ho * stride + kh - PAD
                if hi < 0 or hi >= h_in:
                    continue
                for wo in range(w_out):
                    wi = wo * stride + kw - PAD
                    if wi < 0 or wi >= w_in:
                        continue
                    sel[j, hi * w_in + wi, ho * w_out + wo] = 1.0
    return sel, h_out, w_out


def prepare_params(params, height, width):
    """One-time relayout of PyTorch-style params into kernel operands."""
    p0 = params[0]
    c0, cin0 = p0["w"].shape[0], p0["w"].shape[1]
    s0 = p0["stride"]
    h_cur = (height + 2 * PAD - K) // s0 + 1
    w_cur = (width + 2 * PAD - K) // s0 + 1

    prep = {
        "stride0": s0,
        # (C0, K*K*Cin), row-major over (kh, kw, ci) to match the patches.
        "w0T": jnp.transpose(p0["w"], (0, 2, 3, 1)).reshape(c0, K * K * cin0),
        "b0": p0["b"].reshape(c0, 1),
        "flags": [(p0["do_norm"], p0["do_lrelu"])],
        "inner": [],
    }
    c_prev = c0
    for p in params[1:]:
        c_out = p["w"].shape[0]
        sel, h_out, w_out = _sel_matrices(h_cur, w_cur, p["stride"])
        wT = jnp.transpose(p["w"], (2, 3, 0, 1)).reshape(K * K, c_out, c_prev)
        prep["inner"].append((jnp.asarray(sel), wT, p["b"].reshape(c_out, 1)))
        prep["flags"].append((p["do_norm"], p["do_lrelu"]))
        h_cur, w_cur, c_prev = h_out, w_out, c_out

    prep["flags"] = tuple(prep["flags"])
    prep["out_hw"] = (h_cur, w_cur)
    prep["out_c"] = c_prev
    return prep


def _im2col_T(x_nhwc, stride):
    """Layer-0 patches, transposed: (N, K*K*Cin, Ho*Wo) with (kh,kw,ci) rows."""
    n, h, w, c = x_nhwc.shape
    xp = jnp.pad(x_nhwc, ((0, 0), (PAD, PAD), (PAD, PAD), (0, 0)))
    ho = (h + 2 * PAD - K) // stride + 1
    wo = (w + 2 * PAD - K) // stride + 1
    cols = []
    for kh in range(K):
        for kw in range(K):
            sl = xp[:, kh:kh + stride * (ho - 1) + 1:stride,
                       kw:kw + stride * (wo - 1) + 1:stride, :]
            cols.append(jnp.transpose(sl, (0, 3, 1, 2)).reshape(n, c, ho * wo))
    return jnp.concatenate(cols, axis=1)


# ----------------------------------------------------------------------------
# Public forward pass (NCHW in, NCHW out).
# ----------------------------------------------------------------------------
def nlayer_discriminator(x_nchw, prep):
    n = x_nchw.shape[0]
    x = jnp.transpose(x_nchw, (0, 2, 3, 1))                 # NCHW -> NHWC
    patches0T = _im2col_T(x, stride=prep["stride0"])         # (N, K*K*Cin, P0)
    kkc0, p0 = patches0T.shape[1], patches0T.shape[2]
    c0 = prep["w0T"].shape[0]

    operands = [patches0T, prep["w0T"], prep["b0"]]
    in_specs = [
        pl.BlockSpec((1, kkc0, p0), lambda i: (i, 0, 0)),
        pl.BlockSpec((c0, kkc0), lambda i: (0, 0)),
        pl.BlockSpec((c0, 1), lambda i: (0, 0)),
    ]
    for sel, wT, b in prep["inner"]:
        operands += [sel, wT, b]
        in_specs += [
            pl.BlockSpec(sel.shape, lambda i: (0, 0, 0)),
            pl.BlockSpec(wT.shape, lambda i: (0, 0, 0)),
            pl.BlockSpec(b.shape, lambda i: (0, 0)),
        ]

    h_out, w_out = prep["out_hw"]
    c_last = prep["out_c"]
    p_last = h_out * w_out

    kernel = functools.partial(_disc_kernel, layer_flags=prep["flags"],
                               eps=1e-5, slope=0.2)
    out = pl.pallas_call(
        kernel,
        out_shape=jax.ShapeDtypeStruct((n, c_last, p_last), x.dtype),
        grid_spec=pltpu.PrefetchScalarGridSpec(
            num_scalar_prefetch=0,
            grid=(n,),
            in_specs=in_specs,
            out_specs=pl.BlockSpec((1, c_last, p_last), lambda i: (i, 0, 0)),
        ),
        compiler_params=pltpu.CompilerParams(
            dimension_semantics=("parallel",),
            vmem_limit_bytes=32 * 1024 * 1024),
    )(*operands)
    return out.reshape(n, c_last, h_out, w_out)


# ----------------------------------------------------------------------------
# Synthetic parameters mirroring NLayerDiscriminator.__init__ shapes.
# ----------------------------------------------------------------------------
def init_params(key, input_nc=3, ndf=8, n_layers=3, dtype=jnp.float32):
    specs = []
    # (cin, cout, stride, do_norm, do_lrelu)
    specs.append((input_nc, ndf, 2, False, True))
    nf_mult = 1
    for n in range(1, n_layers):
        nf_mult_prev = nf_mult
        nf_mult = min(2 ** n, 8)
        specs.append((ndf * nf_mult_prev, ndf * nf_mult, 2, True, True))
    nf_mult_prev = nf_mult
    nf_mult = min(2 ** n_layers, 8)
    specs.append((ndf * nf_mult_prev, ndf * nf_mult, 1, True, True))
    specs.append((ndf * nf_mult, 1, 1, False, False))

    params = []
    for cin, cout, stride, do_norm, do_lrelu in specs:
        key, kw, kb = jax.random.split(key, 3)
        w = jax.random.normal(kw, (cout, cin, 4, 4), dtype) * 0.02
        b = jax.random.normal(kb, (cout,), dtype) * 0.02
        params.append(dict(w=w, b=b, stride=stride,
                           do_norm=do_norm, do_lrelu=do_lrelu))
    return params


def _reference(x_nchw, params):
    """Pure-JAX (XLA conv) reference for validation."""
    x = x_nchw
    for p in params:
        w, b, s = p["w"], p["b"], p["stride"]
        y = lax.conv_general_dilated(
            x, w, window_strides=(s, s), padding=[(1, 1), (1, 1)],
            dimension_numbers=("NCHW", "OIHW", "NCHW"))
        y = y + b.reshape(1, -1, 1, 1)
        if p["do_norm"]:
            mean = jnp.mean(y, axis=(2, 3), keepdims=True)
            var = jnp.mean(jnp.square(y - mean), axis=(2, 3), keepdims=True)
            y = (y - mean) * lax.rsqrt(var + 1e-5)
        if p["do_lrelu"]:
            y = jnp.where(y > 0, y, 0.2 * y)
        x = y
    return x


if __name__ == "__main__":
    key = jax.random.PRNGKey(0)
    kx, kp = jax.random.split(key)

    # Small shapes consistent with the module: N=2, input_nc=3, H=W=32, ndf=8.
    x = jax.random.normal(kx, (2, 3, 32, 32), jnp.float32)
    params = init_params(kp, input_nc=3, ndf=8, n_layers=3)
    prep = prepare_params(params, height=32, width=32)

    fwd = jax.jit(functools.partial(nlayer_discriminator, prep=prep))
    out = jax.block_until_ready(fwd(x))

    ref = jax.block_until_ready(_reference(x, params))
    assert out.shape == ref.shape, (out.shape, ref.shape)
    assert jnp.allclose(out, ref, atol=1e-4, rtol=1e-4), \
        float(jnp.max(jnp.abs(out - ref)))

    print("KERNEL_OK")
</pallas_src>

<mosaic_0001>
module attributes {stable_mosaic.version = 11 : i64} {
  func.func @_disc_kernel(%arg0: i32, %arg1: memref<1x48x256xf32, #tpu.memory_space<vmem>>, %arg2: memref<8x48xf32, #tpu.memory_space<vmem>>, %arg3: memref<8x1xf32, #tpu.memory_space<vmem>>, %arg4: memref<16x256x64xf32, #tpu.memory_space<vmem>>, %arg5: memref<16x16x8xf32, #tpu.memory_space<vmem>>, %arg6: memref<16x1xf32, #tpu.memory_space<vmem>>, %arg7: memref<16x64x16xf32, #tpu.memory_space<vmem>>, %arg8: memref<16x32x16xf32, #tpu.memory_space<vmem>>, %arg9: memref<32x1xf32, #tpu.memory_space<vmem>>, %arg10: memref<16x16x9xf32, #tpu.memory_space<vmem>>, %arg11: memref<16x64x32xf32, #tpu.memory_space<vmem>>, %arg12: memref<64x1xf32, #tpu.memory_space<vmem>>, %arg13: memref<16x9x4xf32, #tpu.memory_space<vmem>>, %arg14: memref<16x1x64xf32, #tpu.memory_space<vmem>>, %arg15: memref<1x1xf32, #tpu.memory_space<vmem>>, %arg16: memref<1x1x4xf32, #tpu.memory_space<vmem>>) attributes {dimension_semantics = [#tpu.dimension_semantics<parallel>], iteration_bounds = array<i64: 2>, scalar_prefetch = 0 : i64, scratch_operands = 0 : i64, tpu.core_type = #tpu.core_type<tc>, window_params = [{transform_indices = @transform_0, window_bounds = array<i64: 1, 48, 256>}, {pipeline_mode = #tpu.pipeline_mode<synchronous>, transform_indices = @transform_1, window_bounds = array<i64: 8, 48>}, {pipeline_mode = #tpu.pipeline_mode<synchronous>, transform_indices = @transform_2, window_bounds = array<i64: 8, 1>}, {pipeline_mode = #tpu.pipeline_mode<synchronous>, transform_indices = @transform_3, window_bounds = array<i64: 16, 256, 64>}, {pipeline_mode = #tpu.pipeline_mode<synchronous>, transform_indices = @transform_4, window_bounds = array<i64: 16, 16, 8>}, {pipeline_mode = #tpu.pipeline_mode<synchronous>, transform_indices = @transform_5, window_bounds = array<i64: 16, 1>}, {pipeline_mode = #tpu.pipeline_mode<synchronous>, transform_indices = @transform_6, window_bounds = array<i64: 16, 64, 16>}, {pipeline_mode = #tpu.pipeline_mode<synchronous>, transform_indices = @transform_7, window_bounds = array<i64: 16, 32, 16>}, {pipeline_mode = #tpu.pipeline_mode<synchronous>, transform_indices = @transform_8, window_bounds = array<i64: 32, 1>}, {pipeline_mode = #tpu.pipeline_mode<synchronous>, transform_indices = @transform_9, window_bounds = array<i64: 16, 16, 9>}, {pipeline_mode = #tpu.pipeline_mode<synchronous>, transform_indices = @transform_10, window_bounds = array<i64: 16, 64, 32>}, {pipeline_mode = #tpu.pipeline_mode<synchronous>, transform_indices = @transform_11, window_bounds = array<i64: 64, 1>}, {pipeline_mode = #tpu.pipeline_mode<synchronous>, transform_indices = @transform_12, window_bounds = array<i64: 16, 9, 4>}, {pipeline_mode = #tpu.pipeline_mode<synchronous>, transform_indices = @transform_13, window_bounds = array<i64: 16, 1, 64>}, {pipeline_mode = #tpu.pipeline_mode<synchronous>, transform_indices = @transform_14, window_bounds = array<i64: 1, 1>}, {transform_indices = @transform_15, window_bounds = array<i64: 1, 1, 4>}]} {
    %c0 = arith.constant 0 : index
    %c0_0 = arith.constant 0 : index
    %0 = vector.load %arg2[%c0, %c0_0] : memref<8x48xf32, #tpu.memory_space<vmem>>, vector<8x48xf32>
    %c0_1 = arith.constant 0 : index
    %c0_2 = arith.constant 0 : index
    %c0_3 = arith.constant 0 : index
    %1 = vector.load %arg1[%c0_1, %c0_2, %c0_3] : memref<1x48x256xf32, #tpu.memory_space<vmem>>, vector<1x48x256xf32>
    %2 = vector.shape_cast %1 : vector<1x48x256xf32> to vector<48x256xf32>
    %cst = arith.constant dense<0.000000e+00> : vector<8x256xf32>
    %3 = tpu.matmul %0, %2, %cst {dimension_numbers = #tpu.dot_dimension_numbers<[1], [0], [0], [1], [0, 0, 1, 1], [], []>} : vector<8x48xf32>, vector<48x256xf32>, vector<8x256xf32> -> vector<8x256xf32>
    %c0_4 = arith.constant 0 : index
    %c0_5 = arith.constant 0 : index
    %4 = vector.load %arg3[%c0_4, %c0_5] : memref<8x1xf32, #tpu.memory_space<vmem>>, vector<8x1xf32>
    %5 = vector.broadcast %4 : vector<8x1xf32> to vector<8x256xf32>
    %6 = arith.addf %3, %5 : vector<8x256xf32>
    %cst_6 = arith.constant 0.000000e+00 : f32
    %7 = vector.broadcast %cst_6 : f32 to vector<8x256xf32>
    %8 = arith.cmpf ogt, %6, %7 : vector<8x256xf32>
    %cst_7 = arith.constant 2.000000e-01 : f32
    %9 = vector.broadcast %cst_7 : f32 to vector<8x256xf32>
    %10 = arith.mulf %9, %6 : vector<8x256xf32>
    %11 = arith.select %8, %6, %10 : vector<8x256xi1>, vector<8x256xf32>
    %cst_8 = arith.constant 0.000000e+00 : f32
    %12 = vector.broadcast %cst_8 : f32 to vector<16x64xf32>
    %c0_9 = arith.constant 0 : index
    %c0_10 = arith.constant 0 : index
    %c0_11 = arith.constant 0 : index
    %13 = vector.load %arg4[%c0_9, %c0_10, %c0_11] : memref<16x256x64xf32, #tpu.memory_space<vmem>>, vector<1x256x64xf32>
    %14 = vector.shape_cast %13 : vector<1x256x64xf32> to vector<256x64xf32>
    %cst_12 = arith.constant dense<0.000000e+00> : vector<8x64xf32>
    %15 = tpu.matmul %11, %14, %cst_12 {dimension_numbers = #tpu.dot_dimension_numbers<[1], [0], [0], [1], [0, 0, 1, 1], [], []>} : vector<8x256xf32>, vector<256x64xf32>, vector<8x64xf32> -> vector<8x64xf32>
    %c0_13 = arith.constant 0 : index
    %c0_14 = arith.constant 0 : index
    %c0_15 = arith.constant 0 : index
    %16 = vector.load %arg5[%c0_13, %c0_14, %c0_15] : memref<16x16x8xf32, #tpu.memory_space<vmem>>, vector<1x16x8xf32>
    %17 = vector.shape_cast %16 : vector<1x16x8xf32> to vector<16x8xf32>
    %cst_16 = arith.constant dense<0.000000e+00> : vector<16x64xf32>
    %18 = tpu.matmul %17, %15, %cst_16 {dimension_numbers = #tpu.dot_dimension_numbers<[1], [0], [0], [1], [0, 0, 1, 1], [], []>} : vector<16x8xf32>, vector<8x64xf32>, vector<16x64xf32> -> vector<16x64xf32>
    %19 = arith.addf %12, %18 : vector<16x64xf32>
    %c1 = arith.constant 1 : index
    %c0_17 = arith.constant 0 : index
    %c0_18 = arith.constant 0 : index
    %20 = vector.load %arg4[%c1, %c0_17, %c0_18] : memref<16x256x64xf32, #tpu.memory_space<vmem>>, vector<1x256x64xf32>
    %21 = vector.shape_cast %20 : vector<1x256x64xf32> to vector<256x64xf32>
    %cst_19 = arith.constant dense<0.000000e+00> : vector<8x64xf32>
    %22 = tpu.matmul %11, %21, %cst_19 {dimension_numbers = #tpu.dot_dimension_numbers<[1], [0], [0], [1], [0, 0, 1, 1], [], []>} : vector<8x256xf32>, vector<256x64xf32>, vector<8x64xf32> -> vector<8x64xf32>
    %c1_20 = arith.constant 1 : index
    %c0_21 = arith.constant 0 : index
    %c0_22 = arith.constant 0 : index
    %23 = vector.load %arg5[%c1_20, %c0_21, %c0_22] : memref<16x16x8xf32, #tpu.memory_space<vmem>>, vector<1x16x8xf32>
    %24 = vector.shape_cast %23 : vector<1x16x8xf32> to vector<16x8xf32>
    %cst_23 = arith.constant dense<0.000000e+00> : vector<16x64xf32>
    %25 = tpu.matmul %24, %22, %cst_23 {dimension_numbers = #tpu.dot_dimension_numbers<[1], [0], [0], [1], [0, 0, 1, 1], [], []>} : vector<16x8xf32>, vector<8x64xf32>, vector<16x64xf32> -> vector<16x64xf32>
    %26 = arith.addf %19, %25 : vector<16x64xf32>
    %c2 = arith.constant 2 : index
    %c0_24 = arith.constant 0 : index
    %c0_25 = arith.constant 0 : index
    %27 = vector.load %arg4[%c2, %c0_24, %c0_25] : memref<16x256x64xf32, #tpu.memory_space<vmem>>, vector<1x256x64xf32>
    %28 = vector.shape_cast %27 : vector<1x256x64xf32> to vector<256x64xf32>
    %cst_26 = arith.constant dense<0.000000e+00> : vector<8x64xf32>
    %29 = tpu.matmul %11, %28, %cst_26 {dimension_numbers = #tpu.dot_dimension_numbers<[1], [0], [0], [1], [0, 0, 1, 1], [], []>} : vector<8x256xf32>, vector<256x64xf32>, vector<8x64xf32> -> vector<8x64xf32>
    %c2_27 = arith.constant 2 : index
    %c0_28 = arith.constant 0 : index
    %c0_29 = arith.constant 0 : index
    %30 = vector.load %arg5[%c2_27, %c0_28, %c0_29] : memref<16x16x8xf32, #tpu.memory_space<vmem>>, vector<1x16x8xf32>
    %31 = vector.shape_cast %30 : vector<1x16x8xf32> to vector<16x8xf32>
    %cst_30 = arith.constant dense<0.000000e+00> : vector<16x64xf32>
    %32 = tpu.matmul %31, %29, %cst_30 {dimension_numbers = #tpu.dot_dimension_numbers<[1], [0], [0], [1], [0, 0, 1, 1], [], []>} : vector<16x8xf32>, vector<8x64xf32>, vector<16x64xf32> -> vector<16x64xf32>
    %33 = arith.addf %26, %32 : vector<16x64xf32>
    %c3 = arith.constant 3 : index
    %c0_31 = arith.constant 0 : index
    %c0_32 = arith.constant 0 : index
    %34 = vector.load %arg4[%c3, %c0_31, %c0_32] : memref<16x256x64xf32, #tpu.memory_space<vmem>>, vector<1x256x64xf32>
    %35 = vector.shape_cast %34 : vector<1x256x64xf32> to vector<256x64xf32>
    %cst_33 = arith.constant dense<0.000000e+00> : vector<8x64xf32>
    %36 = tpu.matmul %11, %35, %cst_33 {dimension_numbers = #tpu.dot_dimension_numbers<[1], [0], [0], [1], [0, 0, 1, 1], [], []>} : vector<8x256xf32>, vector<256x64xf32>, vector<8x64xf32> -> vector<8x64xf32>
    %c3_34 = arith.constant 3 : index
    %c0_35 = arith.constant 0 : index
    %c0_36 = arith.constant 0 : index
    %37 = vector.load %arg5[%c3_34, %c0_35, %c0_36] : memref<16x16x8xf32, #tpu.memory_space<vmem>>, vector<1x16x8xf32>
    %38 = vector.shape_cast %37 : vector<1x16x8xf32> to vector<16x8xf32>
    %cst_37 = arith.constant dense<0.000000e+00> : vector<16x64xf32>
    %39 = tpu.matmul %38, %36, %cst_37 {dimension_numbers = #tpu.dot_dimension_numbers<[1], [0], [0], [1], [0, 0, 1, 1], [], []>} : vector<16x8xf32>, vector<8x64xf32>, vector<16x64xf32> -> vector<16x64xf32>
    %40 = arith.addf %33, %39 : vector<16x64xf32>
    %c4 = arith.constant 4 : index
    %c0_38 = arith.constant 0 : index
    %c0_39 = arith.constant 0 : index
    %41 = vector.load %arg4[%c4, %c0_38, %c0_39] : memref<16x256x64xf32, #tpu.memory_space<vmem>>, vector<1x256x64xf32>
    %42 = vector.shape_cast %41 : vector<1x256x64xf32> to vector<256x64xf32>
    %cst_40 = arith.constant dense<0.000000e+00> : vector<8x64xf32>
    %43 = tpu.matmul %11, %42, %cst_40 {dimension_numbers = #tpu.dot_dimension_numbers<[1], [0], [0], [1], [0, 0, 1, 1], [], []>} : vector<8x256xf32>, vector<256x64xf32>, vector<8x64xf32> -> vector<8x64xf32>
    %c4_41 = arith.constant 4 : index
    %c0_42 = arith.constant 0 : index
    %c0_43 = arith.constant 0 : index
    %44 = vector.load %arg5[%c4_41, %c0_42, %c0_43] : memref<16x16x8xf32, #tpu.memory_space<vmem>>, vector<1x16x8xf32>
    %45 = vector.shape_cast %44 : vector<1x16x8xf32> to vector<16x8xf32>
    %cst_44 = arith.constant dense<0.000000e+00> : vector<16x64xf32>
    %46 = tpu.matmul %45, %43, %cst_44 {dimension_numbers = #tpu.dot_dimension_numbers<[1], [0], [0], [1], [0, 0, 1, 1], [], []>} : vector<16x8xf32>, vector<8x64xf32>, vector<16x64xf32> -> vector<16x64xf32>
    %47 = arith.addf %40, %46 : vector<16x64xf32>
    %c5 = arith.constant 5 : index
    %c0_45 = arith.constant 0 : index
    %c0_46 = arith.constant 0 : index
    %48 = vector.load %arg4[%c5, %c0_45, %c0_46] : memref<16x256x64xf32, #tpu.memory_space<vmem>>, vector<1x256x64xf32>
    %49 = vector.shape_cast %48 : vector<1x256x64xf32> to vector<256x64xf32>
    %cst_47 = arith.constant dense<0.000000e+00> : vector<8x64xf32>
    %50 = tpu.matmul %11, %49, %cst_47 {dimension_numbers = #tpu.dot_dimension_numbers<[1], [0], [0], [1], [0, 0, 1, 1], [], []>} : vector<8x256xf32>, vector<256x64xf32>, vector<8x64xf32> -> vector<8x64xf32>
    %c5_48 = arith.constant 5 : index
    %c0_49 = arith.constant 0 : index
    %c0_50 = arith.constant 0 : index
    %51 = vector.load %arg5[%c5_48, %c0_49, %c0_50] : memref<16x16x8xf32, #tpu.memory_space<vmem>>, vector<1x16x8xf32>
    %52 = vector.shape_cast %51 : vector<1x16x8xf32> to vector<16x8xf32>
    %cst_51 = arith.constant dense<0.000000e+00> : vector<16x64xf32>
    %53 = tpu.matmul %52, %50, %cst_51 {dimension_numbers = #tpu.dot_dimension_numbers<[1], [0], [0], [1], [0, 0, 1, 1], [], []>} : vector<16x8xf32>, vector<8x64xf32>, vector<16x64xf32> -> vector<16x64xf32>
    %54 = arith.addf %47, %53 : vector<16x64xf32>
    %c6 = arith.constant 6 : index
    %c0_52 = arith.constant 0 : index
    %c0_53 = arith.constant 0 : index
    %55 = vector.load %arg4[%c6, %c0_52, %c0_53] : memref<16x256x64xf32, #tpu.memory_space<vmem>>, vector<1x256x64xf32>
    %56 = vector.shape_cast %55 : vector<1x256x64xf32> to vector<256x64xf32>
    %cst_54 = arith.constant dense<0.000000e+00> : vector<8x64xf32>
    %57 = tpu.matmul %11, %56, %cst_54 {dimension_numbers = #tpu.dot_dimension_numbers<[1], [0], [0], [1], [0, 0, 1, 1], [], []>} : vector<8x256xf32>, vector<256x64xf32>, vector<8x64xf32> -> vector<8x64xf32>
    %c6_55 = arith.constant 6 : index
    %c0_56 = arith.constant 0 : index
    %c0_57 = arith.constant 0 : index
    %58 = vector.load %arg5[%c6_55, %c0_56, %c0_57] : memref<16x16x8xf32, #tpu.memory_space<vmem>>, vector<1x16x8xf32>
    %59 = vector.shape_cast %58 : vector<1x16x8xf32> to vector<16x8xf32>
    %cst_58 = arith.constant dense<0.000000e+00> : vector<16x64xf32>
    %60 = tpu.matmul %59, %57, %cst_58 {dimension_numbers = #tpu.dot_dimension_numbers<[1], [0], [0], [1], [0, 0, 1, 1], [], []>} : vector<16x8xf32>, vector<8x64xf32>, vector<16x64xf32> -> vector<16x64xf32>
    %61 = arith.addf %54, %60 : vector<16x64xf32>
    %c7 = arith.constant 7 : index
    %c0_59 = arith.constant 0 : index
    %c0_60 = arith.constant 0 : index
    %62 = vector.load %arg4[%c7, %c0_59, %c0_60] : memref<16x256x64xf32, #tpu.memory_space<vmem>>, vector<1x256x64xf32>
    %63 = vector.shape_cast %62 : vector<1x256x64xf32> to vector<256x64xf32>
    %cst_61 = arith.constant dense<0.000000e+00> : vector<8x64xf32>
    %64 = tpu.matmul %11, %63, %cst_61 {dimension_numbers = #tpu.dot_dimension_numbers<[1], [0], [0], [1], [0, 0, 1, 1], [], []>} : vector<8x256xf32>, vector<256x64xf32>, vector<8x64xf32> -> vector<8x64xf32>
    %c7_62 = arith.constant 7 : index
    %c0_63 = arith.constant 0 : index
    %c0_64 = arith.constant 0 : index
    %65 = vector.load %arg5[%c7_62, %c0_63, %c0_64] : memref<16x16x8xf32, #tpu.memory_space<vmem>>, vector<1x16x8xf32>
    %66 = vector.shape_cast %65 : vector<1x16x8xf32> to vector<16x8xf32>
    %cst_65 = arith.constant dense<0.000000e+00> : vector<16x64xf32>
    %67 = tpu.matmul %66, %64, %cst_65 {dimension_numbers = #tpu.dot_dimension_numbers<[1], [0], [0], [1], [0, 0, 1, 1], [], []>} : vector<16x8xf32>, vector<8x64xf32>, vector<16x64xf32> -> vector<16x64xf32>
    %68 = arith.addf %61, %67 : vector<16x64xf32>
    %c8 = arith.constant 8 : index
    %c0_66 = arith.constant 0 : index
    %c0_67 = arith.constant 0 : index
    %69 = vector.load %arg4[%c8, %c0_66, %c0_67] : memref<16x256x64xf32, #tpu.memory_space<vmem>>, vector<1x256x64xf32>
    %70 = vector.shape_cast %69 : vector<1x256x64xf32> to vector<256x64xf32>
    %cst_68 = arith.constant dense<0.000000e+00> : vector<8x64xf32>
    %71 = tpu.matmul %11, %70, %cst_68 {dimension_numbers = #tpu.dot_dimension_numbers<[1], [0], [0], [1], [0, 0, 1, 1], [], []>} : vector<8x256xf32>, vector<256x64xf32>, vector<8x64xf32> -> vector<8x64xf32>
    %c8_69 = arith.constant 8 : index
    %c0_70 = arith.constant 0 : index
    %c0_71 = arith.constant 0 : index
    %72 = vector.load %arg5[%c8_69, %c0_70, %c0_71] : memref<16x16x8xf32, #tpu.memory_space<vmem>>, vector<1x16x8xf32>
    %73 = vector.shape_cast %72 : vector<1x16x8xf32> to vector<16x8xf32>
    %cst_72 = arith.constant dense<0.000000e+00> : vector<16x64xf32>
    %74 = tpu.matmul %73, %71, %cst_72 {dimension_numbers = #tpu.dot_dimension_numbers<[1], [0], [0], [1], [0, 0, 1, 1], [], []>} : vector<16x8xf32>, vector<8x64xf32>, vector<16x64xf32> -> vector<16x64xf32>
    %75 = arith.addf %68, %74 : vector<16x64xf32>
    %c9 = arith.constant 9 : index
    %c0_73 = arith.constant 0 : index
    %c0_74 = arith.constant 0 : index
    %76 = vector.load %arg4[%c9, %c0_73, %c0_74] : memref<16x256x64xf32, #tpu.memory_space<vmem>>, vector<1x256x64xf32>
    %77 = vector.shape_cast %76 : vector<1x256x64xf32> to vector<256x64xf32>
    %cst_75 = arith.constant dense<0.000000e+00> : vector<8x64xf32>
    %78 = tpu.matmul %11, %77, %cst_75 {dimension_numbers = #tpu.dot_dimension_numbers<[1], [0], [0], [1], [0, 0, 1, 1], [], []>} : vector<8x256xf32>, vector<256x64xf32>, vector<8x64xf32> -> vector<8x64xf32>
    %c9_76 = arith.constant 9 : index
    %c0_77 = arith.constant 0 : index
    %c0_78 = arith.constant 0 : index
    %79 = vector.load %arg5[%c9_76, %c0_77, %c0_78] : memref<16x16x8xf32, #tpu.memory_space<vmem>>, vector<1x16x8xf32>
    %80 = vector.shape_cast %79 : vector<1x16x8xf32> to vector<16x8xf32>
    %cst_79 = arith.constant dense<0.000000e+00> : vector<16x64xf32>
    %81 = tpu.matmul %80, %78, %cst_79 {dimension_numbers = #tpu.dot_dimension_numbers<[1], [0], [0], [1], [0, 0, 1, 1], [], []>} : vector<16x8xf32>, vector<8x64xf32>, vector<16x64xf32> -> vector<16x64xf32>
    %82 = arith.addf %75, %81 : vector<16x64xf32>
    %c10 = arith.constant 10 : index
    %c0_80 = arith.constant 0 : index
    %c0_81 = arith.constant 0 : index
    %83 = vector.load %arg4[%c10, %c0_80, %c0_81] : memref<16x256x64xf32, #tpu.memory_space<vmem>>, vector<1x256x64xf32>
    %84 = vector.shape_cast %83 : vector<1x256x64xf32> to vector<256x64xf32>
    %cst_82 = arith.constant dense<0.000000e+00> : vector<8x64xf32>
    %85 = tpu.matmul %11, %84, %cst_82 {dimension_numbers = #tpu.dot_dimension_numbers<[1], [0], [0], [1], [0, 0, 1, 1], [], []>} : vector<8x256xf32>, vector<256x64xf32>, vector<8x64xf32> -> vector<8x64xf32>
    %c10_83 = arith.constant 10 : index
    %c0_84 = arith.constant 0 : index
    %c0_85 = arith.constant 0 : index
    %86 = vector.load %arg5[%c10_83, %c0_84, %c0_85] : memref<16x16x8xf32, #tpu.memory_space<vmem>>, vector<1x16x8xf32>
    %87 = vector.shape_cast %86 : vector<1x16x8xf32> to vector<16x8xf32>
    %cst_86 = arith.constant dense<0.000000e+00> : vector<16x64xf32>
    %88 = tpu.matmul %87, %85, %cst_86 {dimension_numbers = #tpu.dot_dimension_numbers<[1], [0], [0], [1], [0, 0, 1, 1], [], []>} : vector<16x8xf32>, vector<8x64xf32>, vector<16x64xf32> -> vector<16x64xf32>
    %89 = arith.addf %82, %88 : vector<16x64xf32>
    %c11 = arith.constant 11 : index
    %c0_87 = arith.constant 0 : index
    %c0_88 = arith.constant 0 : index
    %90 = vector.load %arg4[%c11, %c0_87, %c0_88] : memref<16x256x64xf32, #tpu.memory_space<vmem>>, vector<1x256x64xf32>
    %91 = vector.shape_cast %90 : vector<1x256x64xf32> to vector<256x64xf32>
    %cst_89 = arith.constant dense<0.000000e+00> : vector<8x64xf32>
    %92 = tpu.matmul %11, %91, %cst_89 {dimension_numbers = #tpu.dot_dimension_numbers<[1], [0], [0], [1], [0, 0, 1, 1], [], []>} : vector<8x256xf32>, vector<256x64xf32>, vector<8x64xf32> -> vector<8x64xf32>
    %c11_90 = arith.constant 11 : index
    %c0_91 = arith.constant 0 : index
    %c0_92 = arith.constant 0 : index
    %93 = vector.load %arg5[%c11_90, %c0_91, %c0_92] : memref<16x16x8xf32, #tpu.memory_space<vmem>>, vector<1x16x8xf32>
    %94 = vector.shape_cast %93 : vector<1x16x8xf32> to vector<16x8xf32>
    %cst_93 = arith.constant dense<0.000000e+00> : vector<16x64xf32>
    %95 = tpu.matmul %94, %92, %cst_93 {dimension_numbers = #tpu.dot_dimension_numbers<[1], [0], [0], [1], [0, 0, 1, 1], [], []>} : vector<16x8xf32>, vector<8x64xf32>, vector<16x64xf32> -> vector<16x64xf32>
    %96 = arith.addf %89, %95 : vector<16x64xf32>
    %c12 = arith.constant 12 : index
    %c0_94 = arith.constant 0 : index
    %c0_95 = arith.constant 0 : index
    %97 = vector.load %arg4[%c12, %c0_94, %c0_95] : memref<16x256x64xf32, #tpu.memory_space<vmem>>, vector<1x256x64xf32>
    %98 = vector.shape_cast %97 : vector<1x256x64xf32> to vector<256x64xf32>
    %cst_96 = arith.constant dense<0.000000e+00> : vector<8x64xf32>
    %99 = tpu.matmul %11, %98, %cst_96 {dimension_numbers = #tpu.dot_dimension_numbers<[1], [0], [0], [1], [0, 0, 1, 1], [], []>} : vector<8x256xf32>, vector<256x64xf32>, vector<8x64xf32> -> vector<8x64xf32>
    %c12_97 = arith.constant 12 : index
    %c0_98 = arith.constant 0 : index
    %c0_99 = arith.constant 0 : index
    %100 = vector.load %arg5[%c12_97, %c0_98, %c0_99] : memref<16x16x8xf32, #tpu.memory_space<vmem>>, vector<1x16x8xf32>
    %101 = vector.shape_cast %100 : vector<1x16x8xf32> to vector<16x8xf32>
    %cst_100 = arith.constant dense<0.000000e+00> : vector<16x64xf32>
    %102 = tpu.matmul %101, %99, %cst_100 {dimension_numbers = #tpu.dot_dimension_numbers<[1], [0], [0], [1], [0, 0, 1, 1], [], []>} : vector<16x8xf32>, vector<8x64xf32>, vector<16x64xf32> -> vector<16x64xf32>
    %103 = arith.addf %96, %102 : vector<16x64xf32>
    %c13 = arith.constant 13 : index
    %c0_101 = arith.constant 0 : index
    %c0_102 = arith.constant 0 : index
    %104 = vector.load %arg4[%c13, %c0_101, %c0_102] : memref<16x256x64xf32, #tpu.memory_space<vmem>>, vector<1x256x64xf32>
    %105 = vector.shape_cast %104 : vector<1x256x64xf32> to vector<256x64xf32>
    %cst_103 = arith.constant dense<0.000000e+00> : vector<8x64xf32>
    %106 = tpu.matmul %11, %105, %cst_103 {dimension_numbers = #tpu.dot_dimension_numbers<[1], [0], [0], [1], [0, 0, 1, 1], [], []>} : vector<8x256xf32>, vector<256x64xf32>, vector<8x64xf32> -> vector<8x64xf32>
    %c13_104 = arith.constant 13 : index
    %c0_105 = arith.constant 0 : index
    %c0_106 = arith.constant 0 : index
    %107 = vector.load %arg5[%c13_104, %c0_105, %c0_106] : memref<16x16x8xf32, #tpu.memory_space<vmem>>, vector<1x16x8xf32>
    %108 = vector.shape_cast %107 : vector<1x16x8xf32> to vector<16x8xf32>
    %cst_107 = arith.constant dense<0.000000e+00> : vector<16x64xf32>
    %109 = tpu.matmul %108, %106, %cst_107 {dimension_numbers = #tpu.dot_dimension_numbers<[1], [0], [0], [1], [0, 0, 1, 1], [], []>} : vector<16x8xf32>, vector<8x64xf32>, vector<16x64xf32> -> vector<16x64xf32>
    %110 = arith.addf %103, %109 : vector<16x64xf32>
    %c14 = arith.constant 14 : index
    %c0_108 = arith.constant 0 : index
    %c0_109 = arith.constant 0 : index
    %111 = vector.load %arg4[%c14, %c0_108, %c0_109] : memref<16x256x64xf32, #tpu.memory_space<vmem>>, vector<1x256x64xf32>
    %112 = vector.shape_cast %111 : vector<1x256x64xf32> to vector<256x64xf32>
    %cst_110 = arith.constant dense<0.000000e+00> : vector<8x64xf32>
    %113 = tpu.matmul %11, %112, %cst_110 {dimension_numbers = #tpu.dot_dimension_numbers<[1], [0], [0], [1], [0, 0, 1, 1], [], []>} : vector<8x256xf32>, vector<256x64xf32>, vector<8x64xf32> -> vector<8x64xf32>
    %c14_111 = arith.constant 14 : index
    %c0_112 = arith.constant 0 : index
    %c0_113 = arith.constant 0 : index
    %114 = vector.load %arg5[%c14_111, %c0_112, %c0_113] : memref<16x16x8xf32, #tpu.memory_space<vmem>>, vector<1x16x8xf32>
    %115 = vector.shape_cast %114 : vector<1x16x8xf32> to vector<16x8xf32>
    %cst_114 = arith.constant dense<0.000000e+00> : vector<16x64xf32>
    %116 = tpu.matmul %115, %113, %cst_114 {dimension_numbers = #tpu.dot_dimension_numbers<[1], [0], [0], [1], [0, 0, 1, 1], [], []>} : vector<16x8xf32>, vector<8x64xf32>, vector<16x64xf32> -> vector<16x64xf32>
    %117 = arith.addf %110, %116 : vector<16x64xf32>
    %c15 = arith.constant 15 : index
    %c0_115 = arith.constant 0 : index
    %c0_116 = arith.constant 0 : index
    %118 = vector.load %arg4[%c15, %c0_115, %c0_116] : memref<16x256x64xf32, #tpu.memory_space<vmem>>, vector<1x256x64xf32>
    %119 = vector.shape_cast %118 : vector<1x256x64xf32> to vector<256x64xf32>
    %cst_117 = arith.constant dense<0.000000e+00> : vector<8x64xf32>
    %120 = tpu.matmul %11, %119, %cst_117 {dimension_numbers = #tpu.dot_dimension_numbers<[1], [0], [0], [1], [0, 0, 1, 1], [], []>} : vector<8x256xf32>, vector<256x64xf32>, vector<8x64xf32> -> vector<8x64xf32>
    %c15_118 = arith.constant 15 : index
    %c0_119 = arith.constant 0 : index
    %c0_120 = arith.constant 0 : index
    %121 = vector.load %arg5[%c15_118, %c0_119, %c0_120] : memref<16x16x8xf32, #tpu.memory_space<vmem>>, vector<1x16x8xf32>
    %122 = vector.shape_cast %121 : vector<1x16x8xf32> to vector<16x8xf32>
    %cst_121 = arith.constant dense<0.000000e+00> : vector<16x64xf32>
    %123 = tpu.matmul %122, %120, %cst_121 {dimension_numbers = #tpu.dot_dimension_numbers<[1], [0], [0], [1], [0, 0, 1, 1], [], []>} : vector<16x8xf32>, vector<8x64xf32>, vector<16x64xf32> -> vector<16x64xf32>
    %124 = arith.addf %117, %123 : vector<16x64xf32>
    %c0_122 = arith.constant 0 : index
    %c0_123 = arith.constant 0 : index
    %125 = vector.load %arg6[%c0_122, %c0_123] : memref<16x1xf32, #tpu.memory_space<vmem>>, vector<16x1xf32>
    %126 = vector.broadcast %125 : vector<16x1xf32> to vector<16x64xf32>
    %127 = arith.addf %124, %126 : vector<16x64xf32>
    %cst_124 = arith.constant dense<0.000000e+00> : vector<16xf32>
    %128 = vector.multi_reduction <add>, %127, %cst_124 [1] : vector<16x64xf32> to vector<16xf32>
    %129 = vector.shape_cast %128 : vector<16xf32> to vector<16x1xf32>
    %cst_125 = arith.constant 6.400000e+01 : f32
    %130 = vector.broadcast %cst_125 : f32 to vector<16x1xf32>
    %131 = arith.divf %129, %130 : vector<16x1xf32>
    %132 = vector.broadcast %131 : vector<16x1xf32> to vector<16x64xf32>
    %133 = arith.subf %127, %132 : vector<16x64xf32>
    %134 = arith.mulf %133, %133 : vector<16x64xf32>
    %cst_126 = arith.constant dense<0.000000e+00> : vector<16xf32>
    %135 = vector.multi_reduction <add>, %134, %cst_126 [1] : vector<16x64xf32> to vector<16xf32>
    %136 = vector.shape_cast %135 : vector<16xf32> to vector<16x1xf32>
    %cst_127 = arith.constant 6.400000e+01 : f32
    %137 = vector.broadcast %cst_127 : f32 to vector<16x1xf32>
    %138 = arith.divf %136, %137 : vector<16x1xf32>
    %139 = vector.broadcast %131 : vector<16x1xf32> to vector<16x64xf32>
    %140 = arith.subf %127, %139 : vector<16x64xf32>
    %cst_128 = arith.constant 9.99999974E-6 : f32
    %141 = vector.broadcast %cst_128 : f32 to vector<16x1xf32>
    %142 = arith.addf %138, %141 : vector<16x1xf32>
    %143 = math.rsqrt %142 : vector<16x1xf32>
    %144 = vector.broadcast %143 : vector<16x1xf32> to vector<16x64xf32>
    %145 = arith.mulf %140, %144 : vector<16x64xf32>
    %cst_129 = arith.constant 0.000000e+00 : f32
    %146 = vector.broadcast %cst_129 : f32 to vector<16x64xf32>
    %147 = arith.cmpf ogt, %145, %146 : vector<16x64xf32>
    %cst_130 = arith.constant 2.000000e-01 : f32
    %148 = vector.broadcast %cst_130 : f32 to vector<16x64xf32>
    %149 = arith.mulf %148, %145 : vector<16x64xf32>
    %150 = arith.select %147, %145, %149 : vector<16x64xi1>, vector<16x64xf32>
    %cst_131 = arith.constant 0.000000e+00 : f32
    %151 = vector.broadcast %cst_131 : f32 to vector<32x16xf32>
    %c0_132 = arith.constant 0 : index
    %c0_133 = arith.constant 0 : index
    %c0_134 = arith.constant 0 : index
    %152 = vector.load %arg7[%c0_132, %c0_133, %c0_134] : memref<16x64x16xf32, #tpu.memory_space<vmem>>, vector<1x64x16xf32>
    %153 = vector.shape_cast %152 : vector<1x64x16xf32> to vector<64x16xf32>
    %cst_135 = arith.constant dense<0.000000e+00> : vector<16x16xf32>
    %154 = tpu.matmul %150, %153, %cst_135 {dimension_numbers = #tpu.dot_dimension_numbers<[1], [0], [0], [1], [0, 0, 1, 1], [], []>} : vector<16x64xf32>, vector<64x16xf32>, vector<16x16xf32> -> vector<16x16xf32>
    %c0_136 = arith.constant 0 : index
    %c0_137 = arith.constant 0 : index
    %c0_138 = arith.constant 0 : index
    %155 = vector.load %arg8[%c0_136, %c0_137, %c0_138] : memref<16x32x16xf32, #tpu.memory_space<vmem>>, vector<1x32x16xf32>
    %156 = vector.shape_cast %155 : vector<1x32x16xf32> to vector<32x16xf32>
    %cst_139 = arith.constant dense<0.000000e+00> : vector<32x16xf32>
    %157 = tpu.matmul %156, %154, %cst_139 {dimension_numbers = #tpu.dot_dimension_numbers<[1], [0], [0], [1], [0, 0, 1, 1], [], []>} : vector<32x16xf32>, vector<16x16xf32>, vector<32x16xf32> -> vector<32x16xf32>
    %158 = arith.addf %151, %157 : vector<32x16xf32>
    %c1_140 = arith.constant 1 : index
    %c0_141 = arith.constant 0 : index
    %c0_142 = arith.constant 0 : index
    %159 = vector.load %arg7[%c1_140, %c0_141, %c0_142] : memref<16x64x16xf32, #tpu.memory_space<vmem>>, vector<1x64x16xf32>
    %160 = vector.shape_cast %159 : vector<1x64x16xf32> to vector<64x16xf32>
    %cst_143 = arith.constant dense<0.000000e+00> : vector<16x16xf32>
    %161 = tpu.matmul %150, %160, %cst_143 {dimension_numbers = #tpu.dot_dimension_numbers<[1], [0], [0], [1], [0, 0, 1, 1], [], []>} : vector<16x64xf32>, vector<64x16xf32>, vector<16x16xf32> -> vector<16x16xf32>
    %c1_144 = arith.constant 1 : index
    %c0_145 = arith.constant 0 : index
    %c0_146 = arith.constant 0 : index
    %162 = vector.load %arg8[%c1_144, %c0_145, %c0_146] : memref<16x32x16xf32, #tpu.memory_space<vmem>>, vector<1x32x16xf32>
    %163 = vector.shape_cast %162 : vector<1x32x16xf32> to vector<32x16xf32>
    %cst_147 = arith.constant dense<0.000000e+00> : vector<32x16xf32>
    %164 = tpu.matmul %163, %161, %cst_147 {dimension_numbers = #tpu.dot_dimension_numbers<[1], [0], [0], [1], [0, 0, 1, 1], [], []>} : vector<32x16xf32>, vector<16x16xf32>, vector<32x16xf32> -> vector<32x16xf32>
    %165 = arith.addf %158, %164 : vector<32x16xf32>
    %c2_148 = arith.constant 2 : index
    %c0_149 = arith.constant 0 : index
    %c0_150 = arith.constant 0 : index
    %166 = vector.load %arg7[%c2_148, %c0_149, %c0_150] : memref<16x64x16xf32, #tpu.memory_space<vmem>>, vector<1x64x16xf32>
    %167 = vector.shape_cast %166 : vector<1x64x16xf32> to vector<64x16xf32>
    %cst_151 = arith.constant dense<0.000000e+00> : vector<16x16xf32>
    %168 = tpu.matmul %150, %167, %cst_151 {dimension_numbers = #tpu.dot_dimension_numbers<[1], [0], [0], [1], [0, 0, 1, 1], [], []>} : vector<16x64xf32>, vector<64x16xf32>, vector<16x16xf32> -> vector<16x16xf32>
    %c2_152 = arith.constant 2 : index
    %c0_153 = arith.constant 0 : index
    %c0_154 = arith.constant 0 : index
    %169 = vector.load %arg8[%c2_152, %c0_153, %c0_154] : memref<16x32x16xf32, #tpu.memory_space<vmem>>, vector<1x32x16xf32>
    %170 = vector.shape_cast %169 : vector<1x32x16xf32> to vector<32x16xf32>
    %cst_155 = arith.constant dense<0.000000e+00> : vector<32x16xf32>
    %171 = tpu.matmul %170, %168, %cst_155 {dimension_numbers = #tpu.dot_dimension_numbers<[1], [0], [0], [1], [0, 0, 1, 1], [], []>} : vector<32x16xf32>, vector<16x16xf32>, vector<32x16xf32> -> vector<32x16xf32>
    %172 = arith.addf %165, %171 : vector<32x16xf32>
    %c3_156 = arith.constant 3 : index
    %c0_157 = arith.constant 0 : index
    %c0_158 = arith.constant 0 : index
    %173 = vector.load %arg7[%c3_156, %c0_157, %c0_158] : memref<16x64x16xf32, #tpu.memory_space<vmem>>, vector<1x64x16xf32>
    %174 = vector.shape_cast %173 : vector<1x64x16xf32> to vector<64x16xf32>
    %cst_159 = arith.constant dense<0.000000e+00> : vector<16x16xf32>
    %175 = tpu.matmul %150, %174, %cst_159 {dimension_numbers = #tpu.dot_dimension_numbers<[1], [0], [0], [1], [0, 0, 1, 1], [], []>} : vector<16x64xf32>, vector<64x16xf32>, vector<16x16xf32> -> vector<16x16xf32>
    %c3_160 = arith.constant 3 : index
    %c0_161 = arith.constant 0 : index
    %c0_162 = arith.constant 0 : index
    %176 = vector.load %arg8[%c3_160, %c0_161, %c0_162] : memref<16x32x16xf32, #tpu.memory_space<vmem>>, vector<1x32x16xf32>
    %177 = vector.shape_cast %176 : vector<1x32x16xf32> to vector<32x16xf32>
    %cst_163 = arith.constant dense<0.000000e+00> : vector<32x16xf32>
    %178 = tpu.matmul %177, %175, %cst_163 {dimension_numbers = #tpu.dot_dimension_numbers<[1], [0], [0], [1], [0, 0, 1, 1], [], []>} : vector<32x16xf32>, vector<16x16xf32>, vector<32x16xf32> -> vector<32x16xf32>
    %179 = arith.addf %172, %178 : vector<32x16xf32>
    %c4_164 = arith.constant 4 : index
    %c0_165 = arith.constant 0 : index
    %c0_166 = arith.constant 0 : index
    %180 = vector.load %arg7[%c4_164, %c0_165, %c0_166] : memref<16x64x16xf32, #tpu.memory_space<vmem>>, vector<1x64x16xf32>
    %181 = vector.shape_cast %180 : vector<1x64x16xf32> to vector<64x16xf32>
    %cst_167 = arith.constant dense<0.000000e+00> : vector<16x16xf32>
    %182 = tpu.matmul %150, %181, %cst_167 {dimension_numbers = #tpu.dot_dimension_numbers<[1], [0], [0], [1], [0, 0, 1, 1], [], []>} : vector<16x64xf32>, vector<64x16xf32>, vector<16x16xf32> -> vector<16x16xf32>
    %c4_168 = arith.constant 4 : index
    %c0_169 = arith.constant 0 : index
    %c0_170 = arith.constant 0 : index
    %183 = vector.load %arg8[%c4_168, %c0_169, %c0_170] : memref<16x32x16xf32, #tpu.memory_space<vmem>>, vector<1x32x16xf32>
    %184 = vector.shape_cast %183 : vector<1x32x16xf32> to vector<32x16xf32>
    %cst_171 = arith.constant dense<0.000000e+00> : vector<32x16xf32>
    %185 = tpu.matmul %184, %182, %cst_171 {dimension_numbers = #tpu.dot_dimension_numbers<[1], [0], [0], [1], [0, 0, 1, 1], [], []>} : vector<32x16xf32>, vector<16x16xf32>, vector<32x16xf32> -> vector<32x16xf32>
    %186 = arith.addf %179, %185 : vector<32x16xf32>
    %c5_172 = arith.constant 5 : index
    %c0_173 = arith.constant 0 : index
    %c0_174 = arith.constant 0 : index
    %187 = vector.load %arg7[%c5_172, %c0_173, %c0_174] : memref<16x64x16xf32, #tpu.memory_space<vmem>>, vector<1x64x16xf32>
    %188 = vector.shape_cast %187 : vector<1x64x16xf32> to vector<64x16xf32>
    %cst_175 = arith.constant dense<0.000000e+00> : vector<16x16xf32>
    %189 = tpu.matmul %150, %188, %cst_175 {dimension_numbers = #tpu.dot_dimension_numbers<[1], [0], [0], [1], [0, 0, 1, 1], [], []>} : vector<16x64xf32>, vector<64x16xf32>, vector<16x16xf32> -> vector<16x16xf32>
    %c5_176 = arith.constant 5 : index
    %c0_177 = arith.constant 0 : index
    %c0_178 = arith.constant 0 : index
    %190 = vector.load %arg8[%c5_176, %c0_177, %c0_178] : memref<16x32x16xf32, #tpu.memory_space<vmem>>, vector<1x32x16xf32>
    %191 = vector.shape_cast %190 : vector<1x32x16xf32> to vector<32x16xf32>
    %cst_179 = arith.constant dense<0.000000e+00> : vector<32x16xf32>
    %192 = tpu.matmul %191, %189, %cst_179 {dimension_numbers = #tpu.dot_dimension_numbers<[1], [0], [0], [1], [0, 0, 1, 1], [], []>} : vector<32x16xf32>, vector<16x16xf32>, vector<32x16xf32> -> vector<32x16xf32>
    %193 = arith.addf %186, %192 : vector<32x16xf32>
    %c6_180 = arith.constant 6 : index
    %c0_181 = arith.constant 0 : index
    %c0_182 = arith.constant 0 : index
    %194 = vector.load %arg7[%c6_180, %c0_181, %c0_182] : memref<16x64x16xf32, #tpu.memory_space<vmem>>, vector<1x64x16xf32>
    %195 = vector.shape_cast %194 : vector<1x64x16xf32> to vector<64x16xf32>
    %cst_183 = arith.constant dense<0.000000e+00> : vector<16x16xf32>
    %196 = tpu.matmul %150, %195, %cst_183 {dimension_numbers = #tpu.dot_dimension_numbers<[1], [0], [0], [1], [0, 0, 1, 1], [], []>} : vector<16x64xf32>, vector<64x16xf32>, vector<16x16xf32> -> vector<16x16xf32>
    %c6_184 = arith.constant 6 : index
    %c0_185 = arith.constant 0 : index
    %c0_186 = arith.constant 0 : index
    %197 = vector.load %arg8[%c6_184, %c0_185, %c0_186] : memref<16x32x16xf32, #tpu.memory_space<vmem>>, vector<1x32x16xf32>
    %198 = vector.shape_cast %197 : vector<1x32x16xf32> to vector<32x16xf32>
    %cst_187 = arith.constant dense<0.000000e+00> : vector<32x16xf32>
    %199 = tpu.matmul %198, %196, %cst_187 {dimension_numbers = #tpu.dot_dimension_numbers<[1], [0], [0], [1], [0, 0, 1, 1], [], []>} : vector<32x16xf32>, vector<16x16xf32>, vector<32x16xf32> -> vector<32x16xf32>
    %200 = arith.addf %193, %199 : vector<32x16xf32>
    %c7_188 = arith.constant 7 : index
    %c0_189 = arith.constant 0 : index
    %c0_190 = arith.constant 0 : index
    %201 = vector.load %arg7[%c7_188, %c0_189, %c0_190] : memref<16x64x16xf32, #tpu.memory_space<vmem>>, vector<1x64x16xf32>
    %202 = vector.shape_cast %201 : vector<1x64x16xf32> to vector<64x16xf32>
    %cst_191 = arith.constant dense<0.000000e+00> : vector<16x16xf32>
    %203 = tpu.matmul %150, %202, %cst_191 {dimension_numbers = #tpu.dot_dimension_numbers<[1], [0], [0], [1], [0, 0, 1, 1], [], []>} : vector<16x64xf32>, vector<64x16xf32>, vector<16x16xf32> -> vector<16x16xf32>
    %c7_192 = arith.constant 7 : index
    %c0_193 = arith.constant 0 : index
    %c0_194 = arith.constant 0 : index
    %204 = vector.load %arg8[%c7_192, %c0_193, %c0_194] : memref<16x32x16xf32, #tpu.memory_space<vmem>>, vector<1x32x16xf32>
    %205 = vector.shape_cast %204 : vector<1x32x16xf32> to vector<32x16xf32>
    %cst_195 = arith.constant dense<0.000000e+00> : vector<32x16xf32>
    %206 = tpu.matmul %205, %203, %cst_195 {dimension_numbers = #tpu.dot_dimension_numbers<[1], [0], [0], [1], [0, 0, 1, 1], [], []>} : vector<32x16xf32>, vector<16x16xf32>, vector<32x16xf32> -> vector<32x16xf32>
    %207 = arith.addf %200, %206 : vector<32x16xf32>
    %c8_196 = arith.constant 8 : index
    %c0_197 = arith.constant 0 : index
    %c0_198 = arith.constant 0 : index
    %208 = vector.load %arg7[%c8_196, %c0_197, %c0_198] : memref<16x64x16xf32, #tpu.memory_space<vmem>>, vector<1x64x16xf32>
    %209 = vector.shape_cast %208 : vector<1x64x16xf32> to vector<64x16xf32>
    %cst_199 = arith.constant dense<0.000000e+00> : vector<16x16xf32>
    %210 = tpu.matmul %150, %209, %cst_199 {dimension_numbers = #tpu.dot_dimension_numbers<[1], [0], [0], [1], [0, 0, 1, 1], [], []>} : vector<16x64xf32>, vector<64x16xf32>, vector<16x16xf32> -> vector<16x16xf32>
    %c8_200 = arith.constant 8 : index
    %c0_201 = arith.constant 0 : index
    %c0_202 = arith.constant 0 : index
    %211 = vector.load %arg8[%c8_200, %c0_201, %c0_202] : memref<16x32x16xf32, #tpu.memory_space<vmem>>, vector<1x32x16xf32>
    %212 = vector.shape_cast %211 : vector<1x32x16xf32> to vector<32x16xf32>
    %cst_203 = arith.constant dense<0.000000e+00> : vector<32x16xf32>
    %213 = tpu.matmul %212, %210, %cst_203 {dimension_numbers = #tpu.dot_dimension_numbers<[1], [0], [0], [1], [0, 0, 1, 1], [], []>} : vector<32x16xf32>, vector<16x16xf32>, vector<32x16xf32> -> vector<32x16xf32>
    %214 = arith.addf %207, %213 : vector<32x16xf32>
    %c9_204 = arith.constant 9 : index
    %c0_205 = arith.constant 0 : index
    %c0_206 = arith.constant 0 : index
    %215 = vector.load %arg7[%c9_204, %c0_205, %c0_206] : memref<16x64x16xf32, #tpu.memory_space<vmem>>, vector<1x64x16xf32>
    %216 = vector.shape_cast %215 : vector<1x64x16xf32> to vector<64x16xf32>
    %cst_207 = arith.constant dense<0.000000e+00> : vector<16x16xf32>
    %217 = tpu.matmul %150, %216, %cst_207 {dimension_numbers = #tpu.dot_dimension_numbers<[1], [0], [0], [1], [0, 0, 1, 1], [], []>} : vector<16x64xf32>, vector<64x16xf32>, vector<16x16xf32> -> vector<16x16xf32>
    %c9_208 = arith.constant 9 : index
    %c0_209 = arith.constant 0 : index
    %c0_210 = arith.constant 0 : index
    %218 = vector.load %arg8[%c9_208, %c0_209, %c0_210] : memref<16x32x16xf32, #tpu.memory_space<vmem>>, vector<1x32x16xf32>
    %219 = vector.shape_cast %218 : vector<1x32x16xf32> to vector<32x16xf32>
    %cst_211 = arith.constant dense<0.000000e+00> : vector<32x16xf32>
    %220 = tpu.matmul %219, %217, %cst_211 {dimension_numbers = #tpu.dot_dimension_numbers<[1], [0], [0], [1], [0, 0, 1, 1], [], []>} : vector<32x16xf32>, vector<16x16xf32>, vector<32x16xf32> -> vector<32x16xf32>
    %221 = arith.addf %214, %220 : vector<32x16xf32>
    %c10_212 = arith.constant 10 : index
    %c0_213 = arith.constant 0 : index
    %c0_214 = arith.constant 0 : index
    %222 = vector.load %arg7[%c10_212, %c0_213, %c0_214] : memref<16x64x16xf32, #tpu.memory_space<vmem>>, vector<1x64x16xf32>
    %223 = vector.shape_cast %222 : vector<1x64x16xf32> to vector<64x16xf32>
    %cst_215 = arith.constant dense<0.000000e+00> : vector<16x16xf32>
    %224 = tpu.matmul %150, %223, %cst_215 {dimension_numbers = #tpu.dot_dimension_numbers<[1], [0], [0], [1], [0, 0, 1, 1], [], []>} : vector<16x64xf32>, vector<64x16xf32>, vector<16x16xf32> -> vector<16x16xf32>
    %c10_216 = arith.constant 10 : index
    %c0_217 = arith.constant 0 : index
    %c0_218 = arith.constant 0 : index
    %225 = vector.load %arg8[%c10_216, %c0_217, %c0_218] : memref<16x32x16xf32, #tpu.memory_space<vmem>>, vector<1x32x16xf32>
    %226 = vector.shape_cast %225 : vector<1x32x16xf32> to vector<32x16xf32>
    %cst_219 = arith.constant dense<0.000000e+00> : vector<32x16xf32>
    %227 = tpu.matmul %226, %224, %cst_219 {dimension_numbers = #tpu.dot_dimension_numbers<[1], [0], [0], [1], [0, 0, 1, 1], [], []>} : vector<32x16xf32>, vector<16x16xf32>, vector<32x16xf32> -> vector<32x16xf32>
    %228 = arith.addf %221, %227 : vector<32x16xf32>
    %c11_220 = arith.constant 11 : index
    %c0_221 = arith.constant 0 : index
    %c0_222 = arith.constant 0 : index
    %229 = vector.load %arg7[%c11_220, %c0_221, %c0_222] : memref<16x64x16xf32, #tpu.memory_space<vmem>>, vector<1x64x16xf32>
    %230 = vector.shape_cast %229 : vector<1x64x16xf32> to vector<64x16xf32>
    %cst_223 = arith.constant dense<0.000000e+00> : vector<16x16xf32>
    %231 = tpu.matmul %150, %230, %cst_223 {dimension_numbers = #tpu.dot_dimension_numbers<[1], [0], [0], [1], [0, 0, 1, 1], [], []>} : vector<16x64xf32>, vector<64x16xf32>, vector<16x16xf32> -> vector<16x16xf32>
    %c11_224 = arith.constant 11 : index
    %c0_225 = arith.constant 0 : index
    %c0_226 = arith.constant 0 : index
    %232 = vector.load %arg8[%c11_224, %c0_225, %c0_226] : memref<16x32x16xf32, #tpu.memory_space<vmem>>, vector<1x32x16xf32>
    %233 = vector.shape_cast %232 : vector<1x32x16xf32> to vector<32x16xf32>
    %cst_227 = arith.constant dense<0.000000e+00> : vector<32x16xf32>
    %234 = tpu.matmul %233, %231, %cst_227 {dimension_numbers = #tpu.dot_dimension_numbers<[1], [0], [0], [1], [0, 0, 1, 1], [], []>} : vector<32x16xf32>, vector<16x16xf32>, vector<32x16xf32> -> vector<32x16xf32>
    %235 = arith.addf %228, %234 : vector<32x16xf32>
    %c12_228 = arith.constant 12 : index
    %c0_229 = arith.constant 0 : index
    %c0_230 = arith.constant 0 : index
    %236 = vector.load %arg7[%c12_228, %c0_229, %c0_230] : memref<16x64x16xf32, #tpu.memory_space<vmem>>, vector<1x64x16xf32>
    %237 = vector.shape_cast %236 : vector<1x64x16xf32> to vector<64x16xf32>
    %cst_231 = arith.constant dense<0.000000e+00> : vector<16x16xf32>
    %238 = tpu.matmul %150, %237, %cst_231 {dimension_numbers = #tpu.dot_dimension_numbers<[1], [0], [0], [1], [0, 0, 1, 1], [], []>} : vector<16x64xf32>, vector<64x16xf32>, vector<16x16xf32> -> vector<16x16xf32>
    %c12_232 = arith.constant 12 : index
    %c0_233 = arith.constant 0 : index
    %c0_234 = arith.constant 0 : index
    %239 = vector.load %arg8[%c12_232, %c0_233, %c0_234] : memref<16x32x16xf32, #tpu.memory_space<vmem>>, vector<1x32x16xf32>
    %240 = vector.shape_cast %239 : vector<1x32x16xf32> to vector<32x16xf32>
    %cst_235 = arith.constant dense<0.000000e+00> : vector<32x16xf32>
    %241 = tpu.matmul %240, %238, %cst_235 {dimension_numbers = #tpu.dot_dimension_numbers<[1], [0], [0], [1], [0, 0, 1, 1], [], []>} : vector<32x16xf32>, vector<16x16xf32>, vector<32x16xf32> -> vector<32x16xf32>
    %242 = arith.addf %235, %241 : vector<32x16xf32>
    %c13_236 = arith.constant 13 : index
    %c0_237 = arith.constant 0 : index
    %c0_238 = arith.constant 0 : index
    %243 = vector.load %arg7[%c13_236, %c0_237, %c0_238] : memref<16x64x16xf32, #tpu.memory_space<vmem>>, vector<1x64x16xf32>
    %244 = vector.shape_cast %243 : vector<1x64x16xf32> to vector<64x16xf32>
    %cst_239 = arith.constant dense<0.000000e+00> : vector<16x16xf32>
    %245 = tpu.matmul %150, %244, %cst_239 {dimension_numbers = #tpu.dot_dimension_numbers<[1], [0], [0], [1], [0, 0, 1, 1], [], []>} : vector<16x64xf32>, vector<64x16xf32>, vector<16x16xf32> -> vector<16x16xf32>
    %c13_240 = arith.constant 13 : index
    %c0_241 = arith.constant 0 : index
    %c0_242 = arith.constant 0 : index
    %246 = vector.load %arg8[%c13_240, %c0_241, %c0_242] : memref<16x32x16xf32, #tpu.memory_space<vmem>>, vector<1x32x16xf32>
    %247 = vector.shape_cast %246 : vector<1x32x16xf32> to vector<32x16xf32>
    %cst_243 = arith.constant dense<0.000000e+00> : vector<32x16xf32>
    %248 = tpu.matmul %247, %245, %cst_243 {dimension_numbers = #tpu.dot_dimension_numbers<[1], [0], [0], [1], [0, 0, 1, 1], [], []>} : vector<32x16xf32>, vector<16x16xf32>, vector<32x16xf32> -> vector<32x16xf32>
    %249 = arith.addf %242, %248 : vector<32x16xf32>
    %c14_244 = arith.constant 14 : index
    %c0_245 = arith.constant 0 : index
    %c0_246 = arith.constant 0 : index
    %250 = vector.load %arg7[%c14_244, %c0_245, %c0_246] : memref<16x64x16xf32, #tpu.memory_space<vmem>>, vector<1x64x16xf32>
    %251 = vector.shape_cast %250 : vector<1x64x16xf32> to vector<64x16xf32>
    %cst_247 = arith.constant dense<0.000000e+00> : vector<16x16xf32>
    %252 = tpu.matmul %150, %251, %cst_247 {dimension_numbers = #tpu.dot_dimension_numbers<[1], [0], [0], [1], [0, 0, 1, 1], [], []>} : vector<16x64xf32>, vector<64x16xf32>, vector<16x16xf32> -> vector<16x16xf32>
    %c14_248 = arith.constant 14 : index
    %c0_249 = arith.constant 0 : index
    %c0_250 = arith.constant 0 : index
    %253 = vector.load %arg8[%c14_248, %c0_249, %c0_250] : memref<16x32x16xf32, #tpu.memory_space<vmem>>, vector<1x32x16xf32>
    %254 = vector.shape_cast %253 : vector<1x32x16xf32> to vector<32x16xf32>
    %cst_251 = arith.constant dense<0.000000e+00> : vector<32x16xf32>
    %255 = tpu.matmul %254, %252, %cst_251 {dimension_numbers = #tpu.dot_dimension_numbers<[1], [0], [0], [1], [0, 0, 1, 1], [], []>} : vector<32x16xf32>, vector<16x16xf32>, vector<32x16xf32> -> vector<32x16xf32>
    %256 = arith.addf %249, %255 : vector<32x16xf32>
    %c15_252 = arith.constant 15 : index
    %c0_253 = arith.constant 0 : index
    %c0_254 = arith.constant 0 : index
    %257 = vector.load %arg7[%c15_252, %c0_253, %c0_254] : memref<16x64x16xf32, #tpu.memory_space<vmem>>, vector<1x64x16xf32>
    %258 = vector.shape_cast %257 : vector<1x64x16xf32> to vector<64x16xf32>
    %cst_255 = arith.constant dense<0.000000e+00> : vector<16x16xf32>
    %259 = tpu.matmul %150, %258, %cst_255 {dimension_numbers = #tpu.dot_dimension_numbers<[1], [0], [0], [1], [0, 0, 1, 1], [], []>} : vector<16x64xf32>, vector<64x16xf32>, vector<16x16xf32> -> vector<16x16xf32>
    %c15_256 = arith.constant 15 : index
    %c0_257 = arith.constant 0 : index
    %c0_258 = arith.constant 0 : index
    %260 = vector.load %arg8[%c15_256, %c0_257, %c0_258] : memref<16x32x16xf32, #tpu.memory_space<vmem>>, vector<1x32x16xf32>
    %261 = vector.shape_cast %260 : vector<1x32x16xf32> to vector<32x16xf32>
    %cst_259 = arith.constant dense<0.000000e+00> : vector<32x16xf32>
    %262 = tpu.matmul %261, %259, %cst_259 {dimension_numbers = #tpu.dot_dimension_numbers<[1], [0], [0], [1], [0, 0, 1, 1], [], []>} : vector<32x16xf32>, vector<16x16xf32>, vector<32x16xf32> -> vector<32x16xf32>
    %263 = arith.addf %256, %262 : vector<32x16xf32>
    %c0_260 = arith.constant 0 : index
    %c0_261 = arith.constant 0 : index
    %264 = vector.load %arg9[%c0_260, %c0_261] : memref<32x1xf32, #tpu.memory_space<vmem>>, vector<32x1xf32>
    %265 = vector.broadcast %264 : vector<32x1xf32> to vector<32x16xf32>
    %266 = arith.addf %263, %265 : vector<32x16xf32>
    %cst_262 = arith.constant dense<0.000000e+00> : vector<32xf32>
    %267 = vector.multi_reduction <add>, %266, %cst_262 [1] : vector<32x16xf32> to vector<32xf32>
    %268 = vector.shape_cast %267 : vector<32xf32> to vector<32x1xf32>
    %cst_263 = arith.constant 1.600000e+01 : f32
    %269 = vector.broadcast %cst_263 : f32 to vector<32x1xf32>
    %270 = arith.divf %268, %269 : vector<32x1xf32>
    %271 = vector.broadcast %270 : vector<32x1xf32> to vector<32x16xf32>
    %272 = arith.subf %266, %271 : vector<32x16xf32>
    %273 = arith.mulf %272, %272 : vector<32x16xf32>
    %cst_264 = arith.constant dense<0.000000e+00> : vector<32xf32>
    %274 = vector.multi_reduction <add>, %273, %cst_264 [1] : vector<32x16xf32> to vector<32xf32>
    %275 = vector.shape_cast %274 : vector<32xf32> to vector<32x1xf32>
    %cst_265 = arith.constant 1.600000e+01 : f32
    %276 = vector.broadcast %cst_265 : f32 to vector<32x1xf32>
    %277 = arith.divf %275, %276 : vector<32x1xf32>
    %278 = vector.broadcast %270 : vector<32x1xf32> to vector<32x16xf32>
    %279 = arith.subf %266, %278 : vector<32x16xf32>
    %cst_266 = arith.constant 9.99999974E-6 : f32
    %280 = vector.broadcast %cst_266 : f32 to vector<32x1xf32>
    %281 = arith.addf %277, %280 : vector<32x1xf32>
    %282 = math.rsqrt %281 : vector<32x1xf32>
    %283 = vector.broadcast %282 : vector<32x1xf32> to vector<32x16xf32>
    %284 = arith.mulf %279, %283 : vector<32x16xf32>
    %cst_267 = arith.constant 0.000000e+00 : f32
    %285 = vector.broadcast %cst_267 : f32 to vector<32x16xf32>
    %286 = arith.cmpf ogt, %284, %285 : vector<32x16xf32>
    %cst_268 = arith.constant 2.000000e-01 : f32
    %287 = vector.broadcast %cst_268 : f32 to vector<32x16xf32>
    %288 = arith.mulf %287, %284 : vector<32x16xf32>
    %289 = arith.select %286, %284, %288 : vector<32x16xi1>, vector<32x16xf32>
    %cst_269 = arith.constant 0.000000e+00 : f32
    %290 = vector.broadcast %cst_269 : f32 to vector<64x9xf32>
    %c0_270 = arith.constant 0 : index
    %c0_271 = arith.constant 0 : index
    %c0_272 = arith.constant 0 : index
    %291 = vector.load %arg10[%c0_270, %c0_271, %c0_272] : memref<16x16x9xf32, #tpu.memory_space<vmem>>, vector<1x16x9xf32>
    %292 = vector.shape_cast %291 : vector<1x16x9xf32> to vector<16x9xf32>
    %cst_273 = arith.constant dense<0.000000e+00> : vector<32x9xf32>
    %293 = tpu.matmul %289, %292, %cst_273 {dimension_numbers = #tpu.dot_dimension_numbers<[1], [0], [0], [1], [0, 0, 1, 1], [], []>} : vector<32x16xf32>, vector<16x9xf32>, vector<32x9xf32> -> vector<32x9xf32>
    %c0_274 = arith.constant 0 : index
    %c0_275 = arith.constant 0 : index
    %c0_276 = arith.constant 0 : index
    %294 = vector.load %arg11[%c0_274, %c0_275, %c0_276] : memref<16x64x32xf32, #tpu.memory_space<vmem>>, vector<1x64x32xf32>
    %295 = vector.shape_cast %294 : vector<1x64x32xf32> to vector<64x32xf32>
    %cst_277 = arith.constant dense<0.000000e+00> : vector<64x9xf32>
    %296 = tpu.matmul %295, %293, %cst_277 {dimension_numbers = #tpu.dot_dimension_numbers<[1], [0], [0], [1], [0, 0, 1, 1], [], []>} : vector<64x32xf32>, vector<32x9xf32>, vector<64x9xf32> -> vector<64x9xf32>
    %297 = arith.addf %290, %296 : vector<64x9xf32>
    %c1_278 = arith.constant 1 : index
    %c0_279 = arith.constant 0 : index
    %c0_280 = arith.constant 0 : index
    %298 = vector.load %arg10[%c1_278, %c0_279, %c0_280] : memref<16x16x9xf32, #tpu.memory_space<vmem>>, vector<1x16x9xf32>
    %299 = vector.shape_cast %298 : vector<1x16x9xf32> to vector<16x9xf32>
    %cst_281 = arith.constant dense<0.000000e+00> : vector<32x9xf32>
    %300 = tpu.matmul %289, %299, %cst_281 {dimension_numbers = #tpu.dot_dimension_numbers<[1], [0], [0], [1], [0, 0, 1, 1], [], []>} : vector<32x16xf32>, vector<16x9xf32>, vector<32x9xf32> -> vector<32x9xf32>
    %c1_282 = arith.constant 1 : index
    %c0_283 = arith.constant 0 : index
    %c0_284 = arith.constant 0 : index
    %301 = vector.load %arg11[%c1_282, %c0_283, %c0_284] : memref<16x64x32xf32, #tpu.memory_space<vmem>>, vector<1x64x32xf32>
    %302 = vector.shape_cast %301 : vector<1x64x32xf32> to vector<64x32xf32>
    %cst_285 = arith.constant dense<0.000000e+00> : vector<64x9xf32>
    %303 = tpu.matmul %302, %300, %cst_285 {dimension_numbers = #tpu.dot_dimension_numbers<[1], [0], [0], [1], [0, 0, 1, 1], [], []>} : vector<64x32xf32>, vector<32x9xf32>, vector<64x9xf32> -> vector<64x9xf32>
    %304 = arith.addf %297, %303 : vector<64x9xf32>
    %c2_286 = arith.constant 2 : index
    %c0_287 = arith.constant 0 : index
    %c0_288 = arith.constant 0 : index
    %305 = vector.load %arg10[%c2_286, %c0_287, %c0_288] : memref<16x16x9xf32, #tpu.memory_space<vmem>>, vector<1x16x9xf32>
    %306 = vector.shape_cast %305 : vector<1x16x9xf32> to vector<16x9xf32>
    %cst_289 = arith.constant dense<0.000000e+00> : vector<32x9xf32>
    %307 = tpu.matmul %289, %306, %cst_289 {dimension_numbers = #tpu.dot_dimension_numbers<[1], [0], [0], [1], [0, 0, 1, 1], [], []>} : vector<32x16xf32>, vector<16x9xf32>, vector<32x9xf32> -> vector<32x9xf32>
    %c2_290 = arith.constant 2 : index
    %c0_291 = arith.constant 0 : index
    %c0_292 = arith.constant 0 : index
    %308 = vector.load %arg11[%c2_290, %c0_291, %c0_292] : memref<16x64x32xf32, #tpu.memory_space<vmem>>, vector<1x64x32xf32>
    %309 = vector.shape_cast %308 : vector<1x64x32xf32> to vector<64x32xf32>
    %cst_293 = arith.constant dense<0.000000e+00> : vector<64x9xf32>
    %310 = tpu.matmul %309, %307, %cst_293 {dimension_numbers = #tpu.dot_dimension_numbers<[1], [0], [0], [1], [0, 0, 1, 1], [], []>} : vector<64x32xf32>, vector<32x9xf32>, vector<64x9xf32> -> vector<64x9xf32>
    %311 = arith.addf %304, %310 : vector<64x9xf32>
    %c3_294 = arith.constant 3 : index
    %c0_295 = arith.constant 0 : index
    %c0_296 = arith.constant 0 : index
    %312 = vector.load %arg10[%c3_294, %c0_295, %c0_296] : memref<16x16x9xf32, #tpu.memory_space<vmem>>, vector<1x16x9xf32>
    %313 = vector.shape_cast %312 : vector<1x16x9xf32> to vector<16x9xf32>
    %cst_297 = arith.constant dense<0.000000e+00> : vector<32x9xf32>
    %314 = tpu.matmul %289, %313, %cst_297 {dimension_numbers = #tpu.dot_dimension_numbers<[1], [0], [0], [1], [0, 0, 1, 1], [], []>} : vector<32x16xf32>, vector<16x9xf32>, vector<32x9xf32> -> vector<32x9xf32>
    %c3_298 = arith.constant 3 : index
    %c0_299 = arith.constant 0 : index
    %c0_300 = arith.constant 0 : index
    %315 = vector.load %arg11[%c3_298, %c0_299, %c0_300] : memref<16x64x32xf32, #tpu.memory_space<vmem>>, vector<1x64x32xf32>
    %316 = vector.shape_cast %315 : vector<1x64x32xf32> to vector<64x32xf32>
    %cst_301 = arith.constant dense<0.000000e+00> : vector<64x9xf32>
    %317 = tpu.matmul %316, %314, %cst_301 {dimension_numbers = #tpu.dot_dimension_numbers<[1], [0], [0], [1], [0, 0, 1, 1], [], []>} : vector<64x32xf32>, vector<32x9xf32>, vector<64x9xf32> -> vector<64x9xf32>
    %318 = arith.addf %311, %317 : vector<64x9xf32>
    %c4_302 = arith.constant 4 : index
    %c0_303 = arith.constant 0 : index
    %c0_304 = arith.constant 0 : index
    %319 = vector.load %arg10[%c4_302, %c0_303, %c0_304] : memref<16x16x9xf32, #tpu.memory_space<vmem>>, vector<1x16x9xf32>
    %320 = vector.shape_cast %319 : vector<1x16x9xf32> to vector<16x9xf32>
    %cst_305 = arith.constant dense<0.000000e+00> : vector<32x9xf32>
    %321 = tpu.matmul %289, %320, %cst_305 {dimension_numbers = #tpu.dot_dimension_numbers<[1], [0], [0], [1], [0, 0, 1, 1], [], []>} : vector<32x16xf32>, vector<16x9xf32>, vector<32x9xf32> -> vector<32x9xf32>
    %c4_306 = arith.constant 4 : index
    %c0_307 = arith.constant 0 : index
    %c0_308 = arith.constant 0 : index
    %322 = vector.load %arg11[%c4_306, %c0_307, %c0_308] : memref<16x64x32xf32, #tpu.memory_space<vmem>>, vector<1x64x32xf32>
    %323 = vector.shape_cast %322 : vector<1x64x32xf32> to vector<64x32xf32>
    %cst_309 = arith.constant dense<0.000000e+00> : vector<64x9xf32>
    %324 = tpu.matmul %323, %321, %cst_309 {dimension_numbers = #tpu.dot_dimension_numbers<[1], [0], [0], [1], [0, 0, 1, 1], [], []>} : vector<64x32xf32>, vector<32x9xf32>, vector<64x9xf32> -> vector<64x9xf32>
    %325 = arith.addf %318, %324 : vector<64x9xf32>
    %c5_310 = arith.constant 5 : index
    %c0_311 = arith.constant 0 : index
    %c0_312 = arith.constant 0 : index
    %326 = vector.load %arg10[%c5_310, %c0_311, %c0_312] : memref<16x16x9xf32, #tpu.memory_space<vmem>>, vector<1x16x9xf32>
    %327 = vector.shape_cast %326 : vector<1x16x9xf32> to vector<16x9xf32>
    %cst_313 = arith.constant dense<0.000000e+00> : vector<32x9xf32>
    %328 = tpu.matmul %289, %327, %cst_313 {dimension_numbers = #tpu.dot_dimension_numbers<[1], [0], [0], [1], [0, 0, 1, 1], [], []>} : vector<32x16xf32>, vector<16x9xf32>, vector<32x9xf32> -> vector<32x9xf32>
    %c5_314 = arith.constant 5 : index
    %c0_315 = arith.constant 0 : index
    %c0_316 = arith.constant 0 : index
    %329 = vector.load %arg11[%c5_314, %c0_315, %c0_316] : memref<16x64x32xf32, #tpu.memory_space<vmem>>, vector<1x64x32xf32>
    %330 = vector.shape_cast %329 : vector<1x64x32xf32> to vector<64x32xf32>
    %cst_317 = arith.constant dense<0.000000e+00> : vector<64x9xf32>
    %331 = tpu.matmul %330, %328, %cst_317 {dimension_numbers = #tpu.dot_dimension_numbers<[1], [0], [0], [1], [0, 0, 1, 1], [], []>} : vector<64x32xf32>, vector<32x9xf32>, vector<64x9xf32> -> vector<64x9xf32>
    %332 = arith.addf %325, %331 : vector<64x9xf32>
    %c6_318 = arith.constant 6 : index
    %c0_319 = arith.constant 0 : index
    %c0_320 = arith.constant 0 : index
    %333 = vector.load %arg10[%c6_318, %c0_319, %c0_320] : memref<16x16x9xf32, #tpu.memory_space<vmem>>, vector<1x16x9xf32>
    %334 = vector.shape_cast %333 : vector<1x16x9xf32> to vector<16x9xf32>
    %cst_321 = arith.constant dense<0.000000e+00> : vector<32x9xf32>
    %335 = tpu.matmul %289, %334, %cst_321 {dimension_numbers = #tpu.dot_dimension_numbers<[1], [0], [0], [1], [0, 0, 1, 1], [], []>} : vector<32x16xf32>, vector<16x9xf32>, vector<32x9xf32> -> vector<32x9xf32>
    %c6_322 = arith.constant 6 : index
    %c0_323 = arith.constant 0 : index
    %c0_324 = arith.constant 0 : index
    %336 = vector.load %arg11[%c6_322, %c0_323, %c0_324] : memref<16x64x32xf32, #tpu.memory_space<vmem>>, vector<1x64x32xf32>
    %337 = vector.shape_cast %336 : vector<1x64x32xf32> to vector<64x32xf32>
    %cst_325 = arith.constant dense<0.000000e+00> : vector<64x9xf32>
    %338 = tpu.matmul %337, %335, %cst_325 {dimension_numbers = #tpu.dot_dimension_numbers<[1], [0], [0], [1], [0, 0, 1, 1], [], []>} : vector<64x32xf32>, vector<32x9xf32>, vector<64x9xf32> -> vector<64x9xf32>
    %339 = arith.addf %332, %338 : vector<64x9xf32>
    %c7_326 = arith.constant 7 : index
    %c0_327 = arith.constant 0 : index
    %c0_328 = arith.constant 0 : index
    %340 = vector.load %arg10[%c7_326, %c0_327, %c0_328] : memref<16x16x9xf32, #tpu.memory_space<vmem>>, vector<1x16x9xf32>
    %341 = vector.shape_cast %340 : vector<1x16x9xf32> to vector<16x9xf32>
    %cst_329 = arith.constant dense<0.000000e+00> : vector<32x9xf32>
    %342 = tpu.matmul %289, %341, %cst_329 {dimension_numbers = #tpu.dot_dimension_numbers<[1], [0], [0], [1], [0, 0, 1, 1], [], []>} : vector<32x16xf32>, vector<16x9xf32>, vector<32x9xf32> -> vector<32x9xf32>
    %c7_330 = arith.constant 7 : index
    %c0_331 = arith.constant 0 : index
    %c0_332 = arith.constant 0 : index
    %343 = vector.load %arg11[%c7_330, %c0_331, %c0_332] : memref<16x64x32xf32, #tpu.memory_space<vmem>>, vector<1x64x32xf32>
    %344 = vector.shape_cast %343 : vector<1x64x32xf32> to vector<64x32xf32>
    %cst_333 = arith.constant dense<0.000000e+00> : vector<64x9xf32>
    %345 = tpu.matmul %344, %342, %cst_333 {dimension_numbers = #tpu.dot_dimension_numbers<[1], [0], [0], [1], [0, 0, 1, 1], [], []>} : vector<64x32xf32>, vector<32x9xf32>, vector<64x9xf32> -> vector<64x9xf32>
    %346 = arith.addf %339, %345 : vector<64x9xf32>
    %c8_334 = arith.constant 8 : index
    %c0_335 = arith.constant 0 : index
    %c0_336 = arith.constant 0 : index
    %347 = vector.load %arg10[%c8_334, %c0_335, %c0_336] : memref<16x16x9xf32, #tpu.memory_space<vmem>>, vector<1x16x9xf32>
    %348 = vector.shape_cast %347 : vector<1x16x9xf32> to vector<16x9xf32>
    %cst_337 = arith.constant dense<0.000000e+00> : vector<32x9xf32>
    %349 = tpu.matmul %289, %348, %cst_337 {dimension_numbers = #tpu.dot_dimension_numbers<[1], [0], [0], [1], [0, 0, 1, 1], [], []>} : vector<32x16xf32>, vector<16x9xf32>, vector<32x9xf32> -> vector<32x9xf32>
    %c8_338 = arith.constant 8 : index
    %c0_339 = arith.constant 0 : index
    %c0_340 = arith.constant 0 : index
    %350 = vector.load %arg11[%c8_338, %c0_339, %c0_340] : memref<16x64x32xf32, #tpu.memory_space<vmem>>, vector<1x64x32xf32>
    %351 = vector.shape_cast %350 : vector<1x64x32xf32> to vector<64x32xf32>
    %cst_341 = arith.constant dense<0.000000e+00> : vector<64x9xf32>
    %352 = tpu.matmul %351, %349, %cst_341 {dimension_numbers = #tpu.dot_dimension_numbers<[1], [0], [0], [1], [0, 0, 1, 1], [], []>} : vector<64x32xf32>, vector<32x9xf32>, vector<64x9xf32> -> vector<64x9xf32>
    %353 = arith.addf %346, %352 : vector<64x9xf32>
    %c9_342 = arith.constant 9 : index
    %c0_343 = arith.constant 0 : index
    %c0_344 = arith.constant 0 : index
    %354 = vector.load %arg10[%c9_342, %c0_343, %c0_344] : memref<16x16x9xf32, #tpu.memory_space<vmem>>, vector<1x16x9xf32>
    %355 = vector.shape_cast %354 : vector<1x16x9xf32> to vector<16x9xf32>
    %cst_345 = arith.constant dense<0.000000e+00> : vector<32x9xf32>
    %356 = tpu.matmul %289, %355, %cst_345 {dimension_numbers = #tpu.dot_dimension_numbers<[1], [0], [0], [1], [0, 0, 1, 1], [], []>} : vector<32x16xf32>, vector<16x9xf32>, vector<32x9xf32> -> vector<32x9xf32>
    %c9_346 = arith.constant 9 : index
    %c0_347 = arith.constant 0 : index
    %c0_348 = arith.constant 0 : index
    %357 = vector.load %arg11[%c9_346, %c0_347, %c0_348] : memref<16x64x32xf32, #tpu.memory_space<vmem>>, vector<1x64x32xf32>
    %358 = vector.shape_cast %357 : vector<1x64x32xf32> to vector<64x32xf32>
    %cst_349 = arith.constant dense<0.000000e+00> : vector<64x9xf32>
    %359 = tpu.matmul %358, %356, %cst_349 {dimension_numbers = #tpu.dot_dimension_numbers<[1], [0], [0], [1], [0, 0, 1, 1], [], []>} : vector<64x32xf32>, vector<32x9xf32>, vector<64x9xf32> -> vector<64x9xf32>
    %360 = arith.addf %353, %359 : vector<64x9xf32>
    %c10_350 = arith.constant 10 : index
    %c0_351 = arith.constant 0 : index
    %c0_352 = arith.constant 0 : index
    %361 = vector.load %arg10[%c10_350, %c0_351, %c0_352] : memref<16x16x9xf32, #tpu.memory_space<vmem>>, vector<1x16x9xf32>
    %362 = vector.shape_cast %361 : vector<1x16x9xf32> to vector<16x9xf32>
    %cst_353 = arith.constant dense<0.000000e+00> : vector<32x9xf32>
    %363 = tpu.matmul %289, %362, %cst_353 {dimension_numbers = #tpu.dot_dimension_numbers<[1], [0], [0], [1], [0, 0, 1, 1], [], []>} : vector<32x16xf32>, vector<16x9xf32>, vector<32x9xf32> -> vector<32x9xf32>
    %c10_354 = arith.constant 10 : index
    %c0_355 = arith.constant 0 : index
    %c0_356 = arith.constant 0 : index
    %364 = vector.load %arg11[%c10_354, %c0_355, %c0_356] : memref<16x64x32xf32, #tpu.memory_space<vmem>>, vector<1x64x32xf32>
    %365 = vector.shape_cast %364 : vector<1x64x32xf32> to vector<64x32xf32>
    %cst_357 = arith.constant dense<0.000000e+00> : vector<64x9xf32>
    %366 = tpu.matmul %365, %363, %cst_357 {dimension_numbers = #tpu.dot_dimension_numbers<[1], [0], [0], [1], [0, 0, 1, 1], [], []>} : vector<64x32xf32>, vector<32x9xf32>, vector<64x9xf32> -> vector<64x9xf32>
    %367 = arith.addf %360, %366 : vector<64x9xf32>
    %c11_358 = arith.constant 11 : index
    %c0_359 = arith.constant 0 : index
    %c0_360 = arith.constant 0 : index
    %368 = vector.load %arg10[%c11_358, %c0_359, %c0_360] : memref<16x16x9xf32, #tpu.memory_space<vmem>>, vector<1x16x9xf32>
    %369 = vector.shape_cast %368 : vector<1x16x9xf32> to vector<16x9xf32>
    %cst_361 = arith.constant dense<0.000000e+00> : vector<32x9xf32>
    %370 = tpu.matmul %289, %369, %cst_361 {dimension_numbers = #tpu.dot_dimension_numbers<[1], [0], [0], [1], [0, 0, 1, 1], [], []>} : vector<32x16xf32>, vector<16x9xf32>, vector<32x9xf32> -> vector<32x9xf32>
    %c11_362 = arith.constant 11 : index
    %c0_363 = arith.constant 0 : index
    %c0_364 = arith.constant 0 : index
    %371 = vector.load %arg11[%c11_362, %c0_363, %c0_364] : memref<16x64x32xf32, #tpu.memory_space<vmem>>, vector<1x64x32xf32>
    %372 = vector.shape_cast %371 : vector<1x64x32xf32> to vector<64x32xf32>
    %cst_365 = arith.constant dense<0.000000e+00> : vector<64x9xf32>
    %373 = tpu.matmul %372, %370, %cst_365 {dimension_numbers = #tpu.dot_dimension_numbers<[1], [0], [0], [1], [0, 0, 1, 1], [], []>} : vector<64x32xf32>, vector<32x9xf32>, vector<64x9xf32> -> vector<64x9xf32>
    %374 = arith.addf %367, %373 : vector<64x9xf32>
    %c12_366 = arith.constant 12 : index
    %c0_367 = arith.constant 0 : index
    %c0_368 = arith.constant 0 : index
    %375 = vector.load %arg10[%c12_366, %c0_367, %c0_368] : memref<16x16x9xf32, #tpu.memory_space<vmem>>, vector<1x16x9xf32>
    %376 = vector.shape_cast %375 : vector<1x16x9xf32> to vector<16x9xf32>
    %cst_369 = arith.constant dense<0.000000e+00> : vector<32x9xf32>
    %377 = tpu.matmul %289, %376, %cst_369 {dimension_numbers = #tpu.dot_dimension_numbers<[1], [0], [0], [1], [0, 0, 1, 1], [], []>} : vector<32x16xf32>, vector<16x9xf32>, vector<32x9xf32> -> vector<32x9xf32>
    %c12_370 = arith.constant 12 : index
    %c0_371 = arith.constant 0 : index
    %c0_372 = arith.constant 0 : index
    %378 = vector.load %arg11[%c12_370, %c0_371, %c0_372] : memref<16x64x32xf32, #tpu.memory_space<vmem>>, vector<1x64x32xf32>
    %379 = vector.shape_cast %378 : vector<1x64x32xf32> to vector<64x32xf32>
    %cst_373 = arith.constant dense<0.000000e+00> : vector<64x9xf32>
    %380 = tpu.matmul %379, %377, %cst_373 {dimension_numbers = #tpu.dot_dimension_numbers<[1], [0], [0], [1], [0, 0, 1, 1], [], []>} : vector<64x32xf32>, vector<32x9xf32>, vector<64x9xf32> -> vector<64x9xf32>
    %381 = arith.addf %374, %380 : vector<64x9xf32>
    %c13_374 = arith.constant 13 : index
    %c0_375 = arith.constant 0 : index
    %c0_376 = arith.constant 0 : index
    %382 = vector.load %arg10[%c13_374, %c0_375, %c0_376] : memref<16x16x9xf32, #tpu.memory_space<vmem>>, vector<1x16x9xf32>
    %383 = vector.shape_cast %382 : vector<1x16x9xf32> to vector<16x9xf32>
    %cst_377 = arith.constant dense<0.000000e+00> : vector<32x9xf32>
    %384 = tpu.matmul %289, %383, %cst_377 {dimension_numbers = #tpu.dot_dimension_numbers<[1], [0], [0], [1], [0, 0, 1, 1], [], []>} : vector<32x16xf32>, vector<16x9xf32>, vector<32x9xf32> -> vector<32x9xf32>
    %c13_378 = arith.constant 13 : index
    %c0_379 = arith.constant 0 : index
    %c0_380 = arith.constant 0 : index
    %385 = vector.load %arg11[%c13_378, %c0_379, %c0_380] : memref<16x64x32xf32, #tpu.memory_space<vmem>>, vector<1x64x32xf32>
    %386 = vector.shape_cast %385 : vector<1x64x32xf32> to vector<64x32xf32>
    %cst_381 = arith.constant dense<0.000000e+00> : vector<64x9xf32>
    %387 = tpu.matmul %386, %384, %cst_381 {dimension_numbers = #tpu.dot_dimension_numbers<[1], [0], [0], [1], [0, 0, 1, 1], [], []>} : vector<64x32xf32>, vector<32x9xf32>, vector<64x9xf32> -> vector<64x9xf32>
    %388 = arith.addf %381, %387 : vector<64x9xf32>
    %c14_382 = arith.constant 14 : index
    %c0_383 = arith.constant 0 : index
    %c0_384 = arith.constant 0 : index
    %389 = vector.load %arg10[%c14_382, %c0_383, %c0_384] : memref<16x16x9xf32, #tpu.memory_space<vmem>>, vector<1x16x9xf32>
    %390 = vector.shape_cast %389 : vector<1x16x9xf32> to vector<16x9xf32>
    %cst_385 = arith.constant dense<0.000000e+00> : vector<32x9xf32>
    %391 = tpu.matmul %289, %390, %cst_385 {dimension_numbers = #tpu.dot_dimension_numbers<[1], [0], [0], [1], [0, 0, 1, 1], [], []>} : vector<32x16xf32>, vector<16x9xf32>, vector<32x9xf32> -> vector<32x9xf32>
    %c14_386 = arith.constant 14 : index
    %c0_387 = arith.constant 0 : index
    %c0_388 = arith.constant 0 : index
    %392 = vector.load %arg11[%c14_386, %c0_387, %c0_388] : memref<16x64x32xf32, #tpu.memory_space<vmem>>, vector<1x64x32xf32>
    %393 = vector.shape_cast %392 : vector<1x64x32xf32> to vector<64x32xf32>
    %cst_389 = arith.constant dense<0.000000e+00> : vector<64x9xf32>
    %394 = tpu.matmul %393, %391, %cst_389 {dimension_numbers = #tpu.dot_dimension_numbers<[1], [0], [0], [1], [0, 0, 1, 1], [], []>} : vector<64x32xf32>, vector<32x9xf32>, vector<64x9xf32> -> vector<64x9xf32>
    %395 = arith.addf %388, %394 : vector<64x9xf32>
    %c15_390 = arith.constant 15 : index
    %c0_391 = arith.constant 0 : index
    %c0_392 = arith.constant 0 : index
    %396 = vector.load %arg10[%c15_390, %c0_391, %c0_392] : memref<16x16x9xf32, #tpu.memory_space<vmem>>, vector<1x16x9xf32>
    %397 = vector.shape_cast %396 : vector<1x16x9xf32> to vector<16x9xf32>
    %cst_393 = arith.constant dense<0.000000e+00> : vector<32x9xf32>
    %398 = tpu.matmul %289, %397, %cst_393 {dimension_numbers = #tpu.dot_dimension_numbers<[1], [0], [0], [1], [0, 0, 1, 1], [], []>} : vector<32x16xf32>, vector<16x9xf32>, vector<32x9xf32> -> vector<32x9xf32>
    %c15_394 = arith.constant 15 : index
    %c0_395 = arith.constant 0 : index
    %c0_396 = arith.constant 0 : index
    %399 = vector.load %arg11[%c15_394, %c0_395, %c0_396] : memref<16x64x32xf32, #tpu.memory_space<vmem>>, vector<1x64x32xf32>
    %400 = vector.shape_cast %399 : vector<1x64x32xf32> to vector<64x32xf32>
    %cst_397 = arith.constant dense<0.000000e+00> : vector<64x9xf32>
    %401 = tpu.matmul %400, %398, %cst_397 {dimension_numbers = #tpu.dot_dimension_numbers<[1], [0], [0], [1], [0, 0, 1, 1], [], []>} : vector<64x32xf32>, vector<32x9xf32>, vector<64x9xf32> -> vector<64x9xf32>
    %402 = arith.addf %395, %401 : vector<64x9xf32>
    %c0_398 = arith.constant 0 : index
    %c0_399 = arith.constant 0 : index
    %403 = vector.load %arg12[%c0_398, %c0_399] : memref<64x1xf32, #tpu.memory_space<vmem>>, vector<64x1xf32>
    %404 = vector.broadcast %403 : vector<64x1xf32> to vector<64x9xf32>
    %405 = arith.addf %402, %404 : vector<64x9xf32>
    %cst_400 = arith.constant dense<0.000000e+00> : vector<64xf32>
    %406 = vector.multi_reduction <add>, %405, %cst_400 [1] : vector<64x9xf32> to vector<64xf32>
    %407 = vector.shape_cast %406 : vector<64xf32> to vector<64x1xf32>
    %cst_401 = arith.constant 9.000000e+00 : f32
    %408 = vector.broadcast %cst_401 : f32 to vector<64x1xf32>
    %409 = arith.divf %407, %408 : vector<64x1xf32>
    %410 = vector.broadcast %409 : vector<64x1xf32> to vector<64x9xf32>
    %411 = arith.subf %405, %410 : vector<64x9xf32>
    %412 = arith.mulf %411, %411 : vector<64x9xf32>
    %cst_402 = arith.constant dense<0.000000e+00> : vector<64xf32>
    %413 = vector.multi_reduction <add>, %412, %cst_402 [1] : vector<64x9xf32> to vector<64xf32>
    %414 = vector.shape_cast %413 : vector<64xf32> to vector<64x1xf32>
    %cst_403 = arith.constant 9.000000e+00 : f32
    %415 = vector.broadcast %cst_403 : f32 to vector<64x1xf32>
    %416 = arith.divf %414, %415 : vector<64x1xf32>
    %417 = vector.broadcast %409 : vector<64x1xf32> to vector<64x9xf32>
    %418 = arith.subf %405, %417 : vector<64x9xf32>
    %cst_404 = arith.constant 9.99999974E-6 : f32
    %419 = vector.broadcast %cst_404 : f32 to vector<64x1xf32>
    %420 = arith.addf %416, %419 : vector<64x1xf32>
    %421 = math.rsqrt %420 : vector<64x1xf32>
    %422 = vector.broadcast %421 : vector<64x1xf32> to vector<64x9xf32>
    %423 = arith.mulf %418, %422 : vector<64x9xf32>
    %cst_405 = arith.constant 0.000000e+00 : f32
    %424 = vector.broadcast %cst_405 : f32 to vector<64x9xf32>
    %425 = arith.cmpf ogt, %423, %424 : vector<64x9xf32>
    %cst_406 = arith.constant 2.000000e-01 : f32
    %426 = vector.broadcast %cst_406 : f32 to vector<64x9xf32>
    %427 = arith.mulf %426, %423 : vector<64x9xf32>
    %428 = arith.select %425, %423, %427 : vector<64x9xi1>, vector<64x9xf32>
    %cst_407 = arith.constant 0.000000e+00 : f32
    %429 = vector.broadcast %cst_407 : f32 to vector<1x4xf32>
    %c0_408 = arith.constant 0 : index
    %c0_409 = arith.constant 0 : index
    %c0_410 = arith.constant 0 : index
    %430 = vector.load %arg13[%c0_408, %c0_409, %c0_410] : memref<16x9x4xf32, #tpu.memory_space<vmem>>, vector<1x9x4xf32>
    %431 = vector.shape_cast %430 : vector<1x9x4xf32> to vector<9x4xf32>
    %cst_411 = arith.constant dense<0.000000e+00> : vector<64x4xf32>
    %432 = tpu.matmul %428, %431, %cst_411 {dimension_numbers = #tpu.dot_dimension_numbers<[1], [0], [0], [1], [0, 0, 1, 1], [], []>} : vector<64x9xf32>, vector<9x4xf32>, vector<64x4xf32> -> vector<64x4xf32>
    %c0_412 = arith.constant 0 : index
    %c0_413 = arith.constant 0 : index
    %c0_414 = arith.constant 0 : index
    %433 = vector.load %arg14[%c0_412, %c0_413, %c0_414] : memref<16x1x64xf32, #tpu.memory_space<vmem>>, vector<1x1x64xf32>
    %434 = vector.shape_cast %433 : vector<1x1x64xf32> to vector<1x64xf32>
    %cst_415 = arith.constant dense<0.000000e+00> : vector<1x4xf32>
    %435 = tpu.matmul %434, %432, %cst_415 {dimension_numbers = #tpu.dot_dimension_numbers<[1], [0], [0], [1], [0, 0, 1, 1], [], []>} : vector<1x64xf32>, vector<64x4xf32>, vector<1x4xf32> -> vector<1x4xf32>
    %436 = arith.addf %429, %435 : vector<1x4xf32>
    %c1_416 = arith.constant 1 : index
    %c0_417 = arith.constant 0 : index
    %c0_418 = arith.constant 0 : index
    %437 = vector.load %arg13[%c1_416, %c0_417, %c0_418] : memref<16x9x4xf32, #tpu.memory_space<vmem>>, vector<1x9x4xf32>
    %438 = vector.shape_cast %437 : vector<1x9x4xf32> to vector<9x4xf32>
    %cst_419 = arith.constant dense<0.000000e+00> : vector<64x4xf32>
    %439 = tpu.matmul %428, %438, %cst_419 {dimension_numbers = #tpu.dot_dimension_numbers<[1], [0], [0], [1], [0, 0, 1, 1], [], []>} : vector<64x9xf32>, vector<9x4xf32>, vector<64x4xf32> -> vector<64x4xf32>
    %c1_420 = arith.constant 1 : index
    %c0_421 = arith.constant 0 : index
    %c0_422 = arith.constant 0 : index
    %440 = vector.load %arg14[%c1_420, %c0_421, %c0_422] : memref<16x1x64xf32, #tpu.memory_space<vmem>>, vector<1x1x64xf32>
    %441 = vector.shape_cast %440 : vector<1x1x64xf32> to vector<1x64xf32>
    %cst_423 = arith.constant dense<0.000000e+00> : vector<1x4xf32>
    %442 = tpu.matmul %441, %439, %cst_423 {dimension_numbers = #tpu.dot_dimension_numbers<[1], [0], [0], [1], [0, 0, 1, 1], [], []>} : vector<1x64xf32>, vector<64x4xf32>, vector<1x4xf32> -> vector<1x4xf32>
    %443 = arith.addf %436, %442 : vector<1x4xf32>
    %c2_424 = arith.constant 2 : index
    %c0_425 = arith.constant 0 : index
    %c0_426 = arith.constant 0 : index
    %444 = vector.load %arg13[%c2_424, %c0_425, %c0_426] : memref<16x9x4xf32, #tpu.memory_space<vmem>>, vector<1x9x4xf32>
    %445 = vector.shape_cast %444 : vector<1x9x4xf32> to vector<9x4xf32>
    %cst_427 = arith.constant dense<0.000000e+00> : vector<64x4xf32>
    %446 = tpu.matmul %428, %445, %cst_427 {dimension_numbers = #tpu.dot_dimension_numbers<[1], [0], [0], [1], [0, 0, 1, 1], [], []>} : vector<64x9xf32>, vector<9x4xf32>, vector<64x4xf32> -> vector<64x4xf32>
    %c2_428 = arith.constant 2 : index
    %c0_429 = arith.constant 0 : index
    %c0_430 = arith.constant 0 : index
    %447 = vector.load %arg14[%c2_428, %c0_429, %c0_430] : memref<16x1x64xf32, #tpu.memory_space<vmem>>, vector<1x1x64xf32>
    %448 = vector.shape_cast %447 : vector<1x1x64xf32> to vector<1x64xf32>
    %cst_431 = arith.constant dense<0.000000e+00> : vector<1x4xf32>
    %449 = tpu.matmul %448, %446, %cst_431 {dimension_numbers = #tpu.dot_dimension_numbers<[1], [0], [0], [1], [0, 0, 1, 1], [], []>} : vector<1x64xf32>, vector<64x4xf32>, vector<1x4xf32> -> vector<1x4xf32>
    %450 = arith.addf %443, %449 : vector<1x4xf32>
    %c3_432 = arith.constant 3 : index
    %c0_433 = arith.constant 0 : index
    %c0_434 = arith.constant 0 : index
    %451 = vector.load %arg13[%c3_432, %c0_433, %c0_434] : memref<16x9x4xf32, #tpu.memory_space<vmem>>, vector<1x9x4xf32>
    %452 = vector.shape_cast %451 : vector<1x9x4xf32> to vector<9x4xf32>
    %cst_435 = arith.constant dense<0.000000e+00> : vector<64x4xf32>
    %453 = tpu.matmul %428, %452, %cst_435 {dimension_numbers = #tpu.dot_dimension_numbers<[1], [0], [0], [1], [0, 0, 1, 1], [], []>} : vector<64x9xf32>, vector<9x4xf32>, vector<64x4xf32> -> vector<64x4xf32>
    %c3_436 = arith.constant 3 : index
    %c0_437 = arith.constant 0 : index
    %c0_438 = arith.constant 0 : index
    %454 = vector.load %arg14[%c3_436, %c0_437, %c0_438] : memref<16x1x64xf32, #tpu.memory_space<vmem>>, vector<1x1x64xf32>
    %455 = vector.shape_cast %454 : vector<1x1x64xf32> to vector<1x64xf32>
    %cst_439 = arith.constant dense<0.000000e+00> : vector<1x4xf32>
    %456 = tpu.matmul %455, %453, %cst_439 {dimension_numbers = #tpu.dot_dimension_numbers<[1], [0], [0], [1], [0, 0, 1, 1], [], []>} : vector<1x64xf32>, vector<64x4xf32>, vector<1x4xf32> -> vector<1x4xf32>
    %457 = arith.addf %450, %456 : vector<1x4xf32>
    %c4_440 = arith.constant 4 : index
    %c0_441 = arith.constant 0 : index
    %c0_442 = arith.constant 0 : index
    %458 = vector.load %arg13[%c4_440, %c0_441, %c0_442] : memref<16x9x4xf32, #tpu.memory_space<vmem>>, vector<1x9x4xf32>
    %459 = vector.shape_cast %458 : vector<1x9x4xf32> to vector<9x4xf32>
    %cst_443 = arith.constant dense<0.000000e+00> : vector<64x4xf32>
    %460 = tpu.matmul %428, %459, %cst_443 {dimension_numbers = #tpu.dot_dimension_numbers<[1], [0], [0], [1], [0, 0, 1, 1], [], []>} : vector<64x9xf32>, vector<9x4xf32>, vector<64x4xf32> -> vector<64x4xf32>
    %c4_444 = arith.constant 4 : index
    %c0_445 = arith.constant 0 : index
    %c0_446 = arith.constant 0 : index
    %461 = vector.load %arg14[%c4_444, %c0_445, %c0_446] : memref<16x1x64xf32, #tpu.memory_space<vmem>>, vector<1x1x64xf32>
    %462 = vector.shape_cast %461 : vector<1x1x64xf32> to vector<1x64xf32>
    %cst_447 = arith.constant dense<0.000000e+00> : vector<1x4xf32>
    %463 = tpu.matmul %462, %460, %cst_447 {dimension_numbers = #tpu.dot_dimension_numbers<[1], [0], [0], [1], [0, 0, 1, 1], [], []>} : vector<1x64xf32>, vector<64x4xf32>, vector<1x4xf32> -> vector<1x4xf32>
    %464 = arith.addf %457, %463 : vector<1x4xf32>
    %c5_448 = arith.constant 5 : index
    %c0_449 = arith.constant 0 : index
    %c0_450 = arith.constant 0 : index
    %465 = vector.load %arg13[%c5_448, %c0_449, %c0_450] : memref<16x9x4xf32, #tpu.memory_space<vmem>>, vector<1x9x4xf32>
    %466 = vector.shape_cast %465 : vector<1x9x4xf32> to vector<9x4xf32>
    %cst_451 = arith.constant dense<0.000000e+00> : vector<64x4xf32>
    %467 = tpu.matmul %428, %466, %cst_451 {dimension_numbers = #tpu.dot_dimension_numbers<[1], [0], [0], [1], [0, 0, 1, 1], [], []>} : vector<64x9xf32>, vector<9x4xf32>, vector<64x4xf32> -> vector<64x4xf32>
    %c5_452 = arith.constant 5 : index
    %c0_453 = arith.constant 0 : index
    %c0_454 = arith.constant 0 : index
    %468 = vector.load %arg14[%c5_452, %c0_453, %c0_454] : memref<16x1x64xf32, #tpu.memory_space<vmem>>, vector<1x1x64xf32>
    %469 = vector.shape_cast %468 : vector<1x1x64xf32> to vector<1x64xf32>
    %cst_455 = arith.constant dense<0.000000e+00> : vector<1x4xf32>
    %470 = tpu.matmul %469, %467, %cst_455 {dimension_numbers = #tpu.dot_dimension_numbers<[1], [0], [0], [1], [0, 0, 1, 1], [], []>} : vector<1x64xf32>, vector<64x4xf32>, vector<1x4xf32> -> vector<1x4xf32>
    %471 = arith.addf %464, %470 : vector<1x4xf32>
    %c6_456 = arith.constant 6 : index
    %c0_457 = arith.constant 0 : index
    %c0_458 = arith.constant 0 : index
    %472 = vector.load %arg13[%c6_456, %c0_457, %c0_458] : memref<16x9x4xf32, #tpu.memory_space<vmem>>, vector<1x9x4xf32>
    %473 = vector.shape_cast %472 : vector<1x9x4xf32> to vector<9x4xf32>
    %cst_459 = arith.constant dense<0.000000e+00> : vector<64x4xf32>
    %474 = tpu.matmul %428, %473, %cst_459 {dimension_numbers = #tpu.dot_dimension_numbers<[1], [0], [0], [1], [0, 0, 1, 1], [], []>} : vector<64x9xf32>, vector<9x4xf32>, vector<64x4xf32> -> vector<64x4xf32>
    %c6_460 = arith.constant 6 : index
    %c0_461 = arith.constant 0 : index
    %c0_462 = arith.constant 0 : index
    %475 = vector.load %arg14[%c6_460, %c0_461, %c0_462] : memref<16x1x64xf32, #tpu.memory_space<vmem>>, vector<1x1x64xf32>
    %476 = vector.shape_cast %475 : vector<1x1x64xf32> to vector<1x64xf32>
    %cst_463 = arith.constant dense<0.000000e+00> : vector<1x4xf32>
    %477 = tpu.matmul %476, %474, %cst_463 {dimension_numbers = #tpu.dot_dimension_numbers<[1], [0], [0], [1], [0, 0, 1, 1], [], []>} : vector<1x64xf32>, vector<64x4xf32>, vector<1x4xf32> -> vector<1x4xf32>
    %478 = arith.addf %471, %477 : vector<1x4xf32>
    %c7_464 = arith.constant 7 : index
    %c0_465 = arith.constant 0 : index
    %c0_466 = arith.constant 0 : index
    %479 = vector.load %arg13[%c7_464, %c0_465, %c0_466] : memref<16x9x4xf32, #tpu.memory_space<vmem>>, vector<1x9x4xf32>
    %480 = vector.shape_cast %479 : vector<1x9x4xf32> to vector<9x4xf32>
    %cst_467 = arith.constant dense<0.000000e+00> : vector<64x4xf32>
    %481 = tpu.matmul %428, %480, %cst_467 {dimension_numbers = #tpu.dot_dimension_numbers<[1], [0], [0], [1], [0, 0, 1, 1], [], []>} : vector<64x9xf32>, vector<9x4xf32>, vector<64x4xf32> -> vector<64x4xf32>
    %c7_468 = arith.constant 7 : index
    %c0_469 = arith.constant 0 : index
    %c0_470 = arith.constant 0 : index
    %482 = vector.load %arg14[%c7_468, %c0_469, %c0_470] : memref<16x1x64xf32, #tpu.memory_space<vmem>>, vector<1x1x64xf32>
    %483 = vector.shape_cast %482 : vector<1x1x64xf32> to vector<1x64xf32>
    %cst_471 = arith.constant dense<0.000000e+00> : vector<1x4xf32>
    %484 = tpu.matmul %483, %481, %cst_471 {dimension_numbers = #tpu.dot_dimension_numbers<[1], [0], [0], [1], [0, 0, 1, 1], [], []>} : vector<1x64xf32>, vector<64x4xf32>, vector<1x4xf32> -> vector<1x4xf32>
    %485 = arith.addf %478, %484 : vector<1x4xf32>
    %c8_472 = arith.constant 8 : index
    %c0_473 = arith.constant 0 : index
    %c0_474 = arith.constant 0 : index
    %486 = vector.load %arg13[%c8_472, %c0_473, %c0_474] : memref<16x9x4xf32, #tpu.memory_space<vmem>>, vector<1x9x4xf32>
    %487 = vector.shape_cast %486 : vector<1x9x4xf32> to vector<9x4xf32>
    %cst_475 = arith.constant dense<0.000000e+00> : vector<64x4xf32>
    %488 = tpu.matmul %428, %487, %cst_475 {dimension_numbers = #tpu.dot_dimension_numbers<[1], [0], [0], [1], [0, 0, 1, 1], [], []>} : vector<64x9xf32>, vector<9x4xf32>, vector<64x4xf32> -> vector<64x4xf32>
    %c8_476 = arith.constant 8 : index
    %c0_477 = arith.constant 0 : index
    %c0_478 = arith.constant 0 : index
    %489 = vector.load %arg14[%c8_476, %c0_477, %c0_478] : memref<16x1x64xf32, #tpu.memory_space<vmem>>, vector<1x1x64xf32>
    %490 = vector.shape_cast %489 : vector<1x1x64xf32> to vector<1x64xf32>
    %cst_479 = arith.constant dense<0.000000e+00> : vector<1x4xf32>
    %491 = tpu.matmul %490, %488, %cst_479 {dimension_numbers = #tpu.dot_dimension_numbers<[1], [0], [0], [1], [0, 0, 1, 1], [], []>} : vector<1x64xf32>, vector<64x4xf32>, vector<1x4xf32> -> vector<1x4xf32>
    %492 = arith.addf %485, %491 : vector<1x4xf32>
    %c9_480 = arith.constant 9 : index
    %c0_481 = arith.constant 0 : index
    %c0_482 = arith.constant 0 : index
    %493 = vector.load %arg13[%c9_480, %c0_481, %c0_482] : memref<16x9x4xf32, #tpu.memory_space<vmem>>, vector<1x9x4xf32>
    %494 = vector.shape_cast %493 : vector<1x9x4xf32> to vector<9x4xf32>
    %cst_483 = arith.constant dense<0.000000e+00> : vector<64x4xf32>
    %495 = tpu.matmul %428, %494, %cst_483 {dimension_numbers = #tpu.dot_dimension_numbers<[1], [0], [0], [1], [0, 0, 1, 1], [], []>} : vector<64x9xf32>, vector<9x4xf32>, vector<64x4xf32> -> vector<64x4xf32>
    %c9_484 = arith.constant 9 : index
    %c0_485 = arith.constant 0 : index
    %c0_486 = arith.constant 0 : index
    %496 = vector.load %arg14[%c9_484, %c0_485, %c0_486] : memref<16x1x64xf32, #tpu.memory_space<vmem>>, vector<1x1x64xf32>
    %497 = vector.shape_cast %496 : vector<1x1x64xf32> to vector<1x64xf32>
    %cst_487 = arith.constant dense<0.000000e+00> : vector<1x4xf32>
    %498 = tpu.matmul %497, %495, %cst_487 {dimension_numbers = #tpu.dot_dimension_numbers<[1], [0], [0], [1], [0, 0, 1, 1], [], []>} : vector<1x64xf32>, vector<64x4xf32>, vector<1x4xf32> -> vector<1x4xf32>
    %499 = arith.addf %492, %498 : vector<1x4xf32>
    %c10_488 = arith.constant 10 : index
    %c0_489 = arith.constant 0 : index
    %c0_490 = arith.constant 0 : index
    %500 = vector.load %arg13[%c10_488, %c0_489, %c0_490] : memref<16x9x4xf32, #tpu.memory_space<vmem>>, vector<1x9x4xf32>
    %501 = vector.shape_cast %500 : vector<1x9x4xf32> to vector<9x4xf32>
    %cst_491 = arith.constant dense<0.000000e+00> : vector<64x4xf32>
    %502 = tpu.matmul %428, %501, %cst_491 {dimension_numbers = #tpu.dot_dimension_numbers<[1], [0], [0], [1], [0, 0, 1, 1], [], []>} : vector<64x9xf32>, vector<9x4xf32>, vector<64x4xf32> -> vector<64x4xf32>
    %c10_492 = arith.constant 10 : index
    %c0_493 = arith.constant 0 : index
    %c0_494 = arith.constant 0 : index
    %503 = vector.load %arg14[%c10_492, %c0_493, %c0_494] : memref<16x1x64xf32, #tpu.memory_space<vmem>>, vector<1x1x64xf32>
    %504 = vector.shape_cast %503 : vector<1x1x64xf32> to vector<1x64xf32>
    %cst_495 = arith.constant dense<0.000000e+00> : vector<1x4xf32>
    %505 = tpu.matmul %504, %502, %cst_495 {dimension_numbers = #tpu.dot_dimension_numbers<[1], [0], [0], [1], [0, 0, 1, 1], [], []>} : vector<1x64xf32>, vector<64x4xf32>, vector<1x4xf32> -> vector<1x4xf32>
    %506 = arith.addf %499, %505 : vector<1x4xf32>
    %c11_496 = arith.constant 11 : index
    %c0_497 = arith.constant 0 : index
    %c0_498 = arith.constant 0 : index
    %507 = vector.load %arg13[%c11_496, %c0_497, %c0_498] : memref<16x9x4xf32, #tpu.memory_space<vmem>>, vector<1x9x4xf32>
    %508 = vector.shape_cast %507 : vector<1x9x4xf32> to vector<9x4xf32>
    %cst_499 = arith.constant dense<0.000000e+00> : vector<64x4xf32>
    %509 = tpu.matmul %428, %508, %cst_499 {dimension_numbers = #tpu.dot_dimension_numbers<[1], [0], [0], [1], [0, 0, 1, 1], [], []>} : vector<64x9xf32>, vector<9x4xf32>, vector<64x4xf32> -> vector<64x4xf32>
    %c11_500 = arith.constant 11 : index
    %c0_501 = arith.constant 0 : index
    %c0_502 = arith.constant 0 : index
    %510 = vector.load %arg14[%c11_500, %c0_501, %c0_502] : memref<16x1x64xf32, #tpu.memory_space<vmem>>, vector<1x1x64xf32>
    %511 = vector.shape_cast %510 : vector<1x1x64xf32> to vector<1x64xf32>
    %cst_503 = arith.constant dense<0.000000e+00> : vector<1x4xf32>
    %512 = tpu.matmul %511, %509, %cst_503 {dimension_numbers = #tpu.dot_dimension_numbers<[1], [0], [0], [1], [0, 0, 1, 1], [], []>} : vector<1x64xf32>, vector<64x4xf32>, vector<1x4xf32> -> vector<1x4xf32>
    %513 = arith.addf %506, %512 : vector<1x4xf32>
    %c12_504 = arith.constant 12 : index
    %c0_505 = arith.constant 0 : index
    %c0_506 = arith.constant 0 : index
    %514 = vector.load %arg13[%c12_504, %c0_505, %c0_506] : memref<16x9x4xf32, #tpu.memory_space<vmem>>, vector<1x9x4xf32>
    %515 = vector.shape_cast %514 : vector<1x9x4xf32> to vector<9x4xf32>
    %cst_507 = arith.constant dense<0.000000e+00> : vector<64x4xf32>
    %516 = tpu.matmul %428, %515, %cst_507 {dimension_numbers = #tpu.dot_dimension_numbers<[1], [0], [0], [1], [0, 0, 1, 1], [], []>} : vector<64x9xf32>, vector<9x4xf32>, vector<64x4xf32> -> vector<64x4xf32>
    %c12_508 = arith.constant 12 : index
    %c0_509 = arith.constant 0 : index
    %c0_510 = arith.constant 0 : index
    %517 = vector.load %arg14[%c12_508, %c0_509, %c0_510] : memref<16x1x64xf32, #tpu.memory_space<vmem>>, vector<1x1x64xf32>
    %518 = vector.shape_cast %517 : vector<1x1x64xf32> to vector<1x64xf32>
    %cst_511 = arith.constant dense<0.000000e+00> : vector<1x4xf32>
    %519 = tpu.matmul %518, %516, %cst_511 {dimension_numbers = #tpu.dot_dimension_numbers<[1], [0], [0], [1], [0, 0, 1, 1], [], []>} : vector<1x64xf32>, vector<64x4xf32>, vector<1x4xf32> -> vector<1x4xf32>
    %520 = arith.addf %513, %519 : vector<1x4xf32>
    %c13_512 = arith.constant 13 : index
    %c0_513 = arith.constant 0 : index
    %c0_514 = arith.constant 0 : index
    %521 = vector.load %arg13[%c13_512, %c0_513, %c0_514] : memref<16x9x4xf32, #tpu.memory_space<vmem>>, vector<1x9x4xf32>
    %522 = vector.shape_cast %521 : vector<1x9x4xf32> to vector<9x4xf32>
    %cst_515 = arith.constant dense<0.000000e+00> : vector<64x4xf32>
    %523 = tpu.matmul %428, %522, %cst_515 {dimension_numbers = #tpu.dot_dimension_numbers<[1], [0], [0], [1], [0, 0, 1, 1], [], []>} : vector<64x9xf32>, vector<9x4xf32>, vector<64x4xf32> -> vector<64x4xf32>
    %c13_516 = arith.constant 13 : index
    %c0_517 = arith.constant 0 : index
    %c0_518 = arith.constant 0 : index
    %524 = vector.load %arg14[%c13_516, %c0_517, %c0_518] : memref<16x1x64xf32, #tpu.memory_space<vmem>>, vector<1x1x64xf32>
    %525 = vector.shape_cast %524 : vector<1x1x64xf32> to vector<1x64xf32>
    %cst_519 = arith.constant dense<0.000000e+00> : vector<1x4xf32>
    %526 = tpu.matmul %525, %523, %cst_519 {dimension_numbers = #tpu.dot_dimension_numbers<[1], [0], [0], [1], [0, 0, 1, 1], [], []>} : vector<1x64xf32>, vector<64x4xf32>, vector<1x4xf32> -> vector<1x4xf32>
    %527 = arith.addf %520, %526 : vector<1x4xf32>
    %c14_520 = arith.constant 14 : index
    %c0_521 = arith.constant 0 : index
    %c0_522 = arith.constant 0 : index
    %528 = vector.load %arg13[%c14_520, %c0_521, %c0_522] : memref<16x9x4xf32, #tpu.memory_space<vmem>>, vector<1x9x4xf32>
    %529 = vector.shape_cast %528 : vector<1x9x4xf32> to vector<9x4xf32>
    %cst_523 = arith.constant dense<0.000000e+00> : vector<64x4xf32>
    %530 = tpu.matmul %428, %529, %cst_523 {dimension_numbers = #tpu.dot_dimension_numbers<[1], [0], [0], [1], [0, 0, 1, 1], [], []>} : vector<64x9xf32>, vector<9x4xf32>, vector<64x4xf32> -> vector<64x4xf32>
    %c14_524 = arith.constant 14 : index
    %c0_525 = arith.constant 0 : index
    %c0_526 = arith.constant 0 : index
    %531 = vector.load %arg14[%c14_524, %c0_525, %c0_526] : memref<16x1x64xf32, #tpu.memory_space<vmem>>, vector<1x1x64xf32>
    %532 = vector.shape_cast %531 : vector<1x1x64xf32> to vector<1x64xf32>
    %cst_527 = arith.constant dense<0.000000e+00> : vector<1x4xf32>
    %533 = tpu.matmul %532, %530, %cst_527 {dimension_numbers = #tpu.dot_dimension_numbers<[1], [0], [0], [1], [0, 0, 1, 1], [], []>} : vector<1x64xf32>, vector<64x4xf32>, vector<1x4xf32> -> vector<1x4xf32>
    %534 = arith.addf %527, %533 : vector<1x4xf32>
    %c15_528 = arith.constant 15 : index
    %c0_529 = arith.constant 0 : index
    %c0_530 = arith.constant 0 : index
    %535 = vector.load %arg13[%c15_528, %c0_529, %c0_530] : memref<16x9x4xf32, #tpu.memory_space<vmem>>, vector<1x9x4xf32>
    %536 = vector.shape_cast %535 : vector<1x9x4xf32> to vector<9x4xf32>
    %cst_531 = arith.constant dense<0.000000e+00> : vector<64x4xf32>
    %537 = tpu.matmul %428, %536, %cst_531 {dimension_numbers = #tpu.dot_dimension_numbers<[1], [0], [0], [1], [0, 0, 1, 1], [], []>} : vector<64x9xf32>, vector<9x4xf32>, vector<64x4xf32> -> vector<64x4xf32>
    %c15_532 = arith.constant 15 : index
    %c0_533 = arith.constant 0 : index
    %c0_534 = arith.constant 0 : index
    %538 = vector.load %arg14[%c15_532, %c0_533, %c0_534] : memref<16x1x64xf32, #tpu.memory_space<vmem>>, vector<1x1x64xf32>
    %539 = vector.shape_cast %538 : vector<1x1x64xf32> to vector<1x64xf32>
    %cst_535 = arith.constant dense<0.000000e+00> : vector<1x4xf32>
    %540 = tpu.matmul %539, %537, %cst_535 {dimension_numbers = #tpu.dot_dimension_numbers<[1], [0], [0], [1], [0, 0, 1, 1], [], []>} : vector<1x64xf32>, vector<64x4xf32>, vector<1x4xf32> -> vector<1x4xf32>
    %541 = arith.addf %534, %540 : vector<1x4xf32>
    %c0_536 = arith.constant 0 : index
    %c0_537 = arith.constant 0 : index
    %542 = vector.load %arg15[%c0_536, %c0_537] : memref<1x1xf32, #tpu.memory_space<vmem>>, vector<1x1xf32>
    %543 = vector.broadcast %542 : vector<1x1xf32> to vector<1x4xf32>
    %544 = arith.addf %541, %543 : vector<1x4xf32>
    %545 = vector.shape_cast %544 : vector<1x4xf32> to vector<1x1x4xf32>
    %c0_538 = arith.constant 0 : index
    %c0_539 = arith.constant 0 : index
    %c0_540 = arith.constant 0 : index
    %546 = vector.load %arg16[%c0_538, %c0_539, %c0_540] : memref<1x1x4xf32, #tpu.memory_space<vmem>>, vector<1x1x4xf32>
    tpu.vector_store %arg16[%c0_538, %c0_539, %c0_540], %545 {strides = array<i32>} : memref<1x1x4xf32, #tpu.memory_space<vmem>>, vector<1x1x4xf32>,
    return
  }
  func.func @transform_0(%arg0: i32) -> (i32, i32, i32) {
    %c0_i32 = arith.constant 0 : i32
    %c0_i32_0 = arith.constant 0 : i32
    %c0_i32_1 = arith.constant 0 : i32
    return %arg0, %c0_i32, %c0_i32_0 : i32, i32, i32
  }
  func.func @transform_1(%arg0: i32) -> (i32, i32) {
    %c0_i32 = arith.constant 0 : i32
    %c0_i32_0 = arith.constant 0 : i32
    %c0_i32_1 = arith.constant 0 : i32
    return %c0_i32, %c0_i32_0 : i32, i32
  }
  func.func @transform_2(%arg0: i32) -> (i32, i32) {
    %c0_i32 = arith.constant 0 : i32
    %c0_i32_0 = arith.constant 0 : i32
    %c0_i32_1 = arith.constant 0 : i32
    return %c0_i32, %c0_i32_0 : i32, i32
  }
  func.func @transform_3(%arg0: i32) -> (i32, i32, i32) {
    %c0_i32 = arith.constant 0 : i32
    %c0_i32_0 = arith.constant 0 : i32
    %c0_i32_1 = arith.constant 0 : i32
    %c0_i32_2 = arith.constant 0 : i32
    return %c0_i32, %c0_i32_0, %c0_i32_1 : i32, i32, i32
  }
  func.func @transform_4(%arg0: i32) -> (i32, i32, i32) {
    %c0_i32 = arith.constant 0 : i32
    %c0_i32_0 = arith.constant 0 : i32
    %c0_i32_1 = arith.constant 0 : i32
    %c0_i32_2 = arith.constant 0 : i32
    return %c0_i32, %c0_i32_0, %c0_i32_1 : i32, i32, i32
  }
  func.func @transform_5(%arg0: i32) -> (i32, i32) {
    %c0_i32 = arith.constant 0 : i32
    %c0_i32_0 = arith.constant 0 : i32
    %c0_i32_1 = arith.constant 0 : i32
    return %c0_i32, %c0_i32_0 : i32, i32
  }
  func.func @transform_6(%arg0: i32) -> (i32, i32, i32) {
    %c0_i32 = arith.constant 0 : i32
    %c0_i32_0 = arith.constant 0 : i32
    %c0_i32_1 = arith.constant 0 : i32
    %c0_i32_2 = arith.constant 0 : i32
    return %c0_i32, %c0_i32_0, %c0_i32_1 : i32, i32, i32
  }
  func.func @transform_7(%arg0: i32) -> (i32, i32, i32) {
    %c0_i32 = arith.constant 0 : i32
    %c0_i32_0 = arith.constant 0 : i32
    %c0_i32_1 = arith.constant 0 : i32
    %c0_i32_2 = arith.constant 0 : i32
    return %c0_i32, %c0_i32_0, %c0_i32_1 : i32, i32, i32
  }
  func.func @transform_8(%arg0: i32) -> (i32, i32) {
    %c0_i32 = arith.constant 0 : i32
    %c0_i32_0 = arith.constant 0 : i32
    %c0_i32_1 = arith.constant 0 : i32
    return %c0_i32, %c0_i32_0 : i32, i32
  }
  func.func @transform_9(%arg0: i32) -> (i32, i32, i32) {
    %c0_i32 = arith.constant 0 : i32
    %c0_i32_0 = arith.constant 0 : i32
    %c0_i32_1 = arith.constant 0 : i32
    %c0_i32_2 = arith.constant 0 : i32
    return %c0_i32, %c0_i32_0, %c0_i32_1 : i32, i32, i32
  }
  func.func @transform_10(%arg0: i32) -> (i32, i32, i32) {
    %c0_i32 = arith.constant 0 : i32
    %c0_i32_0 = arith.constant 0 : i32
    %c0_i32_1 = arith.constant 0 : i32
    %c0_i32_2 = arith.constant 0 : i32
    return %c0_i32, %c0_i32_0, %c0_i32_1 : i32, i32, i32
  }
  func.func @transform_11(%arg0: i32) -> (i32, i32) {
    %c0_i32 = arith.constant 0 : i32
    %c0_i32_0 = arith.constant 0 : i32
    %c0_i32_1 = arith.constant 0 : i32
    return %c0_i32, %c0_i32_0 : i32, i32
  }
  func.func @transform_12(%arg0: i32) -> (i32, i32, i32) {
    %c0_i32 = arith.constant 0 : i32
    %c0_i32_0 = arith.constant 0 : i32
    %c0_i32_1 = arith.constant 0 : i32
    %c0_i32_2 = arith.constant 0 : i32
    return %c0_i32, %c0_i32_0, %c0_i32_1 : i32, i32, i32
  }
  func.func @transform_13(%arg0: i32) -> (i32, i32, i32) {
    %c0_i32 = arith.constant 0 : i32
    %c0_i32_0 = arith.constant 0 : i32
    %c0_i32_1 = arith.constant 0 : i32
    %c0_i32_2 = arith.constant 0 : i32
    return %c0_i32, %c0_i32_0, %c0_i32_1 : i32, i32, i32
  }
  func.func @transform_14(%arg0: i32) -> (i32, i32) {
    %c0_i32 = arith.constant 0 : i32
    %c0_i32_0 = arith.constant 0 : i32
    %c0_i32_1 = arith.constant 0 : i32
    return %c0_i32, %c0_i32_0 : i32, i32
  }
  func.func @transform_15(%arg0: i32) -> (i32, i32, i32) {
    %c0_i32 = arith.constant 0 : i32
    %c0_i32_0 = arith.constant 0 : i32
    %c0_i32_1 = arith.constant 0 : i32
    return %arg0, %c0_i32, %c0_i32_0 : i32, i32, i32
  }
}

</mosaic_0001>

<bundles_post_ra>
// kernel: nlayer_discriminator.1
= control target key start
LH: loop header
LB: loop body
LE: loop exit
PB: predicated region body
PF: predicated region fallthrough
CT: control target
= control target key end

     0   :  { %s22192_s0 = inlined_call_operand.vmem [shape: f32[2,48,256], index: 0, kind: input, shape index: {}]   ;;  %s22193_s1 = inlined_call_operand.vmem [shape: f32[8,48], index: 1, kind: input, shape index: {}]   ;;  %s22194_s2 = inlined_call_operand.vmem [shape: f32[8,1], index: 2, kind: input, shape index: {}]   ;;  %s22195_s3 = inlined_call_operand.vmem [shape: f32[16,256,64], index: 3, kind: input, shape index: {}]   ;;  %s22196_s4 = inlined_call_operand.hbm [shape: f32[16,16,8], index: 4, kind: input, shape index: {}]   ;;  %s22197_s5 = inlined_call_operand.vmem [shape: f32[16,1], index: 5, kind: input, shape index: {}]   ;;  %s22198_s6 = inlined_call_operand.vmem [shape: f32[16,64,16], index: 6, kind: input, shape index: {}]   ;;  %s22199_s7 = inlined_call_operand.vmem [shape: f32[16,32,16], index: 7, kind: input, shape index: {}]   ;;  %s22200_s8 = inlined_call_operand.vmem [shape: f32[32,1], index: 8, kind: input, shape index: {}]   ;;  %s22201_s9 = inlined_call_operand.hbm [shape: f32[16,16,9], index: 9, kind: input, shape index: {}]   ;;  %s22202_s10 = inlined_call_operand.hbm [shape: f32[16,64,32], index: 10, kind: input, shape index: {}]   ;;  %s22203_s11 = inlined_call_operand.vmem [shape: f32[64,1], index: 11, kind: input, shape index: {}]   ;;  %s22204_s12 = inlined_call_operand.hbm [shape: f32[16,9,4], index: 12, kind: input, shape index: {}]   ;;  %s22205_s13 = inlined_call_operand.vmem [shape: f32[16,1,64], index: 13, kind: input, shape index: {}]   ;;  %s22206_s14 = inlined_call_operand.<no memory space> [shape: f32[1,1], index: 14, kind: input, shape index: {}]   ;;  %s22207_s15 = inlined_call_operand.vmem [shape: f32[2,1,4], index: 15, kind: output, shape index: {}]  }
   0x1   :  { %v20_v0 = vstv %s22206_s14 }
   0x2   :  { %21 = vst [vmem:[#allocation2] sm:$0x1] %v20_v0 }
   0x3   :  { %22 = vsyncpa [#allocation4], 0 }
   0x4   :  { %23 = vsyncpa [#allocation6], 0 }
   0x5   :  { %24 = vsyncpa [#allocation9], 0  ;;  %s18401_s20 = smov 0  }
   0x6 LB: > { %s18407_s21 = sadd.s32 4294967295, %s18307_s20   ;;  %p13890_p0 = scmp.ge.s32.totalorder %s18307_s20, 1  ;;  %s18307_s20 = sphi %s18401_s20, %s30_s20  }
   0x7   : > { %p381_p1 = scmp.lt.s32.totalorder %s18307_s20, 3  ;;  %p18130_p2 = scmp.eq.s32.totalorder %s18407_s21, 0 }
   0x8   : > { %s18309_s22 = smov [#allocation5]   ;;  %s18310_s24 = smov [#allocation3]  }
   0x9   : > { %p18412_p3 = pnand %p13890_p0, %p381_p1  ;;  %s427_s23 = sshll.u32 %s18309_s22, 4  ;;  %s428_s23 = int_to_ptr.vmem [resolvable:$true] %s427_s23 }
   0xa   : > { %s402_s25 = sshll.u32 %s18310_s24, 4  ;;  %s18311_s27 = smov [#allocation7]   ;;  %s18418_s25 = int_to_ptr.vmem [resolvable:$true] %s402_s25 }
   0xb   : > { %p18117_p4 = pneg %p18412_p3  ;;  %s440_s28 = sshll.u32 %s18311_s27, 4  ;;  %s18426_s28 = int_to_ptr.vmem [resolvable:$true] %s440_s28 }
   0xc   : > { %s18312_s29 = smov [#allocation8]   ;;  %s18196_s16 = scalar_lea.vmem %s428_s23, 4096 }
   0xd   : > { %p18422_p5 = pnand %p18130_p2, %p18117_p4  ;;  %s18428_s30 = sshll.u32 %s18312_s29, 4  ;;  %s457_s30 = int_to_ptr.vmem [resolvable:$true] %s18428_s30 }
   0xe   : > { %p18197_p7 = scmp.ne.s32.totalorder %s428_s23, %s18196_s16  ;;  %p18204_p10 = scmp.lt.s32.totalorder %s428_s23, %s428_s23 }
   0xf   : > { %p18187_p6 = pneg %p18422_p5  ;;  %p18205_p11 = scmp.lt.s32.totalorder %s18196_s16, %s18196_s16 }
  0x11   : > { %p18199_p8 = pnand %p18197_p7, %p18187_p6  ;;  %p18206_p12 = por %p18205_p11, %p18204_p10 }
  0x13   : > { %p18200_p9 = pneg %p18199_p8 }
  0x15   : > { %p18207_p13 = pnand %p18206_p12, %p18200_p9 }
  0x17   : > { %18210 = shalt.err (!%p18207_p13)
}
  0x18   : > { %s18313_s17 = smov 128   ;;  %s18314_s18 = smov 8  }
  0x19   : > { %18123 = dma.hbm_to_vmem [thread:$0]  (!%p18422_p5), %s22201_s9, 4096, %s428_s23, [#allocation6], %s18313_s17, %s18313_s17, %s18314_s18  }
  0x1a   : > { %s18222_s24 = scalar_lea.vmem %s18418_s25, 4096  ;;  %p18230_p7 = scmp.lt.s32.totalorder %s18418_s25, %s18418_s25 }
  0x1b   : > { %p18223_p0 = scmp.ne.s32.totalorder %s18418_s25, %s18222_s24  ;;  %p18231_p8 = scmp.lt.s32.totalorder %s18222_s24, %s18222_s24 }
  0x1d   : > { %p18225_p1 = pnand %p18223_p0, %p18187_p6  ;;  %p18232_p9 = por %p18231_p8, %p18230_p7 }
  0x1f   : > { %p18226_p4 = pneg %p18225_p1 }
  0x21   : > { %p18233_p10 = pnand %p18232_p9, %p18226_p4 }
  0x23   : > { %18236 = shalt.err (!%p18233_p10)
}
  0x24   : > { %18120 = dma.hbm_to_vmem [thread:$0]  (!%p18422_p5), %s22196_s4, 4096, %s18418_s25, [#allocation4], %s18313_s17, %s18313_s17, %s18314_s18  }
  0x25   : > { %s18248_s29 = scalar_lea.vmem %s18426_s28, 16384  ;;  %p18256_p0 = scmp.lt.s32.totalorder %s18426_s28, %s18426_s28 }
  0x26   : > { %p18249_p11 = scmp.ne.s32.totalorder %s18426_s28, %s18248_s29  ;;  %p18257_p1 = scmp.lt.s32.totalorder %s18248_s29, %s18248_s29 }
  0x28   : > { %p18251_p12 = pnand %p18249_p11, %p18187_p6  ;;  %p18258_p4 = por %p18257_p1, %p18256_p0 }
  0x2a   : > { %p18252_p13 = pneg %p18251_p12 }
  0x2c   : > { %p18259_p7 = pnand %p18258_p4, %p18252_p13 }
  0x2e   : > { %18262 = shalt.err (!%p18259_p7)
}
  0x2f   : > { %18126 = dma.hbm_to_vmem [thread:$0]  (!%p18422_p5), %s22202_s10, 16384, %s18426_s28, [#allocation6], %s18313_s17, %s18313_s17, %s18314_s18  }
  0x30   : > { %s18274_s19 = scalar_lea.vmem %s457_s30, 4096  ;;  %p18282_p11 = scmp.lt.s32.totalorder %s457_s30, %s457_s30 }
  0x31   : > { %p18275_p8 = scmp.ne.s32.totalorder %s457_s30, %s18274_s19  ;;  %p18283_p12 = scmp.lt.s32.totalorder %s18274_s19, %s18274_s19 }
  0x33   : > { %p18277_p9 = pnand %p18275_p8, %p18187_p6  ;;  %p18284_p13 = por %p18283_p12, %p18282_p11 }
  0x35   : > { %p18278_p10 = pneg %p18277_p9 }
  0x37   : > { %p18285_p0 = pnand %p18284_p13, %p18278_p10 }
  0x39   : > { %18288 = shalt.err (!%p18285_p0)
}
  0x3a   : > { %18129 = dma.hbm_to_vmem [thread:$0]  (!%p18422_p5), %s22204_s12, 4096, %s457_s30, [#allocation9], %s18313_s17, %s18313_s17, %s18314_s18  }
  0x3b   : > { %486 = sbr.rel (%p18412_p3) target bundleno = 12186 (0x2f9a), region = 80 }
  0x40   : > { %18294 = dma.done.wait (%p18130_p2), [#allocation4], 4096  }
  0x41   : > { %18296 = vsyncadd (%p18130_p2), [#allocation4], 4294963200 }
  0x42   : > { %18298 = dma.done.wait (%p18130_p2), [#allocation6], 20480  }
  0x43   : > { %18300 = vsyncadd (%p18130_p2), [#allocation6], 4294946816 }
  0x44   : > { %18302 = dma.done.wait (%p18130_p2), [#allocation9], 4096  }
  0x45   : > { %18304 = vsyncadd (%p18130_p2), [#allocation9], 4294963200  ;;  %p544_p3 = scmp.lt.s32.totalorder %s18407_s21, 1  ;;  %v18315_v1 = vmov 0.0   ;;  %v18316_v2 = vmov 0   ;;  %v565_v10 = vld [vmem:[%s22194_s2] sm:$0xff] }
  0x46   : > { %639 = vmatprep.mubr.f32.mxu0 %v18315_v1  ;;  %18155 = vset.pattern.permute.xlu0 %v18316_v2  ;;  %v683_v12 = vld [vmem:[%s22195_s3 + $0xf8] sm:$0xff]  ;;  %v3671_v15 = vld [vmem:[%s22197_s5] sm:$0xff]  ;;  %v682_v16 = vld [vmem:[%s22195_s3 + $0xf0] sm:$0xff]  ;;  %vm571_vm0 = vcmask 392192   ;;  %vm862_vm3 = vcmask 64512   ;;  %vm3685_vm4 = vcmask 523264  }
  0x47   : > { %s22211_s21 = smov (!%p544_p3, %s18407_s21), 1  ;;  %18156 = vset.pattern.permute.xlu1 %v18316_v2  ;;  %568 = vperm.xlu0 %18155, %v565_v10   ;;  %v667_v13 = vld [vmem:[%s22195_s3 + $0x78] sm:$0xff]  ;;  %v666_v18 = vld [vmem:[%s22195_s3 + $0x70] sm:$0xff]  ;;  %v681_v20 = vld [vmem:[%s22195_s3 + $0xe8] sm:$0xff]  ;;  %vm3901_vm7 = vcmask 130048   ;;  %vm7053_vm12 = vcmask 261120  }
  0x48   : > { %s18100_s14 = smul.u32 96, %s22211_s21  ;;  %15060 = vmatprep.subr.mxu1 %v683_v12  ;;  %v665_v22 = vld [vmem:[%s22195_s3 + $0x68] sm:$0xff]  ;;  %v552_v23 = vld [vmem:[%s22193_s1] sm:$0xff]  ;;  %v13934_v24 = vld [vmem:[%s22195_s3 + $0x1f8] sm:$0xff]  ;;  %vm10644_vm13 = vcmask 72704   ;;  %vm10800_vm14 = vcmask 1040384   ;;  %s551_s16 = scalar_lea.vmem %s22207_s15, %s22211_s21 }
  0x49   : > { %15061 = vmatpush3.msra.mxu1 %v667_v13  ;;  %v13918_v25 = vld [vmem:[%s22195_s3 + $0x178] sm:$0xff]  ;;  %v680_v26 = vld [vmem:[%s22195_s3 + $0xe0] sm:$0xff]  ;;  %v13933_v27 = vld [vmem:[%s22195_s3 + $0x1f0] sm:$0xff] }
  0x4a   : > { %s18510_s30 = scalar_lea.vmem %s22192_s0, %s18100_s14  ;;  %15062 = vmatprep.subr.mxu1 %v682_v16  ;;  %v664_v28 = vld [vmem:[%s22195_s3 + $0x60] sm:$0xff]  ;;  %v13917_v29 = vld [vmem:[%s22195_s3 + $0x170] sm:$0xff]  ;;  %v679_v30 = vld [vmem:[%s22195_s3 + $0xd8] sm:$0xff] }
  0x4b   : > { %v564_v3 = vld [vmem:[%s18510_s30 + $0x58] sm:$0xff]  ;;  %v563_v4 = vld [vmem:[%s18510_s30 + $0x50] sm:$0xff]  ;;  %v562_v5 = vld [vmem:[%s18510_s30 + $0x48] sm:$0xff]  ;;  %3675 = vperm.xlu0 %18155, %v3671_v15   ;;  %15063 = vmatpush3.msra.mxu1 %v666_v18 }
  0x4c   : > { %595 = vmatprep.subr.mxu0 %v564_v3  ;;  %v561_v6 = vld [vmem:[%s18510_s30 + $0x40] sm:$0xff]  ;;  %v560_v7 = vld [vmem:[%s18510_s30 + $0x38] sm:$0xff]  ;;  %v559_v8 = vld [vmem:[%s18510_s30 + $0x30] sm:$0xff]  ;;  %15064 = vmatprep.subr.mxu1 %v681_v20 }
  0x4d   : > { %596 = vmatpush1.msra.mxu0 %v563_v4  ;;  %v558_v9 = vld [vmem:[%s18510_s30 + $0x28] sm:$0xff]  ;;  %v557_v11 = vld [vmem:[%s18510_s30 + $0x20] sm:$0xff]  ;;  %v556_v14 = vld [vmem:[%s18510_s30 + $0x18] sm:$0xff]  ;;  %15065 = vmatpush3.msra.mxu1 %v665_v22 }
  0x4e   : > { %597 = vmatprep.subr.mxu0 %v562_v5  ;;  %v555_v17 = vld [vmem:[%s18510_s30 + $0x10] sm:$0xff]  ;;  %v554_v19 = vld [vmem:[%s18510_s30 + $0x8] sm:$0xff]  ;;  %v553_v21 = vld [vmem:[%s18510_s30] sm:$0xff]  ;;  %15066 = vmatprep.subr.mxu1 %v680_v26 }
  0x4f   : > { %598 = vmatpush1.msra.mxu0 %v561_v6  ;;  %v13932_v31 = vld [vmem:[%s22195_s3 + $0x1e8] sm:$0xff]  ;;  %v663_v32 = vld [vmem:[%s22195_s3 + $0x58] sm:$0xff]  ;;  %15067 = vmatpush3.msra.mxu1 %v664_v28  ;;  %v678_v34 = vld [vmem:[%s22195_s3 + $0xd0] sm:$0xff] }
  0x50   : > { %599 = vmatprep.subr.mxu0 %v560_v7  ;;  %v13916_v33 = vld [vmem:[%s22195_s3 + $0x168] sm:$0xff]  ;;  %v13931_v35 = vld [vmem:[%s22195_s3 + $0x1e0] sm:$0xff]  ;;  %15068 = vmatprep.subr.mxu1 %v679_v30  ;;  %v662_v36 = vld [vmem:[%s22195_s3 + $0x50] sm:$0xff] }
  0x51   : > { %600 = vmatpush1.msra.mxu0 %v559_v8  ;;  %v13915_v37 = vld [vmem:[%s22195_s3 + $0x160] sm:$0xff]  ;;  %15069 = vmatpush3.msra.mxu1 %v663_v32  ;;  %v677_v38 = vld [vmem:[%s22195_s3 + $0xc8] sm:$0xff]  ;;  %v13930_v39 = vld [vmem:[%s22195_s3 + $0x1d8] sm:$0xff] }
  0x52   : > { %601 = vmatprep.subr.mxu0 %v558_v9  ;;  %15070 = vmatprep.subr.mxu1 %v678_v34  ;;  %v661_v40 = vld [vmem:[%s22195_s3 + $0x48] sm:$0xff]  ;;  %v13914_v41 = vld [vmem:[%s22195_s3 + $0x158] sm:$0xff]  ;;  %v676_v42 = vld [vmem:[%s22195_s3 + $0xc0] sm:$0xff] }
  0x53   : > { %602 = vmatpush1.msra.mxu0 %v557_v11  ;;  %15071 = vmatpush3.msra.mxu1 %v662_v36  ;;  %v13929_v43 = vld [vmem:[%s22195_s3 + $0x1d0] sm:$0xff]  ;;  %v660_v44 = vld [vmem:[%s22195_s3 + $0x40] sm:$0xff]  ;;  %v675_v46 = vld [vmem:[%s22195_s3 + $0xb8] sm:$0xff] }
  0x54   : > { %603 = vmatprep.subr.mxu0 %v556_v14  ;;  %15072 = vmatprep.subr.mxu1 %v677_v38  ;;  %v13913_v45 = vld [vmem:[%s22195_s3 + $0x150] sm:$0xff]  ;;  %v13928_v47 = vld [vmem:[%s22195_s3 + $0x1c8] sm:$0xff]  ;;  %v659_v48 = vld [vmem:[%s22195_s3 + $0x38] sm:$0xff] }
  0x55   : > { %604 = vmatpush1.msra.mxu0 %v555_v17  ;;  %15073 = vmatpush3.msra.mxu1 %v661_v40  ;;  %v13912_v49 = vld [vmem:[%s22195_s3 + $0x148] sm:$0xff]  ;;  %v674_v50 = vld [vmem:[%s22195_s3 + $0xb0] sm:$0xff]  ;;  %v13927_v51 = vld [vmem:[%s22195_s3 + $0x1c0] sm:$0xff] }
  0x56   : > { %605 = vmatprep.subr.mxu0 %v554_v19  ;;  %15074 = vmatprep.subr.mxu1 %v676_v42  ;;  %v658_v52 = vld [vmem:[%s22195_s3 + $0x30] sm:$0xff]  ;;  %v13911_v53 = vld [vmem:[%s22195_s3 + $0x140] sm:$0xff]  ;;  %v673_v54 = vld [vmem:[%s22195_s3 + $0xa8] sm:$0xff] }
  0x57   : > { %606 = vmatpush1.msra.mxu0 %v553_v21  ;;  %15075 = vmatpush3.msra.mxu1 %v660_v44  ;;  %v13926_v55 = vld [vmem:[%s22195_s3 + $0x1b8] sm:$0xff]  ;;  %v657_v56 = vld [vmem:[%s22195_s3 + $0x28] sm:$0xff]  ;;  %v672_v58 = vld [vmem:[%s22195_s3 + $0xa0] sm:$0xff] }
  0x58   : > { %13902 = vmatmul.mubr.msk.f32.vlgmr.msra.gmra.mxu0 %vm571_vm0, %v552_v23  ;;  %15095 = vmatprep.subr.mxu0 %v13934_v24  ;;  %v13910_v57 = vld [vmem:[%s22195_s3 + $0x138] sm:$0xff]  ;;  %v13925_v59 = vld [vmem:[%s22195_s3 + $0x1b0] sm:$0xff]  ;;  %v13924_v61 = vld [vmem:[%s22195_s3 + $0x1a8] sm:$0xff] }
  0x59   : > { %15096 = vmatpush3.msra.mxu0 %v13918_v25  ;;  %15076 = vmatprep.subr.mxu1 %v675_v46  ;;  %v13909_v60 = vld [vmem:[%s22195_s3 + $0x130] sm:$0xff]  ;;  %v13908_v62 = vld [vmem:[%s22195_s3 + $0x128] sm:$0xff]  ;;  %v13923_v63 = vld [vmem:[%s22195_s3 + $0x1a0] sm:$0xff] }
  0x5a   : > { %15097 = vmatprep.subr.mxu0 %v13933_v27  ;;  %15077 = vmatpush3.msra.mxu1 %v659_v48  ;;  %v656_v0 = vld [vmem:[%s22195_s3 + $0x20] sm:$0xff]  ;;  %v671_v3 = vld [vmem:[%s22195_s3 + $0x98] sm:$0xff]  ;;  %v670_v7 = vld [vmem:[%s22195_s3 + $0x90] sm:$0xff] }
  0x5b   : > { %15098 = vmatpush3.msra.mxu0 %v13917_v29  ;;  %15078 = vmatprep.subr.mxu1 %v674_v50  ;;  %v13907_v2 = vld [vmem:[%s22195_s3 + $0x120] sm:$0xff]  ;;  %v13922_v4 = vld [vmem:[%s22195_s3 + $0x198] sm:$0xff]  ;;  %v13921_v8 = vld [vmem:[%s22195_s3 + $0x190] sm:$0xff] }
  0x5c   : > { %15099 = vmatprep.subr.mxu0 %v13932_v31  ;;  %15079 = vmatpush3.msra.mxu1 %v658_v52  ;;  %v655_v5 = vld [vmem:[%s22195_s3 + $0x18] sm:$0xff]  ;;  %v654_v9 = vld [vmem:[%s22195_s3 + $0x10] sm:$0xff]  ;;  %v669_v11 = vld [vmem:[%s22195_s3 + $0x88] sm:$0xff] }
  0x5d   : > { %15100 = vmatpush3.msra.mxu0 %v13916_v33  ;;  %15080 = vmatprep.subr.mxu1 %v673_v54  ;;  %v13906_v6 = vld [vmem:[%s22195_s3 + $0x118] sm:$0xff]  ;;  %v13905_v10 = vld [vmem:[%s22195_s3 + $0x110] sm:$0xff]  ;;  %v13920_v12 = vld [vmem:[%s22195_s3 + $0x188] sm:$0xff] }
  0x5e   : > { %15101 = vmatprep.subr.mxu0 %v13931_v35  ;;  %15081 = vmatpush3.msra.mxu1 %v657_v56  ;;  %v653_v13 = vld [vmem:[%s22195_s3 + $0x8] sm:$0xff]  ;;  %v668_v15 = vld [vmem:[%s22195_s3 + $0x80] sm:$0xff]  ;;  %v860_v28 = vld [vmem:[#allocation3 + $0x10] sm:$0xff] }
  0x5f   : > { %15102 = vmatpush3.msra.mxu0 %v13915_v37  ;;  %15082 = vmatprep.subr.mxu1 %v672_v58  ;;  %v13904_v14 = vld [vmem:[%s22195_s3 + $0x108] sm:$0xff]  ;;  %v13919_v16 = vld [vmem:[%s22195_s3 + $0x180] sm:$0xff]  ;;  %v13970_v38 = vld [vmem:[%s22195_s3 + $0x2f8] sm:$0xff] }
  0x60   : > { %15103 = vmatprep.subr.mxu0 %v13930_v39  ;;  %15083 = vmatpush3.msra.mxu1 %v656_v0  ;;  %v652_v17 = vld [vmem:[%s22195_s3] sm:$0xff]  ;;  %v755_v37 = vld [vmem:[#allocation3 + $0x8] sm:$0xff]  ;;  %v13954_v39 = vld [vmem:[%s22195_s3 + $0x278] sm:$0xff] }
  0x61   : > { %15104 = vmatpush3.msra.mxu0 %v13914_v41  ;;  %15084 = vmatprep.subr.mxu1 %v671_v3  ;;  %v13903_v18 = vld [vmem:[%s22195_s3 + $0x100] sm:$0xff]  ;;  %v13969_v40 = vld [vmem:[%s22195_s3 + $0x2f0] sm:$0xff]  ;;  %v13968_v42 = vld [vmem:[%s22195_s3 + $0x2e8] sm:$0xff] }
  0x62   : > { %15105 = vmatprep.subr.mxu0 %v13929_v43  ;;  %15085 = vmatpush3.msra.mxu1 %v655_v5  ;;  %v754_v29 = vld [vmem:[#allocation3] sm:$0xff]  ;;  %v861_v36 = vld [vmem:[#allocation3 + $0x18] sm:$0xff]  ;;  %v13953_v41 = vld [vmem:[%s22195_s3 + $0x270] sm:$0xff] }
  0x63   : > { %15106 = vmatpush3.msra.mxu0 %v13913_v45  ;;  %15086 = vmatprep.subr.mxu1 %v670_v7  ;;  %v13952_v43 = vld [vmem:[%s22195_s3 + $0x268] sm:$0xff]  ;;  %v13967_v44 = vld [vmem:[%s22195_s3 + $0x2e0] sm:$0xff]  ;;  %v13966_v46 = vld [vmem:[%s22195_s3 + $0x2d8] sm:$0xff] }
  0x64   : > { %15107 = vmatprep.subr.mxu0 %v13928_v47  ;;  %15087 = vmatpush3.msra.mxu1 %v654_v9  ;;  %v13951_v45 = vld [vmem:[%s22195_s3 + $0x260] sm:$0xff]  ;;  %v13950_v47 = vld [vmem:[%s22195_s3 + $0x258] sm:$0xff]  ;;  %v13965_v48 = vld [vmem:[%s22195_s3 + $0x2d0] sm:$0xff] }
  0x65   : > { %15108 = vmatpush3.msra.mxu0 %v13912_v49  ;;  %15088 = vmatprep.subr.mxu1 %v669_v11  ;;  %v13949_v49 = vld [vmem:[%s22195_s3 + $0x250] sm:$0xff]  ;;  %v13964_v50 = vld [vmem:[%s22195_s3 + $0x2c8] sm:$0xff]  ;;  %v13963_v52 = vld [vmem:[%s22195_s3 + $0x2c0] sm:$0xff] }
  0x66   : > { %15109 = vmatprep.subr.mxu0 %v13927_v51  ;;  %15089 = vmatpush3.msra.mxu1 %v653_v13  ;;  %v13948_v51 = vld [vmem:[%s22195_s3 + $0x248] sm:$0xff]  ;;  %v13962_v54 = vld [vmem:[%s22195_s3 + $0x2b8] sm:$0xff]  ;;  %v13961_v56 = vld [vmem:[%s22195_s3 + $0x2b0] sm:$0xff] }
  0x67   : > { %15110 = vmatpush3.msra.mxu0 %v13911_v53  ;;  %15090 = vmatprep.subr.mxu1 %v668_v15  ;;  %v13947_v53 = vld [vmem:[%s22195_s3 + $0x240] sm:$0xff]  ;;  %v13960_v58 = vld [vmem:[%s22195_s3 + $0x2a8] sm:$0xff]  ;;  %v13957_v0 = vld [vmem:[%s22195_s3 + $0x290] sm:$0xff] }
  0x68   : > { %15111 = vmatprep.subr.mxu0 %v13926_v55  ;;  %15091 = vmatpush3.msra.mxu1 %v652_v17  ;;  %v13946_v55 = vld [vmem:[%s22195_s3 + $0x238] sm:$0xff]  ;;  %v13956_v3 = vld [vmem:[%s22195_s3 + $0x288] sm:$0xff]  ;;  %v13955_v5 = vld [vmem:[%s22195_s3 + $0x280] sm:$0xff] }
  0x69   : > { %15112 = vmatpush3.msra.mxu0 %v13910_v57  ;;  %v13945_v57 = vld [vmem:[%s22195_s3 + $0x230] sm:$0xff]  ;;  %v1129_v7 = vld [vmem:[#allocation3 + $0x20] sm:$0xff]  ;;  %v13988_v17 = vld [vmem:[%s22195_s3 + $0x378] sm:$0xff] }
  0x6a   : > { %15113 = vmatprep.subr.mxu0 %v13925_v59  ;;  %v13944_v59 = vld [vmem:[%s22195_s3 + $0x228] sm:$0xff] }
  0x6b   : > { %15114 = vmatpush3.msra.mxu0 %v13909_v60  ;;  %v13959_v60 = vld [vmem:[%s22195_s3 + $0x2a0] sm:$0xff]  ;;  %v1130_v15 = vld [vmem:[#allocation3 + $0x28] sm:$0xff] }
  0x6c   : > { %15115 = vmatprep.subr.mxu0 %v13924_v61  ;;  %v13943_v61 = vld [vmem:[%s22195_s3 + $0x220] sm:$0xff] }
  0x6d   : > { %15116 = vmatpush3.msra.mxu0 %v13908_v62  ;;  %v13958_v62 = vld [vmem:[%s22195_s3 + $0x298] sm:$0xff] }
  0x6e   : > { %15117 = vmatprep.subr.mxu0 %v13923_v63  ;;  %v13942_v63 = vld [vmem:[%s22195_s3 + $0x218] sm:$0xff] }
  0x6f   : > { %15118 = vmatpush3.msra.mxu0 %v13907_v2  ;;  %v13941_v2 = vld [vmem:[%s22195_s3 + $0x210] sm:$0xff] }
  0x70   : > { %15119 = vmatprep.subr.mxu0 %v13922_v4  ;;  %v13940_v4 = vld [vmem:[%s22195_s3 + $0x208] sm:$0xff] }
  0x71   : > { %15120 = vmatpush3.msra.mxu0 %v13906_v6  ;;  %v13939_v6 = vld [vmem:[%s22195_s3 + $0x200] sm:$0xff] }
  0x72   : > { %15121 = vmatprep.subr.mxu0 %v13921_v8 }
  0x73   : > { %15122 = vmatpush3.msra.mxu0 %v13905_v10 }
  0x74   : > { %15123 = vmatprep.subr.mxu0 %v13920_v12 }
  0x75   : > { %15124 = vmatpush3.msra.mxu0 %v13904_v14 }
  0x76   : > { %15125 = vmatprep.subr.mxu0 %v13919_v16  ;;  %v14004_v16 = vld [vmem:[%s22195_s3 + $0x3f8] sm:$0xff] }
  0x77   : > { %15126 = vmatpush3.msra.mxu0 %v13903_v18  ;;  %v14003_v18 = vld [vmem:[%s22195_s3 + $0x3f0] sm:$0xff] }
  0xc2   : > { %v569_v19 = vpop.permute.xlu0 %568 }
 0x118   : > { %v641_v20 = vpop.f32.mrf.mxu0 }
 0x119   : > { %v642_v21 = vadd.f32 %v641_v20, %v569_v19  ;;  %v14002_v20 = vld [vmem:[%s22195_s3 + $0x3e8] sm:$0xff] }
 0x11a   : > { %v643_v22 = vpop.f32.mrf.mxu0 }
 0x11b   : > { %v644_v23 = vadd.f32 %v643_v22, %v569_v19  ;;  %v648_v24 = vmul.f32 0.2, %v642_v21  ;;  %vm646_vm1 = vcmp.gt.f32.partialorder %v642_v21, 0.0  ;;  %v13987_v19 = vld [vmem:[%s22195_s3 + $0x370] sm:$0xff]  ;;  %v14001_v22 = vld [vmem:[%s22195_s3 + $0x3e0] sm:$0xff] }
 0x11d   : > { %vm647_vm2 = vcmp.gt.f32.partialorder %v644_v23, 0.0  ;;  %v649_v25 = vmul.f32 0.2, %v644_v23  ;;  %v18727_v27 = vsel %vm646_vm1, %v642_v21, %v648_v24  ;;  %v13986_v21 = vld [vmem:[%s22195_s3 + $0x368] sm:$0xff]  ;;  %v14000_v24 = vld [vmem:[%s22195_s3 + $0x3d8] sm:$0xff] }
 0x11f   : > { %v18725_v26 = vsel %vm647_vm2, %v644_v23, %v649_v25  ;;  %v13985_v23 = vld [vmem:[%s22195_s3 + $0x360] sm:$0xff]  ;;  %v13984_v25 = vld [vmem:[%s22195_s3 + $0x358] sm:$0xff] }
 0x120   : > { %748 = vmatprep.mubr.f32.mxu1 %v18725_v26  ;;  %853 = vmatprep.mubr.f32.mxu0 %v18725_v26 }
 0x121   : > { %749 = vmatmul.mubr.f32.vlgmr.msra.gmra.mxu1 %v18727_v27  ;;  %854 = vmatmul.mubr.f32.vlgmr.msra.gmra.mxu0 %v18727_v27 }
 0x122   : > { %16518 = vmatprep.mubr.msk.f32.mxu0 %vm862_vm3, %v860_v28  ;;  %16523 = vmatprep.mubr.msk.f32.mxu1 %vm862_vm3, %v754_v29  ;;  %v13999_v28 = vld [vmem:[%s22195_s3 + $0x3d0] sm:$0xff] }
 0x123   : > { %v13983_v29 = vld [vmem:[%s22195_s3 + $0x350] sm:$0xff] }
 0x1e1   : > { %v15092_v30 = vpop.f32.mrf.mxu1  ;;  %v15127_v31 = vpop.f32.mrf.mxu0 }
 0x1e3   : > { %v15093_v32 = vpop.f32.mrf.mxu1  ;;  %v15128_v33 = vpop.f32.mrf.mxu0 }
 0x1e4   : > { %v15094_v34 = vadd.f32 %v15093_v32, %v15092_v30  ;;  %v15129_v35 = vadd.f32 %v15128_v33, %v15127_v31  ;;  %v13998_v30 = vld [vmem:[%s22195_s3 + $0x3c8] sm:$0xff]  ;;  %v13997_v32 = vld [vmem:[%s22195_s3 + $0x3c0] sm:$0xff] }
 0x1e5   : > { %v13982_v31 = vld [vmem:[%s22195_s3 + $0x348] sm:$0xff]  ;;  %v13981_v33 = vld [vmem:[%s22195_s3 + $0x340] sm:$0xff] }
 0x1e6   : > { %16516 = vmatprep.subr.mxu0 %v15129_v35  ;;  %16521 = vmatprep.subr.mxu1 %v15094_v34 }
 0x1e7   : > { %16517 = vmatpush3.msra.mxu0 %v15129_v35  ;;  %16522 = vmatpush3.msra.mxu1 %v15094_v34  ;;  %v13996_v34 = vld [vmem:[%s22195_s3 + $0x3b8] sm:$0xff] }
 0x1e8   : > { %16519 = vmatmul.mubr.msk.f32.vlgmr.msra.gmra.mxu0 %vm862_vm3, %v861_v36  ;;  %16524 = vmatmul.mubr.msk.f32.vlgmr.msra.gmra.mxu1 %vm862_vm3, %v755_v37  ;;  %v13980_v35 = vld [vmem:[%s22195_s3 + $0x338] sm:$0xff]  ;;  %v13995_v36 = vld [vmem:[%s22195_s3 + $0x3b0] sm:$0xff] }
 0x1e9   : > { %15136 = vmatprep.subr.mxu1 %v13970_v38  ;;  %1122 = vmatprep.mubr.f32.mxu1 %v18725_v26  ;;  %v13979_v37 = vld [vmem:[%s22195_s3 + $0x330] sm:$0xff]  ;;  %v13994_v38 = vld [vmem:[%s22195_s3 + $0x3a8] sm:$0xff] }
 0x1ea   : > { %15137 = vmatpush3.msra.mxu1 %v13954_v39  ;;  %16528 = vmatprep.mubr.msk.f32.mxu0 %vm862_vm3, %v1129_v7  ;;  %v13978_v39 = vld [vmem:[%s22195_s3 + $0x328] sm:$0xff]  ;;  %v14017_v7 = vld [vmem:[%s22195_s3 + $0x450] sm:$0xff] }
 0x1eb   : > { %15138 = vmatprep.subr.mxu1 %v13969_v40  ;;  %v13993_v40 = vld [vmem:[%s22195_s3 + $0x3a0] sm:$0xff] }
 0x1ec   : > { %15139 = vmatpush3.msra.mxu1 %v13953_v41  ;;  %v13977_v41 = vld [vmem:[%s22195_s3 + $0x320] sm:$0xff] }
 0x1ed   : > { %15140 = vmatprep.subr.mxu1 %v13968_v42  ;;  %v13992_v42 = vld [vmem:[%s22195_s3 + $0x398] sm:$0xff] }
 0x1ee   : > { %15141 = vmatpush3.msra.mxu1 %v13952_v43  ;;  %v13976_v43 = vld [vmem:[%s22195_s3 + $0x318] sm:$0xff] }
 0x1ef   : > { %15142 = vmatprep.subr.mxu1 %v13967_v44  ;;  %v13991_v44 = vld [vmem:[%s22195_s3 + $0x390] sm:$0xff] }
 0x1f0   : > { %15143 = vmatpush3.msra.mxu1 %v13951_v45  ;;  %v13975_v45 = vld [vmem:[%s22195_s3 + $0x310] sm:$0xff] }
 0x1f1   : > { %15144 = vmatprep.subr.mxu1 %v13966_v46  ;;  %v13990_v46 = vld [vmem:[%s22195_s3 + $0x388] sm:$0xff] }
 0x1f2   : > { %15145 = vmatpush3.msra.mxu1 %v13950_v47  ;;  %v13974_v47 = vld [vmem:[%s22195_s3 + $0x308] sm:$0xff] }
 0x1f3   : > { %15146 = vmatprep.subr.mxu1 %v13965_v48  ;;  %v13989_v48 = vld [vmem:[%s22195_s3 + $0x380] sm:$0xff] }
 0x1f4   : > { %15147 = vmatpush3.msra.mxu1 %v13949_v49  ;;  %v13973_v49 = vld [vmem:[%s22195_s3 + $0x300] sm:$0xff] }
 0x1f5   : > { %15148 = vmatprep.subr.mxu1 %v13964_v50  ;;  %v1318_v50 = vld [vmem:[#allocation3 + $0x30] sm:$0xff] }
 0x1f6   : > { %15149 = vmatpush3.msra.mxu1 %v13948_v51 }
 0x1f7   : > { %15150 = vmatprep.subr.mxu1 %v13963_v52 }
 0x1f8   : > { %15151 = vmatpush3.msra.mxu1 %v13947_v53 }
 0x1f9   : > { %15152 = vmatprep.subr.mxu1 %v13962_v54 }
 0x1fa   : > { %15153 = vmatpush3.msra.mxu1 %v13946_v55 }
 0x1fb   : > { %15154 = vmatprep.subr.mxu1 %v13961_v56 }
 0x1fc   : > { %15155 = vmatpush3.msra.mxu1 %v13945_v57 }
 0x1fd   : > { %15156 = vmatprep.subr.mxu1 %v13960_v58  ;;  %v1319_v58 = vld [vmem:[#allocation3 + $0x38] sm:$0xff] }
 0x1fe   : > { %15157 = vmatpush3.msra.mxu1 %v13944_v59  ;;  %v14038_v59 = vld [vmem:[%s22195_s3 + $0x4f8] sm:$0xff] }
 0x1ff   : > { %15158 = vmatprep.subr.mxu1 %v13959_v60  ;;  %v14022_v60 = vld [vmem:[%s22195_s3 + $0x478] sm:$0xff] }
 0x200   : > { %15159 = vmatpush3.msra.mxu1 %v13943_v61  ;;  %v14037_v61 = vld [vmem:[%s22195_s3 + $0x4f0] sm:$0xff] }
 0x201   : > { %15160 = vmatprep.subr.mxu1 %v13958_v62  ;;  %v14021_v62 = vld [vmem:[%s22195_s3 + $0x470] sm:$0xff] }
 0x202   : > { %15161 = vmatpush3.msra.mxu1 %v13942_v63  ;;  %v14036_v63 = vld [vmem:[%s22195_s3 + $0x4e8] sm:$0xff] }
 0x203   : > { %15162 = vmatprep.subr.mxu1 %v13957_v0  ;;  %v14020_v0 = vld [vmem:[%s22195_s3 + $0x468] sm:$0xff] }
 0x204   : > { %15163 = vmatpush3.msra.mxu1 %v13941_v2  ;;  %v14035_v2 = vld [vmem:[%s22195_s3 + $0x4e0] sm:$0xff] }
 0x205   : > { %15164 = vmatprep.subr.mxu1 %v13956_v3  ;;  %v14019_v3 = vld [vmem:[%s22195_s3 + $0x460] sm:$0xff] }
 0x206   : > { %15165 = vmatpush3.msra.mxu1 %v13940_v4  ;;  %v14034_v4 = vld [vmem:[%s22195_s3 + $0x4d8] sm:$0xff] }
 0x207   : > { %15166 = vmatprep.subr.mxu1 %v13955_v5  ;;  %v14018_v5 = vld [vmem:[%s22195_s3 + $0x458] sm:$0xff] }
 0x208   : > { %15167 = vmatpush3.msra.mxu1 %v13939_v6  ;;  %v14033_v6 = vld [vmem:[%s22195_s3 + $0x4d0] sm:$0xff] }
 0x209   : > { %1123 = vmatmul.mubr.f32.vlgmr.msra.gmra.mxu1 %v18727_v27 }
 0x20a   : > { %16533 = vmatprep.mubr.msk.f32.mxu1 %vm862_vm3, %v1318_v50  ;;  %v14051_v50 = vld [vmem:[%s22195_s3 + $0x550] sm:$0xff] }
 0x2a8   : > { %v16520_v8 = vpop.f32.mrf.mxu0  ;;  %v16525_v9 = vpop.f32.mrf.mxu1 }
 0x2a9   : > { %v18836_v10 = vadd.f32 %v16525_v9, %v16520_v8  ;;  %v14032_v8 = vld [vmem:[%s22195_s3 + $0x4c8] sm:$0xff] }
 0x2aa   : > { %v18838_v11 = vpop.f32.mrf.mxu1  ;;  %v18940_v51 = vpop.f32.mrf.mxu0  ;;  %v14016_v9 = vld [vmem:[%s22195_s3 + $0x448] sm:$0xff] }
 0x2c9   : > { %v15168_v12 = vpop.f32.mrf.mxu1 }
 0x2cb   : > { %v15169_v13 = vpop.f32.mrf.mxu1 }
 0x2cc   : > { %v15170_v14 = vadd.f32 %v15169_v13, %v15168_v12  ;;  %v14015_v12 = vld [vmem:[%s22195_s3 + $0x440] sm:$0xff]  ;;  %v14030_v13 = vld [vmem:[%s22195_s3 + $0x4b8] sm:$0xff] }
 0x2ce   : > { %16526 = vmatprep.subr.mxu0 %v15170_v14 }
 0x2cf   : > { %16527 = vmatpush3.msra.mxu0 %v15170_v14  ;;  %v14014_v14 = vld [vmem:[%s22195_s3 + $0x438] sm:$0xff] }
 0x2d0   : > { %16529 = vmatmul.mubr.msk.f32.vlgmr.msra.gmra.mxu0 %vm862_vm3, %v1130_v15  ;;  %15174 = vmatprep.subr.mxu0 %v14004_v16  ;;  %v14029_v15 = vld [vmem:[%s22195_s3 + $0x4b0] sm:$0xff] }
 0x2d1   : > { %15175 = vmatpush3.msra.mxu0 %v13988_v17  ;;  %1311 = vmatprep.mubr.f32.mxu0 %v18725_v26  ;;  %v14013_v16 = vld [vmem:[%s22195_s3 + $0x430] sm:$0xff]  ;;  %v14028_v17 = vld [vmem:[%s22195_s3 + $0x4a8] sm:$0xff] }
 0x2d2   : > { %15176 = vmatprep.subr.mxu0 %v14003_v18  ;;  %v14012_v18 = vld [vmem:[%s22195_s3 + $0x428] sm:$0xff] }
 0x2d3   : > { %15177 = vmatpush3.msra.mxu0 %v13987_v19  ;;  %v14027_v19 = vld [vmem:[%s22195_s3 + $0x4a0] sm:$0xff] }
 0x2d4   : > { %15178 = vmatprep.subr.mxu0 %v14002_v20  ;;  %v14011_v20 = vld [vmem:[%s22195_s3 + $0x420] sm:$0xff] }
 0x2d5   : > { %15179 = vmatpush3.msra.mxu0 %v13986_v21  ;;  %v14026_v21 = vld [vmem:[%s22195_s3 + $0x498] sm:$0xff] }
 0x2d6   : > { %15180 = vmatprep.subr.mxu0 %v14001_v22  ;;  %v14010_v22 = vld [vmem:[%s22195_s3 + $0x418] sm:$0xff] }
 0x2d7   : > { %15181 = vmatpush3.msra.mxu0 %v13985_v23  ;;  %v14025_v23 = vld [vmem:[%s22195_s3 + $0x490] sm:$0xff] }
 0x2d8   : > { %15182 = vmatprep.subr.mxu0 %v14000_v24  ;;  %v14009_v24 = vld [vmem:[%s22195_s3 + $0x410] sm:$0xff] }
 0x2d9   : > { %15183 = vmatpush3.msra.mxu0 %v13984_v25  ;;  %v14024_v25 = vld [vmem:[%s22195_s3 + $0x488] sm:$0xff] }
 0x2da   : > { %15184 = vmatprep.subr.mxu0 %v13999_v28  ;;  %v14008_v28 = vld [vmem:[%s22195_s3 + $0x408] sm:$0xff] }
 0x2db   : > { %15185 = vmatpush3.msra.mxu0 %v13983_v29  ;;  %v14023_v29 = vld [vmem:[%s22195_s3 + $0x480] sm:$0xff] }
 0x2dc   : > { %15186 = vmatprep.subr.mxu0 %v13998_v30  ;;  %v14007_v30 = vld [vmem:[%s22195_s3 + $0x400] sm:$0xff] }
 0x2dd   : > { %15187 = vmatpush3.msra.mxu0 %v13982_v31  ;;  %v1507_v31 = vld [vmem:[#allocation3 + $0x40] sm:$0xff] }
 0x2de   : > { %15188 = vmatprep.subr.mxu0 %v13997_v32 }
 0x2df   : > { %15189 = vmatpush3.msra.mxu0 %v13981_v33 }
 0x2e0   : > { %15190 = vmatprep.subr.mxu0 %v13996_v34 }
 0x2e1   : > { %15191 = vmatpush3.msra.mxu0 %v13980_v35 }
 0x2e2   : > { %15192 = vmatprep.subr.mxu0 %v13995_v36 }
 0x2e3   : > { %15193 = vmatpush3.msra.mxu0 %v13979_v37 }
 0x2e4   : > { %15194 = vmatprep.subr.mxu0 %v13994_v38  ;;  %v1508_v38 = vld [vmem:[#allocation3 + $0x48] sm:$0xff] }
 0x2e5   : > { %15195 = vmatpush3.msra.mxu0 %v13978_v39  ;;  %v14072_v39 = vld [vmem:[%s22195_s3 + $0x5f8] sm:$0xff] }
 0x2e6   : > { %15196 = vmatprep.subr.mxu0 %v13993_v40  ;;  %v14056_v40 = vld [vmem:[%s22195_s3 + $0x578] sm:$0xff] }
 0x2e7   : > { %15197 = vmatpush3.msra.mxu0 %v13977_v41  ;;  %v14071_v41 = vld [vmem:[%s22195_s3 + $0x5f0] sm:$0xff] }
 0x2e8   : > { %15198 = vmatprep.subr.mxu0 %v13992_v42  ;;  %v14055_v42 = vld [vmem:[%s22195_s3 + $0x570] sm:$0xff] }
 0x2e9   : > { %15199 = vmatpush3.msra.mxu0 %v13976_v43  ;;  %v14070_v43 = vld [vmem:[%s22195_s3 + $0x5e8] sm:$0xff] }
 0x2ea   : > { %15200 = vmatprep.subr.mxu0 %v13991_v44  ;;  %v14054_v44 = vld [vmem:[%s22195_s3 + $0x568] sm:$0xff] }
 0x2eb   : > { %15201 = vmatpush3.msra.mxu0 %v13975_v45  ;;  %v14069_v45 = vld [vmem:[%s22195_s3 + $0x5e0] sm:$0xff] }
 0x2ec   : > { %15202 = vmatprep.subr.mxu0 %v13990_v46  ;;  %v14053_v46 = vld [vmem:[%s22195_s3 + $0x560] sm:$0xff] }
 0x2ed   : > { %15203 = vmatpush3.msra.mxu0 %v13974_v47  ;;  %v14068_v47 = vld [vmem:[%s22195_s3 + $0x5d8] sm:$0xff] }
 0x2ee   : > { %15204 = vmatprep.subr.mxu0 %v13989_v48  ;;  %v14052_v48 = vld [vmem:[%s22195_s3 + $0x558] sm:$0xff] }
 0x2ef   : > { %15205 = vmatpush3.msra.mxu0 %v13973_v49  ;;  %v14067_v49 = vld [vmem:[%s22195_s3 + $0x5d0] sm:$0xff] }
 0x2f0   : > { %1312 = vmatmul.mubr.f32.vlgmr.msra.gmra.mxu0 %v18727_v27 }
 0x2f1   : > { %16538 = vmatprep.mubr.msk.f32.mxu0 %vm862_vm3, %v1507_v31  ;;  %v14101_v31 = vld [vmem:[%s22195_s3 + $0x6d0] sm:$0xff] }
 0x390   : > { %v16530_v52 = vpop.f32.mrf.mxu0 }
 0x391   : > { %v18943_v53 = vadd.f32 %v16530_v52, %v18836_v10  ;;  %v14031_v10 = vld [vmem:[%s22195_s3 + $0x4c0] sm:$0xff]  ;;  %v14066_v52 = vld [vmem:[%s22195_s3 + $0x5c8] sm:$0xff] }
 0x392   : > { %v18945_v54 = vpop.f32.mrf.mxu0 }
 0x3b0   : > { %v15206_v55 = vpop.f32.mrf.mxu0 }
 0x3b2   : > { %v15207_v56 = vpop.f32.mrf.mxu0 }
 0x3b3   : > { %v15208_v57 = vadd.f32 %v15207_v56, %v15206_v55  ;;  %v14065_v55 = vld [vmem:[%s22195_s3 + $0x5c0] sm:$0xff] }
 0x3b4   : > { %v14049_v56 = vld [vmem:[%s22195_s3 + $0x540] sm:$0xff] }
 0x3b5   : > { %16531 = vmatprep.subr.mxu1 %v15208_v57 }
 0x3b6   : > { %16532 = vmatpush3.msra.mxu1 %v15208_v57  ;;  %v14064_v57 = vld [vmem:[%s22195_s3 + $0x5b8] sm:$0xff] }
 0x3b7   : > { %16534 = vmatmul.mubr.msk.f32.vlgmr.msra.gmra.mxu1 %vm862_vm3, %v1319_v58  ;;  %15212 = vmatprep.subr.mxu1 %v14038_v59  ;;  %v14048_v58 = vld [vmem:[%s22195_s3 + $0x538] sm:$0xff]  ;;  %v14063_v59 = vld [vmem:[%s22195_s3 + $0x5b0] sm:$0xff] }
 0x3b8   : > { %15213 = vmatpush3.msra.mxu1 %v14022_v60  ;;  %1500 = vmatprep.mubr.f32.mxu1 %v18725_v26  ;;  %v14047_v60 = vld [vmem:[%s22195_s3 + $0x530] sm:$0xff] }
 0x3b9   : > { %15214 = vmatprep.subr.mxu1 %v14037_v61  ;;  %v14062_v61 = vld [vmem:[%s22195_s3 + $0x5a8] sm:$0xff] }
 0x3ba   : > { %15215 = vmatpush3.msra.mxu1 %v14021_v62  ;;  %v14046_v62 = vld [vmem:[%s22195_s3 + $0x528] sm:$0xff] }
 0x3bb   : > { %15216 = vmatprep.subr.mxu1 %v14036_v63  ;;  %v14061_v63 = vld [vmem:[%s22195_s3 + $0x5a0] sm:$0xff] }
 0x3bc   : > { %15217 = vmatpush3.msra.mxu1 %v14020_v0  ;;  %v14045_v0 = vld [vmem:[%s22195_s3 + $0x520] sm:$0xff] }
 0x3bd   : > { %15218 = vmatprep.subr.mxu1 %v14035_v2  ;;  %v14060_v2 = vld [vmem:[%s22195_s3 + $0x598] sm:$0xff] }
 0x3be   : > { %15219 = vmatpush3.msra.mxu1 %v14019_v3  ;;  %v14044_v3 = vld [vmem:[%s22195_s3 + $0x518] sm:$0xff] }
 0x3bf   : > { %15220 = vmatprep.subr.mxu1 %v14034_v4  ;;  %v14059_v4 = vld [vmem:[%s22195_s3 + $0x590] sm:$0xff] }
 0x3c0   : > { %15221 = vmatpush3.msra.mxu1 %v14018_v5  ;;  %v14043_v5 = vld [vmem:[%s22195_s3 + $0x510] sm:$0xff] }
 0x3c1   : > { %15222 = vmatprep.subr.mxu1 %v14033_v6  ;;  %v14058_v6 = vld [vmem:[%s22195_s3 + $0x588] sm:$0xff] }
 0x3c2   : > { %15223 = vmatpush3.msra.mxu1 %v14017_v7  ;;  %v14042_v7 = vld [vmem:[%s22195_s3 + $0x508] sm:$0xff] }
 0x3c3   : > { %15224 = vmatprep.subr.mxu1 %v14032_v8  ;;  %v14057_v8 = vld [vmem:[%s22195_s3 + $0x580] sm:$0xff] }
 0x3c4   : > { %15225 = vmatpush3.msra.mxu1 %v14016_v9  ;;  %v14041_v9 = vld [vmem:[%s22195_s3 + $0x500] sm:$0xff] }
 0x3c5   : > { %15226 = vmatprep.subr.mxu1 %v14031_v10  ;;  %v1696_v10 = vld [vmem:[#allocation3 + $0x50] sm:$0xff] }
 0x3c6   : > { %15227 = vmatpush3.msra.mxu1 %v14015_v12 }
 0x3c7   : > { %15228 = vmatprep.subr.mxu1 %v14030_v13 }
 0x3c8   : > { %15229 = vmatpush3.msra.mxu1 %v14014_v14 }
 0x3c9   : > { %15230 = vmatprep.subr.mxu1 %v14029_v15 }
 0x3ca   : > { %15231 = vmatpush3.msra.mxu1 %v14013_v16 }
 0x3cb   : > { %15232 = vmatprep.subr.mxu1 %v14028_v17 }
 0x3cc   : > { %15233 = vmatpush3.msra.mxu1 %v14012_v18  ;;  %v1697_v18 = vld [vmem:[#allocation3 + $0x58] sm:$0xff] }
 0x3cd   : > { %15234 = vmatprep.subr.mxu1 %v14027_v19  ;;  %v14106_v19 = vld [vmem:[%s22195_s3 + $0x6f8] sm:$0xff] }
 0x3ce   : > { %15235 = vmatpush3.msra.mxu1 %v14011_v20  ;;  %v14090_v20 = vld [vmem:[%s22195_s3 + $0x678] sm:$0xff] }
 0x3cf   : > { %15236 = vmatprep.subr.mxu1 %v14026_v21  ;;  %v14105_v21 = vld [vmem:[%s22195_s3 + $0x6f0] sm:$0xff] }
 0x3d0   : > { %15237 = vmatpush3.msra.mxu1 %v14010_v22  ;;  %v14089_v22 = vld [vmem:[%s22195_s3 + $0x670] sm:$0xff] }
 0x3d1   : > { %15238 = vmatprep.subr.mxu1 %v14025_v23  ;;  %v14104_v23 = vld [vmem:[%s22195_s3 + $0x6e8] sm:$0xff] }
 0x3d2   : > { %15239 = vmatpush3.msra.mxu1 %v14009_v24  ;;  %v14088_v24 = vld [vmem:[%s22195_s3 + $0x668] sm:$0xff] }
 0x3d3   : > { %15240 = vmatprep.subr.mxu1 %v14024_v25  ;;  %v14103_v25 = vld [vmem:[%s22195_s3 + $0x6e0] sm:$0xff] }
 0x3d4   : > { %15241 = vmatpush3.msra.mxu1 %v14008_v28  ;;  %v14087_v28 = vld [vmem:[%s22195_s3 + $0x660] sm:$0xff] }
 0x3d5   : > { %15242 = vmatprep.subr.mxu1 %v14023_v29  ;;  %v14102_v29 = vld [vmem:[%s22195_s3 + $0x6d8] sm:$0xff] }
 0x3d6   : > { %15243 = vmatpush3.msra.mxu1 %v14007_v30  ;;  %v14086_v30 = vld [vmem:[%s22195_s3 + $0x658] sm:$0xff] }
 0x3d7   : > { %1501 = vmatmul.mubr.f32.vlgmr.msra.gmra.mxu1 %v18727_v27 }
 0x3d8   : > { %16543 = vmatprep.mubr.msk.f32.mxu1 %vm862_vm3, %v1696_v10  ;;  %v14120_v10 = vld [vmem:[%s22195_s3 + $0x758] sm:$0xff] }
 0x477   : > { %v16535_v32 = vpop.f32.mrf.mxu1 }
 0x478   : > { %v19048_v33 = vadd.f32 %v16535_v32, %v18943_v53  ;;  %v14050_v53 = vld [vmem:[%s22195_s3 + $0x548] sm:$0xff]  ;;  %v14085_v32 = vld [vmem:[%s22195_s3 + $0x650] sm:$0xff] }
 0x479   : > { %v19050_v34 = vpop.f32.mrf.mxu1 }
 0x497   : > { %v15244_v35 = vpop.f32.mrf.mxu1 }
 0x499   : > { %v15245_v36 = vpop.f32.mrf.mxu1 }
 0x49a   : > { %v15246_v37 = vadd.f32 %v15245_v36, %v15244_v35  ;;  %v14084_v35 = vld [vmem:[%s22195_s3 + $0x648] sm:$0xff]  ;;  %v14099_v36 = vld [vmem:[%s22195_s3 + $0x6c0] sm:$0xff] }
 0x49c   : > { %16536 = vmatprep.subr.mxu0 %v15246_v37 }
 0x49d   : > { %16537 = vmatpush3.msra.mxu0 %v15246_v37  ;;  %v14083_v37 = vld [vmem:[%s22195_s3 + $0x640] sm:$0xff] }
 0x49e   : > { %16539 = vmatmul.mubr.msk.f32.vlgmr.msra.gmra.mxu0 %vm862_vm3, %v1508_v38  ;;  %15250 = vmatprep.subr.mxu0 %v14072_v39  ;;  %v14098_v38 = vld [vmem:[%s22195_s3 + $0x6b8] sm:$0xff] }
 0x49f   : > { %15251 = vmatpush3.msra.mxu0 %v14056_v40  ;;  %1689 = vmatprep.mubr.f32.mxu0 %v18725_v26  ;;  %v14082_v39 = vld [vmem:[%s22195_s3 + $0x638] sm:$0xff]  ;;  %v14097_v40 = vld [vmem:[%s22195_s3 + $0x6b0] sm:$0xff] }
 0x4a0   : > { %15252 = vmatprep.subr.mxu0 %v14071_v41  ;;  %v14081_v41 = vld [vmem:[%s22195_s3 + $0x630] sm:$0xff] }
 0x4a1   : > { %15253 = vmatpush3.msra.mxu0 %v14055_v42  ;;  %v14096_v42 = vld [vmem:[%s22195_s3 + $0x6a8] sm:$0xff] }
 0x4a2   : > { %15254 = vmatprep.subr.mxu0 %v14070_v43  ;;  %v14080_v43 = vld [vmem:[%s22195_s3 + $0x628] sm:$0xff] }
 0x4a3   : > { %15255 = vmatpush3.msra.mxu0 %v14054_v44  ;;  %v14095_v44 = vld [vmem:[%s22195_s3 + $0x6a0] sm:$0xff] }
 0x4a4   : > { %15256 = vmatprep.subr.mxu0 %v14069_v45  ;;  %v14079_v45 = vld [vmem:[%s22195_s3 + $0x620] sm:$0xff] }
 0x4a5   : > { %15257 = vmatpush3.msra.mxu0 %v14053_v46  ;;  %v14094_v46 = vld [vmem:[%s22195_s3 + $0x698] sm:$0xff] }
 0x4a6   : > { %15258 = vmatprep.subr.mxu0 %v14068_v47  ;;  %v14078_v47 = vld [vmem:[%s22195_s3 + $0x618] sm:$0xff] }
 0x4a7   : > { %15259 = vmatpush3.msra.mxu0 %v14052_v48  ;;  %v14093_v48 = vld [vmem:[%s22195_s3 + $0x690] sm:$0xff] }
 0x4a8   : > { %15260 = vmatprep.subr.mxu0 %v14067_v49  ;;  %v14077_v49 = vld [vmem:[%s22195_s3 + $0x610] sm:$0xff] }
 0x4a9   : > { %15261 = vmatpush3.msra.mxu0 %v14051_v50  ;;  %v14092_v50 = vld [vmem:[%s22195_s3 + $0x688] sm:$0xff] }
 0x4aa   : > { %15262 = vmatprep.subr.mxu0 %v14066_v52  ;;  %v14076_v52 = vld [vmem:[%s22195_s3 + $0x608] sm:$0xff] }
 0x4ab   : > { %15263 = vmatpush3.msra.mxu0 %v14050_v53  ;;  %v14091_v53 = vld [vmem:[%s22195_s3 + $0x680] sm:$0xff] }
 0x4ac   : > { %15264 = vmatprep.subr.mxu0 %v14065_v55  ;;  %v14075_v55 = vld [vmem:[%s22195_s3 + $0x600] sm:$0xff] }
 0x4ad   : > { %15265 = vmatpush3.msra.mxu0 %v14049_v56  ;;  %v1885_v56 = vld [vmem:[#allocation3 + $0x60] sm:$0xff] }
 0x4ae   : > { %15266 = vmatprep.subr.mxu0 %v14064_v57 }
 0x4af   : > { %15267 = vmatpush3.msra.mxu0 %v14048_v58 }
 0x4b0   : > { %15268 = vmatprep.subr.mxu0 %v14063_v59 }
 0x4b1   : > { %15269 = vmatpush3.msra.mxu0 %v14047_v60 }
 0x4b2   : > { %15270 = vmatprep.subr.mxu0 %v14062_v61 }
 0x4b3   : > { %15271 = vmatpush3.msra.mxu0 %v14046_v62 }
 0x4b4   : > { %15272 = vmatprep.subr.mxu0 %v14061_v63  ;;  %v1886_v63 = vld [vmem:[#allocation3 + $0x68] sm:$0xff] }
 0x4b5   : > { %15273 = vmatpush3.msra.mxu0 %v14045_v0  ;;  %v14140_v0 = vld [vmem:[%s22195_s3 + $0x7f8] sm:$0xff] }
 0x4b6   : > { %15274 = vmatprep.subr.mxu0 %v14060_v2  ;;  %v14124_v2 = vld [vmem:[%s22195_s3 + $0x778] sm:$0xff] }
 0x4b7   : > { %15275 = vmatpush3.msra.mxu0 %v14044_v3  ;;  %v14139_v3 = vld [vmem:[%s22195_s3 + $0x7f0] sm:$0xff] }
 0x4b8   : > { %15276 = vmatprep.subr.mxu0 %v14059_v4  ;;  %v14123_v4 = vld [vmem:[%s22195_s3 + $0x770] sm:$0xff] }
 0x4b9   : > { %15277 = vmatpush3.msra.mxu0 %v14043_v5  ;;  %v14138_v5 = vld [vmem:[%s22195_s3 + $0x7e8] sm:$0xff] }
 0x4ba   : > { %15278 = vmatprep.subr.mxu0 %v14058_v6  ;;  %v14122_v6 = vld [vmem:[%s22195_s3 + $0x768] sm:$0xff] }
 0x4bb   : > { %15279 = vmatpush3.msra.mxu0 %v14042_v7  ;;  %v14137_v7 = vld [vmem:[%s22195_s3 + $0x7e0] sm:$0xff] }
 0x4bc   : > { %15280 = vmatprep.subr.mxu0 %v14057_v8  ;;  %v14121_v8 = vld [vmem:[%s22195_s3 + $0x760] sm:$0xff] }
 0x4bd   : > { %15281 = vmatpush3.msra.mxu0 %v14041_v9  ;;  %v14136_v9 = vld [vmem:[%s22195_s3 + $0x7d8] sm:$0xff] }
 0x4be   : > { %1690 = vmatmul.mubr.f32.vlgmr.msra.gmra.mxu0 %v18727_v27 }
 0x4bf   : > { %16548 = vmatprep.mubr.msk.f32.mxu0 %vm862_vm3, %v1885_v56  ;;  %v14170_v56 = vld [vmem:[%s22195_s3 + $0x8d8] sm:$0xff] }
 0x55e   : > { %v16540_v12 = vpop.f32.mrf.mxu0 }
 0x55f   : > { %v19153_v13 = vadd.f32 %v16540_v12, %v19048_v33  ;;  %v14100_v33 = vld [vmem:[%s22195_s3 + $0x6c8] sm:$0xff]  ;;  %v14135_v12 = vld [vmem:[%s22195_s3 + $0x7d0] sm:$0xff] }
 0x560   : > { %v19155_v14 = vpop.f32.mrf.mxu0 }
 0x57e   : > { %v15282_v15 = vpop.f32.mrf.mxu0 }
 0x580   : > { %v15283_v16 = vpop.f32.mrf.mxu0 }
 0x581   : > { %v15284_v17 = vadd.f32 %v15283_v16, %v15282_v15  ;;  %v14134_v15 = vld [vmem:[%s22195_s3 + $0x7c8] sm:$0xff] }
 0x582   : > { %v14118_v16 = vld [vmem:[%s22195_s3 + $0x748] sm:$0xff] }
 0x583   : > { %16541 = vmatprep.subr.mxu1 %v15284_v17 }
 0x584   : > { %16542 = vmatpush3.msra.mxu1 %v15284_v17  ;;  %v14133_v17 = vld [vmem:[%s22195_s3 + $0x7c0] sm:$0xff] }
 0x585   : > { %16544 = vmatmul.mubr.msk.f32.vlgmr.msra.gmra.mxu1 %vm862_vm3, %v1697_v18  ;;  %15288 = vmatprep.subr.mxu1 %v14106_v19  ;;  %v14117_v18 = vld [vmem:[%s22195_s3 + $0x740] sm:$0xff]  ;;  %v14132_v19 = vld [vmem:[%s22195_s3 + $0x7b8] sm:$0xff] }
 0x586   : > { %15289 = vmatpush3.msra.mxu1 %v14090_v20  ;;  %1878 = vmatprep.mubr.f32.mxu1 %v18725_v26  ;;  %v14116_v20 = vld [vmem:[%s22195_s3 + $0x738] sm:$0xff] }
 0x587   : > { %15290 = vmatprep.subr.mxu1 %v14105_v21  ;;  %v14131_v21 = vld [vmem:[%s22195_s3 + $0x7b0] sm:$0xff] }
 0x588   : > { %15291 = vmatpush3.msra.mxu1 %v14089_v22  ;;  %v14115_v22 = vld [vmem:[%s22195_s3 + $0x730] sm:$0xff] }
 0x589   : > { %15292 = vmatprep.subr.mxu1 %v14104_v23  ;;  %v14130_v23 = vld [vmem:[%s22195_s3 + $0x7a8] sm:$0xff] }
 0x58a   : > { %15293 = vmatpush3.msra.mxu1 %v14088_v24  ;;  %v14114_v24 = vld [vmem:[%s22195_s3 + $0x728] sm:$0xff] }
 0x58b   : > { %15294 = vmatprep.subr.mxu1 %v14103_v25  ;;  %v14129_v25 = vld [vmem:[%s22195_s3 + $0x7a0] sm:$0xff] }
 0x58c   : > { %15295 = vmatpush3.msra.mxu1 %v14087_v28  ;;  %v14113_v28 = vld [vmem:[%s22195_s3 + $0x720] sm:$0xff] }
 0x58d   : > { %15296 = vmatprep.subr.mxu1 %v14102_v29  ;;  %v14128_v29 = vld [vmem:[%s22195_s3 + $0x798] sm:$0xff] }
 0x58e   : > { %15297 = vmatpush3.msra.mxu1 %v14086_v30  ;;  %v14112_v30 = vld [vmem:[%s22195_s3 + $0x718] sm:$0xff] }
 0x58f   : > { %15298 = vmatprep.subr.mxu1 %v14101_v31  ;;  %v14127_v31 = vld [vmem:[%s22195_s3 + $0x790] sm:$0xff] }
 0x590   : > { %15299 = vmatpush3.msra.mxu1 %v14085_v32  ;;  %v14111_v32 = vld [vmem:[%s22195_s3 + $0x710] sm:$0xff] }
 0x591   : > { %15300 = vmatprep.subr.mxu1 %v14100_v33  ;;  %v14126_v33 = vld [vmem:[%s22195_s3 + $0x788] sm:$0xff] }
 0x592   : > { %15301 = vmatpush3.msra.mxu1 %v14084_v35  ;;  %v14110_v35 = vld [vmem:[%s22195_s3 + $0x708] sm:$0xff] }
 0x593   : > { %15302 = vmatprep.subr.mxu1 %v14099_v36  ;;  %v14125_v36 = vld [vmem:[%s22195_s3 + $0x780] sm:$0xff] }
 0x594   : > { %15303 = vmatpush3.msra.mxu1 %v14083_v37  ;;  %v14109_v37 = vld [vmem:[%s22195_s3 + $0x700] sm:$0xff] }
 0x595   : > { %15304 = vmatprep.subr.mxu1 %v14098_v38  ;;  %v2074_v38 = vld [vmem:[#allocation3 + $0x70] sm:$0xff] }
 0x596   : > { %15305 = vmatpush3.msra.mxu1 %v14082_v39 }
 0x597   : > { %15306 = vmatprep.subr.mxu1 %v14097_v40 }
 0x598   : > { %15307 = vmatpush3.msra.mxu1 %v14081_v41 }
 0x599   : > { %15308 = vmatprep.subr.mxu1 %v14096_v42 }
 0x59a   : > { %15309 = vmatpush3.msra.mxu1 %v14080_v43 }
 0x59b   : > { %15310 = vmatprep.subr.mxu1 %v14095_v44 }
 0x59c   : > { %15311 = vmatpush3.msra.mxu1 %v14079_v45  ;;  %v2075_v45 = vld [vmem:[#allocation3 + $0x78] sm:$0xff] }
 0x59d   : > { %15312 = vmatprep.subr.mxu1 %v14094_v46  ;;  %v14174_v46 = vld [vmem:[%s22195_s3 + $0x8f8] sm:$0xff] }
 0x59e   : > { %15313 = vmatpush3.msra.mxu1 %v14078_v47  ;;  %v14158_v47 = vld [vmem:[%s22195_s3 + $0x878] sm:$0xff] }
 0x59f   : > { %15314 = vmatprep.subr.mxu1 %v14093_v48  ;;  %v14173_v48 = vld [vmem:[%s22195_s3 + $0x8f0] sm:$0xff] }
 0x5a0   : > { %15315 = vmatpush3.msra.mxu1 %v14077_v49  ;;  %v14157_v49 = vld [vmem:[%s22195_s3 + $0x870] sm:$0xff] }
 0x5a1   : > { %15316 = vmatprep.subr.mxu1 %v14092_v50  ;;  %v14172_v50 = vld [vmem:[%s22195_s3 + $0x8e8] sm:$0xff] }
 0x5a2   : > { %15317 = vmatpush3.msra.mxu1 %v14076_v52  ;;  %v14156_v52 = vld [vmem:[%s22195_s3 + $0x868] sm:$0xff] }
 0x5a3   : > { %15318 = vmatprep.subr.mxu1 %v14091_v53  ;;  %v14171_v53 = vld [vmem:[%s22195_s3 + $0x8e0] sm:$0xff] }
 0x5a4   : > { %15319 = vmatpush3.msra.mxu1 %v14075_v55  ;;  %v14155_v55 = vld [vmem:[%s22195_s3 + $0x860] sm:$0xff] }
 0x5a5   : > { %1879 = vmatmul.mubr.f32.vlgmr.msra.gmra.mxu1 %v18727_v27 }
 0x5a6   : > { %16553 = vmatprep.mubr.msk.f32.mxu1 %vm862_vm3, %v2074_v38  ;;  %v14189_v38 = vld [vmem:[%s22195_s3 + $0x960] sm:$0xff] }
 0x645   : > { %v16545_v57 = vpop.f32.mrf.mxu1 }
 0x646   : > { %v19258_v58 = vadd.f32 %v16545_v57, %v19153_v13  ;;  %v14119_v13 = vld [vmem:[%s22195_s3 + $0x750] sm:$0xff]  ;;  %v14154_v57 = vld [vmem:[%s22195_s3 + $0x858] sm:$0xff] }
 0x647   : > { %v19260_v59 = vpop.f32.mrf.mxu1 }
 0x665   : > { %v15320_v60 = vpop.f32.mrf.mxu1 }
 0x667   : > { %v15321_v61 = vpop.f32.mrf.mxu1 }
 0x668   : > { %v15322_v62 = vadd.f32 %v15321_v61, %v15320_v60  ;;  %v14153_v60 = vld [vmem:[%s22195_s3 + $0x850] sm:$0xff]  ;;  %v14168_v61 = vld [vmem:[%s22195_s3 + $0x8c8] sm:$0xff] }
 0x66a   : > { %16546 = vmatprep.subr.mxu0 %v15322_v62 }
 0x66b   : > { %16547 = vmatpush3.msra.mxu0 %v15322_v62  ;;  %v14152_v62 = vld [vmem:[%s22195_s3 + $0x848] sm:$0xff] }
 0x66c   : > { %16549 = vmatmul.mubr.msk.f32.vlgmr.msra.gmra.mxu0 %vm862_vm3, %v1886_v63  ;;  %15326 = vmatprep.subr.mxu0 %v14140_v0  ;;  %v14167_v63 = vld [vmem:[%s22195_s3 + $0x8c0] sm:$0xff] }
 0x66d   : > { %15327 = vmatpush3.msra.mxu0 %v14124_v2  ;;  %2067 = vmatprep.mubr.f32.mxu0 %v18725_v26  ;;  %v14151_v0 = vld [vmem:[%s22195_s3 + $0x840] sm:$0xff]  ;;  %v14166_v2 = vld [vmem:[%s22195_s3 + $0x8b8] sm:$0xff] }
 0x66e   : > { %15328 = vmatprep.subr.mxu0 %v14139_v3  ;;  %v14150_v3 = vld [vmem:[%s22195_s3 + $0x838] sm:$0xff] }
 0x66f   : > { %15329 = vmatpush3.msra.mxu0 %v14123_v4  ;;  %v14165_v4 = vld [vmem:[%s22195_s3 + $0x8b0] sm:$0xff] }
 0x670   : > { %15330 = vmatprep.subr.mxu0 %v14138_v5  ;;  %v14149_v5 = vld [vmem:[%s22195_s3 + $0x830] sm:$0xff] }
 0x671   : > { %15331 = vmatpush3.msra.mxu0 %v14122_v6  ;;  %v14164_v6 = vld [vmem:[%s22195_s3 + $0x8a8] sm:$0xff] }
 0x672   : > { %15332 = vmatprep.subr.mxu0 %v14137_v7  ;;  %v14148_v7 = vld [vmem:[%s22195_s3 + $0x828] sm:$0xff] }
 0x673   : > { %15333 = vmatpush3.msra.mxu0 %v14121_v8  ;;  %v14163_v8 = vld [vmem:[%s22195_s3 + $0x8a0] sm:$0xff] }
 0x674   : > { %15334 = vmatprep.subr.mxu0 %v14136_v9  ;;  %v14147_v9 = vld [vmem:[%s22195_s3 + $0x820] sm:$0xff] }
 0x675   : > { %15335 = vmatpush3.msra.mxu0 %v14120_v10  ;;  %v14162_v10 = vld [vmem:[%s22195_s3 + $0x898] sm:$0xff] }
 0x676   : > { %15336 = vmatprep.subr.mxu0 %v14135_v12  ;;  %v14146_v12 = vld [vmem:[%s22195_s3 + $0x818] sm:$0xff] }
 0x677   : > { %15337 = vmatpush3.msra.mxu0 %v14119_v13  ;;  %v14161_v13 = vld [vmem:[%s22195_s3 + $0x890] sm:$0xff] }
 0x678   : > { %15338 = vmatprep.subr.mxu0 %v14134_v15  ;;  %v14145_v15 = vld [vmem:[%s22195_s3 + $0x810] sm:$0xff] }
 0x679   : > { %15339 = vmatpush3.msra.mxu0 %v14118_v16  ;;  %v14160_v16 = vld [vmem:[%s22195_s3 + $0x888] sm:$0xff] }
 0x67a   : > { %15340 = vmatprep.subr.mxu0 %v14133_v17  ;;  %v14144_v17 = vld [vmem:[%s22195_s3 + $0x808] sm:$0xff] }
 0x67b   : > { %15341 = vmatpush3.msra.mxu0 %v14117_v18  ;;  %v14159_v18 = vld [vmem:[%s22195_s3 + $0x880] sm:$0xff] }
 0x67c   : > { %15342 = vmatprep.subr.mxu0 %v14132_v19  ;;  %v14143_v19 = vld [vmem:[%s22195_s3 + $0x800] sm:$0xff] }
 0x67d   : > { %15343 = vmatpush3.msra.mxu0 %v14116_v20  ;;  %v2263_v20 = vld [vmem:[#allocation3 + $0x80] sm:$0xff] }
 0x67e   : > { %15344 = vmatprep.subr.mxu0 %v14131_v21 }
 0x67f   : > { %15345 = vmatpush3.msra.mxu0 %v14115_v22 }
 0x680   : > { %15346 = vmatprep.subr.mxu0 %v14130_v23 }
 0x681   : > { %15347 = vmatpush3.msra.mxu0 %v14114_v24 }
 0x682   : > { %15348 = vmatprep.subr.mxu0 %v14129_v25 }
 0x683   : > { %15349 = vmatpush3.msra.mxu0 %v14113_v28 }
 0x684   : > { %15350 = vmatprep.subr.mxu0 %v14128_v29  ;;  %v2264_v29 = vld [vmem:[#allocation3 + $0x88] sm:$0xff] }
 0x685   : > { %15351 = vmatpush3.msra.mxu0 %v14112_v30  ;;  %v14208_v30 = vld [vmem:[%s22195_s3 + $0x9f8] sm:$0xff] }
 0x686   : > { %15352 = vmatprep.subr.mxu0 %v14127_v31  ;;  %v14192_v31 = vld [vmem:[%s22195_s3 + $0x978] sm:$0xff] }
 0x687   : > { %15353 = vmatpush3.msra.mxu0 %v14111_v32  ;;  %v14207_v32 = vld [vmem:[%s22195_s3 + $0x9f0] sm:$0xff] }
 0x688   : > { %15354 = vmatprep.subr.mxu0 %v14126_v33  ;;  %v14191_v33 = vld [vmem:[%s22195_s3 + $0x970] sm:$0xff] }
 0x689   : > { %15355 = vmatpush3.msra.mxu0 %v14110_v35  ;;  %v14206_v35 = vld [vmem:[%s22195_s3 + $0x9e8] sm:$0xff] }
 0x68a   : > { %15356 = vmatprep.subr.mxu0 %v14125_v36  ;;  %v14190_v36 = vld [vmem:[%s22195_s3 + $0x968] sm:$0xff] }
 0x68b   : > { %15357 = vmatpush3.msra.mxu0 %v14109_v37  ;;  %v14205_v37 = vld [vmem:[%s22195_s3 + $0x9e0] sm:$0xff] }
 0x68c   : > { %2068 = vmatmul.mubr.f32.vlgmr.msra.gmra.mxu0 %v18727_v27 }
 0x68d   : > { %16558 = vmatprep.mubr.msk.f32.mxu0 %vm862_vm3, %v2263_v20  ;;  %v14239_v20 = vld [vmem:[%s22195_s3 + $0xae0] sm:$0xff] }
 0x72c   : > { %v16550_v39 = vpop.f32.mrf.mxu0 }
 0x72d   : > { %v19363_v40 = vadd.f32 %v16550_v39, %v19258_v58  ;;  %v14169_v58 = vld [vmem:[%s22195_s3 + $0x8d0] sm:$0xff]  ;;  %v14204_v39 = vld [vmem:[%s22195_s3 + $0x9d8] sm:$0xff] }
 0x72e   : > { %v19365_v41 = vpop.f32.mrf.mxu0 }
 0x74c   : > { %v15358_v42 = vpop.f32.mrf.mxu0 }
 0x74e   : > { %v15359_v43 = vpop.f32.mrf.mxu0 }
 0x74f   : > { %v15360_v44 = vadd.f32 %v15359_v43, %v15358_v42  ;;  %v14203_v42 = vld [vmem:[%s22195_s3 + $0x9d0] sm:$0xff] }
 0x750   : > { %v14187_v43 = vld [vmem:[%s22195_s3 + $0x950] sm:$0xff] }
 0x751   : > { %16551 = vmatprep.subr.mxu1 %v15360_v44 }
 0x752   : > { %16552 = vmatpush3.msra.mxu1 %v15360_v44  ;;  %v14202_v44 = vld [vmem:[%s22195_s3 + $0x9c8] sm:$0xff] }
 0x753   : > { %16554 = vmatmul.mubr.msk.f32.vlgmr.msra.gmra.mxu1 %vm862_vm3, %v2075_v45  ;;  %15364 = vmatprep.subr.mxu1 %v14174_v46  ;;  %v14186_v45 = vld [vmem:[%s22195_s3 + $0x948] sm:$0xff]  ;;  %v14201_v46 = vld [vmem:[%s22195_s3 + $0x9c0] sm:$0xff] }
 0x754   : > { %15365 = vmatpush3.msra.mxu1 %v14158_v47  ;;  %2256 = vmatprep.mubr.f32.mxu1 %v18725_v26  ;;  %v14185_v47 = vld [vmem:[%s22195_s3 + $0x940] sm:$0xff] }
 0x755   : > { %15366 = vmatprep.subr.mxu1 %v14173_v48  ;;  %v14200_v48 = vld [vmem:[%s22195_s3 + $0x9b8] sm:$0xff] }
 0x756   : > { %15367 = vmatpush3.msra.mxu1 %v14157_v49  ;;  %v14184_v49 = vld [vmem:[%s22195_s3 + $0x938] sm:$0xff] }
 0x757   : > { %15368 = vmatprep.subr.mxu1 %v14172_v50  ;;  %v14199_v50 = vld [vmem:[%s22195_s3 + $0x9b0] sm:$0xff] }
 0x758   : > { %15369 = vmatpush3.msra.mxu1 %v14156_v52  ;;  %v14183_v52 = vld [vmem:[%s22195_s3 + $0x930] sm:$0xff] }
 0x759   : > { %15370 = vmatprep.subr.mxu1 %v14171_v53  ;;  %v14198_v53 = vld [vmem:[%s22195_s3 + $0x9a8] sm:$0xff] }
 0x75a   : > { %15371 = vmatpush3.msra.mxu1 %v14155_v55  ;;  %v14182_v55 = vld [vmem:[%s22195_s3 + $0x928] sm:$0xff] }
 0x75b   : > { %15372 = vmatprep.subr.mxu1 %v14170_v56  ;;  %v14197_v56 = vld [vmem:[%s22195_s3 + $0x9a0] sm:$0xff] }
 0x75c   : > { %15373 = vmatpush3.msra.mxu1 %v14154_v57  ;;  %v14181_v57 = vld [vmem:[%s22195_s3 + $0x920] sm:$0xff] }
 0x75d   : > { %15374 = vmatprep.subr.mxu1 %v14169_v58  ;;  %v14196_v58 = vld [vmem:[%s22195_s3 + $0x998] sm:$0xff] }
 0x75e   : > { %15375 = vmatpush3.msra.mxu1 %v14153_v60  ;;  %v14180_v60 = vld [vmem:[%s22195_s3 + $0x918] sm:$0xff] }
 0x75f   : > { %15376 = vmatprep.subr.mxu1 %v14168_v61  ;;  %v14195_v61 = vld [vmem:[%s22195_s3 + $0x990] sm:$0xff] }
 0x760   : > { %15377 = vmatpush3.msra.mxu1 %v14152_v62  ;;  %v14179_v62 = vld [vmem:[%s22195_s3 + $0x910] sm:$0xff] }
 0x761   : > { %15378 = vmatprep.subr.mxu1 %v14167_v63  ;;  %v14194_v63 = vld [vmem:[%s22195_s3 + $0x988] sm:$0xff] }
 0x762   : > { %15379 = vmatpush3.msra.mxu1 %v14151_v0  ;;  %v14178_v0 = vld [vmem:[%s22195_s3 + $0x908] sm:$0xff] }
 0x763   : > { %15380 = vmatprep.subr.mxu1 %v14166_v2  ;;  %v14193_v2 = vld [vmem:[%s22195_s3 + $0x980] sm:$0xff] }
 0x764   : > { %15381 = vmatpush3.msra.mxu1 %v14150_v3  ;;  %v14177_v3 = vld [vmem:[%s22195_s3 + $0x900] sm:$0xff] }
 0x765   : > { %15382 = vmatprep.subr.mxu1 %v14165_v4  ;;  %v2452_v4 = vld [vmem:[#allocation3 + $0x90] sm:$0xff] }
 0x766   : > { %15383 = vmatpush3.msra.mxu1 %v14149_v5 }
 0x767   : > { %15384 = vmatprep.subr.mxu1 %v14164_v6 }
 0x768   : > { %15385 = vmatpush3.msra.mxu1 %v14148_v7 }
 0x769   : > { %15386 = vmatprep.subr.mxu1 %v14163_v8 }
 0x76a   : > { %15387 = vmatpush3.msra.mxu1 %v14147_v9 }
 0x76b   : > { %15388 = vmatprep.subr.mxu1 %v14162_v10 }
 0x76c   : > { %15389 = vmatpush3.msra.mxu1 %v14146_v12  ;;  %v2453_v12 = vld [vmem:[#allocation3 + $0x98] sm:$0xff] }
 0x76d   : > { %15390 = vmatprep.subr.mxu1 %v14161_v13  ;;  %v14242_v13 = vld [vmem:[%s22195_s3 + $0xaf8] sm:$0xff] }
 0x76e   : > { %15391 = vmatpush3.msra.mxu1 %v14145_v15  ;;  %v14226_v15 = vld [vmem:[%s22195_s3 + $0xa78] sm:$0xff] }
 0x76f   : > { %15392 = vmatprep.subr.mxu1 %v14160_v16  ;;  %v14241_v16 = vld [vmem:[%s22195_s3 + $0xaf0] sm:$0xff] }
 0x770   : > { %15393 = vmatpush3.msra.mxu1 %v14144_v17  ;;  %v14225_v17 = vld [vmem:[%s22195_s3 + $0xa70] sm:$0xff] }
 0x771   : > { %15394 = vmatprep.subr.mxu1 %v14159_v18  ;;  %v14240_v18 = vld [vmem:[%s22195_s3 + $0xae8] sm:$0xff] }
 0x772   : > { %15395 = vmatpush3.msra.mxu1 %v14143_v19  ;;  %v14224_v19 = vld [vmem:[%s22195_s3 + $0xa68] sm:$0xff] }
 0x773   : > { %2257 = vmatmul.mubr.f32.vlgmr.msra.gmra.mxu1 %v18727_v27 }
 0x774   : > { %16563 = vmatprep.mubr.msk.f32.mxu1 %vm862_vm3, %v2452_v4  ;;  %v14258_v4 = vld [vmem:[%s22195_s3 + $0xb68] sm:$0xff] }
 0x813   : > { %v16555_v21 = vpop.f32.mrf.mxu1 }
 0x814   : > { %v19468_v22 = vadd.f32 %v16555_v21, %v19363_v40  ;;  %v14188_v40 = vld [vmem:[%s22195_s3 + $0x958] sm:$0xff]  ;;  %v14223_v21 = vld [vmem:[%s22195_s3 + $0xa60] sm:$0xff] }
 0x815   : > { %v19470_v23 = vpop.f32.mrf.mxu1 }
 0x833   : > { %v15396_v24 = vpop.f32.mrf.mxu1 }
 0x835   : > { %v15397_v25 = vpop.f32.mrf.mxu1 }
 0x836   : > { %v15398_v28 = vadd.f32 %v15397_v25, %v15396_v24  ;;  %v14222_v24 = vld [vmem:[%s22195_s3 + $0xa58] sm:$0xff]  ;;  %v14237_v25 = vld [vmem:[%s22195_s3 + $0xad0] sm:$0xff] }
 0x838   : > { %16556 = vmatprep.subr.mxu0 %v15398_v28 }
 0x839   : > { %16557 = vmatpush3.msra.mxu0 %v15398_v28  ;;  %v14221_v28 = vld [vmem:[%s22195_s3 + $0xa50] sm:$0xff] }
 0x83a   : > { %16559 = vmatmul.mubr.msk.f32.vlgmr.msra.gmra.mxu0 %vm862_vm3, %v2264_v29  ;;  %15402 = vmatprep.subr.mxu0 %v14208_v30  ;;  %v14236_v29 = vld [vmem:[%s22195_s3 + $0xac8] sm:$0xff] }
 0x83b   : > { %15403 = vmatpush3.msra.mxu0 %v14192_v31  ;;  %2445 = vmatprep.mubr.f32.mxu0 %v18725_v26  ;;  %v14220_v30 = vld [vmem:[%s22195_s3 + $0xa48] sm:$0xff]  ;;  %v14235_v31 = vld [vmem:[%s22195_s3 + $0xac0] sm:$0xff] }
 0x83c   : > { %15404 = vmatprep.subr.mxu0 %v14207_v32  ;;  %v14219_v32 = vld [vmem:[%s22195_s3 + $0xa40] sm:$0xff] }
 0x83d   : > { %15405 = vmatpush3.msra.mxu0 %v14191_v33  ;;  %v14234_v33 = vld [vmem:[%s22195_s3 + $0xab8] sm:$0xff] }
 0x83e   : > { %15406 = vmatprep.subr.mxu0 %v14206_v35  ;;  %v14218_v35 = vld [vmem:[%s22195_s3 + $0xa38] sm:$0xff] }
 0x83f   : > { %15407 = vmatpush3.msra.mxu0 %v14190_v36  ;;  %v14233_v36 = vld [vmem:[%s22195_s3 + $0xab0] sm:$0xff] }
 0x840   : > { %15408 = vmatprep.subr.mxu0 %v14205_v37  ;;  %v14217_v37 = vld [vmem:[%s22195_s3 + $0xa30] sm:$0xff] }
 0x841   : > { %15409 = vmatpush3.msra.mxu0 %v14189_v38  ;;  %v14232_v38 = vld [vmem:[%s22195_s3 + $0xaa8] sm:$0xff] }
 0x842   : > { %15410 = vmatprep.subr.mxu0 %v14204_v39  ;;  %v14216_v39 = vld [vmem:[%s22195_s3 + $0xa28] sm:$0xff] }
 0x843   : > { %15411 = vmatpush3.msra.mxu0 %v14188_v40  ;;  %v14231_v40 = vld [vmem:[%s22195_s3 + $0xaa0] sm:$0xff] }
 0x844   : > { %15412 = vmatprep.subr.mxu0 %v14203_v42  ;;  %v14215_v42 = vld [vmem:[%s22195_s3 + $0xa20] sm:$0xff] }
 0x845   : > { %15413 = vmatpush3.msra.mxu0 %v14187_v43  ;;  %v14230_v43 = vld [vmem:[%s22195_s3 + $0xa98] sm:$0xff] }
 0x846   : > { %15414 = vmatprep.subr.mxu0 %v14202_v44  ;;  %v14214_v44 = vld [vmem:[%s22195_s3 + $0xa18] sm:$0xff] }
 0x847   : > { %15415 = vmatpush3.msra.mxu0 %v14186_v45  ;;  %v14229_v45 = vld [vmem:[%s22195_s3 + $0xa90] sm:$0xff] }
 0x848   : > { %15416 = vmatprep.subr.mxu0 %v14201_v46  ;;  %v14213_v46 = vld [vmem:[%s22195_s3 + $0xa10] sm:$0xff] }
 0x849   : > { %15417 = vmatpush3.msra.mxu0 %v14185_v47  ;;  %v14228_v47 = vld [vmem:[%s22195_s3 + $0xa88] sm:$0xff] }
 0x84a   : > { %15418 = vmatprep.subr.mxu0 %v14200_v48  ;;  %v14212_v48 = vld [vmem:[%s22195_s3 + $0xa08] sm:$0xff] }
 0x84b   : > { %15419 = vmatpush3.msra.mxu0 %v14184_v49  ;;  %v14227_v49 = vld [vmem:[%s22195_s3 + $0xa80] sm:$0xff] }
 0x84c   : > { %15420 = vmatprep.subr.mxu0 %v14199_v50  ;;  %v14211_v50 = vld [vmem:[%s22195_s3 + $0xa00] sm:$0xff] }
 0x84d   : > { %15421 = vmatpush3.msra.mxu0 %v14183_v52  ;;  %v2641_v52 = vld [vmem:[#allocation3 + $0xa0] sm:$0xff] }
 0x84e   : > { %15422 = vmatprep.subr.mxu0 %v14198_v53 }
 0x84f   : > { %15423 = vmatpush3.msra.mxu0 %v14182_v55 }
 0x850   : > { %15424 = vmatprep.subr.mxu0 %v14197_v56 }
 0x851   : > { %15425 = vmatpush3.msra.mxu0 %v14181_v57 }
 0x852   : > { %15426 = vmatprep.subr.mxu0 %v14196_v58 }
 0x853   : > { %15427 = vmatpush3.msra.mxu0 %v14180_v60 }
 0x854   : > { %15428 = vmatprep.subr.mxu0 %v14195_v61  ;;  %v2642_v61 = vld [vmem:[#allocation3 + $0xa8] sm:$0xff] }
 0x855   : > { %15429 = vmatpush3.msra.mxu0 %v14179_v62  ;;  %v14276_v62 = vld [vmem:[%s22195_s3 + $0xbf8] sm:$0xff] }
 0x856   : > { %15430 = vmatprep.subr.mxu0 %v14194_v63  ;;  %v14260_v63 = vld [vmem:[%s22195_s3 + $0xb78] sm:$0xff] }
 0x857   : > { %15431 = vmatpush3.msra.mxu0 %v14178_v0  ;;  %v14275_v0 = vld [vmem:[%s22195_s3 + $0xbf0] sm:$0xff] }
 0x858   : > { %15432 = vmatprep.subr.mxu0 %v14193_v2  ;;  %v14259_v2 = vld [vmem:[%s22195_s3 + $0xb70] sm:$0xff] }
 0x859   : > { %15433 = vmatpush3.msra.mxu0 %v14177_v3  ;;  %v14274_v3 = vld [vmem:[%s22195_s3 + $0xbe8] sm:$0xff] }
 0x85a   : > { %2446 = vmatmul.mubr.f32.vlgmr.msra.gmra.mxu0 %v18727_v27 }
 0x85b   : > { %16568 = vmatprep.mubr.msk.f32.mxu0 %vm862_vm3, %v2641_v52  ;;  %v14308_v52 = vld [vmem:[%s22195_s3 + $0xce8] sm:$0xff] }
 0x8fa   : > { %v16560_v5 = vpop.f32.mrf.mxu0 }
 0x8fb   : > { %v19573_v6 = vadd.f32 %v16560_v5, %v19468_v22  ;;  %v14238_v22 = vld [vmem:[%s22195_s3 + $0xad8] sm:$0xff]  ;;  %v14273_v5 = vld [vmem:[%s22195_s3 + $0xbe0] sm:$0xff] }
 0x8fc   : > { %v19575_v7 = vpop.f32.mrf.mxu0 }
 0x91a   : > { %v15434_v8 = vpop.f32.mrf.mxu0 }
 0x91c   : > { %v15435_v9 = vpop.f32.mrf.mxu0 }
 0x91d   : > { %v15436_v10 = vadd.f32 %v15435_v9, %v15434_v8  ;;  %v14272_v8 = vld [vmem:[%s22195_s3 + $0xbd8] sm:$0xff] }
 0x91e   : > { %v14256_v9 = vld [vmem:[%s22195_s3 + $0xb58] sm:$0xff] }
 0x91f   : > { %16561 = vmatprep.subr.mxu1 %v15436_v10 }
 0x920   : > { %16562 = vmatpush3.msra.mxu1 %v15436_v10  ;;  %v14271_v10 = vld [vmem:[%s22195_s3 + $0xbd0] sm:$0xff] }
 0x921   : > { %16564 = vmatmul.mubr.msk.f32.vlgmr.msra.gmra.mxu1 %vm862_vm3, %v2453_v12  ;;  %15440 = vmatprep.subr.mxu1 %v14242_v13  ;;  %v14255_v12 = vld [vmem:[%s22195_s3 + $0xb50] sm:$0xff]  ;;  %v14270_v13 = vld [vmem:[%s22195_s3 + $0xbc8] sm:$0xff] }
 0x922   : > { %15441 = vmatpush3.msra.mxu1 %v14226_v15  ;;  %2634 = vmatprep.mubr.f32.mxu1 %v18725_v26  ;;  %v14254_v15 = vld [vmem:[%s22195_s3 + $0xb48] sm:$0xff] }
 0x923   : > { %15442 = vmatprep.subr.mxu1 %v14241_v16  ;;  %v14269_v16 = vld [vmem:[%s22195_s3 + $0xbc0] sm:$0xff] }
 0x924   : > { %15443 = vmatpush3.msra.mxu1 %v14225_v17  ;;  %v14253_v17 = vld [vmem:[%s22195_s3 + $0xb40] sm:$0xff] }
 0x925   : > { %15444 = vmatprep.subr.mxu1 %v14240_v18  ;;  %v14268_v18 = vld [vmem:[%s22195_s3 + $0xbb8] sm:$0xff] }
 0x926   : > { %15445 = vmatpush3.msra.mxu1 %v14224_v19  ;;  %v14252_v19 = vld [vmem:[%s22195_s3 + $0xb38] sm:$0xff] }
 0x927   : > { %15446 = vmatprep.subr.mxu1 %v14239_v20  ;;  %v14267_v20 = vld [vmem:[%s22195_s3 + $0xbb0] sm:$0xff] }
 0x928   : > { %15447 = vmatpush3.msra.mxu1 %v14223_v21  ;;  %v14251_v21 = vld [vmem:[%s22195_s3 + $0xb30] sm:$0xff] }
 0x929   : > { %15448 = vmatprep.subr.mxu1 %v14238_v22  ;;  %v14266_v22 = vld [vmem:[%s22195_s3 + $0xba8] sm:$0xff] }
 0x92a   : > { %15449 = vmatpush3.msra.mxu1 %v14222_v24  ;;  %v14250_v24 = vld [vmem:[%s22195_s3 + $0xb28] sm:$0xff] }
 0x92b   : > { %15450 = vmatprep.subr.mxu1 %v14237_v25  ;;  %v14265_v25 = vld [vmem:[%s22195_s3 + $0xba0] sm:$0xff] }
 0x92c   : > { %15451 = vmatpush3.msra.mxu1 %v14221_v28  ;;  %v14249_v28 = vld [vmem:[%s22195_s3 + $0xb20] sm:$0xff] }
 0x92d   : > { %15452 = vmatprep.subr.mxu1 %v14236_v29  ;;  %v14264_v29 = vld [vmem:[%s22195_s3 + $0xb98] sm:$0xff] }
 0x92e   : > { %15453 = vmatpush3.msra.mxu1 %v14220_v30  ;;  %v14248_v30 = vld [vmem:[%s22195_s3 + $0xb18] sm:$0xff] }
 0x92f   : > { %15454 = vmatprep.subr.mxu1 %v14235_v31  ;;  %v14263_v31 = vld [vmem:[%s22195_s3 + $0xb90] sm:$0xff] }
 0x930   : > { %15455 = vmatpush3.msra.mxu1 %v14219_v32  ;;  %v14247_v32 = vld [vmem:[%s22195_s3 + $0xb10] sm:$0xff] }
 0x931   : > { %15456 = vmatprep.subr.mxu1 %v14234_v33  ;;  %v14262_v33 = vld [vmem:[%s22195_s3 + $0xb88] sm:$0xff] }
 0x932   : > { %15457 = vmatpush3.msra.mxu1 %v14218_v35  ;;  %v14246_v35 = vld [vmem:[%s22195_s3 + $0xb08] sm:$0xff] }
 0x933   : > { %15458 = vmatprep.subr.mxu1 %v14233_v36  ;;  %v14261_v36 = vld [vmem:[%s22195_s3 + $0xb80] sm:$0xff] }
 0x934   : > { %15459 = vmatpush3.msra.mxu1 %v14217_v37  ;;  %v14245_v37 = vld [vmem:[%s22195_s3 + $0xb00] sm:$0xff] }
 0x935   : > { %15460 = vmatprep.subr.mxu1 %v14232_v38  ;;  %v2830_v38 = vld [vmem:[#allocation3 + $0xb0] sm:$0xff] }
 0x936   : > { %15461 = vmatpush3.msra.mxu1 %v14216_v39 }
 0x937   : > { %15462 = vmatprep.subr.mxu1 %v14231_v40 }
 0x938   : > { %15463 = vmatpush3.msra.mxu1 %v14215_v42 }
 0x939   : > { %15464 = vmatprep.subr.mxu1 %v14230_v43 }
 0x93a   : > { %15465 = vmatpush3.msra.mxu1 %v14214_v44 }
 0x93b   : > { %15466 = vmatprep.subr.mxu1 %v14229_v45 }
 0x93c   : > { %15467 = vmatpush3.msra.mxu1 %v14213_v46  ;;  %v2831_v46 = vld [vmem:[#allocation3 + $0xb8] sm:$0xff] }
 0x93d   : > { %15468 = vmatprep.subr.mxu1 %v14228_v47  ;;  %v14310_v47 = vld [vmem:[%s22195_s3 + $0xcf8] sm:$0xff] }
 0x93e   : > { %15469 = vmatpush3.msra.mxu1 %v14212_v48  ;;  %v14294_v48 = vld [vmem:[%s22195_s3 + $0xc78] sm:$0xff] }
 0x93f   : > { %15470 = vmatprep.subr.mxu1 %v14227_v49  ;;  %v14309_v49 = vld [vmem:[%s22195_s3 + $0xcf0] sm:$0xff] }
 0x940   : > { %15471 = vmatpush3.msra.mxu1 %v14211_v50  ;;  %v14293_v50 = vld [vmem:[%s22195_s3 + $0xc70] sm:$0xff] }
 0x941   : > { %2635 = vmatmul.mubr.f32.vlgmr.msra.gmra.mxu1 %v18727_v27 }
 0x942   : > { %16573 = vmatprep.mubr.msk.f32.mxu1 %vm862_vm3, %v2830_v38  ;;  %v14327_v38 = vld [vmem:[%s22195_s3 + $0xd70] sm:$0xff] }
 0x9e1   : > { %v16565_v53 = vpop.f32.mrf.mxu1 }
 0x9e2   : > { %v19678_v55 = vadd.f32 %v16565_v53, %v19573_v6  ;;  %v14257_v6 = vld [vmem:[%s22195_s3 + $0xb60] sm:$0xff]  ;;  %v14292_v53 = vld [vmem:[%s22195_s3 + $0xc68] sm:$0xff] }
 0x9e3   : > { %v19680_v56 = vpop.f32.mrf.mxu1 }
 0xa01   : > { %v15472_v57 = vpop.f32.mrf.mxu1 }
 0xa03   : > { %v15473_v58 = vpop.f32.mrf.mxu1 }
 0xa04   : > { %v15474_v60 = vadd.f32 %v15473_v58, %v15472_v57  ;;  %v14291_v57 = vld [vmem:[%s22195_s3 + $0xc60] sm:$0xff]  ;;  %v14306_v58 = vld [vmem:[%s22195_s3 + $0xcd8] sm:$0xff] }
 0xa06   : > { %16566 = vmatprep.subr.mxu0 %v15474_v60 }
 0xa07   : > { %16567 = vmatpush3.msra.mxu0 %v15474_v60  ;;  %v14290_v60 = vld [vmem:[%s22195_s3 + $0xc58] sm:$0xff] }
 0xa08   : > { %16569 = vmatmul.mubr.msk.f32.vlgmr.msra.gmra.mxu0 %vm862_vm3, %v2642_v61  ;;  %15478 = vmatprep.subr.mxu0 %v14276_v62  ;;  %v14305_v61 = vld [vmem:[%s22195_s3 + $0xcd0] sm:$0xff] }
 0xa09   : > { %15479 = vmatpush3.msra.mxu0 %v14260_v63  ;;  %2823 = vmatprep.mubr.f32.mxu0 %v18725_v26  ;;  %v14289_v62 = vld [vmem:[%s22195_s3 + $0xc50] sm:$0xff]  ;;  %v14304_v63 = vld [vmem:[%s22195_s3 + $0xcc8] sm:$0xff] }
 0xa0a   : > { %15480 = vmatprep.subr.mxu0 %v14275_v0  ;;  %v14288_v0 = vld [vmem:[%s22195_s3 + $0xc48] sm:$0xff] }
 0xa0b   : > { %15481 = vmatpush3.msra.mxu0 %v14259_v2  ;;  %v14303_v2 = vld [vmem:[%s22195_s3 + $0xcc0] sm:$0xff] }
 0xa0c   : > { %15482 = vmatprep.subr.mxu0 %v14274_v3  ;;  %v14287_v3 = vld [vmem:[%s22195_s3 + $0xc40] sm:$0xff] }
 0xa0d   : > { %15483 = vmatpush3.msra.mxu0 %v14258_v4  ;;  %v14302_v4 = vld [vmem:[%s22195_s3 + $0xcb8] sm:$0xff] }
 0xa0e   : > { %15484 = vmatprep.subr.mxu0 %v14273_v5  ;;  %v14286_v5 = vld [vmem:[%s22195_s3 + $0xc38] sm:$0xff] }
 0xa0f   : > { %15485 = vmatpush3.msra.mxu0 %v14257_v6  ;;  %v14301_v6 = vld [vmem:[%s22195_s3 + $0xcb0] sm:$0xff] }
 0xa10   : > { %15486 = vmatprep.subr.mxu0 %v14272_v8  ;;  %v14285_v8 = vld [vmem:[%s22195_s3 + $0xc30] sm:$0xff] }
 0xa11   : > { %15487 = vmatpush3.msra.mxu0 %v14256_v9  ;;  %v14300_v9 = vld [vmem:[%s22195_s3 + $0xca8] sm:$0xff] }
 0xa12   : > { %15488 = vmatprep.subr.mxu0 %v14271_v10  ;;  %v14284_v10 = vld [vmem:[%s22195_s3 + $0xc28] sm:$0xff] }
 0xa13   : > { %15489 = vmatpush3.msra.mxu0 %v14255_v12  ;;  %v14299_v12 = vld [vmem:[%s22195_s3 + $0xca0] sm:$0xff] }
 0xa14   : > { %15490 = vmatprep.subr.mxu0 %v14270_v13  ;;  %v14283_v13 = vld [vmem:[%s22195_s3 + $0xc20] sm:$0xff] }
 0xa15   : > { %15491 = vmatpush3.msra.mxu0 %v14254_v15  ;;  %v14298_v15 = vld [vmem:[%s22195_s3 + $0xc98] sm:$0xff] }
 0xa16   : > { %15492 = vmatprep.subr.mxu0 %v14269_v16  ;;  %v14282_v16 = vld [vmem:[%s22195_s3 + $0xc18] sm:$0xff] }
 0xa17   : > { %15493 = vmatpush3.msra.mxu0 %v14253_v17  ;;  %v14297_v17 = vld [vmem:[%s22195_s3 + $0xc90] sm:$0xff] }
 0xa18   : > { %15494 = vmatprep.subr.mxu0 %v14268_v18  ;;  %v14281_v18 = vld [vmem:[%s22195_s3 + $0xc10] sm:$0xff] }
 0xa19   : > { %15495 = vmatpush3.msra.mxu0 %v14252_v19  ;;  %v14296_v19 = vld [vmem:[%s22195_s3 + $0xc88] sm:$0xff] }
 0xa1a   : > { %15496 = vmatprep.subr.mxu0 %v14267_v20  ;;  %v14280_v20 = vld [vmem:[%s22195_s3 + $0xc08] sm:$0xff] }
 0xa1b   : > { %15497 = vmatpush3.msra.mxu0 %v14251_v21  ;;  %v14295_v21 = vld [vmem:[%s22195_s3 + $0xc80] sm:$0xff] }
 0xa1c   : > { %15498 = vmatprep.subr.mxu0 %v14266_v22  ;;  %v14279_v22 = vld [vmem:[%s22195_s3 + $0xc00] sm:$0xff] }
 0xa1d   : > { %15499 = vmatpush3.msra.mxu0 %v14250_v24  ;;  %v3019_v24 = vld [vmem:[#allocation3 + $0xc0] sm:$0xff] }
 0xa1e   : > { %15500 = vmatprep.subr.mxu0 %v14265_v25 }
 0xa1f   : > { %15501 = vmatpush3.msra.mxu0 %v14249_v28 }
 0xa20   : > { %15502 = vmatprep.subr.mxu0 %v14264_v29 }
 0xa21   : > { %15503 = vmatpush3.msra.mxu0 %v14248_v30 }
 0xa22   : > { %15504 = vmatprep.subr.mxu0 %v14263_v31 }
 0xa23   : > { %15505 = vmatpush3.msra.mxu0 %v14247_v32 }
 0xa24   : > { %15506 = vmatprep.subr.mxu0 %v14262_v33  ;;  %v3020_v33 = vld [vmem:[#allocation3 + $0xc8] sm:$0xff] }
 0xa25   : > { %15507 = vmatpush3.msra.mxu0 %v14246_v35  ;;  %v14344_v35 = vld [vmem:[%s22195_s3 + $0xdf8] sm:$0xff] }
 0xa26   : > { %15508 = vmatprep.subr.mxu0 %v14261_v36  ;;  %v14328_v36 = vld [vmem:[%s22195_s3 + $0xd78] sm:$0xff] }
 0xa27   : > { %15509 = vmatpush3.msra.mxu0 %v14245_v37  ;;  %v14343_v37 = vld [vmem:[%s22195_s3 + $0xdf0] sm:$0xff] }
 0xa28   : > { %2824 = vmatmul.mubr.f32.vlgmr.msra.gmra.mxu0 %v18727_v27 }
 0xa29   : > { %16578 = vmatprep.mubr.msk.f32.mxu0 %vm862_vm3, %v3019_v24  ;;  %v14377_v24 = vld [vmem:[%s22195_s3 + $0xef0] sm:$0xff] }
 0xac8   : > { %v16570_v39 = vpop.f32.mrf.mxu0 }
 0xac9   : > { %v19783_v40 = vadd.f32 %v16570_v39, %v19678_v55  ;;  %v14307_v55 = vld [vmem:[%s22195_s3 + $0xce0] sm:$0xff]  ;;  %v14342_v39 = vld [vmem:[%s22195_s3 + $0xde8] sm:$0xff] }
 0xaca   : > { %v19785_v42 = vpop.f32.mrf.mxu0 }
 0xae8   : > { %v15510_v43 = vpop.f32.mrf.mxu0 }
 0xaea   : > { %v15511_v44 = vpop.f32.mrf.mxu0 }
 0xaeb   : > { %v15512_v45 = vadd.f32 %v15511_v44, %v15510_v43  ;;  %v14341_v43 = vld [vmem:[%s22195_s3 + $0xde0] sm:$0xff] }
 0xaec   : > { %v14325_v44 = vld [vmem:[%s22195_s3 + $0xd60] sm:$0xff] }
 0xaed   : > { %16571 = vmatprep.subr.mxu1 %v15512_v45 }
 0xaee   : > { %16572 = vmatpush3.msra.mxu1 %v15512_v45  ;;  %v14340_v45 = vld [vmem:[%s22195_s3 + $0xdd8] sm:$0xff] }
 0xaef   : > { %16574 = vmatmul.mubr.msk.f32.vlgmr.msra.gmra.mxu1 %vm862_vm3, %v2831_v46  ;;  %15516 = vmatprep.subr.mxu1 %v14310_v47  ;;  %v14324_v46 = vld [vmem:[%s22195_s3 + $0xd58] sm:$0xff]  ;;  %v14339_v47 = vld [vmem:[%s22195_s3 + $0xdd0] sm:$0xff] }
 0xaf0   : > { %15517 = vmatpush3.msra.mxu1 %v14294_v48  ;;  %3012 = vmatprep.mubr.f32.mxu1 %v18725_v26  ;;  %v14323_v48 = vld [vmem:[%s22195_s3 + $0xd50] sm:$0xff] }
 0xaf1   : > { %15518 = vmatprep.subr.mxu1 %v14309_v49  ;;  %v14338_v49 = vld [vmem:[%s22195_s3 + $0xdc8] sm:$0xff] }
 0xaf2   : > { %15519 = vmatpush3.msra.mxu1 %v14293_v50  ;;  %v14322_v50 = vld [vmem:[%s22195_s3 + $0xd48] sm:$0xff] }
 0xaf3   : > { %15520 = vmatprep.subr.mxu1 %v14308_v52  ;;  %v14337_v52 = vld [vmem:[%s22195_s3 + $0xdc0] sm:$0xff] }
 0xaf4   : > { %15521 = vmatpush3.msra.mxu1 %v14292_v53  ;;  %v14321_v53 = vld [vmem:[%s22195_s3 + $0xd40] sm:$0xff] }
 0xaf5   : > { %15522 = vmatprep.subr.mxu1 %v14307_v55  ;;  %v14336_v55 = vld [vmem:[%s22195_s3 + $0xdb8] sm:$0xff] }
 0xaf6   : > { %15523 = vmatpush3.msra.mxu1 %v14291_v57  ;;  %v14320_v57 = vld [vmem:[%s22195_s3 + $0xd38] sm:$0xff] }
 0xaf7   : > { %15524 = vmatprep.subr.mxu1 %v14306_v58  ;;  %v14335_v58 = vld [vmem:[%s22195_s3 + $0xdb0] sm:$0xff] }
 0xaf8   : > { %15525 = vmatpush3.msra.mxu1 %v14290_v60  ;;  %v14319_v60 = vld [vmem:[%s22195_s3 + $0xd30] sm:$0xff] }
 0xaf9   : > { %15526 = vmatprep.subr.mxu1 %v14305_v61  ;;  %v14334_v61 = vld [vmem:[%s22195_s3 + $0xda8] sm:$0xff] }
 0xafa   : > { %15527 = vmatpush3.msra.mxu1 %v14289_v62  ;;  %v14318_v62 = vld [vmem:[%s22195_s3 + $0xd28] sm:$0xff] }
 0xafb   : > { %15528 = vmatprep.subr.mxu1 %v14304_v63  ;;  %v14333_v63 = vld [vmem:[%s22195_s3 + $0xda0] sm:$0xff] }
 0xafc   : > { %15529 = vmatpush3.msra.mxu1 %v14288_v0  ;;  %v14317_v0 = vld [vmem:[%s22195_s3 + $0xd20] sm:$0xff] }
 0xafd   : > { %15530 = vmatprep.subr.mxu1 %v14303_v2  ;;  %v14332_v2 = vld [vmem:[%s22195_s3 + $0xd98] sm:$0xff] }
 0xafe   : > { %15531 = vmatpush3.msra.mxu1 %v14287_v3  ;;  %v14316_v3 = vld [vmem:[%s22195_s3 + $0xd18] sm:$0xff] }
 0xaff   : > { %15532 = vmatprep.subr.mxu1 %v14302_v4  ;;  %v14331_v4 = vld [vmem:[%s22195_s3 + $0xd90] sm:$0xff] }
 0xb00   : > { %15533 = vmatpush3.msra.mxu1 %v14286_v5  ;;  %v14315_v5 = vld [vmem:[%s22195_s3 + $0xd10] sm:$0xff] }
 0xb01   : > { %15534 = vmatprep.subr.mxu1 %v14301_v6  ;;  %v14330_v6 = vld [vmem:[%s22195_s3 + $0xd88] sm:$0xff] }
 0xb02   : > { %15535 = vmatpush3.msra.mxu1 %v14285_v8  ;;  %v14314_v8 = vld [vmem:[%s22195_s3 + $0xd08] sm:$0xff] }
 0xb03   : > { %15536 = vmatprep.subr.mxu1 %v14300_v9  ;;  %v14329_v9 = vld [vmem:[%s22195_s3 + $0xd80] sm:$0xff] }
 0xb04   : > { %15537 = vmatpush3.msra.mxu1 %v14284_v10  ;;  %v14313_v10 = vld [vmem:[%s22195_s3 + $0xd00] sm:$0xff] }
 0xb05   : > { %15538 = vmatprep.subr.mxu1 %v14299_v12  ;;  %v3208_v12 = vld [vmem:[#allocation3 + $0xd0] sm:$0xff] }
 0xb06   : > { %15539 = vmatpush3.msra.mxu1 %v14283_v13 }
 0xb07   : > { %15540 = vmatprep.subr.mxu1 %v14298_v15 }
 0xb08   : > { %15541 = vmatpush3.msra.mxu1 %v14282_v16 }
 0xb09   : > { %15542 = vmatprep.subr.mxu1 %v14297_v17 }
 0xb0a   : > { %15543 = vmatpush3.msra.mxu1 %v14281_v18 }
 0xb0b   : > { %15544 = vmatprep.subr.mxu1 %v14296_v19 }
 0xb0c   : > { %15545 = vmatpush3.msra.mxu1 %v14280_v20  ;;  %v3209_v20 = vld [vmem:[#allocation3 + $0xd8] sm:$0xff] }
 0xb0d   : > { %15546 = vmatprep.subr.mxu1 %v14295_v21  ;;  %v14378_v21 = vld [vmem:[%s22195_s3 + $0xef8] sm:$0xff] }
 0xb0e   : > { %15547 = vmatpush3.msra.mxu1 %v14279_v22  ;;  %v14362_v22 = vld [vmem:[%s22195_s3 + $0xe78] sm:$0xff] }
 0xb0f   : > { %3013 = vmatmul.mubr.f32.vlgmr.msra.gmra.mxu1 %v18727_v27 }
 0xb10   : > { %16583 = vmatprep.mubr.msk.f32.mxu1 %vm862_vm3, %v3208_v12  ;;  %v14396_v12 = vld [vmem:[%s22195_s3 + $0xf78] sm:$0xff] }
 0xbaf   : > { %v16575_v25 = vpop.f32.mrf.mxu1 }
 0xbb0   : > { %v19888_v28 = vadd.f32 %v16575_v25, %v19783_v40  ;;  %v14326_v40 = vld [vmem:[%s22195_s3 + $0xd68] sm:$0xff]  ;;  %v14361_v25 = vld [vmem:[%s22195_s3 + $0xe70] sm:$0xff] }
 0xbb1   : > { %v19890_v29 = vpop.f32.mrf.mxu1 }
 0xbcf   : > { %v15548_v30 = vpop.f32.mrf.mxu1 }
 0xbd1   : > { %v15549_v31 = vpop.f32.mrf.mxu1 }
 0xbd2   : > { %v15550_v32 = vadd.f32 %v15549_v31, %v15548_v30  ;;  %v14360_v30 = vld [vmem:[%s22195_s3 + $0xe68] sm:$0xff]  ;;  %v14375_v31 = vld [vmem:[%s22195_s3 + $0xee0] sm:$0xff] }
 0xbd4   : > { %16576 = vmatprep.subr.mxu0 %v15550_v32 }
 0xbd5   : > { %16577 = vmatpush3.msra.mxu0 %v15550_v32  ;;  %v14359_v32 = vld [vmem:[%s22195_s3 + $0xe60] sm:$0xff] }
 0xbd6   : > { %16579 = vmatmul.mubr.msk.f32.vlgmr.msra.gmra.mxu0 %vm862_vm3, %v3020_v33  ;;  %15554 = vmatprep.subr.mxu0 %v14344_v35  ;;  %v14374_v33 = vld [vmem:[%s22195_s3 + $0xed8] sm:$0xff] }
 0xbd7   : > { %15555 = vmatpush3.msra.mxu0 %v14328_v36  ;;  %3201 = vmatprep.mubr.f32.mxu0 %v18725_v26  ;;  %v14358_v35 = vld [vmem:[%s22195_s3 + $0xe58] sm:$0xff]  ;;  %v14373_v36 = vld [vmem:[%s22195_s3 + $0xed0] sm:$0xff] }
 0xbd8   : > { %15556 = vmatprep.subr.mxu0 %v14343_v37  ;;  %v14357_v37 = vld [vmem:[%s22195_s3 + $0xe50] sm:$0xff] }
 0xbd9   : > { %15557 = vmatpush3.msra.mxu0 %v14327_v38  ;;  %v14372_v38 = vld [vmem:[%s22195_s3 + $0xec8] sm:$0xff] }
 0xbda   : > { %15558 = vmatprep.subr.mxu0 %v14342_v39  ;;  %v14356_v39 = vld [vmem:[%s22195_s3 + $0xe48] sm:$0xff] }
 0xbdb   : > { %15559 = vmatpush3.msra.mxu0 %v14326_v40  ;;  %v14371_v40 = vld [vmem:[%s22195_s3 + $0xec0] sm:$0xff] }
 0xbdc   : > { %15560 = vmatprep.subr.mxu0 %v14341_v43  ;;  %v14355_v43 = vld [vmem:[%s22195_s3 + $0xe40] sm:$0xff] }
 0xbdd   : > { %15561 = vmatpush3.msra.mxu0 %v14325_v44  ;;  %v14370_v44 = vld [vmem:[%s22195_s3 + $0xeb8] sm:$0xff] }
 0xbde   : > { %15562 = vmatprep.subr.mxu0 %v14340_v45  ;;  %v14354_v45 = vld [vmem:[%s22195_s3 + $0xe38] sm:$0xff] }
 0xbdf   : > { %15563 = vmatpush3.msra.mxu0 %v14324_v46  ;;  %v14369_v46 = vld [vmem:[%s22195_s3 + $0xeb0] sm:$0xff] }
 0xbe0   : > { %15564 = vmatprep.subr.mxu0 %v14339_v47  ;;  %v14353_v47 = vld [vmem:[%s22195_s3 + $0xe30] sm:$0xff] }
 0xbe1   : > { %15565 = vmatpush3.msra.mxu0 %v14323_v48  ;;  %v14368_v48 = vld [vmem:[%s22195_s3 + $0xea8] sm:$0xff] }
 0xbe2   : > { %15566 = vmatprep.subr.mxu0 %v14338_v49  ;;  %v14352_v49 = vld [vmem:[%s22195_s3 + $0xe28] sm:$0xff] }
 0xbe3   : > { %15567 = vmatpush3.msra.mxu0 %v14322_v50  ;;  %v14367_v50 = vld [vmem:[%s22195_s3 + $0xea0] sm:$0xff] }
 0xbe4   : > { %15568 = vmatprep.subr.mxu0 %v14337_v52  ;;  %v14351_v52 = vld [vmem:[%s22195_s3 + $0xe20] sm:$0xff] }
 0xbe5   : > { %15569 = vmatpush3.msra.mxu0 %v14321_v53  ;;  %v14366_v53 = vld [vmem:[%s22195_s3 + $0xe98] sm:$0xff] }
 0xbe6   : > { %15570 = vmatprep.subr.mxu0 %v14336_v55  ;;  %v14350_v55 = vld [vmem:[%s22195_s3 + $0xe18] sm:$0xff] }
 0xbe7   : > { %15571 = vmatpush3.msra.mxu0 %v14320_v57  ;;  %v14365_v57 = vld [vmem:[%s22195_s3 + $0xe90] sm:$0xff] }
 0xbe8   : > { %15572 = vmatprep.subr.mxu0 %v14335_v58  ;;  %v14349_v58 = vld [vmem:[%s22195_s3 + $0xe10] sm:$0xff] }
 0xbe9   : > { %15573 = vmatpush3.msra.mxu0 %v14319_v60  ;;  %v14364_v60 = vld [vmem:[%s22195_s3 + $0xe88] sm:$0xff] }
 0xbea   : > { %15574 = vmatprep.subr.mxu0 %v14334_v61  ;;  %v14348_v61 = vld [vmem:[%s22195_s3 + $0xe08] sm:$0xff] }
 0xbeb   : > { %15575 = vmatpush3.msra.mxu0 %v14318_v62  ;;  %v14363_v62 = vld [vmem:[%s22195_s3 + $0xe80] sm:$0xff] }
 0xbec   : > { %15576 = vmatprep.subr.mxu0 %v14333_v63  ;;  %v14347_v63 = vld [vmem:[%s22195_s3 + $0xe00] sm:$0xff] }
 0xbed   : > { %15577 = vmatpush3.msra.mxu0 %v14317_v0  ;;  %v3397_v0 = vld [vmem:[#allocation3 + $0xe0] sm:$0xff] }
 0xbee   : > { %15578 = vmatprep.subr.mxu0 %v14332_v2 }
 0xbef   : > { %15579 = vmatpush3.msra.mxu0 %v14316_v3 }
 0xbf0   : > { %15580 = vmatprep.subr.mxu0 %v14331_v4 }
 0xbf1   : > { %15581 = vmatpush3.msra.mxu0 %v14315_v5 }
 0xbf2   : > { %15582 = vmatprep.subr.mxu0 %v14330_v6 }
 0xbf3   : > { %15583 = vmatpush3.msra.mxu0 %v14314_v8 }
 0xbf4   : > { %15584 = vmatprep.subr.mxu0 %v14329_v9  ;;  %v3398_v9 = vld [vmem:[#allocation3 + $0xe8] sm:$0xff] }
 0xbf5   : > { %15585 = vmatpush3.msra.mxu0 %v14313_v10  ;;  %v14412_v10 = vld [vmem:[%s22195_s3 + $0xff8] sm:$0xff] }
 0xbf6   : > { %3202 = vmatmul.mubr.f32.vlgmr.msra.gmra.mxu0 %v18727_v27 }
 0xbf7   : > { %16588 = vmatprep.mubr.msk.f32.mxu0 %vm862_vm3, %v3397_v0 }
 0xc96   : > { %v16580_v13 = vpop.f32.mrf.mxu0 }
 0xc97   : > { %v19993_v15 = vadd.f32 %v16580_v13, %v19888_v28  ;;  %v14376_v28 = vld [vmem:[%s22195_s3 + $0xee8] sm:$0xff]  ;;  %v14411_v13 = vld [vmem:[%s22195_s3 + $0xff0] sm:$0xff] }
 0xc98   : > { %v19995_v16 = vpop.f32.mrf.mxu0 }
 0xcb6   : > { %v15586_v17 = vpop.f32.mrf.mxu0 }
 0xcb8   : > { %v15587_v18 = vpop.f32.mrf.mxu0 }
 0xcb9   : > { %v15588_v19 = vadd.f32 %v15587_v18, %v15586_v17  ;;  %v14410_v17 = vld [vmem:[%s22195_s3 + $0xfe8] sm:$0xff] }
 0xcba   : > { %v14394_v18 = vld [vmem:[%s22195_s3 + $0xf68] sm:$0xff] }
 0xcbb   : > { %16581 = vmatprep.subr.mxu1 %v15588_v19 }
 0xcbc   : > { %16582 = vmatpush3.msra.mxu1 %v15588_v19  ;;  %v14409_v19 = vld [vmem:[%s22195_s3 + $0xfe0] sm:$0xff] }
 0xcbd   : > { %16584 = vmatmul.mubr.msk.f32.vlgmr.msra.gmra.mxu1 %vm862_vm3, %v3209_v20  ;;  %15592 = vmatprep.subr.mxu1 %v14378_v21  ;;  %v14393_v20 = vld [vmem:[%s22195_s3 + $0xf60] sm:$0xff]  ;;  %v14392_v21 = vld [vmem:[%s22195_s3 + $0xf58] sm:$0xff] }
 0xcbe   : > { %15593 = vmatpush3.msra.mxu1 %v14362_v22  ;;  %3390 = vmatprep.mubr.f32.mxu1 %v18725_v26  ;;  %v14407_v22 = vld [vmem:[%s22195_s3 + $0xfd0] sm:$0xff] }
 0xcbf   : > { %15594 = vmatprep.subr.mxu1 %v14377_v24  ;;  %v14391_v24 = vld [vmem:[%s22195_s3 + $0xf50] sm:$0xff] }
 0xcc0   : > { %15595 = vmatpush3.msra.mxu1 %v14361_v25  ;;  %v14406_v25 = vld [vmem:[%s22195_s3 + $0xfc8] sm:$0xff] }
 0xcc1   : > { %15596 = vmatprep.subr.mxu1 %v14376_v28  ;;  %v14390_v28 = vld [vmem:[%s22195_s3 + $0xf48] sm:$0xff] }
 0xcc2   : > { %15597 = vmatpush3.msra.mxu1 %v14360_v30  ;;  %v14405_v30 = vld [vmem:[%s22195_s3 + $0xfc0] sm:$0xff] }
 0xcc3   : > { %15598 = vmatprep.subr.mxu1 %v14375_v31  ;;  %v14389_v31 = vld [vmem:[%s22195_s3 + $0xf40] sm:$0xff] }
 0xcc4   : > { %15599 = vmatpush3.msra.mxu1 %v14359_v32  ;;  %v14404_v32 = vld [vmem:[%s22195_s3 + $0xfb8] sm:$0xff] }
 0xcc5   : > { %15600 = vmatprep.subr.mxu1 %v14374_v33  ;;  %v14388_v33 = vld [vmem:[%s22195_s3 + $0xf38] sm:$0xff] }
 0xcc6   : > { %15601 = vmatpush3.msra.mxu1 %v14358_v35  ;;  %v14403_v35 = vld [vmem:[%s22195_s3 + $0xfb0] sm:$0xff] }
 0xcc7   : > { %15602 = vmatprep.subr.mxu1 %v14373_v36  ;;  %v14387_v36 = vld [vmem:[%s22195_s3 + $0xf30] sm:$0xff] }
 0xcc8   : > { %15603 = vmatpush3.msra.mxu1 %v14357_v37  ;;  %v14402_v37 = vld [vmem:[%s22195_s3 + $0xfa8] sm:$0xff] }
 0xcc9   : > { %15604 = vmatprep.subr.mxu1 %v14372_v38  ;;  %v14386_v38 = vld [vmem:[%s22195_s3 + $0xf28] sm:$0xff] }
 0xcca   : > { %15605 = vmatpush3.msra.mxu1 %v14356_v39  ;;  %v14401_v39 = vld [vmem:[%s22195_s3 + $0xfa0] sm:$0xff] }
 0xccb   : > { %15606 = vmatprep.subr.mxu1 %v14371_v40  ;;  %v14385_v40 = vld [vmem:[%s22195_s3 + $0xf20] sm:$0xff] }
 0xccc   : > { %15607 = vmatpush3.msra.mxu1 %v14355_v43  ;;  %v14400_v43 = vld [vmem:[%s22195_s3 + $0xf98] sm:$0xff] }
 0xccd   : > { %15608 = vmatprep.subr.mxu1 %v14370_v44  ;;  %v14384_v44 = vld [vmem:[%s22195_s3 + $0xf18] sm:$0xff] }
 0xcce   : > { %15609 = vmatpush3.msra.mxu1 %v14354_v45  ;;  %v14399_v45 = vld [vmem:[%s22195_s3 + $0xf90] sm:$0xff] }
 0xccf   : > { %15610 = vmatprep.subr.mxu1 %v14369_v46  ;;  %v14383_v46 = vld [vmem:[%s22195_s3 + $0xf10] sm:$0xff] }
 0xcd0   : > { %15611 = vmatpush3.msra.mxu1 %v14353_v47  ;;  %v14398_v47 = vld [vmem:[%s22195_s3 + $0xf88] sm:$0xff] }
 0xcd1   : > { %15612 = vmatprep.subr.mxu1 %v14368_v48  ;;  %v14382_v48 = vld [vmem:[%s22195_s3 + $0xf08] sm:$0xff] }
 0xcd2   : > { %15613 = vmatpush3.msra.mxu1 %v14352_v49  ;;  %v14397_v49 = vld [vmem:[%s22195_s3 + $0xf80] sm:$0xff] }
 0xcd3   : > { %15614 = vmatprep.subr.mxu1 %v14367_v50  ;;  %v14381_v50 = vld [vmem:[%s22195_s3 + $0xf00] sm:$0xff] }
 0xcd4   : > { %15615 = vmatpush3.msra.mxu1 %v14351_v52  ;;  %v3586_v52 = vld [vmem:[#allocation3 + $0xf0] sm:$0xff] }
 0xcd5   : > { %15616 = vmatprep.subr.mxu1 %v14366_v53  ;;  %v3672_v53 = vld [vmem:[%s22197_s5 + $0x8] sm:$0xff] }
 0xcd6   : > { %15617 = vmatpush3.msra.mxu1 %v14350_v55  ;;  %3680 = vperm.xlu1 %18156, %v3672_v53  }
 0xcd7   : > { %15618 = vmatprep.subr.mxu1 %v14365_v57 }
 0xcd8   : > { %15619 = vmatpush3.msra.mxu1 %v14349_v58 }
 0xcd9   : > { %15620 = vmatprep.subr.mxu1 %v14364_v60 }
 0xcda   : > { %15621 = vmatpush3.msra.mxu1 %v14348_v61 }
 0xcdb   : > { %15622 = vmatprep.subr.mxu1 %v14363_v62 }
 0xcdc   : > { %15623 = vmatpush3.msra.mxu1 %v14347_v63  ;;  %v3587_v63 = vld [vmem:[#allocation3 + $0xf8] sm:$0xff] }
 0xcdd   : > { %3391 = vmatmul.mubr.f32.vlgmr.msra.gmra.mxu1 %v18727_v27 }
 0xcde   : > { %16593 = vmatprep.mubr.msk.f32.mxu1 %vm862_vm3, %v3586_v52 }
 0xd7d   : > { %v16585_v2 = vpop.f32.mrf.mxu1 }
 0xd7e   : > { %v20098_v3 = vadd.f32 %v16585_v2, %v19993_v15  ;;  %v14395_v15 = vld [vmem:[%s22195_s3 + $0xf70] sm:$0xff] }
 0xd7f   : > { %v20100_v4 = vpop.f32.mrf.mxu1 }
 0xd9d   : > { %v15624_v5 = vpop.f32.mrf.mxu1 }
 0xd9f   : > { %v15625_v6 = vpop.f32.mrf.mxu1 }
 0xda0   : > { %v15626_v8 = vadd.f32 %v15625_v6, %v15624_v5 }
 0xda2   : > { %16586 = vmatprep.subr.mxu0 %v15626_v8 }
 0xda3   : > { %16587 = vmatpush3.msra.mxu0 %v15626_v8 }
 0xda4   : > { %16589 = vmatmul.mubr.msk.f32.vlgmr.msra.gmra.mxu0 %vm862_vm3, %v3398_v9  ;;  %15630 = vmatprep.subr.mxu0 %v14412_v10 }
 0xda5   : > { %15631 = vmatpush3.msra.mxu0 %v14396_v12  ;;  %3579 = vmatprep.mubr.f32.mxu0 %v18725_v26  ;;  %v14408_v26 = vld [vmem:[%s22195_s3 + $0xfd8] sm:$0xff] }
 0xda6   : > { %15632 = vmatprep.subr.mxu0 %v14411_v13 }
 0xda7   : > { %15633 = vmatpush3.msra.mxu0 %v14395_v15 }
 0xda8   : > { %15634 = vmatprep.subr.mxu0 %v14410_v17  ;;  %v3676_v17 = vpop.permute.xlu0 %3675 }
 0xda9   : > { %15635 = vmatpush3.msra.mxu0 %v14394_v18 }
 0xdaa   : > { %15636 = vmatprep.subr.mxu0 %v14409_v19 }
 0xdab   : > { %15637 = vmatpush3.msra.mxu0 %v14393_v20 }
 0xdac   : > { %15638 = vmatprep.subr.mxu0 %v14408_v26 }
 0xdad   : > { %15639 = vmatpush3.msra.mxu0 %v14392_v21 }
 0xdae   : > { %15640 = vmatprep.subr.mxu0 %v14407_v22 }
 0xdaf   : > { %15641 = vmatpush3.msra.mxu0 %v14391_v24 }
 0xdb0   : > { %15642 = vmatprep.subr.mxu0 %v14406_v25  ;;  %v6757_v25 = vld [vmem:[%s22200_s8 + $0x8] sm:$0xff] }
 0xdb1   : > { %15643 = vmatpush3.msra.mxu0 %v14390_v28  ;;  %v6758_v28 = vld [vmem:[%s22200_s8 + $0x10] sm:$0xff] }
 0xdb2   : > { %15644 = vmatprep.subr.mxu0 %v14405_v30  ;;  %v3726_v30 = vld [vmem:[%s22198_s6 + $0x38] sm:$0xff] }
 0xdb3   : > { %15645 = vmatpush3.msra.mxu0 %v14389_v31  ;;  %v14424_v31 = vld [vmem:[%s22198_s6 + $0x78] sm:$0xff] }
 0xdb4   : > { %15646 = vmatprep.subr.mxu0 %v14404_v32  ;;  %v6756_v32 = vld [vmem:[%s22200_s8] sm:$0xff] }
 0xdb5   : > { %15647 = vmatpush3.msra.mxu0 %v14388_v33  ;;  %v3725_v33 = vld [vmem:[%s22198_s6 + $0x30] sm:$0xff] }
 0xdb6   : > { %15648 = vmatprep.subr.mxu0 %v14403_v35  ;;  %v14423_v35 = vld [vmem:[%s22198_s6 + $0x70] sm:$0xff] }
 0xdb7   : > { %15649 = vmatpush3.msra.mxu0 %v14387_v36  ;;  %v3724_v36 = vld [vmem:[%s22198_s6 + $0x28] sm:$0xff] }
 0xdb8   : > { %15650 = vmatprep.subr.mxu0 %v14402_v37  ;;  %v14422_v37 = vld [vmem:[%s22198_s6 + $0x68] sm:$0xff] }
 0xdb9   : > { %15651 = vmatpush3.msra.mxu0 %v14386_v38  ;;  %v6759_v38 = vld [vmem:[%s22200_s8 + $0x18] sm:$0xff] }
 0xdba   : > { %15652 = vmatprep.subr.mxu0 %v14401_v39  ;;  %v3723_v39 = vld [vmem:[%s22198_s6 + $0x20] sm:$0xff] }
 0xdbb   : > { %15653 = vmatpush3.msra.mxu0 %v14385_v40  ;;  %v14421_v40 = vld [vmem:[%s22198_s6 + $0x60] sm:$0xff] }
 0xdbc   : > { %15654 = vmatprep.subr.mxu0 %v14400_v43  ;;  %v3722_v43 = vld [vmem:[%s22198_s6 + $0x18] sm:$0xff] }
 0xdbd   : > { %15655 = vmatpush3.msra.mxu0 %v14384_v44  ;;  %v14420_v44 = vld [vmem:[%s22198_s6 + $0x58] sm:$0xff] }
 0xdbe   : > { %15656 = vmatprep.subr.mxu0 %v14399_v45  ;;  %v3721_v45 = vld [vmem:[%s22198_s6 + $0x10] sm:$0xff] }
 0xdbf   : > { %15657 = vmatpush3.msra.mxu0 %v14383_v46  ;;  %v14419_v46 = vld [vmem:[%s22198_s6 + $0x50] sm:$0xff] }
 0xdc0   : > { %15658 = vmatprep.subr.mxu0 %v14398_v47  ;;  %v3720_v47 = vld [vmem:[%s22198_s6 + $0x8] sm:$0xff] }
 0xdc1   : > { %15659 = vmatpush3.msra.mxu0 %v14382_v48  ;;  %v14418_v48 = vld [vmem:[%s22198_s6 + $0x48] sm:$0xff] }
 0xdc2   : > { %15660 = vmatprep.subr.mxu0 %v14397_v49  ;;  %v3719_v49 = vld [vmem:[%s22198_s6] sm:$0xff] }
 0xdc3   : > { %15661 = vmatpush3.msra.mxu0 %v14381_v50  ;;  %v14417_v50 = vld [vmem:[%s22198_s6 + $0x40] sm:$0xff] }
 0xdc4   : > { %3580 = vmatmul.mubr.f32.vlgmr.msra.gmra.mxu0 %v18727_v27  ;;  %v1017_v27 = vadd.f32 %v18838_v11, %v18940_v51  ;;  %16615 = vmatprep.subr.mxu0 %v14424_v31 }
 0xdc5   : > { %16616 = vmatpush3.msra.mxu0 %v14424_v31  ;;  %v14450_v31 = vld [vmem:[%s22199_s7 + $0x48] sm:$0xff] }
 0xdc6   : > { %v1212_v0 = vadd.f32 %v18945_v54, %v1017_v27  ;;  %16617 = vmatprep.subr.mxu0 %v14423_v35 }
 0xdc7   : > { %16618 = vmatpush3.msra.mxu0 %v14423_v35  ;;  %v14463_v35 = vld [vmem:[%s22198_s6 + $0xf0] sm:$0xff] }
 0xdc8   : > { %v1401_v2 = vadd.f32 %v19050_v34, %v1212_v0  ;;  %16619 = vmatprep.subr.mxu0 %v14422_v37 }
 0xdc9   : > { %16620 = vmatpush3.msra.mxu0 %v14422_v37  ;;  %v14462_v37 = vld [vmem:[%s22198_s6 + $0xe8] sm:$0xff] }
 0xdca   : > { %v1590_v5 = vadd.f32 %v19155_v14, %v1401_v2  ;;  %v3681_v14 = vpop.permute.xlu1 %3680  ;;  %16621 = vmatprep.subr.mxu0 %v14421_v40 }
 0xdcb   : > { %16622 = vmatpush3.msra.mxu0 %v14421_v40  ;;  %v14459_v40 = vld [vmem:[%s22198_s6 + $0xd0] sm:$0xff] }
 0xdcc   : > { %16623 = vmatprep.subr.mxu0 %v14420_v44 }
 0xdcd   : > { %16624 = vmatpush3.msra.mxu0 %v14420_v44  ;;  %v14457_v44 = vld [vmem:[%s22198_s6 + $0xc0] sm:$0xff] }
 0xdce   : > { %16625 = vmatprep.subr.mxu0 %v14419_v46 }
 0xdcf   : > { %16626 = vmatpush3.msra.mxu0 %v14419_v46 }
 0xdd0   : > { %16627 = vmatprep.subr.mxu0 %v14418_v48 }
 0xdd1   : > { %16628 = vmatpush3.msra.mxu0 %v14418_v48 }
 0xdd2   : > { %16629 = vmatprep.subr.mxu0 %v14417_v50 }
 0xdd3   : > { %16630 = vmatpush3.msra.mxu0 %v14417_v50 }
 0xe64   : > { %v16590_v55 = vpop.f32.mrf.mxu0 }
 0xe65   : > { %v3481_v57 = vadd.f32 %v16590_v55, %v20098_v3  ;;  %v1779_v3 = vadd.f32 %v19260_v59, %v1590_v5 }
 0xe66   : > { %v3471_v58 = vpop.f32.mrf.mxu0 }
 0xe67   : > { %v1968_v6 = vadd.f32 %v19365_v41, %v1779_v3 }
 0xe69   : > { %v2157_v8 = vadd.f32 %v19470_v23, %v1968_v6  ;;  %v14427_v6 = vld [vmem:[%s22199_s7 + $0x20] sm:$0xff] }
 0xe6b   : > { %v2346_v9 = vadd.f32 %v19575_v7, %v2157_v8  ;;  %v3808_v8 = vld [vmem:[%s22199_s7] sm:$0xff] }
 0xe6d   : > { %v2535_v10 = vadd.f32 %v19680_v56, %v2346_v9 }
 0xe6f   : > { %v2724_v12 = vadd.f32 %v19785_v42, %v2535_v10 }
 0xe71   : > { %v2913_v11 = vadd.f32 %v19890_v29, %v2724_v12 }
 0xe73   : > { %v3102_v51 = vadd.f32 %v19995_v16, %v2913_v11 }
 0xe75   : > { %v3291_v54 = vadd.f32 %v20100_v4, %v3102_v51  ;;  %v14428_v51 = vld [vmem:[%s22199_s7 + $0x28] sm:$0xff] }
 0xe77   : > { %v3480_v13 = vadd.f32 %v3471_v58, %v3291_v54  ;;  %v3809_v54 = vld [vmem:[%s22199_s7 + $0x8] sm:$0xff] }
 0xe84   : > { %v15662_v60 = vpop.f32.mrf.mxu0 }
 0xe86   : > { %v15663_v61 = vpop.f32.mrf.mxu0 }
 0xe87   : > { %v15664_v62 = vadd.f32 %v15663_v61, %v15662_v60 }
 0xe89   : > { %16591 = vmatprep.subr.mxu1 %v15664_v62 }
 0xe8a   : > { %16592 = vmatpush3.msra.mxu1 %v15664_v62 }
 0xe8b   : > { %16594 = vmatmul.mubr.msk.f32.vlgmr.msra.gmra.mxu1 %vm862_vm3, %v3587_v63  ;;  %16596 = vmatprep.subr.mxu1 %v3726_v30 }
 0xe8c   : > { %16597 = vmatpush3.msra.mxu1 %v3726_v30 }
 0xe8d   : > { %16598 = vmatprep.subr.mxu1 %v3725_v33 }
 0xe8e   : > { %16599 = vmatpush3.msra.mxu1 %v3725_v33  ;;  %v14451_v33 = vld [vmem:[%s22199_s7 + $0x50] sm:$0xff] }
 0xe8f   : > { %16600 = vmatprep.subr.mxu1 %v3724_v36 }
 0xe90   : > { %16601 = vmatpush3.msra.mxu1 %v3724_v36  ;;  %v14452_v36 = vld [vmem:[%s22199_s7 + $0x58] sm:$0xff] }
 0xe91   : > { %16602 = vmatprep.subr.mxu1 %v3723_v39 }
 0xe92   : > { %16603 = vmatpush3.msra.mxu1 %v3723_v39  ;;  %v14460_v39 = vld [vmem:[%s22198_s6 + $0xd8] sm:$0xff] }
 0xe93   : > { %16604 = vmatprep.subr.mxu1 %v3722_v43 }
 0xe94   : > { %16605 = vmatpush3.msra.mxu1 %v3722_v43  ;;  %v14458_v43 = vld [vmem:[%s22198_s6 + $0xc8] sm:$0xff] }
 0xe95   : > { %16606 = vmatprep.subr.mxu1 %v3721_v45 }
 0xe96   : > { %16607 = vmatpush3.msra.mxu1 %v3721_v45  ;;  %v14467_v45 = vld [vmem:[%s22199_s7 + $0x60] sm:$0xff] }
 0xe97   : > { %16608 = vmatprep.subr.mxu1 %v3720_v47 }
 0xe98   : > { %16609 = vmatpush3.msra.mxu1 %v3720_v47 }
 0xe99   : > { %16610 = vmatprep.subr.mxu1 %v3719_v49 }
 0xe9a   : > { %16611 = vmatpush3.msra.mxu1 %v3719_v49 }
 0xf4b   : > { %v16595_v34 = vpop.f32.mrf.mxu1 }
 0xf4c   : > { %v3670_v59 = vadd.f32 %v16595_v34, %v3481_v57  ;;  %v14446_v34 = vld [vmem:[%s22198_s6 + $0xb8] sm:$0xff] }
 0xf4d   : > { %v3660_v15 = vpop.f32.mrf.mxu1 }
 0xf4e   : > { %v3684_v41 = vadd.f32 %v3681_v14, %v3670_v59  ;;  %v3669_v23 = vadd.f32 %v3660_v15, %v3480_v13  ;;  %v14429_v14 = vld [vmem:[%s22199_s7 + $0x30] sm:$0xff]  ;;  %v3811_v15 = vld [vmem:[%s22199_s7 + $0x18] sm:$0xff] }
 0xf4f   : > { %v3810_v13 = vld [vmem:[%s22199_s7 + $0x10] sm:$0xff] }
 0xf50   : > { %v3689_v7 = vsel %vm3685_vm4, %v3684_v41, 0.0  ;;  %v3683_v56 = vadd.f32 %v3676_v17, %v3669_v23  ;;  %v14445_v59 = vld [vmem:[%s22198_s6 + $0xb0] sm:$0xff]  ;;  %v14444_v23 = vld [vmem:[%s22198_s6 + $0xa8] sm:$0xff]  ;;  %v14443_v17 = vld [vmem:[%s22198_s6 + $0xa0] sm:$0xff] }
 0xf51   : > { %3690 = vadd.xlane.f32.xlu0 %v3689_v7  ;;  %v14442_v7 = vld [vmem:[%s22198_s6 + $0x98] sm:$0xff] }
 0xf52   : > { %v3686_v42 = vsel %vm3685_vm4, %v3683_v56, 0.0 }
 0xf53   : > { %3687 = vadd.xlane.f32.xlu1 %v3686_v42  ;;  %v14440_v42 = vld [vmem:[%s22198_s6 + $0x88] sm:$0xff] }
 0xfda   : > { %v3691_v29 = vpop.xlane.xlu0 %3690 }
 0xfdb   : > { %v3694_v16 = vmul.f32 0.015625, %v3691_v29  ;;  %v14439_v29 = vld [vmem:[%s22198_s6 + $0x80] sm:$0xff] }
 0xfdc   : > { %v3688_v18 = vpop.xlane.xlu1 %3687 }
 0xfdd   : > { %v20223_v4 = vsub.f32 %v3684_v41, %v3694_v16  ;;  %v3693_v19 = vmul.f32 0.015625, %v3688_v18  ;;  %v14430_v41 = vld [vmem:[%s22199_s7 + $0x38] sm:$0xff]  ;;  %v14449_v16 = vld [vmem:[%s22199_s7 + $0x40] sm:$0xff] }
 0xfdf   : > { %v20225_v20 = vsub.f32 %v3683_v56, %v3693_v19  ;;  %v3698_v26 = vmul.f32 %v20223_v4, %v20223_v4  ;;  %v14441_v56 = vld [vmem:[%s22198_s6 + $0x90] sm:$0xff] }
 0xfe1   : > { %v3702_v21 = vsel %vm3685_vm4, %v3698_v26, 0.0  ;;  %v3697_v22 = vmul.f32 %v20225_v20, %v20225_v20 }
 0xfe2   : > { %3703 = vadd.xlane.f32.xlu1 %v3702_v21 }
 0xfe3   : > { %v3699_v24 = vsel %vm3685_vm4, %v3697_v22, 0.0 }
 0xfe4   : > { %3700 = vadd.xlane.f32.xlu0 %v3699_v24 }
 0xff3   : > { %6767 = vperm.xlu1 %18156, %v6757_v25  }
 0xff7   : > { %6772 = vperm.xlu1 %18156, %v6758_v28  }
 0xffa   : > { %6762 = vperm.xlu0 %18155, %v6756_v32   ;;  %v14464_v32 = vld [vmem:[%s22198_s6 + $0xf8] sm:$0xff] }
 0xffe   : > { %6777 = vperm.xlu0 %18155, %v6759_v38   ;;  %v14461_v38 = vld [vmem:[%s22198_s6 + $0xe0] sm:$0xff] }
0x106b   : > { %v3704_v52 = vpop.xlane.xlu1 %3703 }
0x106c   : > { %v3706_v53 = vmul.f32 0.015625, %v3704_v52 }
0x106d   : > { %v3701_v55 = vpop.xlane.xlu0 %3700 }
0x106e   : > { %v3708_v57 = vadd.f32 1e-05, %v3706_v53  ;;  %v3705_v58 = vmul.f32 0.015625, %v3701_v55 }
0x1070   : > { %18157 = vrsqrt.f32 %v3708_v57  ;;  %v3707_v60 = vadd.f32 1e-05, %v3705_v58  ;;  %v14468_v58 = vld [vmem:[%s22199_s7 + $0x68] sm:$0xff] }
0x1072   : > { %18159 = vrsqrt.f32 %v3707_v60  ;;  %v14482_v60 = vld [vmem:[%s22198_s6 + $0x138] sm:$0xff] }
0x107d   : > { %v18158_v61 = vpop.eup %18157 }
0x107e   : > { %v3712_v62 = vmul.f32 %v18158_v61, %v20223_v4  ;;  %v14469_v61 = vld [vmem:[%s22199_s7 + $0x70] sm:$0xff] }
0x107f   : > { %v18160_v63 = vpop.eup %18159 }
0x1080   : > { %v3711_v27 = vmul.f32 %v18160_v63, %v20225_v20  ;;  %v3716_v0 = vmul.f32 0.2, %v3712_v62  ;;  %vm3714_vm5 = vcmp.gt.f32.partialorder %v3712_v62, 0.0  ;;  %v14470_v63 = vld [vmem:[%s22199_s7 + $0x78] sm:$0xff] }
0x1082   : > { %vm3713_vm6 = vcmp.gt.f32.partialorder %v3711_v27, 0.0  ;;  %v3715_v2 = vmul.f32 0.2, %v3711_v27  ;;  %v20297_v3 = vsel %vm3714_vm5, %v3712_v62, %v3716_v0  ;;  %v14481_v62 = vld [vmem:[%s22198_s6 + $0x130] sm:$0xff]  ;;  %v14479_v0 = vld [vmem:[%s22198_s6 + $0x120] sm:$0xff] }
0x1084   : > { %v20295_v5 = vsel %vm3713_vm6, %v3711_v27, %v3715_v2  ;;  %v14480_v27 = vld [vmem:[%s22198_s6 + $0x128] sm:$0xff]  ;;  %v14478_v2 = vld [vmem:[%s22198_s6 + $0x118] sm:$0xff] }
0x1085   : > { %16612 = vmatprep.mubr.msk.f32.mxu1 %vm3685_vm4, %v20295_v5  ;;  %16631 = vmatprep.mubr.msk.f32.mxu0 %vm3685_vm4, %v20295_v5 }
0x1086   : > { %16613 = vmatmul.mubr.msk.f32.vlgmr.msra.gmra.mxu1 %vm3685_vm4, %v20297_v3  ;;  %16632 = vmatmul.mubr.msk.f32.vlgmr.msra.gmra.mxu0 %vm3685_vm4, %v20297_v3 }
0x1087   : > { %16638 = vmatprep.mubr.msk.f32.mxu1 %vm3901_vm7, %v14427_v6  ;;  %16648 = vmatprep.mubr.msk.f32.mxu0 %vm3901_vm7, %v3808_v8  ;;  %v14477_v6 = vld [vmem:[%s22198_s6 + $0x110] sm:$0xff]  ;;  %v14476_v8 = vld [vmem:[%s22198_s6 + $0x108] sm:$0xff] }
0x1146   : > { %v16614_v9 = vpop.f32.mrf.mxu1  ;;  %v16633_v10 = vpop.f32.mrf.mxu0 }
0x1147   : > { %16634 = vmatprep.subr.mxu1 %v16633_v10  ;;  %16644 = vmatprep.subr.mxu0 %v16614_v9 }
0x1148   : > { %v3799_v12 = vpop.f32.mrf.mxu1  ;;  %v3887_v11 = vpop.f32.mrf.mxu0  ;;  %16635 = vmatpush3.msra.mxu1 %v16633_v10  ;;  %16645 = vmatpush3.msra.mxu0 %v16614_v9  ;;  %v14475_v9 = vld [vmem:[%s22198_s6 + $0x100] sm:$0xff] }
0x1149   : > { %16636 = vmatprep.subr.mxu1 %v3887_v11  ;;  %16646 = vmatprep.subr.mxu0 %v3799_v12  ;;  %v14485_v10 = vld [vmem:[%s22199_s7 + $0x80] sm:$0xff] }
0x114a   : > { %16637 = vmatpush3.msra.mxu1 %v3887_v11  ;;  %16647 = vmatpush3.msra.mxu0 %v3799_v12 }
0x114b   : > { %16639 = vmatmul.mubr.msk.f32.vlgmr.msra.gmra.mxu1 %vm3901_vm7, %v14428_v51  ;;  %16649 = vmatmul.mubr.msk.f32.vlgmr.msra.gmra.mxu0 %vm3901_vm7, %v3809_v54 }
0x114c   : > { %16654 = vmatprep.subr.mxu1 %v14446_v34  ;;  %16641 = vmatprep.mubr.msk.f32.mxu1 %vm3901_vm7, %v14429_v14 }
0x114d   : > { %16655 = vmatpush3.msra.mxu1 %v14446_v34  ;;  %16651 = vmatprep.mubr.msk.f32.mxu0 %vm3901_vm7, %v3810_v13 }
0x114e   : > { %16656 = vmatprep.subr.mxu1 %v14445_v59 }
0x114f   : > { %16657 = vmatpush3.msra.mxu1 %v14445_v59  ;;  %16652 = vmatmul.mubr.msk.f32.gmra.mxu0 %vm3901_vm7, %v3811_v15  ;;  %v14486_v15 = vld [vmem:[%s22199_s7 + $0x88] sm:$0xff] }
0x1150   : > { %16642 = vmatmul.mubr.msk.f32.gmra.mxu1 %vm3901_vm7, %v14430_v41  ;;  %16658 = vmatprep.subr.mxu1 %v14444_v23  ;;  %v14500_v41 = vld [vmem:[%s22198_s6 + $0x178] sm:$0xff] }
0x1151   : > { %16659 = vmatpush3.msra.mxu1 %v14444_v23  ;;  %16670 = vmatprep.mubr.msk.f32.mxu1 %vm3685_vm4, %v20295_v5  ;;  %v14487_v23 = vld [vmem:[%s22199_s7 + $0x90] sm:$0xff] }
0x1152   : > { %16660 = vmatprep.subr.mxu1 %v14443_v17  ;;  %16677 = vmatprep.mubr.msk.f32.mxu0 %vm3901_vm7, %v14449_v16  ;;  %v14495_v16 = vld [vmem:[%s22198_s6 + $0x150] sm:$0xff] }
0x1153   : > { %16661 = vmatpush3.msra.mxu1 %v14443_v17  ;;  %v14499_v17 = vld [vmem:[%s22198_s6 + $0x170] sm:$0xff] }
0x1154   : > { %16662 = vmatprep.subr.mxu1 %v14442_v7 }
0x1155   : > { %16663 = vmatpush3.msra.mxu1 %v14442_v7  ;;  %v14488_v7 = vld [vmem:[%s22199_s7 + $0x98] sm:$0xff] }
0x1156   : > { %16664 = vmatprep.subr.mxu1 %v14441_v56 }
0x1157   : > { %16665 = vmatpush3.msra.mxu1 %v14441_v56  ;;  %v14498_v56 = vld [vmem:[%s22198_s6 + $0x168] sm:$0xff] }
0x1158   : > { %16666 = vmatprep.subr.mxu1 %v14440_v42 }
0x1159   : > { %16667 = vmatpush3.msra.mxu1 %v14440_v42  ;;  %v14497_v42 = vld [vmem:[%s22198_s6 + $0x160] sm:$0xff] }
0x115a   : > { %16668 = vmatprep.subr.mxu1 %v14439_v29 }
0x115b   : > { %16669 = vmatpush3.msra.mxu1 %v14439_v29  ;;  %v14496_v29 = vld [vmem:[%s22198_s6 + $0x158] sm:$0xff] }
0x115c   : > { %16671 = vmatmul.mubr.msk.f32.vlgmr.msra.gmra.mxu1 %vm3685_vm4, %v20297_v3 }
0x115d   : > { %16706 = vmatprep.mubr.msk.f32.mxu1 %vm3901_vm7, %v14467_v45  ;;  %v14513_v45 = vld [vmem:[%s22198_s6 + $0x190] sm:$0xff] }
0x120b   : > { %v16640_v18 = vpop.f32.mrf.mxu1  ;;  %v16650_v4 = vpop.f32.mrf.mxu0 }
0x120c   : > { %v4083_v19 = vadd.f32 %v16650_v4, %v16640_v18  ;;  %v14494_v18 = vld [vmem:[%s22198_s6 + $0x148] sm:$0xff]  ;;  %v14493_v4 = vld [vmem:[%s22198_s6 + $0x140] sm:$0xff] }
0x120d   : > { %v20371_v20 = vpop.f32.mrf.mxu1  ;;  %v20373_v26 = vpop.f32.mrf.mxu0 }
0x120f   : > { %v16653_v22 = vpop.f32.mrf.mxu0 }
0x1210   : > { %v16643_v21 = vpop.f32.mrf.mxu1 }
0x1211   : > { %v4093_v24 = vadd.f32 %v16653_v22, %v16643_v21  ;;  %v20421_v46 = vpop.f32.mrf.mxu0 }
0x1212   : > { %v20375_v25 = vpop.f32.mrf.mxu1 }
0x121c   : > { %v16672_v28 = vpop.f32.mrf.mxu1 }
0x121d   : > { %16673 = vmatprep.subr.mxu0 %v16672_v28 }
0x121e   : > { %v4171_v30 = vpop.f32.mrf.mxu1  ;;  %16674 = vmatpush3.msra.mxu0 %v16672_v28 }
0x121f   : > { %16675 = vmatprep.subr.mxu0 %v4171_v30 }
0x1220   : > { %16676 = vmatpush3.msra.mxu0 %v4171_v30 }
0x1221   : > { %16678 = vmatmul.mubr.msk.f32.vlgmr.msra.gmra.mxu0 %vm3901_vm7, %v14450_v31  ;;  %16683 = vmatprep.subr.mxu0 %v14464_v32 }
0x1222   : > { %16684 = vmatpush3.msra.mxu0 %v14464_v32  ;;  %16680 = vmatprep.mubr.msk.f32.mxu0 %vm3901_vm7, %v14451_v33 }
0x1223   : > { %16685 = vmatprep.subr.mxu0 %v14463_v35 }
0x1224   : > { %16686 = vmatpush3.msra.mxu0 %v14463_v35  ;;  %v14504_v35 = vld [vmem:[%s22199_s7 + $0xa8] sm:$0xff] }
0x1225   : > { %16681 = vmatmul.mubr.msk.f32.gmra.mxu0 %vm3901_vm7, %v14452_v36  ;;  %16687 = vmatprep.subr.mxu0 %v14462_v37  ;;  %v14518_v36 = vld [vmem:[%s22198_s6 + $0x1b8] sm:$0xff] }
0x1226   : > { %16688 = vmatpush3.msra.mxu0 %v14462_v37  ;;  %16699 = vmatprep.mubr.msk.f32.mxu0 %vm3685_vm4, %v20295_v5  ;;  %v14505_v37 = vld [vmem:[%s22199_s7 + $0xb0] sm:$0xff] }
0x1227   : > { %16689 = vmatprep.subr.mxu0 %v14461_v38 }
0x1228   : > { %16690 = vmatpush3.msra.mxu0 %v14461_v38  ;;  %v14517_v38 = vld [vmem:[%s22198_s6 + $0x1b0] sm:$0xff] }
0x1229   : > { %16691 = vmatprep.subr.mxu0 %v14460_v39 }
0x122a   : > { %16692 = vmatpush3.msra.mxu0 %v14460_v39  ;;  %v14506_v39 = vld [vmem:[%s22199_s7 + $0xb8] sm:$0xff] }
0x122b   : > { %16693 = vmatprep.subr.mxu0 %v14459_v40 }
0x122c   : > { %16694 = vmatpush3.msra.mxu0 %v14459_v40  ;;  %v14516_v40 = vld [vmem:[%s22198_s6 + $0x1a8] sm:$0xff] }
0x122d   : > { %16695 = vmatprep.subr.mxu0 %v14458_v43 }
0x122e   : > { %16696 = vmatpush3.msra.mxu0 %v14458_v43  ;;  %v14515_v43 = vld [vmem:[%s22198_s6 + $0x1a0] sm:$0xff] }
0x122f   : > { %16697 = vmatprep.subr.mxu0 %v14457_v44 }
0x1230   : > { %16698 = vmatpush3.msra.mxu0 %v14457_v44  ;;  %v14514_v44 = vld [vmem:[%s22198_s6 + $0x198] sm:$0xff] }
0x1231   : > { %16700 = vmatmul.mubr.msk.f32.vlgmr.msra.gmra.mxu0 %vm3685_vm4, %v20297_v3 }
0x1232   : > { %16735 = vmatprep.mubr.msk.f32.mxu0 %vm3901_vm7, %v14485_v10  ;;  %v14533_v10 = vld [vmem:[%s22198_s6 + $0x1e0] sm:$0xff] }
0x12e1   : > { %v16679_v47 = vpop.f32.mrf.mxu0 }
0x12e2   : > { %v4283_v48 = vadd.f32 %v16679_v47, %v4083_v19  ;;  %v14503_v19 = vld [vmem:[%s22199_s7 + $0xa0] sm:$0xff]  ;;  %v14512_v47 = vld [vmem:[%s22198_s6 + $0x188] sm:$0xff] }
0x12e3   : > { %v20423_v49 = vpop.f32.mrf.mxu0 }
0x12e5   : > { %v16682_v50 = vpop.f32.mrf.mxu0 }
0x12e6   : > { %v4285_v52 = vadd.f32 %v16682_v50, %v4093_v24  ;;  %v14521_v50 = vld [vmem:[%s22199_s7 + $0xc0] sm:$0xff] }
0x12e7   : > { %v20425_v53 = vpop.f32.mrf.mxu0 }
0x12f1   : > { %v16701_v55 = vpop.f32.mrf.mxu0 }
0x12f2   : > { %16702 = vmatprep.subr.mxu1 %v16701_v55 }
0x12f3   : > { %v4361_v57 = vpop.f32.mrf.mxu0  ;;  %16703 = vmatpush3.msra.mxu1 %v16701_v55 }
0x12f4   : > { %16704 = vmatprep.subr.mxu1 %v4361_v57 }
0x12f5   : > { %16705 = vmatpush3.msra.mxu1 %v4361_v57 }
0x12f6   : > { %16707 = vmatmul.mubr.msk.f32.vlgmr.msra.gmra.mxu1 %vm3901_vm7, %v14468_v58  ;;  %16712 = vmatprep.subr.mxu1 %v14482_v60 }
0x12f7   : > { %16713 = vmatpush3.msra.mxu1 %v14482_v60  ;;  %16709 = vmatprep.mubr.msk.f32.mxu1 %vm3901_vm7, %v14469_v61 }
0x12f8   : > { %16714 = vmatprep.subr.mxu1 %v14481_v62 }
0x12f9   : > { %16715 = vmatpush3.msra.mxu1 %v14481_v62 }
0x12fa   : > { %16710 = vmatmul.mubr.msk.f32.gmra.mxu1 %vm3901_vm7, %v14470_v63  ;;  %16716 = vmatprep.subr.mxu1 %v14480_v27 }
0x12fb   : > { %16717 = vmatpush3.msra.mxu1 %v14480_v27  ;;  %16728 = vmatprep.mubr.msk.f32.mxu1 %vm3685_vm4, %v20295_v5  ;;  %v14522_v27 = vld [vmem:[%s22199_s7 + $0xc8] sm:$0xff] }
0x12fc   : > { %16718 = vmatprep.subr.mxu1 %v14479_v0 }
0x12fd   : > { %16719 = vmatpush3.msra.mxu1 %v14479_v0  ;;  %v14536_v0 = vld [vmem:[%s22198_s6 + $0x1f8] sm:$0xff] }
0x12fe   : > { %16720 = vmatprep.subr.mxu1 %v14478_v2 }
0x12ff   : > { %16721 = vmatpush3.msra.mxu1 %v14478_v2  ;;  %v14523_v2 = vld [vmem:[%s22199_s7 + $0xd0] sm:$0xff] }
0x1300   : > { %16722 = vmatprep.subr.mxu1 %v14477_v6 }
0x1301   : > { %16723 = vmatpush3.msra.mxu1 %v14477_v6  ;;  %v14535_v6 = vld [vmem:[%s22198_s6 + $0x1f0] sm:$0xff] }
0x1302   : > { %16724 = vmatprep.subr.mxu1 %v14476_v8 }
0x1303   : > { %16725 = vmatpush3.msra.mxu1 %v14476_v8  ;;  %v14524_v8 = vld [vmem:[%s22199_s7 + $0xd8] sm:$0xff] }
0x1304   : > { %16726 = vmatprep.subr.mxu1 %v14475_v9 }
0x1305   : > { %16727 = vmatpush3.msra.mxu1 %v14475_v9  ;;  %v14534_v9 = vld [vmem:[%s22198_s6 + $0x1e8] sm:$0xff] }
0x1306   : > { %16729 = vmatmul.mubr.msk.f32.vlgmr.msra.gmra.mxu1 %vm3685_vm4, %v20297_v3 }
0x1307   : > { %16764 = vmatprep.mubr.msk.f32.mxu1 %vm3901_vm7, %v14503_v19  ;;  %v14542_v19 = vld [vmem:[%s22199_s7 + $0xf8] sm:$0xff] }
0x13b6   : > { %v16708_v12 = vpop.f32.mrf.mxu1 }
0x13b7   : > { %v4473_v11 = vadd.f32 %v16708_v12, %v4283_v48  ;;  %v14511_v48 = vld [vmem:[%s22198_s6 + $0x180] sm:$0xff]  ;;  %v14532_v12 = vld [vmem:[%s22198_s6 + $0x1d8] sm:$0xff] }
0x13b8   : > { %v20471_v51 = vpop.f32.mrf.mxu1 }
0x13ba   : > { %v16711_v54 = vpop.f32.mrf.mxu1 }
0x13bb   : > { %v4475_v34 = vadd.f32 %v16711_v54, %v4285_v52  ;;  %v14530_v54 = vld [vmem:[%s22198_s6 + $0x1c8] sm:$0xff] }
0x13bc   : > { %v20473_v14 = vpop.f32.mrf.mxu1 }
0x13c6   : > { %v16730_v13 = vpop.f32.mrf.mxu1 }
0x13c7   : > { %16731 = vmatprep.subr.mxu0 %v16730_v13 }
0x13c8   : > { %v4551_v59 = vpop.f32.mrf.mxu1  ;;  %16732 = vmatpush3.msra.mxu0 %v16730_v13  ;;  %v14539_v13 = vld [vmem:[%s22199_s7 + $0xe0] sm:$0xff] }
0x13c9   : > { %16733 = vmatprep.subr.mxu0 %v4551_v59 }
0x13ca   : > { %16734 = vmatpush3.msra.mxu0 %v4551_v59 }
0x13cb   : > { %16736 = vmatmul.mubr.msk.f32.vlgmr.msra.gmra.mxu0 %vm3901_vm7, %v14486_v15  ;;  %16741 = vmatprep.subr.mxu0 %v14500_v41 }
0x13cc   : > { %16742 = vmatpush3.msra.mxu0 %v14500_v41  ;;  %16738 = vmatprep.mubr.msk.f32.mxu0 %vm3901_vm7, %v14487_v23 }
0x13cd   : > { %16743 = vmatprep.subr.mxu0 %v14499_v17 }
0x13ce   : > { %16744 = vmatpush3.msra.mxu0 %v14499_v17 }
0x13cf   : > { %16739 = vmatmul.mubr.msk.f32.gmra.mxu0 %vm3901_vm7, %v14488_v7  ;;  %16745 = vmatprep.subr.mxu0 %v14498_v56 }
0x13d0   : > { %16746 = vmatpush3.msra.mxu0 %v14498_v56  ;;  %16757 = vmatprep.mubr.msk.f32.mxu0 %vm3685_vm4, %v20295_v5 }
0x13d1   : > { %16747 = vmatprep.subr.mxu0 %v14497_v42 }
0x13d2   : > { %16748 = vmatpush3.msra.mxu0 %v14497_v42 }
0x13d3   : > { %16749 = vmatprep.subr.mxu0 %v14496_v29 }
0x13d4   : > { %16750 = vmatpush3.msra.mxu0 %v14496_v29  ;;  %v14540_v29 = vld [vmem:[%s22199_s7 + $0xe8] sm:$0xff] }
0x13d5   : > { %16751 = vmatprep.subr.mxu0 %v14495_v16 }
0x13d6   : > { %16752 = vmatpush3.msra.mxu0 %v14495_v16  ;;  %v14554_v16 = vld [vmem:[%s22198_s6 + $0x238] sm:$0xff] }
0x13d7   : > { %16753 = vmatprep.subr.mxu0 %v14494_v18 }
0x13d8   : > { %16754 = vmatpush3.msra.mxu0 %v14494_v18  ;;  %v14541_v18 = vld [vmem:[%s22199_s7 + $0xf0] sm:$0xff] }
0x13d9   : > { %16755 = vmatprep.subr.mxu0 %v14493_v4 }
0x13da   : > { %16756 = vmatpush3.msra.mxu0 %v14493_v4  ;;  %v14553_v4 = vld [vmem:[%s22198_s6 + $0x230] sm:$0xff] }
0x13db   : > { %16758 = vmatmul.mubr.msk.f32.vlgmr.msra.gmra.mxu0 %vm3685_vm4, %v20297_v3 }
0x13dc   : > { %16793 = vmatprep.mubr.msk.f32.mxu0 %vm3901_vm7, %v14521_v50  ;;  %v14559_v50 = vld [vmem:[%s22199_s7 + $0x110] sm:$0xff] }
0x148b   : > { %v16737_v21 = vpop.f32.mrf.mxu0 }
0x148c   : > { %v4663_v22 = vadd.f32 %v16737_v21, %v4473_v11  ;;  %v14531_v11 = vld [vmem:[%s22198_s6 + $0x1d0] sm:$0xff]  ;;  %v14552_v21 = vld [vmem:[%s22198_s6 + $0x228] sm:$0xff] }
0x148d   : > { %v20519_v24 = vpop.f32.mrf.mxu0 }
0x148f   : > { %v16740_v28 = vpop.f32.mrf.mxu0 }
0x1490   : > { %v4665_v30 = vadd.f32 %v16740_v28, %v4475_v34  ;;  %v14529_v34 = vld [vmem:[%s22198_s6 + $0x1c0] sm:$0xff]  ;;  %v14550_v28 = vld [vmem:[%s22198_s6 + $0x218] sm:$0xff] }
0x1491   : > { %v20521_v31 = vpop.f32.mrf.mxu0 }
0x149b   : > { %v16759_v32 = vpop.f32.mrf.mxu0 }
0x149c   : > { %16760 = vmatprep.subr.mxu1 %v16759_v32 }
0x149d   : > { %v4741_v33 = vpop.f32.mrf.mxu0  ;;  %16761 = vmatpush3.msra.mxu1 %v16759_v32  ;;  %v14548_v32 = vld [vmem:[%s22198_s6 + $0x208] sm:$0xff] }
0x149e   : > { %16762 = vmatprep.subr.mxu1 %v4741_v33 }
0x149f   : > { %16763 = vmatpush3.msra.mxu1 %v4741_v33  ;;  %v14547_v33 = vld [vmem:[%s22198_s6 + $0x200] sm:$0xff] }
0x14a0   : > { %16765 = vmatmul.mubr.msk.f32.vlgmr.msra.gmra.mxu1 %vm3901_vm7, %v14504_v35  ;;  %16770 = vmatprep.subr.mxu1 %v14518_v36  ;;  %v14557_v35 = vld [vmem:[%s22199_s7 + $0x100] sm:$0xff] }
0x14a1   : > { %16771 = vmatpush3.msra.mxu1 %v14518_v36  ;;  %16767 = vmatprep.mubr.msk.f32.mxu1 %vm3901_vm7, %v14505_v37 }
0x14a2   : > { %16772 = vmatprep.subr.mxu1 %v14517_v38 }
0x14a3   : > { %16773 = vmatpush3.msra.mxu1 %v14517_v38 }
0x14a4   : > { %16768 = vmatmul.mubr.msk.f32.gmra.mxu1 %vm3901_vm7, %v14506_v39  ;;  %16774 = vmatprep.subr.mxu1 %v14516_v40 }
0x14a5   : > { %16775 = vmatpush3.msra.mxu1 %v14516_v40  ;;  %16786 = vmatprep.mubr.msk.f32.mxu1 %vm3685_vm4, %v20295_v5 }
0x14a6   : > { %16776 = vmatprep.subr.mxu1 %v14515_v43 }
0x14a7   : > { %16777 = vmatpush3.msra.mxu1 %v14515_v43 }
0x14a8   : > { %16778 = vmatprep.subr.mxu1 %v14514_v44 }
0x14a9   : > { %16779 = vmatpush3.msra.mxu1 %v14514_v44 }
0x14aa   : > { %16780 = vmatprep.subr.mxu1 %v14513_v45 }
0x14ab   : > { %16781 = vmatpush3.msra.mxu1 %v14513_v45 }
0x14ac   : > { %16782 = vmatprep.subr.mxu1 %v14512_v47 }
0x14ad   : > { %16783 = vmatpush3.msra.mxu1 %v14512_v47  ;;  %v14558_v47 = vld [vmem:[%s22199_s7 + $0x108] sm:$0xff] }
0x14ae   : > { %16784 = vmatprep.subr.mxu1 %v14511_v48 }
0x14af   : > { %16785 = vmatpush3.msra.mxu1 %v14511_v48  ;;  %v14572_v48 = vld [vmem:[%s22198_s6 + $0x278] sm:$0xff] }
0x14b0   : > { %16787 = vmatmul.mubr.msk.f32.vlgmr.msra.gmra.mxu1 %vm3685_vm4, %v20297_v3 }
0x14b1   : > { %16822 = vmatprep.mubr.msk.f32.mxu1 %vm3901_vm7, %v14539_v13  ;;  %v14576_v13 = vld [vmem:[%s22199_s7 + $0x128] sm:$0xff] }
0x1560   : > { %v16766_v52 = vpop.f32.mrf.mxu1 }
0x1561   : > { %v4853_v55 = vadd.f32 %v16766_v52, %v4663_v22  ;;  %v14551_v22 = vld [vmem:[%s22198_s6 + $0x220] sm:$0xff]  ;;  %v14571_v52 = vld [vmem:[%s22198_s6 + $0x270] sm:$0xff] }
0x1562   : > { %v20567_v57 = vpop.f32.mrf.mxu1 }
0x1564   : > { %v16769_v58 = vpop.f32.mrf.mxu1 }
0x1565   : > { %v4855_v60 = vadd.f32 %v16769_v58, %v4665_v30  ;;  %v14549_v30 = vld [vmem:[%s22198_s6 + $0x210] sm:$0xff]  ;;  %v14570_v58 = vld [vmem:[%s22198_s6 + $0x268] sm:$0xff] }
0x1566   : > { %v20569_v61 = vpop.f32.mrf.mxu1 }
0x1570   : > { %v16788_v62 = vpop.f32.mrf.mxu1 }
0x1571   : > { %16789 = vmatprep.subr.mxu0 %v16788_v62 }
0x1572   : > { %v4931_v63 = vpop.f32.mrf.mxu1  ;;  %16790 = vmatpush3.msra.mxu0 %v16788_v62  ;;  %v14568_v62 = vld [vmem:[%s22198_s6 + $0x258] sm:$0xff] }
0x1573   : > { %16791 = vmatprep.subr.mxu0 %v4931_v63 }
0x1574   : > { %16792 = vmatpush3.msra.mxu0 %v4931_v63  ;;  %v14567_v63 = vld [vmem:[%s22198_s6 + $0x250] sm:$0xff] }
0x1575   : > { %16794 = vmatmul.mubr.msk.f32.vlgmr.msra.gmra.mxu0 %vm3901_vm7, %v14522_v27  ;;  %16799 = vmatprep.subr.mxu0 %v14536_v0  ;;  %v14566_v27 = vld [vmem:[%s22198_s6 + $0x248] sm:$0xff] }
0x1576   : > { %16800 = vmatpush3.msra.mxu0 %v14536_v0  ;;  %16796 = vmatprep.mubr.msk.f32.mxu0 %vm3901_vm7, %v14523_v2  ;;  %v14565_v0 = vld [vmem:[%s22198_s6 + $0x240] sm:$0xff] }
0x1577   : > { %16801 = vmatprep.subr.mxu0 %v14535_v6  ;;  %v14575_v2 = vld [vmem:[%s22199_s7 + $0x120] sm:$0xff] }
0x1578   : > { %16802 = vmatpush3.msra.mxu0 %v14535_v6 }
0x1579   : > { %16797 = vmatmul.mubr.msk.f32.gmra.mxu0 %vm3901_vm7, %v14524_v8  ;;  %16803 = vmatprep.subr.mxu0 %v14534_v9 }
0x157a   : > { %16804 = vmatpush3.msra.mxu0 %v14534_v9  ;;  %16815 = vmatprep.mubr.msk.f32.mxu0 %vm3685_vm4, %v20295_v5 }
0x157b   : > { %16805 = vmatprep.subr.mxu0 %v14533_v10 }
0x157c   : > { %16806 = vmatpush3.msra.mxu0 %v14533_v10 }
0x157d   : > { %16807 = vmatprep.subr.mxu0 %v14532_v12 }
0x157e   : > { %16808 = vmatpush3.msra.mxu0 %v14532_v12 }
0x157f   : > { %16809 = vmatprep.subr.mxu0 %v14531_v11 }
0x1580   : > { %16810 = vmatpush3.msra.mxu0 %v14531_v11 }
0x1581   : > { %16811 = vmatprep.subr.mxu0 %v14530_v54 }
0x1582   : > { %16812 = vmatpush3.msra.mxu0 %v14530_v54 }
0x1583   : > { %16813 = vmatprep.subr.mxu0 %v14529_v34 }
0x1584   : > { %16814 = vmatpush3.msra.mxu0 %v14529_v34 }
0x1585   : > { %16816 = vmatmul.mubr.msk.f32.vlgmr.msra.gmra.mxu0 %vm3685_vm4, %v20297_v3 }
0x1586   : > { %16851 = vmatprep.mubr.msk.f32.mxu0 %vm3901_vm7, %v14557_v35 }
0x1635   : > { %v16795_v59 = vpop.f32.mrf.mxu0 }
0x1636   : > { %v5043_v15 = vadd.f32 %v16795_v59, %v4853_v55  ;;  %v14560_v55 = vld [vmem:[%s22199_s7 + $0x118] sm:$0xff] }
0x1637   : > { %v20615_v41 = vpop.f32.mrf.mxu0  ;;  %v14590_v59 = vld [vmem:[%s22198_s6 + $0x2b8] sm:$0xff] }
0x1639   : > { %v16798_v23 = vpop.f32.mrf.mxu0 }
0x163a   : > { %v5045_v17 = vadd.f32 %v16798_v23, %v4855_v60  ;;  %v14569_v60 = vld [vmem:[%s22198_s6 + $0x260] sm:$0xff]  ;;  %v14589_v23 = vld [vmem:[%s22198_s6 + $0x2b0] sm:$0xff] }
0x163b   : > { %v20617_v7 = vpop.f32.mrf.mxu0 }
0x1645   : > { %v16817_v56 = vpop.f32.mrf.mxu0 }
0x1646   : > { %16818 = vmatprep.subr.mxu1 %v16817_v56 }
0x1647   : > { %v5121_v42 = vpop.f32.mrf.mxu0  ;;  %16819 = vmatpush3.msra.mxu1 %v16817_v56  ;;  %v14588_v56 = vld [vmem:[%s22198_s6 + $0x2a8] sm:$0xff] }
0x1648   : > { %16820 = vmatprep.subr.mxu1 %v5121_v42 }
0x1649   : > { %16821 = vmatpush3.msra.mxu1 %v5121_v42  ;;  %v14587_v42 = vld [vmem:[%s22198_s6 + $0x2a0] sm:$0xff] }
0x164a   : > { %16823 = vmatmul.mubr.msk.f32.vlgmr.msra.gmra.mxu1 %vm3901_vm7, %v14540_v29  ;;  %16828 = vmatprep.subr.mxu1 %v14554_v16  ;;  %v14586_v29 = vld [vmem:[%s22198_s6 + $0x298] sm:$0xff] }
0x164b   : > { %16829 = vmatpush3.msra.mxu1 %v14554_v16  ;;  %16825 = vmatprep.mubr.msk.f32.mxu1 %vm3901_vm7, %v14541_v18  ;;  %v14585_v16 = vld [vmem:[%s22198_s6 + $0x290] sm:$0xff]  ;;  %v14584_v18 = vld [vmem:[%s22198_s6 + $0x288] sm:$0xff] }
0x164c   : > { %16830 = vmatprep.subr.mxu1 %v14553_v4 }
0x164d   : > { %16831 = vmatpush3.msra.mxu1 %v14553_v4  ;;  %v14583_v4 = vld [vmem:[%s22198_s6 + $0x280] sm:$0xff] }
0x164e   : > { %16826 = vmatmul.mubr.msk.f32.gmra.mxu1 %vm3901_vm7, %v14542_v19  ;;  %16832 = vmatprep.subr.mxu1 %v14552_v21  ;;  %v14593_v19 = vld [vmem:[%s22199_s7 + $0x140] sm:$0xff] }
0x164f   : > { %16833 = vmatpush3.msra.mxu1 %v14552_v21  ;;  %16844 = vmatprep.mubr.msk.f32.mxu1 %vm3685_vm4, %v20295_v5 }
0x1650   : > { %16834 = vmatprep.subr.mxu1 %v14551_v22 }
0x1651   : > { %16835 = vmatpush3.msra.mxu1 %v14551_v22 }
0x1652   : > { %16836 = vmatprep.subr.mxu1 %v14550_v28 }
0x1653   : > { %16837 = vmatpush3.msra.mxu1 %v14550_v28 }
0x1654   : > { %16838 = vmatprep.subr.mxu1 %v14549_v30 }
0x1655   : > { %16839 = vmatpush3.msra.mxu1 %v14549_v30 }
0x1656   : > { %16840 = vmatprep.subr.mxu1 %v14548_v32 }
0x1657   : > { %16841 = vmatpush3.msra.mxu1 %v14548_v32 }
0x1658   : > { %16842 = vmatprep.subr.mxu1 %v14547_v33 }
0x1659   : > { %16843 = vmatpush3.msra.mxu1 %v14547_v33 }
0x165a   : > { %16845 = vmatmul.mubr.msk.f32.vlgmr.msra.gmra.mxu1 %vm3685_vm4, %v20297_v3 }
0x165b   : > { %16880 = vmatprep.mubr.msk.f32.mxu1 %vm3901_vm7, %v14575_v2 }
0x170a   : > { %v16824_v36 = vpop.f32.mrf.mxu1 }
0x170b   : > { %v5233_v37 = vadd.f32 %v16824_v36, %v5043_v15  ;;  %v14577_v15 = vld [vmem:[%s22199_s7 + $0x130] sm:$0xff] }
0x170c   : > { %v20663_v38 = vpop.f32.mrf.mxu1 }
0x170e   : > { %v16827_v39 = vpop.f32.mrf.mxu1 }
0x170f   : > { %v5235_v40 = vadd.f32 %v16827_v39, %v5045_v17  ;;  %v14578_v17 = vld [vmem:[%s22199_s7 + $0x138] sm:$0xff] }
0x1710   : > { %v20665_v43 = vpop.f32.mrf.mxu1  ;;  %v14608_v39 = vld [vmem:[%s22198_s6 + $0x2f8] sm:$0xff] }
0x171a   : > { %v16846_v44 = vpop.f32.mrf.mxu1 }
0x171b   : > { %16847 = vmatprep.subr.mxu0 %v16846_v44 }
0x171c   : > { %v5311_v45 = vpop.f32.mrf.mxu1  ;;  %16848 = vmatpush3.msra.mxu0 %v16846_v44  ;;  %v14607_v44 = vld [vmem:[%s22198_s6 + $0x2f0] sm:$0xff] }
0x171d   : > { %16849 = vmatprep.subr.mxu0 %v5311_v45 }
0x171e   : > { %16850 = vmatpush3.msra.mxu0 %v5311_v45  ;;  %v14596_v45 = vld [vmem:[%s22199_s7 + $0x158] sm:$0xff] }
0x171f   : > { %16852 = vmatmul.mubr.msk.f32.vlgmr.msra.gmra.mxu0 %vm3901_vm7, %v14558_v47  ;;  %16857 = vmatprep.subr.mxu0 %v14572_v48  ;;  %v14606_v47 = vld [vmem:[%s22198_s6 + $0x2e8] sm:$0xff] }
0x1720   : > { %16858 = vmatpush3.msra.mxu0 %v14572_v48  ;;  %16854 = vmatprep.mubr.msk.f32.mxu0 %vm3901_vm7, %v14559_v50  ;;  %v14605_v48 = vld [vmem:[%s22198_s6 + $0x2e0] sm:$0xff]  ;;  %v14604_v50 = vld [vmem:[%s22198_s6 + $0x2d8] sm:$0xff] }
0x1721   : > { %16859 = vmatprep.subr.mxu0 %v14571_v52 }
0x1722   : > { %16860 = vmatpush3.msra.mxu0 %v14571_v52  ;;  %v14603_v52 = vld [vmem:[%s22198_s6 + $0x2d0] sm:$0xff] }
0x1723   : > { %16855 = vmatmul.mubr.msk.f32.gmra.mxu0 %vm3901_vm7, %v14560_v55  ;;  %16861 = vmatprep.subr.mxu0 %v14570_v58  ;;  %v14602_v55 = vld [vmem:[%s22198_s6 + $0x2c8] sm:$0xff] }
0x1724   : > { %16862 = vmatpush3.msra.mxu0 %v14570_v58  ;;  %16873 = vmatprep.mubr.msk.f32.mxu0 %vm3685_vm4, %v20295_v5  ;;  %v14601_v58 = vld [vmem:[%s22198_s6 + $0x2c0] sm:$0xff] }
0x1725   : > { %16863 = vmatprep.subr.mxu0 %v14569_v60 }
0x1726   : > { %16864 = vmatpush3.msra.mxu0 %v14569_v60  ;;  %v14611_v60 = vld [vmem:[%s22199_s7 + $0x160] sm:$0xff] }
0x1727   : > { %16865 = vmatprep.subr.mxu0 %v14568_v62 }
0x1728   : > { %16866 = vmatpush3.msra.mxu0 %v14568_v62 }
0x1729   : > { %16867 = vmatprep.subr.mxu0 %v14567_v63 }
0x172a   : > { %16868 = vmatpush3.msra.mxu0 %v14567_v63 }
0x172b   : > { %16869 = vmatprep.subr.mxu0 %v14566_v27 }
0x172c   : > { %16870 = vmatpush3.msra.mxu0 %v14566_v27 }
0x172d   : > { %16871 = vmatprep.subr.mxu0 %v14565_v0 }
0x172e   : > { %16872 = vmatpush3.msra.mxu0 %v14565_v0 }
0x172f   : > { %16874 = vmatmul.mubr.msk.f32.vlgmr.msra.gmra.mxu0 %vm3685_vm4, %v20297_v3 }
0x1730   : > { %16909 = vmatprep.mubr.msk.f32.mxu0 %vm3901_vm7, %v14593_v19 }
0x17df   : > { %v16853_v6 = vpop.f32.mrf.mxu0 }
0x17e0   : > { %v5423_v8 = vadd.f32 %v16853_v6, %v5233_v37  ;;  %v14594_v37 = vld [vmem:[%s22199_s7 + $0x148] sm:$0xff] }
0x17e1   : > { %v20711_v9 = vpop.f32.mrf.mxu0 }
0x17e3   : > { %v16856_v10 = vpop.f32.mrf.mxu0 }
0x17e4   : > { %v5425_v12 = vadd.f32 %v16856_v10, %v5235_v40  ;;  %v14595_v40 = vld [vmem:[%s22199_s7 + $0x150] sm:$0xff] }
0x17e5   : > { %v20713_v11 = vpop.f32.mrf.mxu0 }
0x17ef   : > { %v16875_v54 = vpop.f32.mrf.mxu0 }
0x17f0   : > { %16876 = vmatprep.subr.mxu1 %v16875_v54 }
0x17f1   : > { %v5501_v34 = vpop.f32.mrf.mxu0  ;;  %16877 = vmatpush3.msra.mxu1 %v16875_v54  ;;  %v14626_v54 = vld [vmem:[%s22198_s6 + $0x338] sm:$0xff] }
0x17f2   : > { %16878 = vmatprep.subr.mxu1 %v5501_v34 }
0x17f3   : > { %16879 = vmatpush3.msra.mxu1 %v5501_v34  ;;  %v14613_v34 = vld [vmem:[%s22199_s7 + $0x170] sm:$0xff] }
0x17f4   : > { %16881 = vmatmul.mubr.msk.f32.vlgmr.msra.gmra.mxu1 %vm3901_vm7, %v14576_v13  ;;  %16886 = vmatprep.subr.mxu1 %v14590_v59  ;;  %v14625_v13 = vld [vmem:[%s22198_s6 + $0x330] sm:$0xff] }
0x17f5   : > { %16887 = vmatpush3.msra.mxu1 %v14590_v59  ;;  %16883 = vmatprep.mubr.msk.f32.mxu1 %vm3901_vm7, %v14577_v15  ;;  %v14614_v59 = vld [vmem:[%s22199_s7 + $0x178] sm:$0xff]  ;;  %v14624_v15 = vld [vmem:[%s22198_s6 + $0x328] sm:$0xff] }
0x17f6   : > { %16888 = vmatprep.subr.mxu1 %v14589_v23 }
0x17f7   : > { %16889 = vmatpush3.msra.mxu1 %v14589_v23  ;;  %v14623_v23 = vld [vmem:[%s22198_s6 + $0x320] sm:$0xff] }
0x17f8   : > { %16884 = vmatmul.mubr.msk.f32.gmra.mxu1 %vm3901_vm7, %v14578_v17  ;;  %16890 = vmatprep.subr.mxu1 %v14588_v56  ;;  %v14622_v17 = vld [vmem:[%s22198_s6 + $0x318] sm:$0xff] }
0x17f9   : > { %16891 = vmatpush3.msra.mxu1 %v14588_v56  ;;  %16902 = vmatprep.mubr.msk.f32.mxu1 %vm3685_vm4, %v20295_v5  ;;  %v14621_v56 = vld [vmem:[%s22198_s6 + $0x310] sm:$0xff] }
0x17fa   : > { %16892 = vmatprep.subr.mxu1 %v14587_v42 }
0x17fb   : > { %16893 = vmatpush3.msra.mxu1 %v14587_v42  ;;  %v14620_v42 = vld [vmem:[%s22198_s6 + $0x308] sm:$0xff] }
0x17fc   : > { %16894 = vmatprep.subr.mxu1 %v14586_v29 }
0x17fd   : > { %16895 = vmatpush3.msra.mxu1 %v14586_v29  ;;  %v14619_v29 = vld [vmem:[%s22198_s6 + $0x300] sm:$0xff] }
0x17fe   : > { %16896 = vmatprep.subr.mxu1 %v14585_v16 }
0x17ff   : > { %16897 = vmatpush3.msra.mxu1 %v14585_v16  ;;  %v14629_v16 = vld [vmem:[%s22199_s7 + $0x180] sm:$0xff] }
0x1800   : > { %16898 = vmatprep.subr.mxu1 %v14584_v18 }
0x1801   : > { %16899 = vmatpush3.msra.mxu1 %v14584_v18 }
0x1802   : > { %16900 = vmatprep.subr.mxu1 %v14583_v4 }
0x1803   : > { %16901 = vmatpush3.msra.mxu1 %v14583_v4 }
0x1804   : > { %16903 = vmatmul.mubr.msk.f32.vlgmr.msra.gmra.mxu1 %vm3685_vm4, %v20297_v3 }
0x1805   : > { %16938 = vmatprep.mubr.msk.f32.mxu1 %vm3901_vm7, %v14611_v60 }
0x18b4   : > { %v16882_v21 = vpop.f32.mrf.mxu1 }
0x18b5   : > { %v5613_v22 = vadd.f32 %v16882_v21, %v5423_v8 }
0x18b6   : > { %v20759_v28 = vpop.f32.mrf.mxu1 }
0x18b8   : > { %v16885_v30 = vpop.f32.mrf.mxu1 }
0x18b9   : > { %v5615_v32 = vadd.f32 %v16885_v30, %v5425_v12  ;;  %v14612_v12 = vld [vmem:[%s22199_s7 + $0x168] sm:$0xff] }
0x18ba   : > { %v20761_v33 = vpop.f32.mrf.mxu1 }
0x18c4   : > { %v16904_v35 = vpop.f32.mrf.mxu1 }
0x18c5   : > { %16905 = vmatprep.subr.mxu0 %v16904_v35 }
0x18c6   : > { %v5691_v36 = vpop.f32.mrf.mxu1  ;;  %16906 = vmatpush3.msra.mxu0 %v16904_v35 }
0x18c7   : > { %16907 = vmatprep.subr.mxu0 %v5691_v36 }
0x18c8   : > { %16908 = vmatpush3.msra.mxu0 %v5691_v36  ;;  %v14630_v36 = vld [vmem:[%s22199_s7 + $0x188] sm:$0xff] }
0x18c9   : > { %16910 = vmatmul.mubr.msk.f32.vlgmr.msra.gmra.mxu0 %vm3901_vm7, %v14594_v37  ;;  %16915 = vmatprep.subr.mxu0 %v14608_v39  ;;  %v14644_v37 = vld [vmem:[%s22198_s6 + $0x378] sm:$0xff] }
0x18ca   : > { %16916 = vmatpush3.msra.mxu0 %v14608_v39  ;;  %16912 = vmatprep.mubr.msk.f32.mxu0 %vm3901_vm7, %v14595_v40  ;;  %v14631_v39 = vld [vmem:[%s22199_s7 + $0x190] sm:$0xff] }
0x18cb   : > { %16917 = vmatprep.subr.mxu0 %v14607_v44  ;;  %v14643_v40 = vld [vmem:[%s22198_s6 + $0x370] sm:$0xff] }
0x18cc   : > { %16918 = vmatpush3.msra.mxu0 %v14607_v44  ;;  %v14632_v44 = vld [vmem:[%s22199_s7 + $0x198] sm:$0xff] }
0x18cd   : > { %16913 = vmatmul.mubr.msk.f32.gmra.mxu0 %vm3901_vm7, %v14596_v45  ;;  %16919 = vmatprep.subr.mxu0 %v14606_v47  ;;  %v14642_v45 = vld [vmem:[%s22198_s6 + $0x368] sm:$0xff] }
0x18ce   : > { %16920 = vmatpush3.msra.mxu0 %v14606_v47  ;;  %16931 = vmatprep.mubr.msk.f32.mxu0 %vm3685_vm4, %v20295_v5  ;;  %v14641_v47 = vld [vmem:[%s22198_s6 + $0x360] sm:$0xff] }
0x18cf   : > { %16921 = vmatprep.subr.mxu0 %v14605_v48 }
0x18d0   : > { %16922 = vmatpush3.msra.mxu0 %v14605_v48  ;;  %v14640_v48 = vld [vmem:[%s22198_s6 + $0x358] sm:$0xff] }
0x18d1   : > { %16923 = vmatprep.subr.mxu0 %v14604_v50 }
0x18d2   : > { %16924 = vmatpush3.msra.mxu0 %v14604_v50  ;;  %v14639_v50 = vld [vmem:[%s22198_s6 + $0x350] sm:$0xff] }
0x18d3   : > { %16925 = vmatprep.subr.mxu0 %v14603_v52 }
0x18d4   : > { %16926 = vmatpush3.msra.mxu0 %v14603_v52  ;;  %v14638_v52 = vld [vmem:[%s22198_s6 + $0x348] sm:$0xff] }
0x18d5   : > { %16927 = vmatprep.subr.mxu0 %v14602_v55 }
0x18d6   : > { %16928 = vmatpush3.msra.mxu0 %v14602_v55  ;;  %v14637_v55 = vld [vmem:[%s22198_s6 + $0x340] sm:$0xff] }
0x18d7   : > { %16929 = vmatprep.subr.mxu0 %v14601_v58 }
0x18d8   : > { %16930 = vmatpush3.msra.mxu0 %v14601_v58  ;;  %v14647_v58 = vld [vmem:[%s22199_s7 + $0x1a0] sm:$0xff] }
0x18d9   : > { %16932 = vmatmul.mubr.msk.f32.vlgmr.msra.gmra.mxu0 %vm3685_vm4, %v20297_v3 }
0x18da   : > { %16967 = vmatprep.mubr.msk.f32.mxu0 %vm3901_vm7, %v14629_v16  ;;  %v14655_v16 = vld [vmem:[%s22198_s6 + $0x380] sm:$0xff] }
0x1989   : > { %v16911_v62 = vpop.f32.mrf.mxu0 }
0x198a   : > { %v5803_v63 = vadd.f32 %v16911_v62, %v5613_v22 }
0x198b   : > { %v20807_v27 = vpop.f32.mrf.mxu0 }
0x198d   : > { %v16914_v0 = vpop.f32.mrf.mxu0 }
0x198e   : > { %v5805_v2 = vadd.f32 %v16914_v0, %v5615_v32 }
0x198f   : > { %v20809_v6 = vpop.f32.mrf.mxu0 }
0x1999   : > { %v16933_v8 = vpop.f32.mrf.mxu0 }
0x199a   : > { %16934 = vmatprep.subr.mxu1 %v16933_v8 }
0x199b   : > { %v5881_v10 = vpop.f32.mrf.mxu0  ;;  %16935 = vmatpush3.msra.mxu1 %v16933_v8 }
0x199c   : > { %16936 = vmatprep.subr.mxu1 %v5881_v10 }
0x199d   : > { %16937 = vmatpush3.msra.mxu1 %v5881_v10 }
0x199e   : > { %16939 = vmatmul.mubr.msk.f32.vlgmr.msra.gmra.mxu1 %vm3901_vm7, %v14612_v12  ;;  %16944 = vmatprep.subr.mxu1 %v14626_v54 }
0x199f   : > { %16945 = vmatpush3.msra.mxu1 %v14626_v54  ;;  %16941 = vmatprep.mubr.msk.f32.mxu1 %vm3901_vm7, %v14613_v34  ;;  %v14648_v54 = vld [vmem:[%s22199_s7 + $0x1a8] sm:$0xff]  ;;  %v14662_v34 = vld [vmem:[%s22198_s6 + $0x3b8] sm:$0xff] }
0x19a0   : > { %16946 = vmatprep.subr.mxu1 %v14625_v13 }
0x19a1   : > { %16947 = vmatpush3.msra.mxu1 %v14625_v13  ;;  %v14649_v13 = vld [vmem:[%s22199_s7 + $0x1b0] sm:$0xff] }
0x19a2   : > { %16942 = vmatmul.mubr.msk.f32.gmra.mxu1 %vm3901_vm7, %v14614_v59  ;;  %16948 = vmatprep.subr.mxu1 %v14624_v15  ;;  %v14661_v59 = vld [vmem:[%s22198_s6 + $0x3b0] sm:$0xff] }
0x19a3   : > { %16949 = vmatpush3.msra.mxu1 %v14624_v15  ;;  %16960 = vmatprep.mubr.msk.f32.mxu1 %vm3685_vm4, %v20295_v5  ;;  %v14650_v15 = vld [vmem:[%s22199_s7 + $0x1b8] sm:$0xff] }
0x19a4   : > { %16950 = vmatprep.subr.mxu1 %v14623_v23 }
0x19a5   : > { %16951 = vmatpush3.msra.mxu1 %v14623_v23  ;;  %v14660_v23 = vld [vmem:[%s22198_s6 + $0x3a8] sm:$0xff] }
0x19a6   : > { %16952 = vmatprep.subr.mxu1 %v14622_v17 }
0x19a7   : > { %16953 = vmatpush3.msra.mxu1 %v14622_v17  ;;  %v14659_v17 = vld [vmem:[%s22198_s6 + $0x3a0] sm:$0xff] }
0x19a8   : > { %16954 = vmatprep.subr.mxu1 %v14621_v56 }
0x19a9   : > { %16955 = vmatpush3.msra.mxu1 %v14621_v56  ;;  %v14658_v56 = vld [vmem:[%s22198_s6 + $0x398] sm:$0xff] }
0x19aa   : > { %16956 = vmatprep.subr.mxu1 %v14620_v42 }
0x19ab   : > { %16957 = vmatpush3.msra.mxu1 %v14620_v42  ;;  %v14657_v42 = vld [vmem:[%s22198_s6 + $0x390] sm:$0xff] }
0x19ac   : > { %16958 = vmatprep.subr.mxu1 %v14619_v29 }
0x19ad   : > { %16959 = vmatpush3.msra.mxu1 %v14619_v29  ;;  %v14656_v29 = vld [vmem:[%s22198_s6 + $0x388] sm:$0xff] }
0x19ae   : > { %16961 = vmatmul.mubr.msk.f32.vlgmr.msra.gmra.mxu1 %vm3685_vm4, %v20297_v3 }
0x19af   : > { %16996 = vmatprep.mubr.msk.f32.mxu1 %vm3901_vm7, %v14647_v58  ;;  %v14675_v58 = vld [vmem:[%s22198_s6 + $0x3d0] sm:$0xff] }
0x1a5e   : > { %v16940_v18 = vpop.f32.mrf.mxu1 }
0x1a5f   : > { %v5993_v4 = vadd.f32 %v16940_v18, %v5803_v63  ;;  %v14665_v18 = vld [vmem:[%s22199_s7 + $0x1c0] sm:$0xff] }
0x1a60   : > { %v20855_v19 = vpop.f32.mrf.mxu1 }
0x1a62   : > { %v16943_v21 = vpop.f32.mrf.mxu1 }
0x1a63   : > { %v5995_v22 = vadd.f32 %v16943_v21, %v5805_v2 }
0x1a64   : > { %v20857_v30 = vpop.f32.mrf.mxu1 }
0x1a6e   : > { %v16962_v32 = vpop.f32.mrf.mxu1 }
0x1a6f   : > { %16963 = vmatprep.subr.mxu0 %v16962_v32 }
0x1a70   : > { %v6071_v35 = vpop.f32.mrf.mxu1  ;;  %16964 = vmatpush3.msra.mxu0 %v16962_v32 }
0x1a71   : > { %16965 = vmatprep.subr.mxu0 %v6071_v35 }
0x1a72   : > { %16966 = vmatpush3.msra.mxu0 %v6071_v35 }
0x1a73   : > { %16968 = vmatmul.mubr.msk.f32.vlgmr.msra.gmra.mxu0 %vm3901_vm7, %v14630_v36  ;;  %16973 = vmatprep.subr.mxu0 %v14644_v37 }
0x1a74   : > { %16974 = vmatpush3.msra.mxu0 %v14644_v37  ;;  %16970 = vmatprep.mubr.msk.f32.mxu0 %vm3901_vm7, %v14631_v39 }
0x1a75   : > { %16975 = vmatprep.subr.mxu0 %v14643_v40 }
0x1a76   : > { %16976 = vmatpush3.msra.mxu0 %v14643_v40  ;;  %v14666_v40 = vld [vmem:[%s22199_s7 + $0x1c8] sm:$0xff] }
0x1a77   : > { %16971 = vmatmul.mubr.msk.f32.gmra.mxu0 %vm3901_vm7, %v14632_v44  ;;  %16977 = vmatprep.subr.mxu0 %v14642_v45  ;;  %v14680_v44 = vld [vmem:[%s22198_s6 + $0x3f8] sm:$0xff] }
0x1a78   : > { %16978 = vmatpush3.msra.mxu0 %v14642_v45  ;;  %16989 = vmatprep.mubr.msk.f32.mxu0 %vm3685_vm4, %v20295_v5  ;;  %v14667_v45 = vld [vmem:[%s22199_s7 + $0x1d0] sm:$0xff] }
0x1a79   : > { %16979 = vmatprep.subr.mxu0 %v14641_v47 }
0x1a7a   : > { %16980 = vmatpush3.msra.mxu0 %v14641_v47  ;;  %v14679_v47 = vld [vmem:[%s22198_s6 + $0x3f0] sm:$0xff] }
0x1a7b   : > { %16981 = vmatprep.subr.mxu0 %v14640_v48 }
0x1a7c   : > { %16982 = vmatpush3.msra.mxu0 %v14640_v48  ;;  %v14668_v48 = vld [vmem:[%s22199_s7 + $0x1d8] sm:$0xff] }
0x1a7d   : > { %16983 = vmatprep.subr.mxu0 %v14639_v50 }
0x1a7e   : > { %16984 = vmatpush3.msra.mxu0 %v14639_v50  ;;  %v14678_v50 = vld [vmem:[%s22198_s6 + $0x3e8] sm:$0xff] }
0x1a7f   : > { %16985 = vmatprep.subr.mxu0 %v14638_v52 }
0x1a80   : > { %16986 = vmatpush3.msra.mxu0 %v14638_v52  ;;  %v14677_v52 = vld [vmem:[%s22198_s6 + $0x3e0] sm:$0xff] }
0x1a81   : > { %16987 = vmatprep.subr.mxu0 %v14637_v55 }
0x1a82   : > { %16988 = vmatpush3.msra.mxu0 %v14637_v55  ;;  %v14676_v55 = vld [vmem:[%s22198_s6 + $0x3d8] sm:$0xff] }
0x1a83   : > { %16990 = vmatmul.mubr.msk.f32.vlgmr.msra.gmra.mxu0 %vm3685_vm4, %v20297_v3 }
0x1a84   : > { %17025 = vmatprep.mubr.msk.f32.mxu0 %vm3901_vm7, %v14665_v18 }
0x1b33   : > { %v16969_v60 = vpop.f32.mrf.mxu0 }
0x1b34   : > { %v6183_v62 = vadd.f32 %v16969_v60, %v5993_v4  ;;  %v14674_v60 = vld [vmem:[%s22198_s6 + $0x3c8] sm:$0xff] }
0x1b35   : > { %v20903_v63 = vpop.f32.mrf.mxu0 }
0x1b37   : > { %v16972_v0 = vpop.f32.mrf.mxu0 }
0x1b38   : > { %v6185_v2 = vadd.f32 %v16972_v0, %v5995_v22 }
0x1b39   : > { %v20905_v8 = vpop.f32.mrf.mxu0 }
0x1b43   : > { %v16991_v10 = vpop.f32.mrf.mxu0 }
0x1b44   : > { %16992 = vmatprep.subr.mxu1 %v16991_v10 }
0x1b45   : > { %v6261_v12 = vpop.f32.mrf.mxu0  ;;  %16993 = vmatpush3.msra.mxu1 %v16991_v10 }
0x1b46   : > { %16994 = vmatprep.subr.mxu1 %v6261_v12 }
0x1b47   : > { %16995 = vmatpush3.msra.mxu1 %v6261_v12 }
0x1b48   : > { %16997 = vmatmul.mubr.msk.f32.vlgmr.msra.gmra.mxu1 %vm3901_vm7, %v14648_v54  ;;  %17002 = vmatprep.subr.mxu1 %v14662_v34 }
0x1b49   : > { %17003 = vmatpush3.msra.mxu1 %v14662_v34  ;;  %16999 = vmatprep.mubr.msk.f32.mxu1 %vm3901_vm7, %v14649_v13 }
0x1b4a   : > { %17004 = vmatprep.subr.mxu1 %v14661_v59 }
0x1b4b   : > { %17005 = vmatpush3.msra.mxu1 %v14661_v59 }
0x1b4c   : > { %17000 = vmatmul.mubr.msk.f32.gmra.mxu1 %vm3901_vm7, %v14650_v15  ;;  %17006 = vmatprep.subr.mxu1 %v14660_v23  ;;  %v14685_v15 = vld [vmem:[%s22199_s7 + $0x1f0] sm:$0xff] }
0x1b4d   : > { %17007 = vmatpush3.msra.mxu1 %v14660_v23  ;;  %17018 = vmatprep.mubr.msk.f32.mxu1 %vm3685_vm4, %v20295_v5  ;;  %v14686_v23 = vld [vmem:[%s22199_s7 + $0x1f8] sm:$0xff] }
0x1b4e   : > { %17008 = vmatprep.subr.mxu1 %v14659_v17 }
0x1b4f   : > { %17009 = vmatpush3.msra.mxu1 %v14659_v17  ;;  %v4078_v17 = vadd.f32 %v20373_v26, %v20371_v20 }
0x1b50   : > { %17010 = vmatprep.subr.mxu1 %v14658_v56 }
0x1b51   : > { %17011 = vmatpush3.msra.mxu1 %v14658_v56  ;;  %v4282_v56 = vadd.f32 %v20423_v49, %v4078_v17 }
0x1b52   : > { %17012 = vmatprep.subr.mxu1 %v14657_v42 }
0x1b53   : > { %17013 = vmatpush3.msra.mxu1 %v14657_v42  ;;  %v4088_v42 = vadd.f32 %v20421_v46, %v20375_v25 }
0x1b54   : > { %17014 = vmatprep.subr.mxu1 %v14656_v29 }
0x1b55   : > { %17015 = vmatpush3.msra.mxu1 %v14656_v29  ;;  %v4472_v29 = vadd.f32 %v20471_v51, %v4282_v56 }
0x1b56   : > { %17016 = vmatprep.subr.mxu1 %v14655_v16 }
0x1b57   : > { %17017 = vmatpush3.msra.mxu1 %v14655_v16  ;;  %v4284_v16 = vadd.f32 %v20425_v53, %v4088_v42  ;;  %v4662_v18 = vadd.f32 %v20519_v24, %v4472_v29 }
0x1b58   : > { %17019 = vmatmul.mubr.msk.f32.vlgmr.msra.gmra.mxu1 %vm3685_vm4, %v20297_v3 }
0x1c08   : > { %v16998_v4 = vpop.f32.mrf.mxu1 }
0x1c09   : > { %v6373_v21 = vadd.f32 %v16998_v4, %v6183_v62  ;;  %v14683_v62 = vld [vmem:[%s22199_s7 + $0x1e0] sm:$0xff]  ;;  %v4474_v4 = vadd.f32 %v20473_v14, %v4284_v16 }
0x1c0a   : > { %v20951_v22 = vpop.f32.mrf.mxu1  ;;  %17054 = vmatprep.mubr.msk.f32.mxu1 %vm3901_vm7, %v14683_v62 }
0x1c0c   : > { %v17001_v32 = vpop.f32.mrf.mxu1 }
0x1c0d   : > { %v6375_v35 = vadd.f32 %v17001_v32, %v6185_v2  ;;  %v4664_v32 = vadd.f32 %v20521_v31, %v4474_v4  ;;  %v10590_v4 = vld [vmem:[%s22203_s11 + $0x10] sm:$0xff] }
0x1c0e   : > { %v20953_v36 = vpop.f32.mrf.mxu1 }
0x1c0f   : > { %v4854_v20 = vadd.f32 %v20569_v61, %v4664_v32  ;;  %v10592_v32 = vld [vmem:[%s22203_s11 + $0x20] sm:$0xff] }
0x1c11   : > { %v5044_v25 = vadd.f32 %v20617_v7, %v4854_v20  ;;  %v10594_v20 = vld [vmem:[%s22203_s11 + $0x30] sm:$0xff] }
0x1c13   : > { %v5234_v49 = vadd.f32 %v20665_v43, %v5044_v25  ;;  %v6958_v25 = vld [vmem:[#allocation5 + $0x18] sm:$0xff] }
0x1c15   : > { %v5424_v51 = vadd.f32 %v20713_v11, %v5234_v49  ;;  %v6849_v49 = vld [vmem:[#allocation5] sm:$0xff] }
0x1c17   : > { %v5614_v24 = vadd.f32 %v20761_v33, %v5424_v51  ;;  %v10595_v51 = vld [vmem:[%s22203_s11 + $0x38] sm:$0xff] }
0x1c18   : > { %v17020_v37 = vpop.f32.mrf.mxu1 }
0x1c19   : > { %17021 = vmatprep.subr.mxu0 %v17020_v37 }
0x1c1a   : > { %v6451_v39 = vpop.f32.mrf.mxu1  ;;  %17022 = vmatpush3.msra.mxu0 %v17020_v37  ;;  %v6768_v37 = vpop.permute.xlu1 %6767 }
0x1c1b   : > { %17023 = vmatprep.subr.mxu0 %v6451_v39 }
0x1c1c   : > { %17024 = vmatpush3.msra.mxu0 %v6451_v39 }
0x1c1d   : > { %17026 = vmatmul.mubr.msk.f32.vlgmr.msra.gmra.mxu0 %vm3901_vm7, %v14666_v40  ;;  %17031 = vmatprep.subr.mxu0 %v14680_v44 }
0x1c1e   : > { %17032 = vmatpush3.msra.mxu0 %v14680_v44  ;;  %17028 = vmatprep.mubr.msk.f32.mxu0 %vm3901_vm7, %v14667_v45 }
0x1c1f   : > { %17033 = vmatprep.subr.mxu0 %v14679_v47 }
0x1c20   : > { %17034 = vmatpush3.msra.mxu0 %v14679_v47 }
0x1c21   : > { %17029 = vmatmul.mubr.msk.f32.gmra.mxu0 %vm3901_vm7, %v14668_v48  ;;  %17035 = vmatprep.subr.mxu0 %v14678_v50 }
0x1c22   : > { %17036 = vmatpush3.msra.mxu0 %v14678_v50  ;;  %17047 = vmatprep.mubr.msk.f32.mxu0 %vm3685_vm4, %v20295_v5  ;;  %v14673_v5 = vld [vmem:[%s22198_s6 + $0x3c0] sm:$0xff]  ;;  %v6773_v50 = vpop.permute.xlu1 %6772 }
0x1c23   : > { %17037 = vmatprep.subr.mxu0 %v14677_v52 }
0x1c24   : > { %17038 = vmatpush3.msra.mxu0 %v14677_v52 }
0x1c25   : > { %17039 = vmatprep.subr.mxu0 %v14676_v55 }
0x1c26   : > { %17040 = vmatpush3.msra.mxu0 %v14676_v55 }
0x1c27   : > { %17041 = vmatprep.subr.mxu0 %v14675_v58 }
0x1c28   : > { %17042 = vmatpush3.msra.mxu0 %v14675_v58 }
0x1c29   : > { %17043 = vmatprep.subr.mxu0 %v14674_v60 }
0x1c2a   : > { %17044 = vmatpush3.msra.mxu0 %v14674_v60 }
0x1c2b   : > { %17045 = vmatprep.subr.mxu0 %v14673_v5 }
0x1c2c   : > { %17046 = vmatpush3.msra.mxu0 %v14673_v5 }
0x1c2d   : > { %17048 = vmatmul.mubr.msk.f32.vlgmr.msra.gmra.mxu0 %vm3685_vm4, %v20297_v3  ;;  %v14684_v3 = vld [vmem:[%s22199_s7 + $0x1e8] sm:$0xff]  ;;  %17070 = vmatprep.subr.mxu0 %v6958_v25 }
0x1c2e   : > { %17071 = vmatpush3.msra.mxu0 %v6958_v25 }
0x1cdd   : > { %v17027_v0 = vpop.f32.mrf.mxu0 }
0x1cde   : > { %v6563_v2 = vadd.f32 %v17027_v0, %v6373_v21  ;;  %v4852_v21 = vadd.f32 %v20567_v57, %v4662_v18  ;;  %v5804_v57 = vadd.f32 %v20809_v6, %v5614_v24  ;;  %v10589_v18 = vld [vmem:[%s22203_s11 + $0x8] sm:$0xff] }
0x1cdf   : > { %v6543_v10 = vpop.f32.mrf.mxu0 }
0x1ce1   : > { %v17030_v12 = vpop.f32.mrf.mxu0 }
0x1ce2   : > { %v6565_v54 = vadd.f32 %v17030_v12, %v6375_v35  ;;  %v5042_v35 = vadd.f32 %v20615_v41, %v4852_v21  ;;  %v5994_v41 = vadd.f32 %v20857_v30, %v5804_v57  ;;  %v10588_v21 = vld [vmem:[%s22203_s11] sm:$0xff] }
0x1ce3   : > { %v6553_v34 = vpop.f32.mrf.mxu0 }
0x1ce4   : > { %v5232_v26 = vadd.f32 %v20663_v38, %v5042_v35  ;;  %v6763_v38 = vpop.permute.xlu0 %6762  ;;  %v10591_v35 = vld [vmem:[%s22203_s11 + $0x18] sm:$0xff] }
0x1ce6   : > { %v5422_v46 = vadd.f32 %v20711_v9, %v5232_v26  ;;  %v6184_v9 = vadd.f32 %v20905_v8, %v5994_v41  ;;  %v6850_v26 = vld [vmem:[#allocation5 + $0x8] sm:$0xff] }
0x1ce8   : > { %v5612_v53 = vadd.f32 %v20759_v28, %v5422_v46  ;;  %v6374_v33 = vadd.f32 %v20953_v36, %v6184_v9  ;;  %v6778_v45 = vpop.permute.xlu0 %6777  ;;  %v10593_v46 = vld [vmem:[%s22203_s11 + $0x28] sm:$0xff] }
0x1cea   : > { %v5802_v14 = vadd.f32 %v20807_v27, %v5612_v53  ;;  %v6564_v6 = vadd.f32 %v6553_v34, %v6374_v33  ;;  %v6957_v53 = vld [vmem:[#allocation5 + $0x10] sm:$0xff] }
0x1ceb   : > { %17072 = vmatprep.subr.mxu0 %v6957_v53 }
0x1cec   : > { %v5992_v31 = vadd.f32 %v20855_v19, %v5802_v14  ;;  %17073 = vmatpush3.msra.mxu0 %v6957_v53 }
0x1ced   : > { %v17049_v13 = vpop.f32.mrf.mxu0 }
0x1cee   : > { %17050 = vmatprep.subr.mxu1 %v17049_v13  ;;  %v6182_v61 = vadd.f32 %v20903_v63, %v5992_v31 }
0x1cef   : > { %v6641_v59 = vpop.f32.mrf.mxu0  ;;  %17051 = vmatpush3.msra.mxu1 %v17049_v13 }
0x1cf0   : > { %17052 = vmatprep.subr.mxu1 %v6641_v59  ;;  %v6372_v7 = vadd.f32 %v20951_v22, %v6182_v61 }
0x1cf1   : > { %17053 = vmatpush3.msra.mxu1 %v6641_v59 }
0x1cf2   : > { %17055 = vmatmul.mubr.msk.f32.vlgmr.msra.gmra.mxu1 %vm3901_vm7, %v14684_v3  ;;  %v6562_v28 = vadd.f32 %v6543_v10, %v6372_v7  ;;  %17060 = vmatprep.subr.mxu1 %v6850_v26 }
0x1cf3   : > { %17057 = vmatprep.mubr.msk.f32.mxu1 %vm3901_vm7, %v14685_v15  ;;  %17061 = vmatpush3.msra.mxu1 %v6850_v26  ;;  %v7635_v26 = vld [vmem:[#allocation7 + $0xc0] sm:$0xff] }
0x1cf4   : > { %17062 = vmatprep.subr.mxu1 %v6849_v49 }
0x1cf5   : > { %17063 = vmatpush3.msra.mxu1 %v6849_v49 }
0x1cf6   : > { %17058 = vmatmul.mubr.msk.f32.gmra.mxu1 %vm3901_vm7, %v14686_v23 }
0x1db2   : > { %v17056_v43 = vpop.f32.mrf.mxu1 }
0x1db3   : > { %v6753_v11 = vadd.f32 %v17056_v43, %v6563_v2 }
0x1db4   : > { %v6733_v27 = vpop.f32.mrf.mxu1 }
0x1db5   : > { %v6752_v39 = vadd.f32 %v6733_v27, %v6562_v28  ;;  %v6781_v19 = vadd.f32 %v6768_v37, %v6753_v11 }
0x1db6   : > { %v17059_v40 = vpop.f32.mrf.mxu1 }
0x1db7   : > { %v6755_v44 = vadd.f32 %v17059_v40, %v6565_v54  ;;  %v6787_v63 = vsel %vm3901_vm7, %v6781_v19, 0.0  ;;  %v6780_v30 = vadd.f32 %v6763_v38, %v6752_v39 }
0x1db8   : > { %v6743_v22 = vpop.f32.mrf.mxu1  ;;  %6788 = vadd.xlane.f32.xlu0 %v6787_v63 }
0x1db9   : > { %v6754_v47 = vadd.f32 %v6743_v22, %v6564_v6  ;;  %v6784_v8 = vsel %vm3901_vm7, %v6780_v30, 0.0  ;;  %v6783_v48 = vadd.f32 %v6778_v45, %v6755_v44 }
0x1dba   : > { %6785 = vadd.xlane.f32.xlu1 %v6784_v8 }
0x1dbb   : > { %v6782_v52 = vadd.f32 %v6773_v50, %v6754_v47  ;;  %v6793_v36 = vsel %vm3901_vm7, %v6783_v48, 0.0 }
0x1dbd   : > { %v6790_v55 = vsel %vm3901_vm7, %v6782_v52, 0.0 }
0x1dbe   : > { %6794 = vadd.xlane.f32.xlu1 %v6793_v36  ;;  %6791 = vadd.xlane.f32.xlu0 %v6790_v55  ;;  %v6948_v36 = vld [vmem:[#allocation7] sm:$0xff] }
0x1e41   : > { %v6789_v58 = vpop.xlane.xlu0 %6788 }
0x1e42   : > { %v6798_v60 = vmul.f32 0.0625, %v6789_v58 }
0x1e43   : > { %v6786_v5 = vpop.xlane.xlu1 %6785 }
0x1e44   : > { %v21043_v62 = vsub.f32 %v6781_v19, %v6798_v60  ;;  %v6797_v0 = vmul.f32 0.0625, %v6786_v5 }
0x1e46   : > { %v21045_v2 = vsub.f32 %v6780_v30, %v6797_v0  ;;  %v6806_v10 = vmul.f32 %v21043_v62, %v21043_v62 }
0x1e47   : > { %v6792_v12 = vpop.xlane.xlu0 %6791  ;;  %v6795_v54 = vpop.xlane.xlu1 %6794 }
0x1e48   : > { %v6799_v34 = vmul.f32 0.0625, %v6792_v12  ;;  %v6800_v13 = vmul.f32 0.0625, %v6795_v54  ;;  %v6812_v59 = vsel %vm3901_vm7, %v6806_v10, 0.0  ;;  %v6805_v3 = vmul.f32 %v21045_v2, %v21045_v2  ;;  %v7046_v12 = vld [vmem:[#allocation7 + $0x48] sm:$0xff] }
0x1e49   : > { %6813 = vadd.xlane.f32.xlu1 %v6812_v59  ;;  %v6949_v54 = vld [vmem:[#allocation7 + $0x8] sm:$0xff] }
0x1e4a   : > { %v21052_v15 = vsub.f32 %v6782_v52, %v6799_v34  ;;  %v21054_v23 = vsub.f32 %v6783_v48, %v6800_v13  ;;  %v6809_v17 = vsel %vm3901_vm7, %v6805_v3, 0.0  ;;  %v7045_v52 = vld [vmem:[#allocation7 + $0x40] sm:$0xff]  ;;  %v7047_v34 = vld [vmem:[#allocation7 + $0x50] sm:$0xff]  ;;  %v7314_v59 = vld [vmem:[#allocation5 + $0x28] sm:$0xff] }
0x1e4b   : > { %6810 = vadd.xlane.f32.xlu0 %v6809_v17  ;;  %v6950_v13 = vld [vmem:[#allocation7 + $0x10] sm:$0xff]  ;;  %v7048_v3 = vld [vmem:[#allocation7 + $0x58] sm:$0xff]  ;;  %v6952_v17 = vld [vmem:[#allocation7 + $0x20] sm:$0xff] }
0x1e4c   : > { %v6807_v56 = vmul.f32 %v21052_v15, %v21052_v15  ;;  %v6808_v42 = vmul.f32 %v21054_v23, %v21054_v23 }
0x1e4e   : > { %v6815_v29 = vsel %vm3901_vm7, %v6807_v56, 0.0  ;;  %v6818_v16 = vsel %vm3901_vm7, %v6808_v42, 0.0  ;;  %v7313_v56 = vld [vmem:[#allocation5 + $0x20] sm:$0xff]  ;;  %v7050_v42 = vld [vmem:[#allocation7 + $0x68] sm:$0xff] }
0x1e4f   : > { %6816 = vadd.xlane.f32.xlu0 %v6815_v29  ;;  %6819 = vadd.xlane.f32.xlu1 %v6818_v16  ;;  %v6953_v29 = vld [vmem:[#allocation7 + $0x28] sm:$0xff]  ;;  %v7051_v16 = vld [vmem:[#allocation7 + $0x70] sm:$0xff] }
0x1e60   : > { %10603 = vperm.xlu1 %18156, %v10589_v18   ;;  %v6954_v18 = vld [vmem:[#allocation7 + $0x30] sm:$0xff] }
0x1e64   : > { %10608 = vperm.xlu1 %18156, %v10590_v4   ;;  %v7548_v4 = vld [vmem:[#allocation5 + $0x38] sm:$0xff] }
0x1e65   : > { %10598 = vperm.xlu0 %18155, %v10588_v21   ;;  %v7052_v21 = vld [vmem:[#allocation7 + $0x78] sm:$0xff] }
0x1e68   : > { %10618 = vperm.xlu1 %18156, %v10592_v32   ;;  %v6955_v32 = vld [vmem:[#allocation7 + $0x38] sm:$0xff] }
0x1e69   : > { %10613 = vperm.xlu0 %18155, %v10591_v35   ;;  %v7547_v35 = vld [vmem:[#allocation5 + $0x30] sm:$0xff] }
0x1e6c   : > { %10628 = vperm.xlu1 %18156, %v10594_v20   ;;  %v7401_v20 = vld [vmem:[#allocation7 + $0x80] sm:$0xff] }
0x1e6d   : > { %10623 = vperm.xlu0 %18155, %v10593_v46  }
0x1e71   : > { %10633 = vperm.xlu0 %18155, %v10595_v51  }
0x1ed2   : > { %v6814_v14 = vpop.xlane.xlu1 %6813 }
0x1ed3   : > { %v6822_v24 = vmul.f32 0.0625, %v6814_v14 }
0x1ed4   : > { %v6811_v31 = vpop.xlane.xlu0 %6810 }
0x1ed5   : > { %v6826_v57 = vadd.f32 1e-05, %v6822_v24  ;;  %v6821_v61 = vmul.f32 0.0625, %v6811_v31 }
0x1ed7   : > { %18161 = vrsqrt.f32 %v6826_v57  ;;  %v6825_v41 = vadd.f32 1e-05, %v6821_v61 }
0x1ed8   : > { %v6817_v7 = vpop.xlane.xlu0 %6816  ;;  %v6820_v38 = vpop.xlane.xlu1 %6819 }
0x1ed9   : > { %18163 = vrsqrt.f32 %v6825_v41  ;;  %v6823_v43 = vmul.f32 0.0625, %v6817_v7  ;;  %v6824_v9 = vmul.f32 0.0625, %v6820_v38 }
0x1edb   : > { %v6827_v28 = vadd.f32 1e-05, %v6823_v43  ;;  %v6828_v11 = vadd.f32 1e-05, %v6824_v9 }
0x1edd   : > { %18165 = vrsqrt.f32 %v6827_v28 }
0x1ede   : > { %18167 = vrsqrt.f32 %v6828_v11 }
0x1ee4   : > { %v18162_v37 = vpop.eup %18161 }
0x1ee5   : > { %v6834_v27 = vmul.f32 %v18162_v37, %v21043_v62 }
0x1ee6   : > { %v18164_v33 = vpop.eup %18163 }
0x1ee7   : > { %v6833_v39 = vmul.f32 %v18164_v33, %v21045_v2  ;;  %v6842_v19 = vmul.f32 0.2, %v6834_v27  ;;  %vm6838_vm8 = vcmp.gt.f32.partialorder %v6834_v27, 0.0 }
0x1ee9   : > { %vm6837_vm9 = vcmp.gt.f32.partialorder %v6833_v39, 0.0  ;;  %v6841_v40 = vmul.f32 0.2, %v6833_v39  ;;  %v21092_v45 = vsel %vm6838_vm8, %v6834_v27, %v6842_v19  ;;  %vm18317_vm8 = vmmov 0  }
0x1eea   : > { %v18166_v6 = vpop.eup %18165 }
0x1eeb   : > { %v18168_v44 = vpop.eup %18167  ;;  %v21089_v63 = vsel %vm6837_vm9, %v6833_v39, %v6841_v40  ;;  %v6835_v30 = vmul.f32 %v18166_v6, %v21052_v15  ;;  %v6951_v15 = vld [vmem:[#allocation7 + $0x18] sm:$0xff]  ;;  %vm13798_vm9 = vcmask 24576  }
0x1eec   : > { %v6836_v22 = vmul.f32 %v18168_v44, %v21054_v23  ;;  %17064 = vmatprep.mubr.msk.f32.mxu1 %vm3901_vm7, %v21089_v63  ;;  %17074 = vmatprep.mubr.msk.f32.mxu0 %vm3901_vm7, %v21089_v63  ;;  %v7049_v23 = vld [vmem:[#allocation7 + $0x60] sm:$0xff] }
0x1eed   : > { %vm6839_vm10 = vcmp.gt.f32.partialorder %v6835_v30, 0.0  ;;  %v6843_v47 = vmul.f32 0.2, %v6835_v30  ;;  %17065 = vmatmul.mubr.msk.f32.vlgmr.msra.gmra.mxu1 %vm3901_vm7, %v21092_v45  ;;  %17075 = vmatmul.mubr.msk.f32.vlgmr.msra.gmra.mxu0 %vm3901_vm7, %v21092_v45 }
0x1eee   : > { %vm6840_vm11 = vcmp.gt.f32.partialorder %v6836_v22, 0.0  ;;  %v6844_v8 = vmul.f32 0.2, %v6836_v22 }
0x1eef   : > { %v21103_v48 = vsel %vm6839_vm10, %v6835_v30, %v6843_v47  ;;  %v7402_v30 = vld [vmem:[#allocation7 + $0x88] sm:$0xff] }
0x1ef0   : > { %v21105_v50 = vsel %vm6840_vm11, %v6836_v22, %v6844_v8  ;;  %17067 = vmatprep.mubr.msk.f32.mxu1 %vm3901_vm7, %v21103_v48  ;;  %17077 = vmatprep.mubr.msk.f32.mxu0 %vm3901_vm7, %v21103_v48  ;;  %v7403_v22 = vld [vmem:[#allocation7 + $0x90] sm:$0xff]  ;;  %v7782_v8 = vld [vmem:[#allocation5 + $0x48] sm:$0xff] }
0x1ef1   : > { %17068 = vmatmul.mubr.msk.f32.gmra.mxu1 %vm3901_vm7, %v21105_v50  ;;  %17078 = vmatmul.mubr.msk.f32.gmra.mxu0 %vm3901_vm7, %v21105_v50 }
0x1ef2   : > { %17088 = vmatprep.mubr.msk.f32.mxu1 %vm7053_vm12, %v7045_v52  ;;  %17108 = vmatprep.mubr.msk.f32.mxu0 %vm7053_vm12, %v6948_v36  ;;  %v7404_v36 = vld [vmem:[#allocation7 + $0x98] sm:$0xff] }
0x1fad   : > { %v17066_v55 = vpop.f32.mrf.mxu1  ;;  %v17076_v58 = vpop.f32.mrf.mxu0 }
0x1faf   : > { %v6929_v60 = vpop.f32.mrf.mxu1  ;;  %v7025_v5 = vpop.f32.mrf.mxu0 }
0x1fb1   : > { %v17069_v62 = vpop.f32.mrf.mxu1  ;;  %v17079_v0 = vpop.f32.mrf.mxu0 }
0x1fb2   : > { %17080 = vmatprep.subr.mxu1 %v17079_v0  ;;  %17100 = vmatprep.subr.mxu0 %v17069_v62 }
0x1fb3   : > { %v6939_v2 = vpop.f32.mrf.mxu1  ;;  %v7035_v10 = vpop.f32.mrf.mxu0  ;;  %17081 = vmatpush3.msra.mxu1 %v17079_v0  ;;  %17101 = vmatpush3.msra.mxu0 %v17069_v62  ;;  %v7407_v62 = vld [vmem:[#allocation7 + $0xb0] sm:$0xff] }
0x1fb4   : > { %17082 = vmatprep.subr.mxu1 %v7035_v10  ;;  %17102 = vmatprep.subr.mxu0 %v6939_v2  ;;  %v7637_v0 = vld [vmem:[#allocation7 + $0xd0] sm:$0xff] }
0x1fb5   : > { %17083 = vmatpush3.msra.mxu1 %v7035_v10  ;;  %17103 = vmatpush3.msra.mxu0 %v6939_v2  ;;  %v8016_v2 = vld [vmem:[#allocation5 + $0x58] sm:$0xff] }
0x1fb6   : > { %17084 = vmatprep.subr.mxu1 %v17076_v58  ;;  %17104 = vmatprep.subr.mxu0 %v17066_v55  ;;  %v7408_v10 = vld [vmem:[#allocation7 + $0xb8] sm:$0xff] }
0x1fb7   : > { %17085 = vmatpush3.msra.mxu1 %v17076_v58  ;;  %17105 = vmatpush3.msra.mxu0 %v17066_v55  ;;  %v7405_v55 = vld [vmem:[#allocation7 + $0xa0] sm:$0xff] }
0x1fb8   : > { %17086 = vmatprep.subr.mxu1 %v7025_v5  ;;  %17106 = vmatprep.subr.mxu0 %v6929_v60  ;;  %v7781_v58 = vld [vmem:[#allocation5 + $0x40] sm:$0xff] }
0x1fb9   : > { %17087 = vmatpush3.msra.mxu1 %v7025_v5  ;;  %17107 = vmatpush3.msra.mxu0 %v6929_v60  ;;  %v7406_v60 = vld [vmem:[#allocation7 + $0xa8] sm:$0xff] }
0x1fba   : > { %17089 = vmatmul.mubr.msk.f32.vlgmr.msra.gmra.mxu1 %vm7053_vm12, %v7046_v12  ;;  %17109 = vmatmul.mubr.msk.f32.vlgmr.msra.gmra.mxu0 %vm7053_vm12, %v6949_v54  ;;  %v7636_v5 = vld [vmem:[#allocation7 + $0xc8] sm:$0xff]  ;;  %v7638_v12 = vld [vmem:[#allocation7 + $0xd8] sm:$0xff]  ;;  %v7639_v54 = vld [vmem:[#allocation7 + $0xe0] sm:$0xff] }
0x1fbb   : > { %17091 = vmatprep.mubr.msk.f32.mxu1 %vm7053_vm12, %v7047_v34  ;;  %17111 = vmatprep.mubr.msk.f32.mxu0 %vm7053_vm12, %v6950_v13  ;;  %v8015_v34 = vld [vmem:[#allocation5 + $0x50] sm:$0xff]  ;;  %v7640_v13 = vld [vmem:[#allocation7 + $0xe8] sm:$0xff] }
0x1fbc   : > { %17120 = vmatprep.subr.mxu1 %v7314_v59 }
0x1fbd   : > { %17121 = vmatpush3.msra.mxu1 %v7314_v59  ;;  %v7641_v59 = vld [vmem:[#allocation7 + $0xf0] sm:$0xff] }
0x1fbe   : > { %17092 = vmatmul.mubr.msk.f32.gmra.mxu1 %vm7053_vm12, %v7048_v3  ;;  %17112 = vmatmul.mubr.msk.f32.gmra.mxu0 %vm7053_vm12, %v6951_v15  ;;  %v7642_v3 = vld [vmem:[#allocation7 + $0xf8] sm:$0xff]  ;;  %v7869_v15 = vld [vmem:[#allocation7 + $0x100] sm:$0xff] }
0x1fbf   : > { %17094 = vmatprep.mubr.msk.f32.mxu1 %vm7053_vm12, %v7049_v23  ;;  %17114 = vmatprep.mubr.msk.f32.mxu0 %vm7053_vm12, %v6952_v17  ;;  %v8103_v23 = vld [vmem:[#allocation7 + $0x140] sm:$0xff] }
0x1fc0   : > { %17122 = vmatprep.subr.mxu1 %v7313_v56 }
0x1fc1   : > { %17123 = vmatpush3.msra.mxu1 %v7313_v56 }
0x1fc2   : > { %17095 = vmatmul.mubr.msk.f32.gmra.mxu1 %vm7053_vm12, %v7050_v42  ;;  %17115 = vmatmul.mubr.msk.f32.gmra.mxu0 %vm7053_vm12, %v6953_v29 }
0x1fc3   : > { %17097 = vmatprep.mubr.msk.f32.mxu1 %vm7053_vm12, %v7051_v16  ;;  %17117 = vmatprep.mubr.msk.f32.mxu0 %vm7053_vm12, %v6954_v18 }
0x1fc4   : > { %17150 = vmatprep.subr.mxu1 %v7548_v4 }
0x1fc6   : > { %17098 = vmatmul.mubr.msk.f32.gmra.mxu1 %vm7053_vm12, %v7052_v21  ;;  %17118 = vmatmul.mubr.msk.f32.gmra.mxu0 %vm7053_vm12, %v6955_v32 }
0x1fc7   : > { %17124 = vmatprep.mubr.msk.f32.mxu1 %vm3901_vm7, %v21089_v63  ;;  %17138 = vmatprep.mubr.msk.f32.mxu0 %vm7053_vm12, %v7401_v20 }
0x1fca   : > { %17125 = vmatmul.mubr.msk.f32.vlgmr.msra.gmra.mxu1 %vm3901_vm7, %v21092_v45 }
0x1fcb   : > { %17127 = vmatprep.mubr.msk.f32.mxu1 %vm3901_vm7, %v21103_v48  ;;  %17151 = vmatpush3.msra.mxu1 %v7548_v4 }
0x1fcc   : > { %17152 = vmatprep.subr.mxu1 %v7547_v35 }
0x1fcd   : > { %17153 = vmatpush3.msra.mxu1 %v7547_v35 }
0x1fce   : > { %17128 = vmatmul.mubr.msk.f32.gmra.mxu1 %vm3901_vm7, %v21105_v50 }
0x1fcf   : > { %17154 = vmatprep.mubr.msk.f32.mxu1 %vm3901_vm7, %v21089_v63 }
0x1fd2   : > { %17155 = vmatmul.mubr.msk.f32.vlgmr.msra.gmra.mxu1 %vm3901_vm7, %v21092_v45 }
0x1fd3   : > { %17157 = vmatprep.mubr.msk.f32.mxu1 %vm3901_vm7, %v21103_v48 }
0x1fd6   : > { %17158 = vmatmul.mubr.msk.f32.gmra.mxu1 %vm3901_vm7, %v21105_v50 }
0x1fd7   : > { %17168 = vmatprep.mubr.msk.f32.mxu1 %vm7053_vm12, %v7635_v26 }
0x207a   : > { %v17090_v25 = vpop.f32.mrf.mxu1  ;;  %v17110_v46 = vpop.f32.mrf.mxu0 }
0x207b   : > { %v21149_v49 = vadd.f32 %v17110_v46, %v17090_v25 }
0x207c   : > { %v21151_v53 = vpop.f32.mrf.mxu1  ;;  %v21153_v51 = vpop.f32.mrf.mxu0 }
0x207e   : > { %v17093_v14 = vpop.f32.mrf.mxu1  ;;  %v17113_v24 = vpop.f32.mrf.mxu0 }
0x207f   : > { %v21155_v31 = vadd.f32 %v17113_v24, %v17093_v14 }
0x2080   : > { %v21157_v57 = vpop.f32.mrf.mxu1  ;;  %v21159_v61 = vpop.f32.mrf.mxu0 }
0x2082   : > { %v17096_v41 = vpop.f32.mrf.mxu1  ;;  %v17116_v7 = vpop.f32.mrf.mxu0 }
0x2083   : > { %v21161_v38 = vadd.f32 %v17116_v7, %v17096_v41 }
0x2084   : > { %v21163_v43 = vpop.f32.mrf.mxu1  ;;  %v21165_v9 = vpop.f32.mrf.mxu0 }
0x2086   : > { %v17099_v28 = vpop.f32.mrf.mxu1  ;;  %v17119_v11 = vpop.f32.mrf.mxu0 }
0x2087   : > { %v21167_v37 = vadd.f32 %v17119_v11, %v17099_v28 }
0x2088   : > { %v21169_v27 = vpop.f32.mrf.mxu1  ;;  %v21203_v17 = vpop.f32.mrf.mxu0 }
0x208a   : > { %v17126_v33 = vpop.f32.mrf.mxu1 }
0x208c   : > { %v7381_v39 = vpop.f32.mrf.mxu1 }
0x208e   : > { %v17129_v19 = vpop.f32.mrf.mxu1 }
0x208f   : > { %17130 = vmatprep.subr.mxu0 %v17129_v19 }
0x2090   : > { %v7391_v40 = vpop.f32.mrf.mxu1  ;;  %17131 = vmatpush3.msra.mxu0 %v17129_v19 }
0x2091   : > { %17132 = vmatprep.subr.mxu0 %v7391_v40 }
0x2092   : > { %17133 = vmatpush3.msra.mxu0 %v7391_v40  ;;  %v17156_v6 = vpop.f32.mrf.mxu1 }
0x2093   : > { %17134 = vmatprep.subr.mxu0 %v17126_v33 }
0x2094   : > { %17135 = vmatpush3.msra.mxu0 %v17126_v33  ;;  %v7615_v44 = vpop.f32.mrf.mxu1 }
0x2095   : > { %17136 = vmatprep.subr.mxu0 %v7381_v39 }
0x2096   : > { %17137 = vmatpush3.msra.mxu0 %v7381_v39  ;;  %v17159_v47 = vpop.f32.mrf.mxu1 }
0x2097   : > { %17139 = vmatmul.mubr.msk.f32.vlgmr.msra.gmra.mxu0 %vm7053_vm12, %v7402_v30  ;;  %17160 = vmatprep.subr.mxu1 %v17159_v47 }
0x2098   : > { %v7625_v52 = vpop.f32.mrf.mxu1  ;;  %17161 = vmatpush3.msra.mxu1 %v17159_v47  ;;  %17141 = vmatprep.mubr.msk.f32.mxu0 %vm7053_vm12, %v7403_v22  ;;  %v7870_v22 = vld [vmem:[#allocation7 + $0x108] sm:$0xff]  ;;  %v7871_v47 = vld [vmem:[#allocation7 + $0x110] sm:$0xff] }
0x2099   : > { %17162 = vmatprep.subr.mxu1 %v7625_v52  ;;  %17180 = vmatprep.subr.mxu0 %v7782_v8 }
0x209a   : > { %17163 = vmatpush3.msra.mxu1 %v7625_v52  ;;  %17181 = vmatpush3.msra.mxu0 %v7782_v8  ;;  %v8250_v52 = vld [vmem:[#allocation5 + $0x68] sm:$0xff] }
0x209b   : > { %17142 = vmatmul.mubr.msk.f32.gmra.mxu0 %vm7053_vm12, %v7404_v36  ;;  %17164 = vmatprep.subr.mxu1 %v17156_v6 }
0x209c   : > { %17165 = vmatpush3.msra.mxu1 %v17156_v6  ;;  %17144 = vmatprep.mubr.msk.f32.mxu0 %vm7053_vm12, %v7405_v55  ;;  %v7872_v55 = vld [vmem:[#allocation7 + $0x118] sm:$0xff] }
0x209d   : > { %17166 = vmatprep.subr.mxu1 %v7615_v44  ;;  %17182 = vmatprep.subr.mxu0 %v7781_v58 }
0x209e   : > { %17167 = vmatpush3.msra.mxu1 %v7615_v44  ;;  %17183 = vmatpush3.msra.mxu0 %v7781_v58  ;;  %v7873_v58 = vld [vmem:[#allocation7 + $0x120] sm:$0xff] }
0x209f   : > { %17145 = vmatmul.mubr.msk.f32.gmra.mxu0 %vm7053_vm12, %v7406_v60  ;;  %17169 = vmatmul.mubr.msk.f32.vlgmr.msra.gmra.mxu1 %vm7053_vm12, %v7636_v5  ;;  %v8249_v60 = vld [vmem:[#allocation5 + $0x60] sm:$0xff]  ;;  %v7874_v5 = vld [vmem:[#allocation7 + $0x128] sm:$0xff] }
0x20a0   : > { %17147 = vmatprep.mubr.msk.f32.mxu0 %vm7053_vm12, %v7407_v62  ;;  %17171 = vmatprep.mubr.msk.f32.mxu1 %vm7053_vm12, %v7637_v0  ;;  %v8104_v62 = vld [vmem:[#allocation7 + $0x148] sm:$0xff]  ;;  %v7875_v0 = vld [vmem:[#allocation7 + $0x130] sm:$0xff] }
0x20a1   : > { %17210 = vmatprep.subr.mxu1 %v8016_v2 }
0x20a2   : > { %17211 = vmatpush3.msra.mxu1 %v8016_v2  ;;  %v8105_v2 = vld [vmem:[#allocation7 + $0x150] sm:$0xff] }
0x20a3   : > { %17148 = vmatmul.mubr.msk.f32.gmra.mxu0 %vm7053_vm12, %v7408_v10  ;;  %17172 = vmatmul.mubr.msk.f32.gmra.mxu1 %vm7053_vm12, %v7638_v12  ;;  %v8484_v10 = vld [vmem:[#allocation5 + $0x78] sm:$0xff] }
0x20a4   : > { %17184 = vmatprep.mubr.msk.f32.mxu0 %vm3901_vm7, %v21089_v63  ;;  %17174 = vmatprep.mubr.msk.f32.mxu1 %vm7053_vm12, %v7639_v54  ;;  %v7876_v12 = vld [vmem:[#allocation7 + $0x138] sm:$0xff] }
0x20a5   : > { %17212 = vmatprep.subr.mxu1 %v8015_v34  ;;  %v8106_v54 = vld [vmem:[#allocation7 + $0x158] sm:$0xff] }
0x20a6   : > { %17213 = vmatpush3.msra.mxu1 %v8015_v34  ;;  %v8107_v34 = vld [vmem:[#allocation7 + $0x160] sm:$0xff] }
0x20a7   : > { %17175 = vmatmul.mubr.msk.f32.gmra.mxu1 %vm7053_vm12, %v7640_v13  ;;  %17185 = vmatmul.mubr.msk.f32.vlgmr.msra.gmra.mxu0 %vm3901_vm7, %v21092_v45  ;;  %v8483_v13 = vld [vmem:[#allocation5 + $0x70] sm:$0xff] }
0x20a8   : > { %17187 = vmatprep.mubr.msk.f32.mxu0 %vm3901_vm7, %v21103_v48  ;;  %17177 = vmatprep.mubr.msk.f32.mxu1 %vm7053_vm12, %v7641_v59  ;;  %v8108_v59 = vld [vmem:[#allocation7 + $0x168] sm:$0xff] }
0x20ab   : > { %17178 = vmatmul.mubr.msk.f32.gmra.mxu1 %vm7053_vm12, %v7642_v3  ;;  %17188 = vmatmul.mubr.msk.f32.gmra.mxu0 %vm3901_vm7, %v21105_v50  ;;  %v8109_v3 = vld [vmem:[#allocation7 + $0x170] sm:$0xff] }
0x20ac   : > { %17214 = vmatprep.mubr.msk.f32.mxu1 %vm3901_vm7, %v21089_v63  ;;  %17198 = vmatprep.mubr.msk.f32.mxu0 %vm7053_vm12, %v7869_v15  ;;  %v8110_v15 = vld [vmem:[#allocation7 + $0x178] sm:$0xff] }
0x20af   : > { %17215 = vmatmul.mubr.msk.f32.vlgmr.msra.gmra.mxu1 %vm3901_vm7, %v21092_v45 }
0x20b0   : > { %17217 = vmatprep.mubr.msk.f32.mxu1 %vm3901_vm7, %v21103_v48 }
0x20b3   : > { %17218 = vmatmul.mubr.msk.f32.gmra.mxu1 %vm3901_vm7, %v21105_v50 }
0x20b4   : > { %17228 = vmatprep.mubr.msk.f32.mxu1 %vm7053_vm12, %v8103_v23  ;;  %v8337_v23 = vld [vmem:[#allocation7 + $0x180] sm:$0xff] }
0x2157   : > { %v17140_v56 = vpop.f32.mrf.mxu0 }
0x2158   : > { %v7539_v42 = vadd.f32 %v17140_v56, %v21149_v49  ;;  %v8571_v56 = vld [vmem:[#allocation7 + $0x1c0] sm:$0xff] }
0x2159   : > { %v21206_v29 = vpop.f32.mrf.mxu0 }
0x215b   : > { %v17143_v16 = vpop.f32.mrf.mxu0 }
0x215c   : > { %v7541_v18 = vadd.f32 %v17143_v16, %v21155_v31 }
0x215d   : > { %v21209_v4 = vpop.f32.mrf.mxu0 }
0x215f   : > { %v17146_v21 = vpop.f32.mrf.mxu0  ;;  %v17170_v32 = vpop.f32.mrf.mxu1 }
0x2160   : > { %v7543_v35 = vadd.f32 %v17146_v21, %v21161_v38  ;;  %v21212_v20 = vadd.f32 %v17170_v32, %v7539_v42 }
0x2161   : > { %v21214_v26 = vpop.f32.mrf.mxu0  ;;  %v21216_v25 = vpop.f32.mrf.mxu1 }
0x2163   : > { %v17149_v46 = vpop.f32.mrf.mxu0  ;;  %v17173_v14 = vpop.f32.mrf.mxu1 }
0x2164   : > { %v7545_v49 = vadd.f32 %v17149_v46, %v21167_v37  ;;  %v21219_v24 = vadd.f32 %v17173_v14, %v7541_v18 }
0x2165   : > { %v21221_v41 = vpop.f32.mrf.mxu0  ;;  %v21223_v31 = vpop.f32.mrf.mxu1 }
0x2167   : > { %v17176_v7 = vpop.f32.mrf.mxu1  ;;  %v17186_v28 = vpop.f32.mrf.mxu0 }
0x2168   : > { %v21225_v11 = vadd.f32 %v17176_v7, %v7543_v35 }
0x2169   : > { %v21227_v38 = vpop.f32.mrf.mxu1  ;;  %v7849_v33 = vpop.f32.mrf.mxu0 }
0x216b   : > { %v17179_v39 = vpop.f32.mrf.mxu1  ;;  %v17189_v19 = vpop.f32.mrf.mxu0 }
0x216c   : > { %v21229_v40 = vadd.f32 %v17179_v39, %v7545_v49  ;;  %17190 = vmatprep.subr.mxu0 %v17189_v19 }
0x216d   : > { %v21231_v6 = vpop.f32.mrf.mxu1  ;;  %v7859_v37 = vpop.f32.mrf.mxu0  ;;  %17191 = vmatpush3.msra.mxu0 %v17189_v19 }
0x216e   : > { %17192 = vmatprep.subr.mxu0 %v7859_v37 }
0x216f   : > { %17193 = vmatpush3.msra.mxu0 %v7859_v37  ;;  %v17216_v44 = vpop.f32.mrf.mxu1 }
0x2170   : > { %17194 = vmatprep.subr.mxu0 %v17186_v28 }
0x2171   : > { %17195 = vmatpush3.msra.mxu0 %v17186_v28  ;;  %v8083_v30 = vpop.f32.mrf.mxu1 }
0x2172   : > { %17196 = vmatprep.subr.mxu0 %v7849_v33 }
0x2173   : > { %17197 = vmatpush3.msra.mxu0 %v7849_v33  ;;  %v17219_v8 = vpop.f32.mrf.mxu1 }
0x2174   : > { %17199 = vmatmul.mubr.msk.f32.vlgmr.msra.gmra.mxu0 %vm7053_vm12, %v7870_v22  ;;  %17220 = vmatprep.subr.mxu1 %v17219_v8 }
0x2175   : > { %v8093_v36 = vpop.f32.mrf.mxu1  ;;  %17221 = vmatpush3.msra.mxu1 %v17219_v8  ;;  %17201 = vmatprep.mubr.msk.f32.mxu0 %vm7053_vm12, %v7871_v47 }
0x2176   : > { %17222 = vmatprep.subr.mxu1 %v8093_v36  ;;  %17240 = vmatprep.subr.mxu0 %v8250_v52 }
0x2177   : > { %17223 = vmatpush3.msra.mxu1 %v8093_v36  ;;  %17241 = vmatpush3.msra.mxu0 %v8250_v52 }
0x2178   : > { %17202 = vmatmul.mubr.msk.f32.gmra.mxu0 %vm7053_vm12, %v7872_v55  ;;  %17224 = vmatprep.subr.mxu1 %v17216_v44 }
0x2179   : > { %17225 = vmatpush3.msra.mxu1 %v17216_v44  ;;  %17204 = vmatprep.mubr.msk.f32.mxu0 %vm7053_vm12, %v7873_v58 }
0x217a   : > { %17226 = vmatprep.subr.mxu1 %v8083_v30  ;;  %17242 = vmatprep.subr.mxu0 %v8249_v60 }
0x217b   : > { %17227 = vmatpush3.msra.mxu1 %v8083_v30  ;;  %17243 = vmatpush3.msra.mxu0 %v8249_v60 }
0x217c   : > { %17205 = vmatmul.mubr.msk.f32.gmra.mxu0 %vm7053_vm12, %v7874_v5  ;;  %17229 = vmatmul.mubr.msk.f32.vlgmr.msra.gmra.mxu1 %vm7053_vm12, %v8104_v62  ;;  %v8338_v62 = vld [vmem:[#allocation7 + $0x188] sm:$0xff] }
0x217d   : > { %17207 = vmatprep.mubr.msk.f32.mxu0 %vm7053_vm12, %v7875_v0  ;;  %17231 = vmatprep.mubr.msk.f32.mxu1 %vm7053_vm12, %v8105_v2  ;;  %v8339_v0 = vld [vmem:[#allocation7 + $0x190] sm:$0xff] }
0x217e   : > { %17270 = vmatprep.subr.mxu1 %v8484_v10 }
0x217f   : > { %17271 = vmatpush3.msra.mxu1 %v8484_v10  ;;  %v8718_v10 = vld [vmem:[#allocation5 + $0x88] sm:$0xff] }
0x2180   : > { %17208 = vmatmul.mubr.msk.f32.gmra.mxu0 %vm7053_vm12, %v7876_v12  ;;  %17232 = vmatmul.mubr.msk.f32.gmra.mxu1 %vm7053_vm12, %v8106_v54  ;;  %v8340_v54 = vld [vmem:[#allocation7 + $0x198] sm:$0xff] }
0x2181   : > { %17244 = vmatprep.mubr.msk.f32.mxu0 %vm3901_vm7, %v21089_v63  ;;  %17234 = vmatprep.mubr.msk.f32.mxu1 %vm7053_vm12, %v8107_v34  ;;  %v8341_v34 = vld [vmem:[#allocation7 + $0x1a0] sm:$0xff] }
0x2182   : > { %17272 = vmatprep.subr.mxu1 %v8483_v13 }
0x2183   : > { %17273 = vmatpush3.msra.mxu1 %v8483_v13  ;;  %v8717_v13 = vld [vmem:[#allocation5 + $0x80] sm:$0xff] }
0x2184   : > { %17235 = vmatmul.mubr.msk.f32.gmra.mxu1 %vm7053_vm12, %v8108_v59  ;;  %17245 = vmatmul.mubr.msk.f32.vlgmr.msra.gmra.mxu0 %vm3901_vm7, %v21092_v45  ;;  %v8342_v59 = vld [vmem:[#allocation7 + $0x1a8] sm:$0xff] }
0x2185   : > { %17247 = vmatprep.mubr.msk.f32.mxu0 %vm3901_vm7, %v21103_v48  ;;  %17237 = vmatprep.mubr.msk.f32.mxu1 %vm7053_vm12, %v8109_v3  ;;  %v8572_v3 = vld [vmem:[#allocation7 + $0x1c8] sm:$0xff] }
0x2188   : > { %17238 = vmatmul.mubr.msk.f32.gmra.mxu1 %vm7053_vm12, %v8110_v15  ;;  %17248 = vmatmul.mubr.msk.f32.gmra.mxu0 %vm3901_vm7, %v21105_v50  ;;  %v8343_v15 = vld [vmem:[#allocation7 + $0x1b0] sm:$0xff] }
0x2189   : > { %17274 = vmatprep.mubr.msk.f32.mxu1 %vm3901_vm7, %v21089_v63  ;;  %17258 = vmatprep.mubr.msk.f32.mxu0 %vm7053_vm12, %v8337_v23  ;;  %v8573_v23 = vld [vmem:[#allocation7 + $0x1d0] sm:$0xff] }
0x218c   : > { %17275 = vmatmul.mubr.msk.f32.vlgmr.msra.gmra.mxu1 %vm3901_vm7, %v21092_v45 }
0x218d   : > { %17277 = vmatprep.mubr.msk.f32.mxu1 %vm3901_vm7, %v21103_v48 }
0x2190   : > { %17278 = vmatmul.mubr.msk.f32.gmra.mxu1 %vm3901_vm7, %v21105_v50 }
0x2191   : > { %17288 = vmatprep.mubr.msk.f32.mxu1 %vm7053_vm12, %v8571_v56  ;;  %v8952_v56 = vld [vmem:[#allocation5 + $0x98] sm:$0xff] }
0x2234   : > { %v17200_v42 = vpop.f32.mrf.mxu0 }
0x2235   : > { %v8007_v16 = vadd.f32 %v17200_v42, %v21212_v20  ;;  %v8344_v42 = vld [vmem:[#allocation7 + $0x1b8] sm:$0xff] }
0x2236   : > { %v21266_v18 = vpop.f32.mrf.mxu0 }
0x2238   : > { %v17203_v21 = vpop.f32.mrf.mxu0 }
0x2239   : > { %v8009_v32 = vadd.f32 %v17203_v21, %v21219_v24  ;;  %v8575_v21 = vld [vmem:[#allocation7 + $0x1e0] sm:$0xff] }
0x223a   : > { %v21269_v35 = vpop.f32.mrf.mxu0 }
0x223c   : > { %v17206_v46 = vpop.f32.mrf.mxu0  ;;  %v17230_v14 = vpop.f32.mrf.mxu1 }
0x223d   : > { %v8011_v49 = vadd.f32 %v17206_v46, %v21225_v11  ;;  %v21272_v7 = vadd.f32 %v17230_v14, %v8007_v16  ;;  %v8574_v16 = vld [vmem:[#allocation7 + $0x1d8] sm:$0xff]  ;;  %v8576_v46 = vld [vmem:[#allocation7 + $0x1e8] sm:$0xff]  ;;  %v8577_v14 = vld [vmem:[#allocation7 + $0x1f0] sm:$0xff] }
0x223e   : > { %v21274_v28 = vpop.f32.mrf.mxu0  ;;  %v21276_v33 = vpop.f32.mrf.mxu1 }
0x2240   : > { %v17209_v39 = vpop.f32.mrf.mxu0  ;;  %v17233_v19 = vpop.f32.mrf.mxu1 }
0x2241   : > { %v8013_v20 = vadd.f32 %v17209_v39, %v21229_v40  ;;  %v21279_v37 = vadd.f32 %v17233_v19, %v8009_v32  ;;  %v8951_v32 = vld [vmem:[#allocation5 + $0x90] sm:$0xff]  ;;  %v8805_v39 = vld [vmem:[#allocation7 + $0x200] sm:$0xff] }
0x2242   : > { %v21281_v44 = vpop.f32.mrf.mxu0  ;;  %v21283_v24 = vpop.f32.mrf.mxu1  ;;  %v9039_v19 = vld [vmem:[#allocation7 + $0x240] sm:$0xff] }
0x2244   : > { %v17236_v30 = vpop.f32.mrf.mxu1  ;;  %v17246_v22 = vpop.f32.mrf.mxu0 }
0x2245   : > { %v21285_v47 = vadd.f32 %v17236_v30, %v8011_v49  ;;  %v8578_v49 = vld [vmem:[#allocation7 + $0x1f8] sm:$0xff] }
0x2246   : > { %v21287_v11 = vpop.f32.mrf.mxu1  ;;  %v8317_v8 = vpop.f32.mrf.mxu0 }
0x2248   : > { %v17239_v52 = vpop.f32.mrf.mxu1  ;;  %v17249_v36 = vpop.f32.mrf.mxu0 }
0x2249   : > { %v21289_v55 = vadd.f32 %v17239_v52, %v8013_v20  ;;  %17250 = vmatprep.subr.mxu0 %v17249_v36 }
0x224a   : > { %v21291_v58 = vpop.f32.mrf.mxu1  ;;  %v8327_v40 = vpop.f32.mrf.mxu0  ;;  %17251 = vmatpush3.msra.mxu0 %v17249_v36 }
0x224b   : > { %17252 = vmatprep.subr.mxu0 %v8327_v40 }
0x224c   : > { %17253 = vmatpush3.msra.mxu0 %v8327_v40  ;;  %v17276_v60 = vpop.f32.mrf.mxu1 }
0x224d   : > { %17254 = vmatprep.subr.mxu0 %v17246_v22 }
0x224e   : > { %17255 = vmatpush3.msra.mxu0 %v17246_v22  ;;  %v8551_v5 = vpop.f32.mrf.mxu1 }
0x224f   : > { %17256 = vmatprep.subr.mxu0 %v8317_v8 }
0x2250   : > { %17257 = vmatpush3.msra.mxu0 %v8317_v8  ;;  %v17279_v2 = vpop.f32.mrf.mxu1 }
0x2251   : > { %17259 = vmatmul.mubr.msk.f32.vlgmr.msra.gmra.mxu0 %vm7053_vm12, %v8338_v62  ;;  %17280 = vmatprep.subr.mxu1 %v17279_v2 }
0x2252   : > { %v8561_v12 = vpop.f32.mrf.mxu1  ;;  %17281 = vmatpush3.msra.mxu1 %v17279_v2  ;;  %17261 = vmatprep.mubr.msk.f32.mxu0 %vm7053_vm12, %v8339_v0 }
0x2253   : > { %17282 = vmatprep.subr.mxu1 %v8561_v12  ;;  %17300 = vmatprep.subr.mxu0 %v8718_v10 }
0x2254   : > { %17283 = vmatpush3.msra.mxu1 %v8561_v12  ;;  %17301 = vmatpush3.msra.mxu0 %v8718_v10 }
0x2255   : > { %17262 = vmatmul.mubr.msk.f32.gmra.mxu0 %vm7053_vm12, %v8340_v54  ;;  %17284 = vmatprep.subr.mxu1 %v17276_v60 }
0x2256   : > { %17285 = vmatpush3.msra.mxu1 %v17276_v60  ;;  %17264 = vmatprep.mubr.msk.f32.mxu0 %vm7053_vm12, %v8341_v34 }
0x2257   : > { %17286 = vmatprep.subr.mxu1 %v8551_v5  ;;  %17302 = vmatprep.subr.mxu0 %v8717_v13 }
0x2258   : > { %17287 = vmatpush3.msra.mxu1 %v8551_v5  ;;  %17303 = vmatpush3.msra.mxu0 %v8717_v13 }
0x2259   : > { %17265 = vmatmul.mubr.msk.f32.gmra.mxu0 %vm7053_vm12, %v8342_v59  ;;  %17289 = vmatmul.mubr.msk.f32.vlgmr.msra.gmra.mxu1 %vm7053_vm12, %v8572_v3 }
0x225a   : > { %17267 = vmatprep.mubr.msk.f32.mxu0 %vm7053_vm12, %v8343_v15  ;;  %17291 = vmatprep.mubr.msk.f32.mxu1 %vm7053_vm12, %v8573_v23 }
0x225b   : > { %17330 = vmatprep.subr.mxu1 %v8952_v56 }
0x225c   : > { %17331 = vmatpush3.msra.mxu1 %v8952_v56 }
0x225d   : > { %17268 = vmatmul.mubr.msk.f32.gmra.mxu0 %vm7053_vm12, %v8344_v42  ;;  %17292 = vmatmul.mubr.msk.f32.gmra.mxu1 %vm7053_vm12, %v8574_v16 }
0x225e   : > { %17304 = vmatprep.mubr.msk.f32.mxu0 %vm3901_vm7, %v21089_v63  ;;  %17294 = vmatprep.mubr.msk.f32.mxu1 %vm7053_vm12, %v8575_v21 }
0x225f   : > { %17332 = vmatprep.subr.mxu1 %v8951_v32 }
0x2260   : > { %17333 = vmatpush3.msra.mxu1 %v8951_v32 }
0x2261   : > { %17295 = vmatmul.mubr.msk.f32.gmra.mxu1 %vm7053_vm12, %v8576_v46  ;;  %17305 = vmatmul.mubr.msk.f32.vlgmr.msra.gmra.mxu0 %vm3901_vm7, %v21092_v45  ;;  %v8806_v46 = vld [vmem:[#allocation7 + $0x208] sm:$0xff] }
0x2262   : > { %17307 = vmatprep.mubr.msk.f32.mxu0 %vm3901_vm7, %v21103_v48  ;;  %17297 = vmatprep.mubr.msk.f32.mxu1 %vm7053_vm12, %v8577_v14  ;;  %v8807_v14 = vld [vmem:[#allocation7 + $0x210] sm:$0xff] }
0x2265   : > { %17298 = vmatmul.mubr.msk.f32.gmra.mxu1 %vm7053_vm12, %v8578_v49  ;;  %17308 = vmatmul.mubr.msk.f32.gmra.mxu0 %vm3901_vm7, %v21105_v50 }
0x2266   : > { %17334 = vmatprep.mubr.msk.f32.mxu1 %vm3901_vm7, %v21089_v63  ;;  %17318 = vmatprep.mubr.msk.f32.mxu0 %vm7053_vm12, %v8805_v39  ;;  %v9186_v39 = vld [vmem:[#allocation5 + $0xa8] sm:$0xff] }
0x2269   : > { %17335 = vmatmul.mubr.msk.f32.vlgmr.msra.gmra.mxu1 %vm3901_vm7, %v21092_v45 }
0x226a   : > { %17337 = vmatprep.mubr.msk.f32.mxu1 %vm3901_vm7, %v21103_v48 }
0x226d   : > { %17338 = vmatmul.mubr.msk.f32.gmra.mxu1 %vm3901_vm7, %v21105_v50 }
0x226e   : > { %17348 = vmatprep.mubr.msk.f32.mxu1 %vm7053_vm12, %v9039_v19 }
0x2311   : > { %v17260_v20 = vpop.f32.mrf.mxu0 }
0x2312   : > { %v8475_v30 = vadd.f32 %v17260_v20, %v21272_v7  ;;  %v8808_v20 = vld [vmem:[#allocation7 + $0x218] sm:$0xff] }
0x2313   : > { %v21326_v22 = vpop.f32.mrf.mxu0 }
0x2315   : > { %v17263_v8 = vpop.f32.mrf.mxu0 }
0x2316   : > { %v8477_v52 = vadd.f32 %v17263_v8, %v21279_v37  ;;  %v9185_v8 = vld [vmem:[#allocation5 + $0xa0] sm:$0xff] }
0x2317   : > { %v21329_v36 = vpop.f32.mrf.mxu0 }
0x2319   : > { %v17266_v40 = vpop.f32.mrf.mxu0  ;;  %v17290_v60 = vpop.f32.mrf.mxu1 }
0x231a   : > { %v8479_v5 = vadd.f32 %v17266_v40, %v21285_v47  ;;  %v21332_v62 = vadd.f32 %v17290_v60, %v8475_v30  ;;  %v8809_v30 = vld [vmem:[#allocation7 + $0x220] sm:$0xff]  ;;  %v9040_v40 = vld [vmem:[#allocation7 + $0x248] sm:$0xff]  ;;  %v8811_v60 = vld [vmem:[#allocation7 + $0x230] sm:$0xff] }
0x231b   : > { %v21334_v0 = vpop.f32.mrf.mxu0  ;;  %v21336_v2 = vpop.f32.mrf.mxu1 }
0x231d   : > { %v17269_v10 = vpop.f32.mrf.mxu0  ;;  %v17293_v12 = vpop.f32.mrf.mxu1 }
0x231e   : > { %v8481_v7 = vadd.f32 %v17269_v10, %v21289_v55  ;;  %v21339_v54 = vadd.f32 %v17293_v12, %v8477_v52  ;;  %v8810_v52 = vld [vmem:[#allocation7 + $0x228] sm:$0xff]  ;;  %v9420_v10 = vld [vmem:[#allocation5 + $0xb8] sm:$0xff] }
0x231f   : > { %v21341_v34 = vpop.f32.mrf.mxu0  ;;  %v21343_v37 = vpop.f32.mrf.mxu1  ;;  %v8812_v12 = vld [vmem:[#allocation7 + $0x238] sm:$0xff] }
0x2321   : > { %v17296_v13 = vpop.f32.mrf.mxu1  ;;  %v17306_v59 = vpop.f32.mrf.mxu0 }
0x2322   : > { %v21345_v3 = vadd.f32 %v17296_v13, %v8479_v5  ;;  %v9041_v5 = vld [vmem:[#allocation7 + $0x250] sm:$0xff]  ;;  %v9043_v13 = vld [vmem:[#allocation7 + $0x260] sm:$0xff] }
0x2323   : > { %v21347_v47 = vpop.f32.mrf.mxu1  ;;  %v8785_v15 = vpop.f32.mrf.mxu0 }
0x2325   : > { %v17299_v23 = vpop.f32.mrf.mxu1  ;;  %v17309_v56 = vpop.f32.mrf.mxu0 }
0x2326   : > { %v21349_v42 = vadd.f32 %v17299_v23, %v8481_v7  ;;  %17310 = vmatprep.subr.mxu0 %v17309_v56  ;;  %v9042_v7 = vld [vmem:[#allocation7 + $0x258] sm:$0xff]  ;;  %v9045_v23 = vld [vmem:[#allocation7 + $0x270] sm:$0xff] }
0x2327   : > { %v21351_v16 = vpop.f32.mrf.mxu1  ;;  %v8795_v55 = vpop.f32.mrf.mxu0  ;;  %17311 = vmatpush3.msra.mxu0 %v17309_v56  ;;  %v9046_v56 = vld [vmem:[#allocation7 + $0x278] sm:$0xff] }
0x2328   : > { %17312 = vmatprep.subr.mxu0 %v8795_v55 }
0x2329   : > { %17313 = vmatpush3.msra.mxu0 %v8795_v55  ;;  %v17336_v21 = vpop.f32.mrf.mxu1  ;;  %v9273_v55 = vld [vmem:[#allocation7 + $0x280] sm:$0xff] }
0x232a   : > { %17314 = vmatprep.subr.mxu0 %v17306_v59 }
0x232b   : > { %17315 = vmatpush3.msra.mxu0 %v17306_v59  ;;  %v9019_v32 = vpop.f32.mrf.mxu1  ;;  %v9419_v59 = vld [vmem:[#allocation5 + $0xb0] sm:$0xff] }
0x232c   : > { %17316 = vmatprep.subr.mxu0 %v8785_v15 }
0x232d   : > { %17317 = vmatpush3.msra.mxu0 %v8785_v15  ;;  %v17339_v49 = vpop.f32.mrf.mxu1  ;;  %v9044_v15 = vld [vmem:[#allocation7 + $0x268] sm:$0xff] }
0x232e   : > { %17319 = vmatmul.mubr.msk.f32.vlgmr.msra.gmra.mxu0 %vm7053_vm12, %v8806_v46  ;;  %17340 = vmatprep.subr.mxu1 %v17339_v49 }
0x232f   : > { %v9029_v19 = vpop.f32.mrf.mxu1  ;;  %17341 = vmatpush3.msra.mxu1 %v17339_v49  ;;  %17321 = vmatprep.mubr.msk.f32.mxu0 %vm7053_vm12, %v8807_v14 }
0x2330   : > { %17342 = vmatprep.subr.mxu1 %v9029_v19  ;;  %17360 = vmatprep.subr.mxu0 %v9186_v39 }
0x2331   : > { %17343 = vmatpush3.msra.mxu1 %v9029_v19  ;;  %17361 = vmatpush3.msra.mxu0 %v9186_v39 }
0x2332   : > { %17322 = vmatmul.mubr.msk.f32.gmra.mxu0 %vm7053_vm12, %v8808_v20  ;;  %17344 = vmatprep.subr.mxu1 %v17336_v21 }
0x2333   : > { %17345 = vmatpush3.msra.mxu1 %v17336_v21  ;;  %17324 = vmatprep.mubr.msk.f32.mxu0 %vm7053_vm12, %v8809_v30  ;;  %v9507_v21 = vld [vmem:[#allocation7 + $0x2c0] sm:$0xff] }
0x2334   : > { %17346 = vmatprep.subr.mxu1 %v9019_v32  ;;  %17362 = vmatprep.subr.mxu0 %v9185_v8 }
0x2335   : > { %17347 = vmatpush3.msra.mxu1 %v9019_v32  ;;  %17363 = vmatpush3.msra.mxu0 %v9185_v8 }
0x2336   : > { %17325 = vmatmul.mubr.msk.f32.gmra.mxu0 %vm7053_vm12, %v8810_v52  ;;  %17349 = vmatmul.mubr.msk.f32.vlgmr.msra.gmra.mxu1 %vm7053_vm12, %v9040_v40 }
0x2337   : > { %17327 = vmatprep.mubr.msk.f32.mxu0 %vm7053_vm12, %v8811_v60  ;;  %17351 = vmatprep.mubr.msk.f32.mxu1 %vm7053_vm12, %v9041_v5 }
0x2338   : > { %17390 = vmatprep.subr.mxu1 %v9420_v10 }
0x2339   : > { %17391 = vmatpush3.msra.mxu1 %v9420_v10 }
0x233a   : > { %17328 = vmatmul.mubr.msk.f32.gmra.mxu0 %vm7053_vm12, %v8812_v12  ;;  %17352 = vmatmul.mubr.msk.f32.gmra.mxu1 %vm7053_vm12, %v9042_v7 }
0x233b   : > { %17364 = vmatprep.mubr.msk.f32.mxu0 %vm3901_vm7, %v21089_v63  ;;  %17354 = vmatprep.mubr.msk.f32.mxu1 %vm7053_vm12, %v9043_v13 }
0x233c   : > { %17392 = vmatprep.subr.mxu1 %v9419_v59 }
0x233d   : > { %17393 = vmatpush3.msra.mxu1 %v9419_v59 }
0x233e   : > { %17355 = vmatmul.mubr.msk.f32.gmra.mxu1 %vm7053_vm12, %v9044_v15  ;;  %17365 = vmatmul.mubr.msk.f32.vlgmr.msra.gmra.mxu0 %vm3901_vm7, %v21092_v45 }
0x233f   : > { %17367 = vmatprep.mubr.msk.f32.mxu0 %vm3901_vm7, %v21103_v48  ;;  %17357 = vmatprep.mubr.msk.f32.mxu1 %vm7053_vm12, %v9045_v23 }
0x2342   : > { %17358 = vmatmul.mubr.msk.f32.gmra.mxu1 %vm7053_vm12, %v9046_v56  ;;  %17368 = vmatmul.mubr.msk.f32.gmra.mxu0 %vm3901_vm7, %v21105_v50 }
0x2343   : > { %17394 = vmatprep.mubr.msk.f32.mxu1 %vm3901_vm7, %v21089_v63  ;;  %17378 = vmatprep.mubr.msk.f32.mxu0 %vm7053_vm12, %v9273_v55 }
0x2346   : > { %17395 = vmatmul.mubr.msk.f32.vlgmr.msra.gmra.mxu1 %vm3901_vm7, %v21092_v45 }
0x2347   : > { %17397 = vmatprep.mubr.msk.f32.mxu1 %vm3901_vm7, %v21103_v48 }
0x234a   : > { %17398 = vmatmul.mubr.msk.f32.gmra.mxu1 %vm3901_vm7, %v21105_v50 }
0x234b   : > { %17408 = vmatprep.mubr.msk.f32.mxu1 %vm7053_vm12, %v9507_v21 }
0x23ee   : > { %v17320_v32 = vpop.f32.mrf.mxu0 }
0x23ef   : > { %v8943_v46 = vadd.f32 %v17320_v32, %v21332_v62 }
0x23f0   : > { %v21386_v14 = vpop.f32.mrf.mxu0 }
0x23f2   : > { %v17323_v49 = vpop.f32.mrf.mxu0 }
0x23f3   : > { %v8945_v39 = vadd.f32 %v17323_v49, %v21339_v54 }
0x23f4   : > { %v21389_v19 = vpop.f32.mrf.mxu0 }
0x23f6   : > { %v17326_v20 = vpop.f32.mrf.mxu0  ;;  %v17350_v30 = vpop.f32.mrf.mxu1 }
0x23f7   : > { %v8947_v8 = vadd.f32 %v17326_v20, %v21345_v3  ;;  %v21392_v52 = vadd.f32 %v17350_v30, %v8943_v46  ;;  %v9275_v20 = vld [vmem:[#allocation7 + $0x290] sm:$0xff] }
0x23f8   : > { %v21394_v40 = vpop.f32.mrf.mxu0  ;;  %v21396_v60 = vpop.f32.mrf.mxu1 }
0x23fa   : > { %v17329_v5 = vpop.f32.mrf.mxu0  ;;  %v17353_v10 = vpop.f32.mrf.mxu1 }
0x23fb   : > { %v8949_v62 = vadd.f32 %v17329_v5, %v21349_v42  ;;  %v21399_v12 = vadd.f32 %v17353_v10, %v8945_v39  ;;  %v9274_v39 = vld [vmem:[#allocation7 + $0x288] sm:$0xff]  ;;  %v9276_v10 = vld [vmem:[#allocation7 + $0x298] sm:$0xff] }
0x23fc   : > { %v21401_v7 = vpop.f32.mrf.mxu0  ;;  %v21403_v54 = vpop.f32.mrf.mxu1 }
0x23fe   : > { %v17356_v13 = vpop.f32.mrf.mxu1  ;;  %v17366_v59 = vpop.f32.mrf.mxu0 }
0x23ff   : > { %v21405_v15 = vadd.f32 %v17356_v13, %v8947_v8  ;;  %v9654_v8 = vld [vmem:[#allocation5 + $0xc8] sm:$0xff]  ;;  %v9653_v13 = vld [vmem:[#allocation5 + $0xc0] sm:$0xff] }
0x2400   : > { %v21407_v3 = vpop.f32.mrf.mxu1  ;;  %v9253_v23 = vpop.f32.mrf.mxu0 }
0x2402   : > { %v17359_v56 = vpop.f32.mrf.mxu1  ;;  %v17369_v55 = vpop.f32.mrf.mxu0 }
0x2403   : > { %v21409_v21 = vadd.f32 %v17359_v56, %v8949_v62  ;;  %17370 = vmatprep.subr.mxu0 %v17369_v55  ;;  %v9277_v62 = vld [vmem:[#allocation7 + $0x2a0] sm:$0xff]  ;;  %v9279_v56 = vld [vmem:[#allocation7 + $0x2b0] sm:$0xff] }
0x2404   : > { %v21411_v32 = vpop.f32.mrf.mxu1  ;;  %v9263_v42 = vpop.f32.mrf.mxu0  ;;  %17371 = vmatpush3.msra.mxu0 %v17369_v55  ;;  %v9509_v55 = vld [vmem:[#allocation7 + $0x2d0] sm:$0xff] }
0x2405   : > { %17372 = vmatprep.subr.mxu0 %v9263_v42 }
0x2406   : > { %17373 = vmatpush3.msra.mxu0 %v9263_v42  ;;  %v17396_v46 = vpop.f32.mrf.mxu1  ;;  %v9888_v42 = vld [vmem:[#allocation5 + $0xd8] sm:$0xff] }
0x2407   : > { %17374 = vmatprep.subr.mxu0 %v17366_v59 }
0x2408   : > { %17375 = vmatpush3.msra.mxu0 %v17366_v59  ;;  %v9487_v49 = vpop.f32.mrf.mxu1  ;;  %v9278_v59 = vld [vmem:[#allocation7 + $0x2a8] sm:$0xff] }
0x2409   : > { %17376 = vmatprep.subr.mxu0 %v9253_v23 }
0x240a   : > { %17377 = vmatpush3.msra.mxu0 %v9253_v23  ;;  %v17399_v30 = vpop.f32.mrf.mxu1  ;;  %v9508_v23 = vld [vmem:[#allocation7 + $0x2c8] sm:$0xff] }
0x240b   : > { %17379 = vmatmul.mubr.msk.f32.vlgmr.msra.gmra.mxu0 %vm7053_vm12, %v9274_v39  ;;  %17400 = vmatprep.subr.mxu1 %v17399_v30  ;;  %v9510_v39 = vld [vmem:[#allocation7 + $0x2d8] sm:$0xff] }
0x240c   : > { %v9497_v5 = vpop.f32.mrf.mxu1  ;;  %17401 = vmatpush3.msra.mxu1 %v17399_v30  ;;  %17381 = vmatprep.mubr.msk.f32.mxu0 %vm7053_vm12, %v9275_v20  ;;  %v9511_v20 = vld [vmem:[#allocation7 + $0x2e0] sm:$0xff]  ;;  %v9887_v30 = vld [vmem:[#allocation5 + $0xd0] sm:$0xff] }
0x240d   : > { %17402 = vmatprep.subr.mxu1 %v9497_v5  ;;  %17420 = vmatprep.subr.mxu0 %v9654_v8 }
0x240e   : > { %17403 = vmatpush3.msra.mxu1 %v9497_v5  ;;  %17421 = vmatpush3.msra.mxu0 %v9654_v8  ;;  %v9513_v8 = vld [vmem:[#allocation7 + $0x2f0] sm:$0xff]  ;;  %v9514_v5 = vld [vmem:[#allocation7 + $0x2f8] sm:$0xff] }
0x240f   : > { %17382 = vmatmul.mubr.msk.f32.gmra.mxu0 %vm7053_vm12, %v9276_v10  ;;  %17404 = vmatprep.subr.mxu1 %v17396_v46  ;;  %v9741_v10 = vld [vmem:[#allocation7 + $0x300] sm:$0xff] }
0x2410   : > { %17405 = vmatpush3.msra.mxu1 %v17396_v46  ;;  %17384 = vmatprep.mubr.msk.f32.mxu0 %vm7053_vm12, %v9277_v62  ;;  %v9280_v46 = vld [vmem:[#allocation7 + $0x2b8] sm:$0xff]  ;;  %v9975_v62 = vld [vmem:[#allocation7 + $0x340] sm:$0xff] }
0x2411   : > { %17406 = vmatprep.subr.mxu1 %v9487_v49  ;;  %17422 = vmatprep.subr.mxu0 %v9653_v13 }
0x2412   : > { %17407 = vmatpush3.msra.mxu1 %v9487_v49  ;;  %17423 = vmatpush3.msra.mxu0 %v9653_v13  ;;  %v9512_v49 = vld [vmem:[#allocation7 + $0x2e8] sm:$0xff]  ;;  %v7274_v13 = vadd.f32 %v21153_v51, %v21151_v53 }
0x2413   : > { %17385 = vmatmul.mubr.msk.f32.gmra.mxu0 %vm7053_vm12, %v9278_v59  ;;  %17409 = vmatmul.mubr.msk.f32.vlgmr.msra.gmra.mxu1 %vm7053_vm12, %v9508_v23  ;;  %v7284_v23 = vadd.f32 %v21159_v61, %v21157_v57 }
0x2414   : > { %17387 = vmatprep.mubr.msk.f32.mxu0 %vm7053_vm12, %v9279_v56  ;;  %17411 = vmatprep.mubr.msk.f32.mxu1 %vm7053_vm12, %v9509_v55  ;;  %v7538_v59 = vadd.f32 %v21206_v29, %v7274_v13 }
0x2415   : > { %17450 = vmatprep.subr.mxu1 %v9888_v42  ;;  %v7540_v55 = vadd.f32 %v21209_v4, %v7284_v23  ;;  %v7304_v4 = vadd.f32 %v21203_v17, %v21169_v27 }
0x2416   : > { %17451 = vmatpush3.msra.mxu1 %v9888_v42  ;;  %v7772_v56 = vadd.f32 %v21216_v25, %v7538_v59 }
0x2417   : > { %17388 = vmatmul.mubr.msk.f32.gmra.mxu0 %vm7053_vm12, %v9280_v46  ;;  %17412 = vmatmul.mubr.msk.f32.gmra.mxu1 %vm7053_vm12, %v9510_v39  ;;  %v7294_v46 = vadd.f32 %v21165_v9, %v21163_v43  ;;  %v7774_v39 = vadd.f32 %v21223_v31, %v7540_v55  ;;  %v7544_v31 = vadd.f32 %v21221_v41, %v7304_v4 }
0x2418   : > { %17424 = vmatprep.mubr.msk.f32.mxu0 %vm3901_vm7, %v21089_v63  ;;  %17414 = vmatprep.mubr.msk.f32.mxu1 %vm7053_vm12, %v9511_v20  ;;  %v8006_v42 = vadd.f32 %v21266_v18, %v7772_v56 }
0x2419   : > { %17452 = vmatprep.subr.mxu1 %v9887_v30  ;;  %v7542_v53 = vadd.f32 %v21214_v26, %v7294_v46  ;;  %v8008_v29 = vadd.f32 %v21269_v35, %v7774_v39  ;;  %v7778_v27 = vadd.f32 %v21231_v6, %v7544_v31 }
0x241a   : > { %17453 = vmatpush3.msra.mxu1 %v9887_v30  ;;  %v8240_v20 = vadd.f32 %v21276_v33, %v8006_v42 }
0x241b   : > { %17415 = vmatmul.mubr.msk.f32.gmra.mxu1 %vm7053_vm12, %v9512_v49  ;;  %17425 = vmatmul.mubr.msk.f32.vlgmr.msra.gmra.mxu0 %vm3901_vm7, %v21092_v45  ;;  %v7776_v25 = vadd.f32 %v21227_v38, %v7542_v53  ;;  %v8242_v43 = vadd.f32 %v21283_v24, %v8008_v29  ;;  %v8012_v41 = vadd.f32 %v21281_v44, %v7778_v27  ;;  %v9747_v27 = vld [vmem:[#allocation7 + $0x330] sm:$0xff] }
0x241c   : > { %17427 = vmatprep.mubr.msk.f32.mxu0 %vm3901_vm7, %v21103_v48  ;;  %17417 = vmatprep.mubr.msk.f32.mxu1 %vm7053_vm12, %v9513_v8  ;;  %v8474_v57 = vadd.f32 %v21326_v22, %v8240_v20 }
0x241d   : > { %v8010_v26 = vadd.f32 %v21274_v28, %v7776_v25  ;;  %v8476_v35 = vadd.f32 %v21329_v36, %v8242_v43  ;;  %v8246_v6 = vadd.f32 %v21291_v58, %v8012_v41  ;;  %v9979_v41 = vld [vmem:[#allocation7 + $0x360] sm:$0xff] }
0x241e   : > { %v8708_v9 = vadd.f32 %v21336_v2, %v8474_v57 }
0x241f   : > { %17418 = vmatmul.mubr.msk.f32.gmra.mxu1 %vm7053_vm12, %v9514_v5  ;;  %17428 = vmatmul.mubr.msk.f32.gmra.mxu0 %vm3901_vm7, %v21105_v50  ;;  %v8244_v17 = vadd.f32 %v21287_v11, %v8010_v26  ;;  %v8710_v24 = vadd.f32 %v21343_v37, %v8476_v35  ;;  %v9744_v26 = vld [vmem:[#allocation7 + $0x318] sm:$0xff]  ;;  %v10121_v35 = vld [vmem:[#allocation5 + $0xe0] sm:$0xff] }
0x2420   : > { %17454 = vmatprep.mubr.msk.f32.mxu1 %vm3901_vm7, %v21089_v63  ;;  %17438 = vmatprep.mubr.msk.f32.mxu0 %vm7053_vm12, %v9741_v10  ;;  %v8942_v22 = vadd.f32 %v21386_v14, %v8708_v9  ;;  %v10122_v9 = vld [vmem:[#allocation5 + $0xe8] sm:$0xff] }
0x2421   : > { %v8478_v28 = vadd.f32 %v21334_v0, %v8244_v17  ;;  %v8944_v36 = vadd.f32 %v21389_v19, %v8710_v24  ;;  %v8480_v0 = vadd.f32 %v21341_v34, %v8246_v6  ;;  %v9977_v17 = vld [vmem:[#allocation7 + $0x350] sm:$0xff]  ;;  %v9748_v24 = vld [vmem:[#allocation7 + $0x338] sm:$0xff] }
0x2422   : > { %v9176_v2 = vadd.f32 %v21396_v60, %v8942_v22  ;;  %v9746_v22 = vld [vmem:[#allocation7 + $0x328] sm:$0xff] }
0x2423   : > { %17455 = vmatmul.mubr.msk.f32.vlgmr.msra.gmra.mxu1 %vm3901_vm7, %v21092_v45  ;;  %v8712_v37 = vadd.f32 %v21347_v47, %v8478_v28  ;;  %v9178_v60 = vadd.f32 %v21403_v54, %v8944_v36  ;;  %v8714_v56 = vadd.f32 %v21351_v16, %v8480_v0  ;;  %v10355_v28 = vld [vmem:[#allocation5 + $0xf0] sm:$0xff]  ;;  %v9982_v36 = vld [vmem:[#allocation7 + $0x378] sm:$0xff] }
0x2424   : > { %17457 = vmatprep.mubr.msk.f32.mxu1 %vm3901_vm7, %v21103_v48 }
0x2425   : > { %v8946_v19 = vadd.f32 %v21394_v40, %v8712_v37  ;;  %v8948_v34 = vadd.f32 %v21401_v7, %v8714_v56 }
0x2427   : > { %17458 = vmatmul.mubr.msk.f32.gmra.mxu1 %vm3901_vm7, %v21105_v50  ;;  %v9180_v47 = vadd.f32 %v21407_v3, %v8946_v19 }
0x2428   : > { %17468 = vmatprep.mubr.msk.f32.mxu1 %vm7053_vm12, %v9975_v62 }
0x24cb   : > { %v17380_v51 = vpop.f32.mrf.mxu0 }
0x24cc   : > { %v9411_v61 = vadd.f32 %v17380_v51, %v21392_v52 }
0x24cd   : > { %v9371_v18 = vpop.f32.mrf.mxu0 }
0x24ce   : > { %v9410_v14 = vadd.f32 %v9371_v18, %v9176_v2  ;;  %v9743_v18 = vld [vmem:[#allocation7 + $0x310] sm:$0xff]  ;;  %v9978_v2 = vld [vmem:[#allocation7 + $0x358] sm:$0xff] }
0x24cf   : > { %v17383_v33 = vpop.f32.mrf.mxu0 }
0x24d0   : > { %v9413_v52 = vadd.f32 %v17383_v33, %v21399_v12  ;;  %v9745_v33 = vld [vmem:[#allocation7 + $0x320] sm:$0xff] }
0x24d1   : > { %v9381_v38 = vpop.f32.mrf.mxu0 }
0x24d2   : > { %v9412_v13 = vadd.f32 %v9381_v38, %v9178_v60  ;;  %v10356_v38 = vld [vmem:[#allocation5 + $0xf8] sm:$0xff] }
0x24d3   : > { %v17386_v30 = vpop.f32.mrf.mxu0  ;;  %v17410_v49 = vpop.f32.mrf.mxu1 }
0x24d4   : > { %v9415_v12 = vadd.f32 %v17386_v30, %v21405_v15  ;;  %v21479_v8 = vadd.f32 %v17410_v49, %v9411_v61  ;;  %v9980_v30 = vld [vmem:[#allocation7 + $0x368] sm:$0xff]  ;;  %v9981_v49 = vld [vmem:[#allocation7 + $0x370] sm:$0xff] }
0x24d5   : > { %v9391_v11 = vpop.f32.mrf.mxu0  ;;  %v9605_v5 = vpop.f32.mrf.mxu1 }
0x24d6   : > { %v21484_v44 = vadd.f32 %v9605_v5, %v9410_v14  ;;  %v9414_v46 = vadd.f32 %v9391_v11, %v9180_v47  ;;  %v10209_v14 = vld [vmem:[#allocation7 + $0x380] sm:$0xff] }
0x24d7   : > { %v17389_v10 = vpop.f32.mrf.mxu0  ;;  %v17413_v62 = vpop.f32.mrf.mxu1 }
0x24d8   : > { %v9417_v15 = vadd.f32 %v17389_v10, %v21409_v21  ;;  %v21489_v59 = vadd.f32 %v17413_v62, %v9413_v52  ;;  %v9182_v21 = vadd.f32 %v21411_v32, %v8948_v34  ;;  %v9742_v32 = vld [vmem:[#allocation7 + $0x308] sm:$0xff] }
0x24d9   : > { %v9401_v58 = vpop.f32.mrf.mxu0  ;;  %v9615_v23 = vpop.f32.mrf.mxu1  ;;  %v9976_v52 = vld [vmem:[#allocation7 + $0x348] sm:$0xff] }
0x24da   : > { %v21493_v54 = vadd.f32 %v9615_v23, %v9412_v13  ;;  %v9416_v16 = vadd.f32 %v9401_v58, %v9182_v21 }
0x24db   : > { %v17416_v55 = vpop.f32.mrf.mxu1  ;;  %v17426_v42 = vpop.f32.mrf.mxu0 }
0x24dc   : > { %v21496_v39 = vadd.f32 %v17416_v55, %v9415_v12  ;;  %v10443_v12 = vld [vmem:[#allocation7 + $0x3c0] sm:$0xff] }
0x24dd   : > { %v9625_v40 = vpop.f32.mrf.mxu1  ;;  %v9721_v20 = vpop.f32.mrf.mxu0 }
0x24de   : > { %v21499_v53 = vadd.f32 %v9625_v40, %v9414_v46 }
0x24df   : > { %v17419_v51 = vpop.f32.mrf.mxu1  ;;  %v17429_v29 = vpop.f32.mrf.mxu0 }
0x24e0   : > { %v21501_v57 = vadd.f32 %v17419_v51, %v9417_v15  ;;  %17430 = vmatprep.subr.mxu0 %v17429_v29 }
0x24e1   : > { %v9635_v3 = vpop.f32.mrf.mxu1  ;;  %v9731_v61 = vpop.f32.mrf.mxu0  ;;  %17431 = vmatpush3.msra.mxu0 %v17429_v29 }
0x24e2   : > { %v21503_v4 = vadd.f32 %v9635_v3, %v9416_v16  ;;  %17432 = vmatprep.subr.mxu0 %v9731_v61 }
0x24e3   : > { %17433 = vmatpush3.msra.mxu0 %v9731_v61  ;;  %v17456_v7 = vpop.f32.mrf.mxu1 }
0x24e4   : > { %17434 = vmatprep.subr.mxu0 %v17426_v42 }
0x24e5   : > { %17435 = vmatpush3.msra.mxu0 %v17426_v42  ;;  %v9955_v25 = vpop.f32.mrf.mxu1 }
0x24e6   : > { %17436 = vmatprep.subr.mxu0 %v9721_v20 }
0x24e7   : > { %17437 = vmatpush3.msra.mxu0 %v9721_v20  ;;  %v17459_v43 = vpop.f32.mrf.mxu1 }
0x24e8   : > { %17439 = vmatmul.mubr.msk.f32.vlgmr.msra.gmra.mxu0 %vm7053_vm12, %v9742_v32  ;;  %17460 = vmatprep.subr.mxu1 %v17459_v43 }
0x24e9   : > { %v9965_v31 = vpop.f32.mrf.mxu1  ;;  %17461 = vmatpush3.msra.mxu1 %v17459_v43  ;;  %17441 = vmatprep.mubr.msk.f32.mxu0 %vm7053_vm12, %v9743_v18  ;;  %v10212_v18 = vld [vmem:[#allocation7 + $0x398] sm:$0xff]  ;;  %v10213_v43 = vld [vmem:[#allocation7 + $0x3a0] sm:$0xff] }
0x24ea   : > { %17462 = vmatprep.subr.mxu1 %v9965_v31  ;;  %17480 = vmatprep.subr.mxu0 %v10122_v9 }
0x24eb   : > { %17463 = vmatpush3.msra.mxu1 %v9965_v31  ;;  %17481 = vmatpush3.msra.mxu0 %v10122_v9  ;;  %v10214_v9 = vld [vmem:[#allocation7 + $0x3a8] sm:$0xff] }
0x24ec   : > { %17442 = vmatmul.mubr.msk.f32.gmra.mxu0 %vm7053_vm12, %v9744_v26  ;;  %17464 = vmatprep.subr.mxu1 %v17456_v7  ;;  %v10444_v31 = vld [vmem:[#allocation7 + $0x3c8] sm:$0xff]  ;;  %v10215_v26 = vld [vmem:[#allocation7 + $0x3b0] sm:$0xff] }
0x24ed   : > { %17465 = vmatpush3.msra.mxu1 %v17456_v7  ;;  %17444 = vmatprep.mubr.msk.f32.mxu0 %vm7053_vm12, %v9745_v33  ;;  %v10211_v7 = vld [vmem:[#allocation7 + $0x390] sm:$0xff] }
0x24ee   : > { %17466 = vmatprep.subr.mxu1 %v9955_v25  ;;  %17482 = vmatprep.subr.mxu0 %v10121_v35  ;;  %v10445_v33 = vld [vmem:[#allocation7 + $0x3d0] sm:$0xff] }
0x24ef   : > { %17467 = vmatpush3.msra.mxu1 %v9955_v25  ;;  %17483 = vmatpush3.msra.mxu0 %v10121_v35  ;;  %v10216_v35 = vld [vmem:[#allocation7 + $0x3b8] sm:$0xff] }
0x24f0   : > { %17445 = vmatmul.mubr.msk.f32.gmra.mxu0 %vm7053_vm12, %v9746_v22  ;;  %17469 = vmatmul.mubr.msk.f32.vlgmr.msra.gmra.mxu1 %vm7053_vm12, %v9976_v52  ;;  %v10446_v22 = vld [vmem:[#allocation7 + $0x3d8] sm:$0xff]  ;;  %v10447_v52 = vld [vmem:[#allocation7 + $0x3e0] sm:$0xff] }
0x24f1   : > { %17447 = vmatprep.mubr.msk.f32.mxu0 %vm7053_vm12, %v9747_v27  ;;  %17471 = vmatprep.mubr.msk.f32.mxu1 %vm7053_vm12, %v9977_v17  ;;  %v10448_v27 = vld [vmem:[#allocation7 + $0x3e8] sm:$0xff]  ;;  %v10449_v17 = vld [vmem:[#allocation7 + $0x3f0] sm:$0xff] }
0x24f2   : > { %17510 = vmatprep.subr.mxu1 %v10356_v38 }
0x24f3   : > { %17511 = vmatpush3.msra.mxu1 %v10356_v38  ;;  %v10450_v38 = vld [vmem:[#allocation7 + $0x3f8] sm:$0xff] }
0x24f4   : > { %17448 = vmatmul.mubr.msk.f32.gmra.mxu0 %vm7053_vm12, %v9748_v24  ;;  %17472 = vmatmul.mubr.msk.f32.gmra.mxu1 %vm7053_vm12, %v9978_v2 }
0x24f5   : > { %17484 = vmatprep.mubr.msk.f32.mxu0 %vm3901_vm7, %v21089_v63  ;;  %17474 = vmatprep.mubr.msk.f32.mxu1 %vm7053_vm12, %v9979_v41  ;;  %v10599_v41 = vpop.permute.xlu0 %10598 }
0x24f6   : > { %17512 = vmatprep.subr.mxu1 %v10355_v28 }
0x24f7   : > { %17513 = vmatpush3.msra.mxu1 %v10355_v28 }
0x24f8   : > { %17475 = vmatmul.mubr.msk.f32.gmra.mxu1 %vm7053_vm12, %v9980_v30  ;;  %17485 = vmatmul.mubr.msk.f32.vlgmr.msra.gmra.mxu0 %vm3901_vm7, %v21092_v45  ;;  %v10604_v30 = vpop.permute.xlu1 %10603 }
0x24f9   : > { %17487 = vmatprep.mubr.msk.f32.mxu0 %vm3901_vm7, %v21103_v48  ;;  %17477 = vmatprep.mubr.msk.f32.mxu1 %vm7053_vm12, %v9981_v49 }
0x24fc   : > { %17478 = vmatmul.mubr.msk.f32.gmra.mxu1 %vm7053_vm12, %v9982_v36  ;;  %17488 = vmatmul.mubr.msk.f32.gmra.mxu0 %vm3901_vm7, %v21105_v50 }
0x24fd   : > { %17514 = vmatprep.mubr.msk.f32.mxu1 %vm3901_vm7, %v21089_v63  ;;  %17498 = vmatprep.mubr.msk.f32.mxu0 %vm7053_vm12, %v10209_v14 }
0x2500   : > { %17515 = vmatmul.mubr.msk.f32.vlgmr.msra.gmra.mxu1 %vm3901_vm7, %v21092_v45 }
0x2501   : > { %17517 = vmatprep.mubr.msk.f32.mxu1 %vm3901_vm7, %v21103_v48 }
0x2504   : > { %17518 = vmatmul.mubr.msk.f32.gmra.mxu1 %vm3901_vm7, %v21105_v50 }
0x2505   : > { %17528 = vmatprep.mubr.msk.f32.mxu1 %vm7053_vm12, %v10443_v12 }
0x25a8   : > { %v17440_v6 = vpop.f32.mrf.mxu0 }
0x25a9   : > { %v9879_v11 = vadd.f32 %v17440_v6, %v21479_v8  ;;  %v10614_v6 = vpop.permute.xlu0 %10613 }
0x25aa   : > { %v9839_v5 = vpop.f32.mrf.mxu0 }
0x25ab   : > { %v9878_v63 = vadd.f32 %v9839_v5, %v21484_v44 }
0x25ac   : > { %v17443_v37 = vpop.f32.mrf.mxu0 }
0x25ad   : > { %v9881_v45 = vadd.f32 %v17443_v37, %v21489_v59 }
0x25ae   : > { %v9849_v60 = vpop.f32.mrf.mxu0 }
0x25af   : > { %v9880_v48 = vadd.f32 %v9849_v60, %v21493_v54 }
0x25b0   : > { %v17446_v0 = vpop.f32.mrf.mxu0  ;;  %v17470_v50 = vpop.f32.mrf.mxu1 }
0x25b1   : > { %v9883_v10 = vadd.f32 %v17446_v0, %v21496_v39  ;;  %v21542_v62 = vadd.f32 %v17470_v50, %v9879_v11 }
0x25b2   : > { %v9859_v19 = vpop.f32.mrf.mxu0  ;;  %v10073_v13 = vpop.f32.mrf.mxu1 }
0x25b3   : > { %v9882_v15 = vadd.f32 %v9859_v19, %v21499_v53  ;;  %v21545_v8 = vadd.f32 %v10073_v13, %v9878_v63 }
0x25b4   : > { %v17449_v58 = vpop.f32.mrf.mxu0  ;;  %v17473_v44 = vpop.f32.mrf.mxu1 }
0x25b5   : > { %v9885_v23 = vadd.f32 %v17449_v58, %v21501_v57  ;;  %v21548_v59 = vadd.f32 %v17473_v44, %v9881_v45  ;;  %v10609_v45 = vpop.permute.xlu1 %10608 }
0x25b6   : > { %v9869_v56 = vpop.f32.mrf.mxu0  ;;  %v10083_v47 = vpop.f32.mrf.mxu1 }
0x25b7   : > { %v9884_v54 = vadd.f32 %v9869_v56, %v21503_v4  ;;  %v21551_v55 = vadd.f32 %v10083_v47, %v9880_v48  ;;  %v10210_v4 = vld [vmem:[#allocation7 + $0x388] sm:$0xff]  ;;  %v10624_v47 = vpop.permute.xlu0 %10623 }
0x25b8   : > { %v17476_v42 = vpop.f32.mrf.mxu1  ;;  %v17486_v34 = vpop.f32.mrf.mxu0 }
0x25b9   : > { %v21553_v46 = vadd.f32 %v17476_v42, %v9883_v10 }
0x25ba   : > { %v10093_v39 = vpop.f32.mrf.mxu1  ;;  %v10189_v40 = vpop.f32.mrf.mxu0 }
0x25bb   : > { %v21555_v20 = vadd.f32 %v10093_v39, %v9882_v15 }
0x25bc   : > { %v17479_v21 = vpop.f32.mrf.mxu1  ;;  %v17489_v53 = vpop.f32.mrf.mxu0 }
0x25bd   : > { %v21557_v51 = vadd.f32 %v17479_v21, %v9885_v23  ;;  %17490 = vmatprep.subr.mxu0 %v17489_v53 }
0x25be   : > { %v10103_v29 = vpop.f32.mrf.mxu1  ;;  %v10199_v16 = vpop.f32.mrf.mxu0  ;;  %17491 = vmatpush3.msra.mxu0 %v17489_v53 }
0x25bf   : > { %v21559_v57 = vadd.f32 %v10103_v29, %v9884_v54  ;;  %17492 = vmatprep.subr.mxu0 %v10199_v16  ;;  %v10619_v54 = vpop.permute.xlu1 %10618 }
0x25c0   : > { %17493 = vmatpush3.msra.mxu0 %v10199_v16  ;;  %v17516_v3 = vpop.f32.mrf.mxu1 }
0x25c1   : > { %17494 = vmatprep.subr.mxu0 %v17486_v34 }
0x25c2   : > { %17495 = vmatpush3.msra.mxu0 %v17486_v34  ;;  %v10423_v61 = vpop.f32.mrf.mxu1 }
0x25c3   : > { %17496 = vmatprep.subr.mxu0 %v10189_v40 }
0x25c4   : > { %17497 = vmatpush3.msra.mxu0 %v10189_v40  ;;  %v17519_v25 = vpop.f32.mrf.mxu1 }
0x25c5   : > { %17499 = vmatmul.mubr.msk.f32.vlgmr.msra.gmra.mxu0 %vm7053_vm12, %v10210_v4  ;;  %17520 = vmatprep.subr.mxu1 %v17519_v25 }
0x25c6   : > { %v10433_v32 = vpop.f32.mrf.mxu1  ;;  %17521 = vmatpush3.msra.mxu1 %v17519_v25  ;;  %17501 = vmatprep.mubr.msk.f32.mxu0 %vm7053_vm12, %v10211_v7 }
0x25c7   : > { %17522 = vmatprep.subr.mxu1 %v10433_v32 }
0x25c8   : > { %17523 = vmatpush3.msra.mxu1 %v10433_v32 }
0x25c9   : > { %17502 = vmatmul.mubr.msk.f32.gmra.mxu0 %vm7053_vm12, %v10212_v18  ;;  %17524 = vmatprep.subr.mxu1 %v17516_v3 }
0x25ca   : > { %17525 = vmatpush3.msra.mxu1 %v17516_v3  ;;  %17504 = vmatprep.mubr.msk.f32.mxu0 %vm7053_vm12, %v10213_v43 }
0x25cb   : > { %17526 = vmatprep.subr.mxu1 %v10423_v61 }
0x25cc   : > { %17527 = vmatpush3.msra.mxu1 %v10423_v61 }
0x25cd   : > { %17505 = vmatmul.mubr.msk.f32.gmra.mxu0 %vm7053_vm12, %v10214_v9  ;;  %17529 = vmatmul.mubr.msk.f32.vlgmr.msra.gmra.mxu1 %vm7053_vm12, %v10444_v31  ;;  %v10629_v9 = vpop.permute.xlu1 %10628 }
0x25ce   : > { %17507 = vmatprep.mubr.msk.f32.mxu0 %vm7053_vm12, %v10215_v26  ;;  %17531 = vmatprep.mubr.msk.f32.mxu1 %vm7053_vm12, %v10445_v33 }
0x25d1   : > { %17508 = vmatmul.mubr.msk.f32.gmra.mxu0 %vm7053_vm12, %v10216_v35  ;;  %17532 = vmatmul.mubr.msk.f32.gmra.mxu1 %vm7053_vm12, %v10446_v22 }
0x25d2   : > { %17534 = vmatprep.mubr.msk.f32.mxu1 %vm7053_vm12, %v10447_v52 }
0x25d5   : > { %17535 = vmatmul.mubr.msk.f32.gmra.mxu1 %vm7053_vm12, %v10448_v27 }
0x25d6   : > { %17537 = vmatprep.mubr.msk.f32.mxu1 %vm7053_vm12, %v10449_v17 }
0x25d9   : > { %17538 = vmatmul.mubr.msk.f32.gmra.mxu1 %vm7053_vm12, %v10450_v38 }
0x2685   : > { %v17500_v24 = vpop.f32.mrf.mxu0 }
0x2686   : > { %v10347_v36 = vadd.f32 %v17500_v24, %v21542_v62 }
0x2687   : > { %v10307_v2 = vpop.f32.mrf.mxu0 }
0x2688   : > { %v10346_v11 = vadd.f32 %v10307_v2, %v21545_v8 }
0x2689   : > { %v17503_v28 = vpop.f32.mrf.mxu0 }
0x268a   : > { %v10349_v60 = vadd.f32 %v17503_v28, %v21548_v59 }
0x268b   : > { %v10317_v49 = vpop.f32.mrf.mxu0 }
0x268c   : > { %v10348_v10 = vadd.f32 %v10317_v49, %v21551_v55 }
0x268d   : > { %v17506_v14 = vpop.f32.mrf.mxu0  ;;  %v17530_v12 = vpop.f32.mrf.mxu1 }
0x268e   : > { %v10581_v5 = vadd.f32 %v17530_v12, %v10347_v36  ;;  %v10351_v8 = vadd.f32 %v17506_v14, %v21553_v46 }
0x268f   : > { %v10327_v63 = vpop.f32.mrf.mxu0  ;;  %v10541_v37 = vpop.f32.mrf.mxu1 }
0x2690   : > { %v10580_v48 = vadd.f32 %v10541_v37, %v10346_v11  ;;  %v10637_v0 = vadd.f32 %v10604_v30, %v10581_v5  ;;  %v10350_v42 = vadd.f32 %v10327_v63, %v21555_v20  ;;  %v10634_v20 = vpop.permute.xlu0 %10633 }
0x2691   : > { %v17533_v50 = vpop.f32.mrf.mxu1  ;;  %v17509_v15 = vpop.f32.mrf.mxu0 }
0x2692   : > { %v10583_v19 = vadd.f32 %v17533_v50, %v10349_v60  ;;  %v10648_v62 = vsel %vm10644_vm13, %v10637_v0, 0.0  ;;  %v10636_v13 = vadd.f32 %v10599_v41, %v10580_v48  ;;  %v10353_v39 = vadd.f32 %v17509_v15, %v21557_v51 }
0x2693   : > { %v10551_v58 = vpop.f32.mrf.mxu1  ;;  %10649 = vadd.xlane.f32.xlu0 %v10648_v62  ;;  %v10337_v40 = vpop.f32.mrf.mxu0 }
0x2694   : > { %v10582_v44 = vadd.f32 %v10551_v58, %v10348_v10  ;;  %v10645_v23 = vsel %vm10644_vm13, %v10636_v13, 0.0  ;;  %v10639_v56 = vadd.f32 %v10614_v6, %v10583_v19  ;;  %v10352_v61 = vadd.f32 %v10337_v40, %v21559_v57  ;;  %v10911_v40 = vld [vmem:[#allocation8 + $0x10] sm:$0xff] }
0x2695   : > { %v17536_v59 = vpop.f32.mrf.mxu1  ;;  %10646 = vadd.xlane.f32.xlu1 %v10645_v23 }
0x2696   : > { %v10585_v55 = vadd.f32 %v17536_v59, %v10351_v8  ;;  %v10638_v34 = vadd.f32 %v10609_v45, %v10582_v44  ;;  %v10654_v29 = vsel %vm10644_vm13, %v10639_v56, 0.0 }
0x2697   : > { %v10561_v21 = vpop.f32.mrf.mxu1 }
0x2698   : > { %v10584_v53 = vadd.f32 %v10561_v21, %v10350_v42  ;;  %v10651_v46 = vsel %vm10644_vm13, %v10638_v34, 0.0  ;;  %v10641_v16 = vadd.f32 %v10624_v47, %v10585_v55  ;;  %v10912_v55 = vld [vmem:[#allocation8 + $0x18] sm:$0x1]  ;;  %v10774_v21 = vld [vmem:[#allocation8] sm:$0xff] }
0x2699   : > { %v17539_v3 = vpop.f32.mrf.mxu1  ;;  %10655 = vadd.xlane.f32.xlu1 %v10654_v29  ;;  %10652 = vadd.xlane.f32.xlu0 %v10651_v46 }
0x269a   : > { %v10587_v4 = vadd.f32 %v17539_v3, %v10353_v39  ;;  %v10640_v7 = vadd.f32 %v10619_v54, %v10584_v53  ;;  %v10660_v51 = vsel %vm10644_vm13, %v10641_v16, 0.0  ;;  %v13787_v39 = vld [vmem:[#allocation2] sm:$0x1]  ;;  %17556 = vmatprep.subr.msk.mxu1 %vm10800_vm14, %v10912_v55 }
0x269b   : > { %v10571_v25 = vpop.f32.mrf.mxu1  ;;  %17557 = vmatpush3.msk.msra.mxu1 %vm10800_vm14, %v10912_v55 }
0x269c   : > { %v10586_v32 = vadd.f32 %v10571_v25, %v10352_v61  ;;  %v10657_v18 = vsel %vm10644_vm13, %v10640_v7, 0.0  ;;  %v10643_v43 = vadd.f32 %v10634_v20, %v10587_v4  ;;  %17558 = vmatprep.subr.mxu1 %v10911_v40 }
0x269d   : > { %10661 = vadd.xlane.f32.xlu1 %v10660_v51  ;;  %10658 = vadd.xlane.f32.xlu0 %v10657_v18 }
0x269e   : > { %v10642_v31 = vadd.f32 %v10629_v9, %v10586_v32  ;;  %v10666_v26 = vsel %vm10644_vm13, %v10643_v43, 0.0  ;;  %17559 = vmatpush3.msra.mxu1 %v10911_v40 }
0x269f   : > { %17591 = vmatprep.subr.mxu1 %v18315_v1 }
0x26a0   : > { %v10663_v33 = vsel %vm10644_vm13, %v10642_v31, 0.0 }
0x26a1   : > { %10667 = vadd.xlane.f32.xlu1 %v10666_v26  ;;  %10664 = vadd.xlane.f32.xlu0 %v10663_v33 }
0x271c   : > { %v10650_v57 = vpop.xlane.xlu0 %10649 }
0x271d   : > { %v10671_v35 = vmul.f32 0.11111111, %v10650_v57 }
0x271e   : > { %v10647_v22 = vpop.xlane.xlu1 %10646 }
0x271f   : > { %v21591_v52 = vsub.f32 %v10637_v0, %v10671_v35  ;;  %v10670_v27 = vmul.f32 0.11111111, %v10647_v22 }
0x2721   : > { %v21593_v17 = vsub.f32 %v10636_v13, %v10670_v27  ;;  %v10687_v38 = vmul.f32 %v21591_v52, %v21591_v52 }
0x2722   : > { %v10653_v24 = vpop.xlane.xlu0 %10652  ;;  %v10656_v2 = vpop.xlane.xlu1 %10655 }
0x2723   : > { %v10672_v41 = vmul.f32 0.11111111, %v10653_v24  ;;  %v10673_v28 = vmul.f32 0.11111111, %v10656_v2  ;;  %v10697_v30 = vsel %vm10644_vm13, %v10687_v38, 0.0  ;;  %v10686_v49 = vmul.f32 %v21593_v17, %v21593_v17 }
0x2724   : > { %10698 = vadd.xlane.f32.xlu1 %v10697_v30 }
0x2725   : > { %v21600_v36 = vsub.f32 %v10638_v34, %v10672_v41  ;;  %v21602_v14 = vsub.f32 %v10639_v56, %v10673_v28  ;;  %v10694_v12 = vsel %vm10644_vm13, %v10686_v49, 0.0  ;;  %v10775_v34 = vld [vmem:[#allocation8 + $0x8] sm:$0x1] }
0x2726   : > { %v10659_v6 = vpop.xlane.xlu0 %10658  ;;  %10695 = vadd.xlane.f32.xlu0 %v10694_v12  ;;  %v10662_v11 = vpop.xlane.xlu1 %10661  ;;  %17540 = vmatprep.subr.msk.mxu0 %vm10800_vm14, %v10775_v34 }
0x2727   : > { %v10674_v5 = vmul.f32 0.11111111, %v10659_v6  ;;  %v10675_v63 = vmul.f32 0.11111111, %v10662_v11  ;;  %v10688_v37 = vmul.f32 %v21600_v36, %v21600_v36  ;;  %v10689_v45 = vmul.f32 %v21602_v14, %v21602_v14  ;;  %17541 = vmatpush3.msk.msra.mxu0 %vm10800_vm14, %v10775_v34 }
0x2728   : > { %17542 = vmatprep.subr.mxu0 %v10774_v21 }
0x2729   : > { %v21609_v60 = vsub.f32 %v10640_v7, %v10674_v5  ;;  %v21611_v48 = vsub.f32 %v10641_v16, %v10675_v63  ;;  %v10700_v0 = vsel %vm10644_vm13, %v10688_v37, 0.0  ;;  %v10703_v50 = vsel %vm10644_vm13, %v10689_v45, 0.0  ;;  %17543 = vmatpush3.msra.mxu0 %v10774_v21 }
0x272a   : > { %v10665_v10 = vpop.xlane.xlu0 %10664  ;;  %10701 = vadd.xlane.f32.xlu0 %v10700_v0  ;;  %10704 = vadd.xlane.f32.xlu1 %v10703_v50  ;;  %v10668_v19 = vpop.xlane.xlu1 %10667 }
0x272b   : > { %v10676_v62 = vmul.f32 0.11111111, %v10665_v10  ;;  %v10677_v13 = vmul.f32 0.11111111, %v10668_v19  ;;  %v10690_v15 = vmul.f32 %v21609_v60, %v21609_v60  ;;  %v10691_v58 = vmul.f32 %v21611_v48, %v21611_v48  ;;  %17572 = vmatprep.subr.mxu0 %v18315_v1 }
0x272d   : > { %v21619_v8 = vsub.f32 %v10642_v31, %v10676_v62  ;;  %v21621_v44 = vsub.f32 %v10643_v43, %v10677_v13  ;;  %v10706_v23 = vsel %vm10644_vm13, %v10690_v15, 0.0  ;;  %v10709_v56 = vsel %vm10644_vm13, %v10691_v58, 0.0 }
0x272e   : > { %10707 = vadd.xlane.f32.xlu0 %v10706_v23  ;;  %10710 = vadd.xlane.f32.xlu1 %v10709_v56 }
0x272f   : > { %v10692_v47 = vmul.f32 %v21619_v8, %v21619_v8  ;;  %v10693_v59 = vmul.f32 %v21621_v44, %v21621_v44 }
0x2731   : > { %v10712_v54 = vsel %vm10644_vm13, %v10692_v47, 0.0  ;;  %v10715_v42 = vsel %vm10644_vm13, %v10693_v59, 0.0 }
0x2732   : > { %10713 = vadd.xlane.f32.xlu0 %v10712_v54  ;;  %10716 = vadd.xlane.f32.xlu1 %v10715_v42 }
0x2748   : > { %13790 = vperm.xlu0 %18155, %v13787_v39  }
0x27ad   : > { %v10699_v53 = vpop.xlane.xlu1 %10698 }
0x27ae   : > { %v10719_v29 = vmul.f32 0.11111111, %v10699_v53 }
0x27af   : > { %v10696_v46 = vpop.xlane.xlu0 %10695 }
0x27b0   : > { %v10727_v16 = vadd.f32 1e-05, %v10719_v29  ;;  %v10718_v3 = vmul.f32 0.11111111, %v10696_v46 }
0x27b2   : > { %18169 = vrsqrt.f32 %v10727_v16  ;;  %v10726_v61 = vadd.f32 1e-05, %v10718_v3 }
0x27b3   : > { %v10702_v4 = vpop.xlane.xlu0 %10701  ;;  %v10705_v7 = vpop.xlane.xlu1 %10704 }
0x27b4   : > { %18171 = vrsqrt.f32 %v10726_v61  ;;  %v10720_v20 = vmul.f32 0.11111111, %v10702_v4  ;;  %v10721_v25 = vmul.f32 0.11111111, %v10705_v7 }
0x27b6   : > { %v10728_v32 = vadd.f32 1e-05, %v10720_v20  ;;  %v10729_v51 = vadd.f32 1e-05, %v10721_v25  ;;  %v14901_v25 = vld [vmem:[%s22205_s13 + $0x1] sm:$0x1] }
0x27b7   : > { %v10708_v18 = vpop.xlane.xlu0 %10707  ;;  %v10711_v43 = vpop.xlane.xlu1 %10710 }
0x27b8   : > { %18173 = vrsqrt.f32 %v10728_v32  ;;  %v10722_v9 = vmul.f32 0.11111111, %v10708_v18  ;;  %v10723_v31 = vmul.f32 0.11111111, %v10711_v43  ;;  %v10909_v32 = vld [vmem:[%s22205_s13] sm:$0x1] }
0x27b9   : > { %18175 = vrsqrt.f32 %v10729_v51  ;;  %v11171_v51 = vld [vmem:[#allocation8 + $0x28] sm:$0x1]  ;;  %v11358_v18 = vld [vmem:[#allocation8 + $0x38] sm:$0x1]  ;;  %v11170_v43 = vld [vmem:[#allocation8 + $0x20] sm:$0xff] }
0x27ba   : > { %v10730_v26 = vadd.f32 1e-05, %v10722_v9  ;;  %v10731_v33 = vadd.f32 1e-05, %v10723_v31  ;;  %v11357_v9 = vld [vmem:[#allocation8 + $0x30] sm:$0xff] }
0x27bb   : > { %v10714_v57 = vpop.xlane.xlu0 %10713  ;;  %v10717_v35 = vpop.xlane.xlu1 %10716 }
0x27bc   : > { %18177 = vrsqrt.f32 %v10730_v26  ;;  %v10724_v22 = vmul.f32 0.11111111, %v10714_v57  ;;  %v10725_v27 = vmul.f32 0.11111111, %v10717_v35 }
0x27bd   : > { %18179 = vrsqrt.f32 %v10731_v33 }
0x27be   : > { %v10732_v38 = vadd.f32 1e-05, %v10724_v22  ;;  %v10733_v24 = vadd.f32 1e-05, %v10725_v27 }
0x27bf   : > { %v18170_v2 = vpop.eup %18169 }
0x27c0   : > { %v10743_v41 = vmul.f32 %v18170_v2, %v21591_v52  ;;  %18181 = vrsqrt.f32 %v10732_v38 }
0x27c1   : > { %v18172_v28 = vpop.eup %18171  ;;  %18183 = vrsqrt.f32 %v10733_v24 }
0x27c2   : > { %v10742_v30 = vmul.f32 %v18172_v28, %v21593_v17  ;;  %v10759_v49 = vmul.f32 0.2, %v10743_v41  ;;  %vm10751_vm15 = vcmp.gt.f32.partialorder %v10743_v41, 0.0 }
0x27c4   : > { %vm10750_vm0 = vcmp.gt.f32.partialorder %v10742_v30, 0.0  ;;  %v10758_v12 = vmul.f32 0.2, %v10742_v30  ;;  %v21642_v37 = vsel %vm10751_vm15, %v10743_v41, %v10759_v49 }
0x27c5   : > { %v18174_v6 = vpop.eup %18173 }
0x27c6   : > { %v18176_v11 = vpop.eup %18175  ;;  %v21639_v5 = vsel %vm10750_vm0, %v10742_v30, %v10758_v12  ;;  %v10744_v63 = vmul.f32 %v18174_v6, %v21600_v36 }
0x27c7   : > { %v10745_v45 = vmul.f32 %v18176_v11, %v21602_v14  ;;  %17544 = vmatprep.mubr.msk.f32.mxu0 %vm10644_vm13, %v21639_v5  ;;  %17560 = vmatprep.mubr.msk.f32.mxu1 %vm10644_vm13, %v21639_v5 }
0x27c8   : > { %vm10752_vm1 = vcmp.gt.f32.partialorder %v10744_v63, 0.0  ;;  %v10760_v52 = vmul.f32 0.2, %v10744_v63  ;;  %17545 = vmatmul.mubr.msk.f32.vlgmr.msra.gmra.mxu0 %vm10644_vm13, %v21642_v37  ;;  %17561 = vmatmul.mubr.msk.f32.vlgmr.msra.gmra.mxu1 %vm10644_vm13, %v21642_v37 }
0x27c9   : > { %v18178_v17 = vpop.eup %18177  ;;  %vm10753_vm2 = vcmp.gt.f32.partialorder %v10745_v45, 0.0  ;;  %v10761_v36 = vmul.f32 0.2, %v10745_v45 }
0x27ca   : > { %v18180_v0 = vpop.eup %18179  ;;  %v21653_v50 = vsel %vm10752_vm1, %v10744_v63, %v10760_v52  ;;  %v10746_v14 = vmul.f32 %v18178_v17, %v21609_v60 }
0x27cb   : > { %v21656_v10 = vsel %vm10753_vm2, %v10745_v45, %v10761_v36  ;;  %v10747_v19 = vmul.f32 %v18180_v0, %v21611_v48  ;;  %17547 = vmatprep.mubr.msk.f32.mxu0 %vm10644_vm13, %v21653_v50  ;;  %17563 = vmatprep.mubr.msk.f32.mxu1 %vm10644_vm13, %v21653_v50  ;;  %v14913_v36 = vld [vmem:[%s22205_s13 + $0x2] sm:$0x1]  ;;  %v14924_v0 = vld [vmem:[%s22205_s13 + $0x3] sm:$0x1] }
0x27cc   : > { %vm10754_vm3 = vcmp.gt.f32.partialorder %v10746_v14, 0.0  ;;  %v10762_v62 = vmul.f32 0.2, %v10746_v14  ;;  %17548 = vmatmul.mubr.msk.f32.gmra.mxu0 %vm10644_vm13, %v21656_v10  ;;  %17564 = vmatmul.mubr.msk.f32.gmra.mxu1 %vm10644_vm13, %v21656_v10 }
0x27cd   : > { %v18182_v13 = vpop.eup %18181  ;;  %vm10755_vm5 = vcmp.gt.f32.partialorder %v10747_v19, 0.0  ;;  %v10763_v60 = vmul.f32 0.2, %v10747_v19 }
0x27ce   : > { %v18184_v15 = vpop.eup %18183  ;;  %v21667_v58 = vsel %vm10754_vm3, %v10746_v14, %v10762_v62  ;;  %v10748_v48 = vmul.f32 %v18182_v13, %v21619_v8  ;;  %v11545_v14 = vld [vmem:[#allocation8 + $0x48] sm:$0x1]  ;;  %v11544_v62 = vld [vmem:[#allocation8 + $0x40] sm:$0xff]  ;;  %v11731_v13 = vld [vmem:[#allocation8 + $0x50] sm:$0xff] }
0x27cf   : > { %v21670_v23 = vsel %vm10755_vm5, %v10747_v19, %v10763_v60  ;;  %v10749_v56 = vmul.f32 %v18184_v15, %v21621_v44  ;;  %17550 = vmatprep.mubr.msk.f32.mxu0 %vm10644_vm13, %v21667_v58  ;;  %17566 = vmatprep.mubr.msk.f32.mxu1 %vm10644_vm13, %v21667_v58  ;;  %v11732_v19 = vld [vmem:[#allocation8 + $0x58] sm:$0x1] }
0x27d0   : > { %vm10756_vm6 = vcmp.gt.f32.partialorder %v10748_v48, 0.0  ;;  %v10764_v47 = vmul.f32 0.2, %v10748_v48  ;;  %17551 = vmatmul.mubr.msk.f32.gmra.mxu0 %vm10644_vm13, %v21670_v23  ;;  %17567 = vmatmul.mubr.msk.f32.gmra.mxu1 %vm10644_vm13, %v21670_v23 }
0x27d1   : > { %vm10757_vm7 = vcmp.gt.f32.partialorder %v10749_v56, 0.0  ;;  %v10765_v8 = vmul.f32 0.2, %v10749_v56 }
0x27d2   : > { %v21681_v59 = vsel %vm10756_vm6, %v10748_v48, %v10764_v47 }
0x27d3   : > { %v21683_v54 = vsel %vm10757_vm7, %v10749_v56, %v10765_v8  ;;  %17553 = vmatprep.mubr.msk.f32.mxu0 %vm10644_vm13, %v21681_v59  ;;  %17569 = vmatprep.mubr.msk.f32.mxu1 %vm10644_vm13, %v21681_v59 }
0x27d4   : > { %17554 = vmatmul.mubr.msk.f32.gmra.mxu0 %vm10644_vm13, %v21683_v54  ;;  %17570 = vmatmul.mubr.msk.f32.gmra.mxu1 %vm10644_vm13, %v21683_v54 }
0x27d5   : > { %17588 = vmatprep.mubr.msk.f32.mxu0 %vm18317_vm8, %v18315_v1  ;;  %17607 = vmatprep.mubr.msk.f32.mxu1 %vm18317_vm8, %v18315_v1 }
0x2888   : > { %v17546_v44 = vpop.f32.mrf.mxu0  ;;  %v17562_v42 = vpop.f32.mrf.mxu1 }
0x288a   : > { %v10870_v55 = vpop.f32.mrf.mxu0  ;;  %v10982_v34 = vpop.f32.mrf.mxu1 }
0x288c   : > { %v17549_v39 = vpop.f32.mrf.mxu0  ;;  %v17565_v40 = vpop.f32.mrf.mxu1 }
0x288e   : > { %v10880_v21 = vpop.f32.mrf.mxu0  ;;  %v10992_v53 = vpop.f32.mrf.mxu1 }
0x2890   : > { %v17552_v29 = vpop.f32.mrf.mxu0  ;;  %v17568_v46 = vpop.f32.mrf.mxu1 }
0x2892   : > { %v10890_v16 = vpop.f32.mrf.mxu0  ;;  %v11002_v3 = vpop.f32.mrf.mxu1 }
0x2894   : > { %v17555_v61 = vpop.f32.mrf.mxu0  ;;  %v17571_v4 = vpop.f32.mrf.mxu1 }
0x2895   : > { %17573 = vmatpush3.msra.mxu0 %v17571_v4  ;;  %17592 = vmatpush3.msra.mxu1 %v17555_v61 }
0x2896   : > { %v10900_v7 = vpop.f32.mrf.mxu0  ;;  %v11012_v20 = vpop.f32.mrf.mxu1  ;;  %17574 = vmatprep.subr.mxu0 %v18315_v1  ;;  %17593 = vmatprep.subr.mxu1 %v18315_v1 }
0x2897   : > { %17575 = vmatpush3.msra.mxu0 %v11012_v20  ;;  %17594 = vmatpush3.msra.mxu1 %v10900_v7 }
0x2898   : > { %17576 = vmatprep.subr.mxu0 %v18315_v1  ;;  %17595 = vmatprep.subr.mxu1 %v18315_v1 }
0x2899   : > { %17577 = vmatpush3.msra.mxu0 %v17568_v46  ;;  %17596 = vmatpush3.msra.mxu1 %v17552_v29 }
0x289a   : > { %17578 = vmatprep.subr.mxu0 %v18315_v1  ;;  %17597 = vmatprep.subr.mxu1 %v18315_v1 }
0x289b   : > { %17579 = vmatpush3.msra.mxu0 %v11002_v3  ;;  %17598 = vmatpush3.msra.mxu1 %v10890_v16 }
0x289c   : > { %17580 = vmatprep.subr.mxu0 %v18315_v1  ;;  %17599 = vmatprep.subr.mxu1 %v18315_v1 }
0x289d   : > { %17581 = vmatpush3.msra.mxu0 %v17565_v40  ;;  %17600 = vmatpush3.msra.mxu1 %v17549_v39 }
0x289e   : > { %17582 = vmatprep.subr.mxu0 %v18315_v1  ;;  %17601 = vmatprep.subr.mxu1 %v18315_v1 }
0x289f   : > { %17583 = vmatpush3.msra.mxu0 %v10992_v53  ;;  %17602 = vmatpush3.msra.mxu1 %v10880_v21 }
0x28a0   : > { %17584 = vmatprep.subr.mxu0 %v18315_v1  ;;  %17603 = vmatprep.subr.mxu1 %v18315_v1 }
0x28a1   : > { %17585 = vmatpush3.msra.mxu0 %v17562_v42  ;;  %17604 = vmatpush3.msra.mxu1 %v17546_v44 }
0x28a2   : > { %17586 = vmatprep.subr.mxu0 %v18315_v1  ;;  %17605 = vmatprep.subr.mxu1 %v18315_v1 }
0x28a3   : > { %17587 = vmatpush3.msra.mxu0 %v10982_v34  ;;  %17606 = vmatpush3.msra.mxu1 %v10870_v55 }
0x28a4   : > { %17589 = vmatmul.mubr.msk.f32.vlgmr.msra.gmra.mxu0 %vm3685_vm4, %v14901_v25  ;;  %17608 = vmatmul.mubr.msk.f32.vlgmr.msra.gmra.mxu1 %vm3685_vm4, %v10909_v32  ;;  %v14935_v25 = vld [vmem:[%s22205_s13 + $0x4] sm:$0x1]  ;;  %v14946_v32 = vld [vmem:[%s22205_s13 + $0x5] sm:$0x1] }
0x28a5   : > { %17610 = vmatprep.subr.msk.mxu0 %vm10800_vm14, %v11171_v51  ;;  %17645 = vmatprep.subr.msk.mxu1 %vm10800_vm14, %v11358_v18 }
0x28a6   : > { %17611 = vmatpush3.msk.msra.mxu0 %vm10800_vm14, %v11171_v51  ;;  %17614 = vmatprep.mubr.msk.f32.mxu0 %vm10644_vm13, %v21639_v5  ;;  %v11919_v51 = vld [vmem:[#allocation8 + $0x68] sm:$0x1] }
0x28a7   : > { %17646 = vmatpush3.msk.msra.mxu1 %vm10800_vm14, %v11358_v18  ;;  %17649 = vmatprep.mubr.msk.f32.mxu1 %vm10644_vm13, %v21639_v5  ;;  %v12106_v18 = vld [vmem:[#allocation8 + $0x78] sm:$0x1] }
0x28a8   : > { %17612 = vmatprep.subr.mxu0 %v11170_v43  ;;  %17647 = vmatprep.subr.mxu1 %v11357_v9 }
0x28a9   : > { %17613 = vmatpush3.msra.mxu0 %v11170_v43  ;;  %17648 = vmatpush3.msra.mxu1 %v11357_v9  ;;  %v11918_v43 = vld [vmem:[#allocation8 + $0x60] sm:$0xff]  ;;  %v12105_v9 = vld [vmem:[#allocation8 + $0x70] sm:$0xff] }
0x28aa   : > { %17615 = vmatmul.mubr.msk.f32.vlgmr.msra.gmra.mxu0 %vm10644_vm13, %v21642_v37  ;;  %17650 = vmatmul.mubr.msk.f32.vlgmr.msra.gmra.mxu1 %vm10644_vm13, %v21642_v37 }
0x28ab   : > { %17617 = vmatprep.mubr.msk.f32.mxu0 %vm10644_vm13, %v21653_v50  ;;  %17652 = vmatprep.mubr.msk.f32.mxu1 %vm10644_vm13, %v21653_v50 }
0x28ac   : > { %17626 = vmatprep.subr.mxu0 %v18315_v1  ;;  %17661 = vmatprep.subr.mxu1 %v18315_v1 }
0x28ae   : > { %17618 = vmatmul.mubr.msk.f32.gmra.mxu0 %vm10644_vm13, %v21656_v10  ;;  %17653 = vmatmul.mubr.msk.f32.gmra.mxu1 %vm10644_vm13, %v21656_v10 }
0x28af   : > { %17620 = vmatprep.mubr.msk.f32.mxu0 %vm10644_vm13, %v21667_v58  ;;  %17655 = vmatprep.mubr.msk.f32.mxu1 %vm10644_vm13, %v21667_v58 }
0x28b2   : > { %17621 = vmatmul.mubr.msk.f32.gmra.mxu0 %vm10644_vm13, %v21670_v23  ;;  %17656 = vmatmul.mubr.msk.f32.gmra.mxu1 %vm10644_vm13, %v21670_v23 }
0x28b3   : > { %17623 = vmatprep.mubr.msk.f32.mxu0 %vm10644_vm13, %v21681_v59  ;;  %17658 = vmatprep.mubr.msk.f32.mxu1 %vm10644_vm13, %v21681_v59 }
0x28b6   : > { %17624 = vmatmul.mubr.msk.f32.gmra.mxu0 %vm10644_vm13, %v21683_v54  ;;  %17659 = vmatmul.mubr.msk.f32.gmra.mxu1 %vm10644_vm13, %v21683_v54 }
0x28b7   : > { %17642 = vmatprep.mubr.msk.f32.mxu0 %vm18317_vm8, %v18315_v1  ;;  %17677 = vmatprep.mubr.msk.f32.mxu1 %vm18317_vm8, %v18315_v1 }
0x2964   : > { %v11092_v31 = vpop.f32.mrf.mxu0  ;;  %v11165_v26 = vpop.f32.mrf.mxu1 }
0x2965   : > { %v21761_v33 = vadd.f32 %v11165_v26, %v11092_v31 }
0x2966   : > { %v17590_v57 = vpop.f32.mrf.mxu0  ;;  %v17609_v35 = vpop.f32.mrf.mxu1 }
0x296a   : > { %v17616_v22 = vpop.f32.mrf.mxu0  ;;  %v17651_v27 = vpop.f32.mrf.mxu1 }
0x296c   : > { %v11241_v38 = vpop.f32.mrf.mxu0  ;;  %v11428_v24 = vpop.f32.mrf.mxu1 }
0x296e   : > { %v17619_v2 = vpop.f32.mrf.mxu0  ;;  %v17654_v41 = vpop.f32.mrf.mxu1 }
0x2970   : > { %v11251_v28 = vpop.f32.mrf.mxu0  ;;  %v11438_v30 = vpop.f32.mrf.mxu1 }
0x2972   : > { %v17622_v49 = vpop.f32.mrf.mxu0  ;;  %v17657_v12 = vpop.f32.mrf.mxu1 }
0x2974   : > { %v11261_v6 = vpop.f32.mrf.mxu0  ;;  %v11448_v11 = vpop.f32.mrf.mxu1 }
0x2976   : > { %v17625_v63 = vpop.f32.mrf.mxu0  ;;  %v17660_v45 = vpop.f32.mrf.mxu1 }
0x2977   : > { %17627 = vmatpush3.msra.mxu0 %v17625_v63  ;;  %17662 = vmatpush3.msra.mxu1 %v17660_v45 }
0x2978   : > { %v11271_v52 = vpop.f32.mrf.mxu0  ;;  %17628 = vmatprep.subr.mxu0 %v18315_v1  ;;  %v11458_v17 = vpop.f32.mrf.mxu1  ;;  %17663 = vmatprep.subr.mxu1 %v18315_v1 }
0x2979   : > { %17629 = vmatpush3.msra.mxu0 %v11271_v52  ;;  %17664 = vmatpush3.msra.mxu1 %v11458_v17 }
0x297a   : > { %17630 = vmatprep.subr.mxu0 %v18315_v1  ;;  %17665 = vmatprep.subr.mxu1 %v18315_v1 }
0x297b   : > { %17631 = vmatpush3.msra.mxu0 %v17622_v49  ;;  %17666 = vmatpush3.msra.mxu1 %v17657_v12 }
0x297c   : > { %17632 = vmatprep.subr.mxu0 %v18315_v1  ;;  %17667 = vmatprep.subr.mxu1 %v18315_v1 }
0x297d   : > { %17633 = vmatpush3.msra.mxu0 %v11261_v6  ;;  %17668 = vmatpush3.msra.mxu1 %v11448_v11 }
0x297e   : > { %17634 = vmatprep.subr.mxu0 %v18315_v1  ;;  %17669 = vmatprep.subr.mxu1 %v18315_v1 }
0x297f   : > { %17635 = vmatpush3.msra.mxu0 %v17619_v2  ;;  %17670 = vmatpush3.msra.mxu1 %v17654_v41 }
0x2980   : > { %17636 = vmatprep.subr.mxu0 %v18315_v1  ;;  %17671 = vmatprep.subr.mxu1 %v18315_v1 }
0x2981   : > { %17637 = vmatpush3.msra.mxu0 %v11251_v28  ;;  %17672 = vmatpush3.msra.mxu1 %v11438_v30 }
0x2982   : > { %17638 = vmatprep.subr.mxu0 %v18315_v1  ;;  %17673 = vmatprep.subr.mxu1 %v18315_v1 }
0x2983   : > { %17639 = vmatpush3.msra.mxu0 %v17616_v22  ;;  %17674 = vmatpush3.msra.mxu1 %v17651_v27 }
0x2984   : > { %17640 = vmatprep.subr.mxu0 %v18315_v1  ;;  %17675 = vmatprep.subr.mxu1 %v18315_v1 }
0x2985   : > { %17641 = vmatpush3.msra.mxu0 %v11241_v38  ;;  %17676 = vmatpush3.msra.mxu1 %v11428_v24 }
0x2986   : > { %17643 = vmatmul.mubr.msk.f32.vlgmr.msra.gmra.mxu0 %vm3685_vm4, %v14913_v36  ;;  %17678 = vmatmul.mubr.msk.f32.vlgmr.msra.gmra.mxu1 %vm3685_vm4, %v14924_v0  ;;  %v14957_v0 = vld [vmem:[%s22205_s13 + $0x6] sm:$0x1] }
0x2987   : > { %17680 = vmatprep.subr.msk.mxu0 %vm10800_vm14, %v11545_v14  ;;  %17715 = vmatprep.subr.msk.mxu1 %vm10800_vm14, %v11732_v19 }
0x2988   : > { %17681 = vmatpush3.msk.msra.mxu0 %vm10800_vm14, %v11545_v14  ;;  %17684 = vmatprep.mubr.msk.f32.mxu0 %vm10644_vm13, %v21639_v5  ;;  %v14968_v14 = vld [vmem:[%s22205_s13 + $0x7] sm:$0x1] }
0x2989   : > { %17716 = vmatpush3.msk.msra.mxu1 %vm10800_vm14, %v11732_v19  ;;  %17719 = vmatprep.mubr.msk.f32.mxu1 %vm10644_vm13, %v21639_v5  ;;  %v12293_v19 = vld [vmem:[#allocation8 + $0x88] sm:$0x1] }
0x298a   : > { %17682 = vmatprep.subr.mxu0 %v11544_v62  ;;  %17717 = vmatprep.subr.mxu1 %v11731_v13 }
0x298b   : > { %17683 = vmatpush3.msra.mxu0 %v11544_v62  ;;  %17718 = vmatpush3.msra.mxu1 %v11731_v13  ;;  %v12480_v62 = vld [vmem:[#allocation8 + $0x98] sm:$0x1]  ;;  %v12292_v13 = vld [vmem:[#allocation8 + $0x80] sm:$0xff] }
0x298c   : > { %17685 = vmatmul.mubr.msk.f32.vlgmr.msra.gmra.mxu0 %vm10644_vm13, %v21642_v37  ;;  %17720 = vmatmul.mubr.msk.f32.vlgmr.msra.gmra.mxu1 %vm10644_vm13, %v21642_v37 }
0x298d   : > { %17687 = vmatprep.mubr.msk.f32.mxu0 %vm10644_vm13, %v21653_v50  ;;  %17722 = vmatprep.mubr.msk.f32.mxu1 %vm10644_vm13, %v21653_v50 }
0x298e   : > { %17696 = vmatprep.subr.mxu0 %v18315_v1  ;;  %17731 = vmatprep.subr.mxu1 %v18315_v1 }
0x2990   : > { %17688 = vmatmul.mubr.msk.f32.gmra.mxu0 %vm10644_vm13, %v21656_v10  ;;  %17723 = vmatmul.mubr.msk.f32.gmra.mxu1 %vm10644_vm13, %v21656_v10 }
0x2991   : > { %17690 = vmatprep.mubr.msk.f32.mxu0 %vm10644_vm13, %v21667_v58  ;;  %17725 = vmatprep.mubr.msk.f32.mxu1 %vm10644_vm13, %v21667_v58 }
0x2994   : > { %17691 = vmatmul.mubr.msk.f32.gmra.mxu0 %vm10644_vm13, %v21670_v23  ;;  %17726 = vmatmul.mubr.msk.f32.gmra.mxu1 %vm10644_vm13, %v21670_v23 }
0x2995   : > { %17693 = vmatprep.mubr.msk.f32.mxu0 %vm10644_vm13, %v21681_v59  ;;  %17728 = vmatprep.mubr.msk.f32.mxu1 %vm10644_vm13, %v21681_v59 }
0x2998   : > { %17694 = vmatmul.mubr.msk.f32.gmra.mxu0 %vm10644_vm13, %v21683_v54  ;;  %17729 = vmatmul.mubr.msk.f32.gmra.mxu1 %vm10644_vm13, %v21683_v54 }
0x2999   : > { %17712 = vmatprep.mubr.msk.f32.mxu0 %vm18317_vm8, %v18315_v1  ;;  %17747 = vmatprep.mubr.msk.f32.mxu1 %vm18317_vm8, %v18315_v1 }
0x2a46   : > { %v11351_v60 = vpop.f32.mrf.mxu0  ;;  %v11538_v15 = vpop.f32.mrf.mxu1 }
0x2a47   : > { %v11355_v48 = vadd.f32 %v11351_v60, %v21761_v33  ;;  %v12479_v60 = vld [vmem:[#allocation8 + $0x90] sm:$0xff] }
0x2a48   : > { %v17644_v56 = vpop.f32.mrf.mxu0  ;;  %v17679_v47 = vpop.f32.mrf.mxu1 }
0x2a49   : > { %v21828_v8 = vadd.f32 %v11538_v15, %v11355_v48 }
0x2a4c   : > { %v17686_v44 = vpop.f32.mrf.mxu0  ;;  %v17721_v42 = vpop.f32.mrf.mxu1 }
0x2a4e   : > { %v11615_v55 = vpop.f32.mrf.mxu0  ;;  %v11802_v34 = vpop.f32.mrf.mxu1 }
0x2a50   : > { %v17689_v39 = vpop.f32.mrf.mxu0  ;;  %v17724_v40 = vpop.f32.mrf.mxu1 }
0x2a52   : > { %v11625_v21 = vpop.f32.mrf.mxu0  ;;  %v11812_v53 = vpop.f32.mrf.mxu1 }
0x2a54   : > { %v17692_v29 = vpop.f32.mrf.mxu0  ;;  %v17727_v46 = vpop.f32.mrf.mxu1 }
0x2a56   : > { %v11635_v16 = vpop.f32.mrf.mxu0  ;;  %v11822_v3 = vpop.f32.mrf.mxu1 }
0x2a58   : > { %v17695_v61 = vpop.f32.mrf.mxu0  ;;  %v17730_v4 = vpop.f32.mrf.mxu1 }
0x2a59   : > { %17697 = vmatpush3.msra.mxu0 %v17695_v61  ;;  %17732 = vmatpush3.msra.mxu1 %v17730_v4 }
0x2a5a   : > { %v11645_v7 = vpop.f32.mrf.mxu0  ;;  %17698 = vmatprep.subr.mxu0 %v18315_v1  ;;  %v11832_v20 = vpop.f32.mrf.mxu1  ;;  %17733 = vmatprep.subr.mxu1 %v18315_v1 }
0x2a5b   : > { %17699 = vmatpush3.msra.mxu0 %v11645_v7  ;;  %17734 = vmatpush3.msra.mxu1 %v11832_v20 }
0x2a5c   : > { %17700 = vmatprep.subr.mxu0 %v18315_v1  ;;  %17735 = vmatprep.subr.mxu1 %v18315_v1 }
0x2a5d   : > { %17701 = vmatpush3.msra.mxu0 %v17692_v29  ;;  %17736 = vmatpush3.msra.mxu1 %v17727_v46 }
0x2a5e   : > { %17702 = vmatprep.subr.mxu0 %v18315_v1  ;;  %17737 = vmatprep.subr.mxu1 %v18315_v1 }
0x2a5f   : > { %17703 = vmatpush3.msra.mxu0 %v11635_v16  ;;  %17738 = vmatpush3.msra.mxu1 %v11822_v3 }
0x2a60   : > { %17704 = vmatprep.subr.mxu0 %v18315_v1  ;;  %17739 = vmatprep.subr.mxu1 %v18315_v1 }
0x2a61   : > { %17705 = vmatpush3.msra.mxu0 %v17689_v39  ;;  %17740 = vmatpush3.msra.mxu1 %v17724_v40 }
0x2a62   : > { %17706 = vmatprep.subr.mxu0 %v18315_v1  ;;  %17741 = vmatprep.subr.mxu1 %v18315_v1 }
0x2a63   : > { %17707 = vmatpush3.msra.mxu0 %v11625_v21  ;;  %17742 = vmatpush3.msra.mxu1 %v11812_v53 }
0x2a64   : > { %17708 = vmatprep.subr.mxu0 %v18315_v1  ;;  %17743 = vmatprep.subr.mxu1 %v18315_v1 }
0x2a65   : > { %17709 = vmatpush3.msra.mxu0 %v17686_v44  ;;  %17744 = vmatpush3.msra.mxu1 %v17721_v42 }
0x2a66   : > { %17710 = vmatprep.subr.mxu0 %v18315_v1  ;;  %17745 = vmatprep.subr.mxu1 %v18315_v1 }
0x2a67   : > { %17711 = vmatpush3.msra.mxu0 %v11615_v55  ;;  %17746 = vmatpush3.msra.mxu1 %v11802_v34 }
0x2a68   : > { %17713 = vmatmul.mubr.msk.f32.vlgmr.msra.gmra.mxu0 %vm3685_vm4, %v14935_v25  ;;  %17748 = vmatmul.mubr.msk.f32.vlgmr.msra.gmra.mxu1 %vm3685_vm4, %v14946_v32  ;;  %v14979_v32 = vld [vmem:[%s22205_s13 + $0x8] sm:$0x1] }
0x2a69   : > { %17750 = vmatprep.subr.msk.mxu0 %vm10800_vm14, %v11919_v51  ;;  %17785 = vmatprep.subr.msk.mxu1 %vm10800_vm14, %v12106_v18 }
0x2a6a   : > { %17751 = vmatpush3.msk.msra.mxu0 %vm10800_vm14, %v11919_v51  ;;  %17754 = vmatprep.mubr.msk.f32.mxu0 %vm10644_vm13, %v21639_v5  ;;  %v14990_v51 = vld [vmem:[%s22205_s13 + $0x9] sm:$0x1] }
0x2a6b   : > { %17786 = vmatpush3.msk.msra.mxu1 %vm10800_vm14, %v12106_v18  ;;  %17789 = vmatprep.mubr.msk.f32.mxu1 %vm10644_vm13, %v21639_v5  ;;  %v12667_v18 = vld [vmem:[#allocation8 + $0xa8] sm:$0x1] }
0x2a6c   : > { %17752 = vmatprep.subr.mxu0 %v11918_v43  ;;  %17787 = vmatprep.subr.mxu1 %v12105_v9 }
0x2a6d   : > { %17753 = vmatpush3.msra.mxu0 %v11918_v43  ;;  %17788 = vmatpush3.msra.mxu1 %v12105_v9  ;;  %v12854_v43 = vld [vmem:[#allocation8 + $0xb8] sm:$0x1]  ;;  %v12666_v9 = vld [vmem:[#allocation8 + $0xa0] sm:$0xff] }
0x2a6e   : > { %17755 = vmatmul.mubr.msk.f32.vlgmr.msra.gmra.mxu0 %vm10644_vm13, %v21642_v37  ;;  %17790 = vmatmul.mubr.msk.f32.vlgmr.msra.gmra.mxu1 %vm10644_vm13, %v21642_v37 }
0x2a6f   : > { %17757 = vmatprep.mubr.msk.f32.mxu0 %vm10644_vm13, %v21653_v50  ;;  %17792 = vmatprep.mubr.msk.f32.mxu1 %vm10644_vm13, %v21653_v50 }
0x2a70   : > { %17766 = vmatprep.subr.mxu0 %v18315_v1  ;;  %17801 = vmatprep.subr.mxu1 %v18315_v1 }
0x2a72   : > { %17758 = vmatmul.mubr.msk.f32.gmra.mxu0 %vm10644_vm13, %v21656_v10  ;;  %17793 = vmatmul.mubr.msk.f32.gmra.mxu1 %vm10644_vm13, %v21656_v10 }
0x2a73   : > { %17760 = vmatprep.mubr.msk.f32.mxu0 %vm10644_vm13, %v21667_v58  ;;  %17795 = vmatprep.mubr.msk.f32.mxu1 %vm10644_vm13, %v21667_v58 }
0x2a76   : > { %17761 = vmatmul.mubr.msk.f32.gmra.mxu0 %vm10644_vm13, %v21670_v23  ;;  %17796 = vmatmul.mubr.msk.f32.gmra.mxu1 %vm10644_vm13, %v21670_v23 }
0x2a77   : > { %17763 = vmatprep.mubr.msk.f32.mxu0 %vm10644_vm13, %v21681_v59  ;;  %17798 = vmatprep.mubr.msk.f32.mxu1 %vm10644_vm13, %v21681_v59 }
0x2a7a   : > { %17764 = vmatmul.mubr.msk.f32.gmra.mxu0 %vm10644_vm13, %v21683_v54  ;;  %17799 = vmatmul.mubr.msk.f32.gmra.mxu1 %vm10644_vm13, %v21683_v54 }
0x2a7b   : > { %17782 = vmatprep.mubr.msk.f32.mxu0 %vm18317_vm8, %v18315_v1  ;;  %17817 = vmatprep.mubr.msk.f32.mxu1 %vm18317_vm8, %v18315_v1 }
0x2b28   : > { %v11725_v31 = vpop.f32.mrf.mxu0  ;;  %v11912_v26 = vpop.f32.mrf.mxu1 }
0x2b29   : > { %v11729_v33 = vadd.f32 %v11725_v31, %v21828_v8  ;;  %v12853_v31 = vld [vmem:[#allocation8 + $0xb0] sm:$0xff] }
0x2b2a   : > { %v17714_v57 = vpop.f32.mrf.mxu0  ;;  %v17749_v35 = vpop.f32.mrf.mxu1 }
0x2b2b   : > { %v21895_v22 = vadd.f32 %v11912_v26, %v11729_v33 }
0x2b2e   : > { %v17756_v27 = vpop.f32.mrf.mxu0  ;;  %v17791_v38 = vpop.f32.mrf.mxu1 }
0x2b30   : > { %v11989_v24 = vpop.f32.mrf.mxu0  ;;  %v12176_v2 = vpop.f32.mrf.mxu1 }
0x2b32   : > { %v17759_v41 = vpop.f32.mrf.mxu0  ;;  %v17794_v28 = vpop.f32.mrf.mxu1 }
0x2b34   : > { %v11999_v30 = vpop.f32.mrf.mxu0  ;;  %v12186_v49 = vpop.f32.mrf.mxu1 }
0x2b36   : > { %v17762_v12 = vpop.f32.mrf.mxu0  ;;  %v17797_v6 = vpop.f32.mrf.mxu1 }
0x2b38   : > { %v12009_v11 = vpop.f32.mrf.mxu0  ;;  %v12196_v63 = vpop.f32.mrf.mxu1 }
0x2b3a   : > { %v17765_v45 = vpop.f32.mrf.mxu0  ;;  %v17800_v52 = vpop.f32.mrf.mxu1 }
0x2b3b   : > { %17767 = vmatpush3.msra.mxu0 %v17765_v45  ;;  %17802 = vmatpush3.msra.mxu1 %v17800_v52 }
0x2b3c   : > { %v12019_v17 = vpop.f32.mrf.mxu0  ;;  %17768 = vmatprep.subr.mxu0 %v18315_v1  ;;  %v12206_v36 = vpop.f32.mrf.mxu1  ;;  %17803 = vmatprep.subr.mxu1 %v18315_v1 }
0x2b3d   : > { %17769 = vmatpush3.msra.mxu0 %v12019_v17  ;;  %17804 = vmatpush3.msra.mxu1 %v12206_v36 }
0x2b3e   : > { %17770 = vmatprep.subr.mxu0 %v18315_v1  ;;  %17805 = vmatprep.subr.mxu1 %v18315_v1 }
0x2b3f   : > { %17771 = vmatpush3.msra.mxu0 %v17762_v12  ;;  %17806 = vmatpush3.msra.mxu1 %v17797_v6 }
0x2b40   : > { %17772 = vmatprep.subr.mxu0 %v18315_v1  ;;  %17807 = vmatprep.subr.mxu1 %v18315_v1 }
0x2b41   : > { %17773 = vmatpush3.msra.mxu0 %v12009_v11  ;;  %17808 = vmatpush3.msra.mxu1 %v12196_v63 }
0x2b42   : > { %17774 = vmatprep.subr.mxu0 %v18315_v1  ;;  %17809 = vmatprep.subr.mxu1 %v18315_v1 }
0x2b43   : > { %17775 = vmatpush3.msra.mxu0 %v17759_v41  ;;  %17810 = vmatpush3.msra.mxu1 %v17794_v28 }
0x2b44   : > { %17776 = vmatprep.subr.mxu0 %v18315_v1  ;;  %17811 = vmatprep.subr.mxu1 %v18315_v1 }
0x2b45   : > { %17777 = vmatpush3.msra.mxu0 %v11999_v30  ;;  %17812 = vmatpush3.msra.mxu1 %v12186_v49 }
0x2b46   : > { %17778 = vmatprep.subr.mxu0 %v18315_v1  ;;  %17813 = vmatprep.subr.mxu1 %v18315_v1 }
0x2b47   : > { %17779 = vmatpush3.msra.mxu0 %v17756_v27  ;;  %17814 = vmatpush3.msra.mxu1 %v17791_v38 }
0x2b48   : > { %17780 = vmatprep.subr.mxu0 %v18315_v1  ;;  %17815 = vmatprep.subr.mxu1 %v18315_v1 }
0x2b49   : > { %17781 = vmatpush3.msra.mxu0 %v11989_v24  ;;  %17816 = vmatpush3.msra.mxu1 %v12176_v2 }
0x2b4a   : > { %17783 = vmatmul.mubr.msk.f32.vlgmr.msra.gmra.mxu0 %vm3685_vm4, %v14957_v0  ;;  %17818 = vmatmul.mubr.msk.f32.vlgmr.msra.gmra.mxu1 %vm3685_vm4, %v14968_v14  ;;  %v15001_v14 = vld [vmem:[%s22205_s13 + $0xa] sm:$0x1] }
0x2b4b   : > { %17820 = vmatprep.subr.msk.mxu0 %vm10800_vm14, %v12293_v19  ;;  %17855 = vmatprep.subr.msk.mxu1 %vm10800_vm14, %v12480_v62 }
0x2b4c   : > { %17821 = vmatpush3.msk.msra.mxu0 %vm10800_vm14, %v12293_v19  ;;  %17824 = vmatprep.mubr.msk.f32.mxu0 %vm10644_vm13, %v21639_v5  ;;  %v15012_v19 = vld [vmem:[%s22205_s13 + $0xb] sm:$0x1] }
0x2b4d   : > { %17856 = vmatpush3.msk.msra.mxu1 %vm10800_vm14, %v12480_v62  ;;  %17859 = vmatprep.mubr.msk.f32.mxu1 %vm10644_vm13, %v21639_v5  ;;  %v13041_v62 = vld [vmem:[#allocation8 + $0xc8] sm:$0x1] }
0x2b4e   : > { %17822 = vmatprep.subr.mxu0 %v12292_v13  ;;  %17857 = vmatprep.subr.mxu1 %v12479_v60 }
0x2b4f   : > { %17823 = vmatpush3.msra.mxu0 %v12292_v13  ;;  %17858 = vmatpush3.msra.mxu1 %v12479_v60  ;;  %v13228_v13 = vld [vmem:[#allocation8 + $0xd8] sm:$0x1]  ;;  %v13040_v60 = vld [vmem:[#allocation8 + $0xc0] sm:$0xff] }
0x2b50   : > { %17825 = vmatmul.mubr.msk.f32.vlgmr.msra.gmra.mxu0 %vm10644_vm13, %v21642_v37  ;;  %17860 = vmatmul.mubr.msk.f32.vlgmr.msra.gmra.mxu1 %vm10644_vm13, %v21642_v37 }
0x2b51   : > { %17827 = vmatprep.mubr.msk.f32.mxu0 %vm10644_vm13, %v21653_v50  ;;  %17862 = vmatprep.mubr.msk.f32.mxu1 %vm10644_vm13, %v21653_v50 }
0x2b52   : > { %17836 = vmatprep.subr.mxu0 %v18315_v1  ;;  %17871 = vmatprep.subr.mxu1 %v18315_v1 }
0x2b54   : > { %17828 = vmatmul.mubr.msk.f32.gmra.mxu0 %vm10644_vm13, %v21656_v10  ;;  %17863 = vmatmul.mubr.msk.f32.gmra.mxu1 %vm10644_vm13, %v21656_v10 }
0x2b55   : > { %17830 = vmatprep.mubr.msk.f32.mxu0 %vm10644_vm13, %v21667_v58  ;;  %17865 = vmatprep.mubr.msk.f32.mxu1 %vm10644_vm13, %v21667_v58 }
0x2b58   : > { %17831 = vmatmul.mubr.msk.f32.gmra.mxu0 %vm10644_vm13, %v21670_v23  ;;  %17866 = vmatmul.mubr.msk.f32.gmra.mxu1 %vm10644_vm13, %v21670_v23 }
0x2b59   : > { %17833 = vmatprep.mubr.msk.f32.mxu0 %vm10644_vm13, %v21681_v59  ;;  %17868 = vmatprep.mubr.msk.f32.mxu1 %vm10644_vm13, %v21681_v59 }
0x2b5c   : > { %17834 = vmatmul.mubr.msk.f32.gmra.mxu0 %vm10644_vm13, %v21683_v54  ;;  %17869 = vmatmul.mubr.msk.f32.gmra.mxu1 %vm10644_vm13, %v21683_v54 }
0x2b5d   : > { %17852 = vmatprep.mubr.msk.f32.mxu0 %vm18317_vm8, %v18315_v1  ;;  %17887 = vmatprep.mubr.msk.f32.mxu1 %vm18317_vm8, %v18315_v1 }
0x2c0a   : > { %v12099_v15 = vpop.f32.mrf.mxu0  ;;  %v12286_v48 = vpop.f32.mrf.mxu1 }
0x2c0b   : > { %v12103_v56 = vadd.f32 %v12099_v15, %v21895_v22  ;;  %v13227_v15 = vld [vmem:[#allocation8 + $0xd0] sm:$0xff] }
0x2c0c   : > { %v17784_v47 = vpop.f32.mrf.mxu0  ;;  %v17819_v8 = vpop.f32.mrf.mxu1 }
0x2c0d   : > { %v21962_v44 = vadd.f32 %v12286_v48, %v12103_v56 }
0x2c10   : > { %v17826_v42 = vpop.f32.mrf.mxu0  ;;  %v17861_v55 = vpop.f32.mrf.mxu1 }
0x2c12   : > { %v12363_v34 = vpop.f32.mrf.mxu0  ;;  %v12550_v39 = vpop.f32.mrf.mxu1 }
0x2c14   : > { %v17829_v40 = vpop.f32.mrf.mxu0  ;;  %v17864_v21 = vpop.f32.mrf.mxu1 }
0x2c16   : > { %v12373_v53 = vpop.f32.mrf.mxu0  ;;  %v12560_v29 = vpop.f32.mrf.mxu1 }
0x2c18   : > { %v17832_v46 = vpop.f32.mrf.mxu0  ;;  %v17867_v16 = vpop.f32.mrf.mxu1 }
0x2c1a   : > { %v12383_v3 = vpop.f32.mrf.mxu0  ;;  %v12570_v61 = vpop.f32.mrf.mxu1 }
0x2c1c   : > { %v17835_v4 = vpop.f32.mrf.mxu0  ;;  %v17870_v7 = vpop.f32.mrf.mxu1 }
0x2c1d   : > { %17837 = vmatpush3.msra.mxu0 %v17835_v4  ;;  %17872 = vmatpush3.msra.mxu1 %v17870_v7 }
0x2c1e   : > { %v12393_v20 = vpop.f32.mrf.mxu0  ;;  %17838 = vmatprep.subr.mxu0 %v18315_v1  ;;  %v12580_v25 = vpop.f32.mrf.mxu1  ;;  %17873 = vmatprep.subr.mxu1 %v18315_v1 }
0x2c1f   : > { %17839 = vmatpush3.msra.mxu0 %v12393_v20  ;;  %17874 = vmatpush3.msra.mxu1 %v12580_v25 }
0x2c20   : > { %17840 = vmatprep.subr.mxu0 %v18315_v1  ;;  %17875 = vmatprep.subr.mxu1 %v18315_v1 }
0x2c21   : > { %17841 = vmatpush3.msra.mxu0 %v17832_v46  ;;  %17876 = vmatpush3.msra.mxu1 %v17867_v16 }
0x2c22   : > { %17842 = vmatprep.subr.mxu0 %v18315_v1  ;;  %17877 = vmatprep.subr.mxu1 %v18315_v1 }
0x2c23   : > { %17843 = vmatpush3.msra.mxu0 %v12383_v3  ;;  %17878 = vmatpush3.msra.mxu1 %v12570_v61 }
0x2c24   : > { %17844 = vmatprep.subr.mxu0 %v18315_v1  ;;  %17879 = vmatprep.subr.mxu1 %v18315_v1 }
0x2c25   : > { %17845 = vmatpush3.msra.mxu0 %v17829_v40  ;;  %17880 = vmatpush3.msra.mxu1 %v17864_v21 }
0x2c26   : > { %17846 = vmatprep.subr.mxu0 %v18315_v1  ;;  %17881 = vmatprep.subr.mxu1 %v18315_v1 }
0x2c27   : > { %17847 = vmatpush3.msra.mxu0 %v12373_v53  ;;  %17882 = vmatpush3.msra.mxu1 %v12560_v29 }
0x2c28   : > { %17848 = vmatprep.subr.mxu0 %v18315_v1  ;;  %17883 = vmatprep.subr.mxu1 %v18315_v1 }
0x2c29   : > { %17849 = vmatpush3.msra.mxu0 %v17826_v42  ;;  %17884 = vmatpush3.msra.mxu1 %v17861_v55 }
0x2c2a   : > { %17850 = vmatprep.subr.mxu0 %v18315_v1  ;;  %17885 = vmatprep.subr.mxu1 %v18315_v1 }
0x2c2b   : > { %17851 = vmatpush3.msra.mxu0 %v12363_v34  ;;  %17886 = vmatpush3.msra.mxu1 %v12550_v39 }
0x2c2c   : > { %17853 = vmatmul.mubr.msk.f32.vlgmr.msra.gmra.mxu0 %vm3685_vm4, %v14979_v32  ;;  %17888 = vmatmul.mubr.msk.f32.vlgmr.msra.gmra.mxu1 %vm3685_vm4, %v14990_v51  ;;  %v15023_v51 = vld [vmem:[%s22205_s13 + $0xc] sm:$0x1] }
0x2c2d   : > { %17890 = vmatprep.subr.msk.mxu0 %vm10800_vm14, %v12667_v18  ;;  %17925 = vmatprep.subr.msk.mxu1 %vm10800_vm14, %v12854_v43 }
0x2c2e   : > { %17891 = vmatpush3.msk.msra.mxu0 %vm10800_vm14, %v12667_v18  ;;  %17894 = vmatprep.mubr.msk.f32.mxu0 %vm10644_vm13, %v21639_v5  ;;  %v15034_v18 = vld [vmem:[%s22205_s13 + $0xd] sm:$0x1] }
0x2c2f   : > { %17926 = vmatpush3.msk.msra.mxu1 %vm10800_vm14, %v12854_v43  ;;  %17929 = vmatprep.mubr.msk.f32.mxu1 %vm10644_vm13, %v21639_v5  ;;  %v13415_v43 = vld [vmem:[#allocation8 + $0xe8] sm:$0x1] }
0x2c30   : > { %17892 = vmatprep.subr.mxu0 %v12666_v9  ;;  %17927 = vmatprep.subr.mxu1 %v12853_v31 }
0x2c31   : > { %17893 = vmatpush3.msra.mxu0 %v12666_v9  ;;  %17928 = vmatpush3.msra.mxu1 %v12853_v31  ;;  %v13602_v9 = vld [vmem:[#allocation8 + $0xf8] sm:$0x1]  ;;  %v13414_v31 = vld [vmem:[#allocation8 + $0xe0] sm:$0xff] }
0x2c32   : > { %17895 = vmatmul.mubr.msk.f32.vlgmr.msra.gmra.mxu0 %vm10644_vm13, %v21642_v37  ;;  %17930 = vmatmul.mubr.msk.f32.vlgmr.msra.gmra.mxu1 %vm10644_vm13, %v21642_v37 }
0x2c33   : > { %17897 = vmatprep.mubr.msk.f32.mxu0 %vm10644_vm13, %v21653_v50  ;;  %17932 = vmatprep.mubr.msk.f32.mxu1 %vm10644_vm13, %v21653_v50 }
0x2c34   : > { %17906 = vmatprep.subr.mxu0 %v18315_v1  ;;  %17941 = vmatprep.subr.mxu1 %v18315_v1 }
0x2c36   : > { %17898 = vmatmul.mubr.msk.f32.gmra.mxu0 %vm10644_vm13, %v21656_v10  ;;  %17933 = vmatmul.mubr.msk.f32.gmra.mxu1 %vm10644_vm13, %v21656_v10 }
0x2c37   : > { %17900 = vmatprep.mubr.msk.f32.mxu0 %vm10644_vm13, %v21667_v58  ;;  %17935 = vmatprep.mubr.msk.f32.mxu1 %vm10644_vm13, %v21667_v58 }
0x2c3a   : > { %17901 = vmatmul.mubr.msk.f32.gmra.mxu0 %vm10644_vm13, %v21670_v23  ;;  %17936 = vmatmul.mubr.msk.f32.gmra.mxu1 %vm10644_vm13, %v21670_v23 }
0x2c3b   : > { %17903 = vmatprep.mubr.msk.f32.mxu0 %vm10644_vm13, %v21681_v59  ;;  %17938 = vmatprep.mubr.msk.f32.mxu1 %vm10644_vm13, %v21681_v59 }
0x2c3e   : > { %17904 = vmatmul.mubr.msk.f32.gmra.mxu0 %vm10644_vm13, %v21683_v54  ;;  %17939 = vmatmul.mubr.msk.f32.gmra.mxu1 %vm10644_vm13, %v21683_v54 }
0x2c3f   : > { %17922 = vmatprep.mubr.msk.f32.mxu0 %vm18317_vm8, %v18315_v1  ;;  %17957 = vmatprep.mubr.msk.f32.mxu1 %vm18317_vm8, %v18315_v1 }
0x2cec   : > { %v12473_v26 = vpop.f32.mrf.mxu0  ;;  %v12660_v33 = vpop.f32.mrf.mxu1 }
0x2ced   : > { %v12477_v57 = vadd.f32 %v12473_v26, %v21962_v44  ;;  %v13601_v26 = vld [vmem:[#allocation8 + $0xf0] sm:$0xff] }
0x2cee   : > { %v17854_v35 = vpop.f32.mrf.mxu0  ;;  %v17889_v22 = vpop.f32.mrf.mxu1 }
0x2cef   : > { %v22029_v27 = vadd.f32 %v12660_v33, %v12477_v57 }
0x2cf2   : > { %v17896_v38 = vpop.f32.mrf.mxu0  ;;  %v17931_v24 = vpop.f32.mrf.mxu1 }
0x2cf4   : > { %v12737_v2 = vpop.f32.mrf.mxu0  ;;  %v12924_v41 = vpop.f32.mrf.mxu1 }
0x2cf6   : > { %v17899_v28 = vpop.f32.mrf.mxu0  ;;  %v17934_v30 = vpop.f32.mrf.mxu1 }
0x2cf8   : > { %v12747_v49 = vpop.f32.mrf.mxu0  ;;  %v12934_v12 = vpop.f32.mrf.mxu1 }
0x2cfa   : > { %v17902_v6 = vpop.f32.mrf.mxu0  ;;  %v17937_v11 = vpop.f32.mrf.mxu1 }
0x2cfc   : > { %v12757_v63 = vpop.f32.mrf.mxu0  ;;  %v12944_v45 = vpop.f32.mrf.mxu1 }
0x2cfe   : > { %v17905_v52 = vpop.f32.mrf.mxu0  ;;  %v17940_v17 = vpop.f32.mrf.mxu1 }
0x2cff   : > { %17907 = vmatpush3.msra.mxu0 %v17905_v52  ;;  %17942 = vmatpush3.msra.mxu1 %v17940_v17 }
0x2d00   : > { %v12767_v36 = vpop.f32.mrf.mxu0  ;;  %17908 = vmatprep.subr.mxu0 %v18315_v1  ;;  %v12954_v0 = vpop.f32.mrf.mxu1  ;;  %17943 = vmatprep.subr.mxu1 %v18315_v1 }
0x2d01   : > { %17909 = vmatpush3.msra.mxu0 %v12767_v36  ;;  %17944 = vmatpush3.msra.mxu1 %v12954_v0  ;;  %v13791_v36 = vpop.permute.xlu0 %13790 }
0x2d02   : > { %17910 = vmatprep.subr.mxu0 %v18315_v1  ;;  %17945 = vmatprep.subr.mxu1 %v18315_v1 }
0x2d03   : > { %17911 = vmatpush3.msra.mxu0 %v17902_v6  ;;  %17946 = vmatpush3.msra.mxu1 %v17937_v11  ;;  %v15045_v11 = vld [vmem:[%s22205_s13 + $0xe] sm:$0x1] }
0x2d04   : > { %17912 = vmatprep.subr.mxu0 %v18315_v1  ;;  %17947 = vmatprep.subr.mxu1 %v18315_v1 }
0x2d05   : > { %17913 = vmatpush3.msra.mxu0 %v12757_v63  ;;  %17948 = vmatpush3.msra.mxu1 %v12944_v45  ;;  %v15056_v63 = vld [vmem:[%s22205_s13 + $0xf] sm:$0x1]  ;;  %v13793_v45 = vlaneseq }
0x2d06   : > { %17914 = vmatprep.subr.mxu0 %v18315_v1  ;;  %17949 = vmatprep.subr.mxu1 %v18315_v1 }
0x2d07   : > { %17915 = vmatpush3.msra.mxu0 %v17899_v28  ;;  %17950 = vmatpush3.msra.mxu1 %v17934_v30  ;;  %v13794_v52 = vshrl.u32 %v13793_v45, 7 }
0x2d08   : > { %17916 = vmatprep.subr.mxu0 %v18315_v1  ;;  %17951 = vmatprep.subr.mxu1 %v18315_v1 }
0x2d09   : > { %17917 = vmatpush3.msra.mxu0 %v12747_v49  ;;  %17952 = vmatpush3.msra.mxu1 %v12934_v12  ;;  %v13795_v17 = vsub.s32 0, %v13794_v52 }
0x2d0a   : > { %17918 = vmatprep.subr.mxu0 %v18315_v1  ;;  %17953 = vmatprep.subr.mxu1 %v18315_v1 }
0x2d0b   : > { %17919 = vmatpush3.msra.mxu0 %v17896_v38  ;;  %17954 = vmatpush3.msra.mxu1 %v17931_v24 }
0x2d0c   : > { %17920 = vmatprep.subr.mxu0 %v18315_v1  ;;  %17955 = vmatprep.subr.mxu1 %v18315_v1 }
0x2d0d   : > { %17921 = vmatpush3.msra.mxu0 %v12737_v2  ;;  %17956 = vmatpush3.msra.mxu1 %v12924_v41 }
0x2d0e   : > { %17923 = vmatmul.mubr.msk.f32.vlgmr.msra.gmra.mxu0 %vm3685_vm4, %v15001_v14  ;;  %17958 = vmatmul.mubr.msk.f32.vlgmr.msra.gmra.mxu1 %vm3685_vm4, %v15012_v19 }
0x2d0f   : > { %17960 = vmatprep.subr.msk.mxu0 %vm10800_vm14, %v13041_v62  ;;  %17995 = vmatprep.subr.msk.mxu1 %vm10800_vm14, %v13228_v13 }
0x2d10   : > { %17961 = vmatpush3.msk.msra.mxu0 %vm10800_vm14, %v13041_v62  ;;  %17964 = vmatprep.mubr.msk.f32.mxu0 %vm10644_vm13, %v21639_v5 }
0x2d11   : > { %17996 = vmatpush3.msk.msra.mxu1 %vm10800_vm14, %v13228_v13  ;;  %17999 = vmatprep.mubr.msk.f32.mxu1 %vm10644_vm13, %v21639_v5 }
0x2d12   : > { %17962 = vmatprep.subr.mxu0 %v13040_v60  ;;  %17997 = vmatprep.subr.mxu1 %v13227_v15 }
0x2d13   : > { %17963 = vmatpush3.msra.mxu0 %v13040_v60  ;;  %17998 = vmatpush3.msra.mxu1 %v13227_v15  ;;  %v13796_v60 = vrot.slane %v13791_v36, %v13795_v17 }
0x2d14   : > { %17965 = vmatmul.mubr.msk.f32.vlgmr.msra.gmra.mxu0 %vm10644_vm13, %v21642_v37  ;;  %18000 = vmatmul.mubr.msk.f32.vlgmr.msra.gmra.mxu1 %vm10644_vm13, %v21642_v37 }
0x2d15   : > { %17967 = vmatprep.mubr.msk.f32.mxu0 %vm10644_vm13, %v21653_v50  ;;  %18002 = vmatprep.mubr.msk.f32.mxu1 %vm10644_vm13, %v21653_v50 }
0x2d16   : > { %17976 = vmatprep.subr.mxu0 %v18315_v1  ;;  %18011 = vmatprep.subr.mxu1 %v18315_v1 }
0x2d18   : > { %17968 = vmatmul.mubr.msk.f32.gmra.mxu0 %vm10644_vm13, %v21656_v10  ;;  %18003 = vmatmul.mubr.msk.f32.gmra.mxu1 %vm10644_vm13, %v21656_v10 }
0x2d19   : > { %17970 = vmatprep.mubr.msk.f32.mxu0 %vm10644_vm13, %v21667_v58  ;;  %18005 = vmatprep.mubr.msk.f32.mxu1 %vm10644_vm13, %v21667_v58 }
0x2d1c   : > { %17971 = vmatmul.mubr.msk.f32.gmra.mxu0 %vm10644_vm13, %v21670_v23  ;;  %18006 = vmatmul.mubr.msk.f32.gmra.mxu1 %vm10644_vm13, %v21670_v23 }
0x2d1d   : > { %17973 = vmatprep.mubr.msk.f32.mxu0 %vm10644_vm13, %v21681_v59  ;;  %18008 = vmatprep.mubr.msk.f32.mxu1 %vm10644_vm13, %v21681_v59 }
0x2d20   : > { %17974 = vmatmul.mubr.msk.f32.gmra.mxu0 %vm10644_vm13, %v21683_v54  ;;  %18009 = vmatmul.mubr.msk.f32.gmra.mxu1 %vm10644_vm13, %v21683_v54 }
0x2d21   : > { %17992 = vmatprep.mubr.msk.f32.mxu0 %vm18317_vm8, %v18315_v1  ;;  %18027 = vmatprep.mubr.msk.f32.mxu1 %vm18317_vm8, %v18315_v1 }
0x2dce   : > { %v12847_v48 = vpop.f32.mrf.mxu0  ;;  %v13034_v56 = vpop.f32.mrf.mxu1 }
0x2dcf   : > { %v12851_v47 = vadd.f32 %v12847_v48, %v22029_v27 }
0x2dd0   : > { %v17924_v8 = vpop.f32.mrf.mxu0  ;;  %v17959_v44 = vpop.f32.mrf.mxu1 }
0x2dd1   : > { %v22096_v42 = vadd.f32 %v13034_v56, %v12851_v47 }
0x2dd4   : > { %v17966_v55 = vpop.f32.mrf.mxu0  ;;  %v18001_v34 = vpop.f32.mrf.mxu1 }
0x2dd6   : > { %v13111_v39 = vpop.f32.mrf.mxu0  ;;  %v13298_v40 = vpop.f32.mrf.mxu1 }
0x2dd8   : > { %v17969_v21 = vpop.f32.mrf.mxu0  ;;  %v18004_v53 = vpop.f32.mrf.mxu1 }
0x2dda   : > { %v13121_v29 = vpop.f32.mrf.mxu0  ;;  %v13308_v46 = vpop.f32.mrf.mxu1 }
0x2ddc   : > { %v17972_v16 = vpop.f32.mrf.mxu0  ;;  %v18007_v3 = vpop.f32.mrf.mxu1 }
0x2dde   : > { %v13131_v61 = vpop.f32.mrf.mxu0  ;;  %v13318_v4 = vpop.f32.mrf.mxu1 }
0x2de0   : > { %v17975_v7 = vpop.f32.mrf.mxu0  ;;  %v18010_v20 = vpop.f32.mrf.mxu1 }
0x2de1   : > { %17977 = vmatpush3.msra.mxu0 %v17975_v7  ;;  %18012 = vmatpush3.msra.mxu1 %v18010_v20 }
0x2de2   : > { %v13141_v25 = vpop.f32.mrf.mxu0  ;;  %17978 = vmatprep.subr.mxu0 %v18315_v1  ;;  %v13328_v32 = vpop.f32.mrf.mxu1  ;;  %18013 = vmatprep.subr.mxu1 %v18315_v1 }
0x2de3   : > { %17979 = vmatpush3.msra.mxu0 %v13141_v25  ;;  %18014 = vmatpush3.msra.mxu1 %v13328_v32 }
0x2de4   : > { %17980 = vmatprep.subr.mxu0 %v18315_v1  ;;  %18015 = vmatprep.subr.mxu1 %v18315_v1 }
0x2de5   : > { %17981 = vmatpush3.msra.mxu0 %v17972_v16  ;;  %18016 = vmatpush3.msra.mxu1 %v18007_v3 }
0x2de6   : > { %17982 = vmatprep.subr.mxu0 %v18315_v1  ;;  %18017 = vmatprep.subr.mxu1 %v18315_v1 }
0x2de7   : > { %17983 = vmatpush3.msra.mxu0 %v13131_v61  ;;  %18018 = vmatpush3.msra.mxu1 %v13318_v4 }
0x2de8   : > { %17984 = vmatprep.subr.mxu0 %v18315_v1  ;;  %18019 = vmatprep.subr.mxu1 %v18315_v1 }
0x2de9   : > { %17985 = vmatpush3.msra.mxu0 %v17969_v21  ;;  %18020 = vmatpush3.msra.mxu1 %v18004_v53 }
0x2dea   : > { %17986 = vmatprep.subr.mxu0 %v18315_v1  ;;  %18021 = vmatprep.subr.mxu1 %v18315_v1 }
0x2deb   : > { %17987 = vmatpush3.msra.mxu0 %v13121_v29  ;;  %18022 = vmatpush3.msra.mxu1 %v13308_v46 }
0x2dec   : > { %17988 = vmatprep.subr.mxu0 %v18315_v1  ;;  %18023 = vmatprep.subr.mxu1 %v18315_v1 }
0x2ded   : > { %17989 = vmatpush3.msra.mxu0 %v17966_v55  ;;  %18024 = vmatpush3.msra.mxu1 %v18001_v34 }
0x2dee   : > { %17990 = vmatprep.subr.mxu0 %v18315_v1  ;;  %18025 = vmatprep.subr.mxu1 %v18315_v1 }
0x2def   : > { %17991 = vmatpush3.msra.mxu0 %v13111_v39  ;;  %18026 = vmatpush3.msra.mxu1 %v13298_v40 }
0x2df0   : > { %17993 = vmatmul.mubr.msk.f32.vlgmr.msra.gmra.mxu0 %vm3685_vm4, %v15023_v51  ;;  %18028 = vmatmul.mubr.msk.f32.vlgmr.msra.gmra.mxu1 %vm3685_vm4, %v15034_v18 }
0x2df1   : > { %18030 = vmatprep.subr.msk.mxu0 %vm10800_vm14, %v13415_v43  ;;  %18065 = vmatprep.subr.msk.mxu1 %vm10800_vm14, %v13602_v9 }
0x2df2   : > { %18031 = vmatpush3.msk.msra.mxu0 %vm10800_vm14, %v13415_v43  ;;  %18034 = vmatprep.mubr.msk.f32.mxu0 %vm10644_vm13, %v21639_v5 }
0x2df3   : > { %18066 = vmatpush3.msk.msra.mxu1 %vm10800_vm14, %v13602_v9  ;;  %18069 = vmatprep.mubr.msk.f32.mxu1 %vm10644_vm13, %v21639_v5 }
0x2df4   : > { %18032 = vmatprep.subr.mxu0 %v13414_v31  ;;  %18067 = vmatprep.subr.mxu1 %v13601_v26 }
0x2df5   : > { %18033 = vmatpush3.msra.mxu0 %v13414_v31  ;;  %18068 = vmatpush3.msra.mxu1 %v13601_v26 }
0x2df6   : > { %18035 = vmatmul.mubr.msk.f32.vlgmr.msra.gmra.mxu0 %vm10644_vm13, %v21642_v37  ;;  %18070 = vmatmul.mubr.msk.f32.vlgmr.msra.gmra.mxu1 %vm10644_vm13, %v21642_v37 }
0x2df7   : > { %18037 = vmatprep.mubr.msk.f32.mxu0 %vm10644_vm13, %v21653_v50  ;;  %18072 = vmatprep.mubr.msk.f32.mxu1 %vm10644_vm13, %v21653_v50 }
0x2df8   : > { %18046 = vmatprep.subr.mxu0 %v18315_v1  ;;  %18081 = vmatprep.subr.mxu1 %v18315_v1 }
0x2dfa   : > { %18038 = vmatmul.mubr.msk.f32.gmra.mxu0 %vm10644_vm13, %v21656_v10  ;;  %18073 = vmatmul.mubr.msk.f32.gmra.mxu1 %vm10644_vm13, %v21656_v10 }
0x2dfb   : > { %18040 = vmatprep.mubr.msk.f32.mxu0 %vm10644_vm13, %v21667_v58  ;;  %18075 = vmatprep.mubr.msk.f32.mxu1 %vm10644_vm13, %v21667_v58 }
0x2dfe   : > { %18041 = vmatmul.mubr.msk.f32.gmra.mxu0 %vm10644_vm13, %v21670_v23  ;;  %18076 = vmatmul.mubr.msk.f32.gmra.mxu1 %vm10644_vm13, %v21670_v23 }
0x2dff   : > { %18043 = vmatprep.mubr.msk.f32.mxu0 %vm10644_vm13, %v21681_v59  ;;  %18078 = vmatprep.mubr.msk.f32.mxu1 %vm10644_vm13, %v21681_v59 }
0x2e02   : > { %18044 = vmatmul.mubr.msk.f32.gmra.mxu0 %vm10644_vm13, %v21683_v54  ;;  %18079 = vmatmul.mubr.msk.f32.gmra.mxu1 %vm10644_vm13, %v21683_v54 }
0x2e03   : > { %18062 = vmatprep.mubr.msk.f32.mxu0 %vm18317_vm8, %v18315_v1  ;;  %18097 = vmatprep.mubr.msk.f32.mxu1 %vm18317_vm8, %v18315_v1 }
0x2eb0   : > { %v13221_v5 = vpop.f32.mrf.mxu0  ;;  %v13408_v37 = vpop.f32.mrf.mxu1 }
0x2eb1   : > { %v13225_v50 = vadd.f32 %v13221_v5, %v22096_v42 }
0x2eb2   : > { %v17994_v10 = vpop.f32.mrf.mxu0  ;;  %v18029_v58 = vpop.f32.mrf.mxu1 }
0x2eb3   : > { %v13412_v23 = vadd.f32 %v13408_v37, %v13225_v50 }
0x2eb6   : > { %v18036_v59 = vpop.f32.mrf.mxu0  ;;  %v18071_v33 = vpop.f32.mrf.mxu1 }
0x2eb8   : > { %v13485_v57 = vpop.f32.mrf.mxu0  ;;  %v13672_v35 = vpop.f32.mrf.mxu1 }
0x2eba   : > { %v18039_v22 = vpop.f32.mrf.mxu0  ;;  %v18074_v27 = vpop.f32.mrf.mxu1 }
0x2ebc   : > { %v13495_v54 = vpop.f32.mrf.mxu0  ;;  %v13682_v38 = vpop.f32.mrf.mxu1 }
0x2ebe   : > { %v18042_v24 = vpop.f32.mrf.mxu0  ;;  %v18077_v2 = vpop.f32.mrf.mxu1 }
0x2ec0   : > { %v13505_v41 = vpop.f32.mrf.mxu0  ;;  %v13692_v28 = vpop.f32.mrf.mxu1 }
0x2ec2   : > { %v18045_v30 = vpop.f32.mrf.mxu0  ;;  %v18080_v49 = vpop.f32.mrf.mxu1 }
0x2ec3   : > { %18047 = vmatpush3.msra.mxu0 %v18045_v30  ;;  %18082 = vmatpush3.msra.mxu1 %v18080_v49 }
0x2ec4   : > { %v13515_v12 = vpop.f32.mrf.mxu0  ;;  %18048 = vmatprep.subr.mxu0 %v18315_v1  ;;  %v13702_v6 = vpop.f32.mrf.mxu1  ;;  %18083 = vmatprep.subr.mxu1 %v18315_v1 }
0x2ec5   : > { %18049 = vmatpush3.msra.mxu0 %v13515_v12  ;;  %18084 = vmatpush3.msra.mxu1 %v13702_v6 }
0x2ec6   : > { %18050 = vmatprep.subr.mxu0 %v18315_v1  ;;  %18085 = vmatprep.subr.mxu1 %v18315_v1 }
0x2ec7   : > { %18051 = vmatpush3.msra.mxu0 %v18042_v24  ;;  %18086 = vmatpush3.msra.mxu1 %v18077_v2 }
0x2ec8   : > { %18052 = vmatprep.subr.mxu0 %v18315_v1  ;;  %18087 = vmatprep.subr.mxu1 %v18315_v1 }
0x2ec9   : > { %18053 = vmatpush3.msra.mxu0 %v13505_v41  ;;  %18088 = vmatpush3.msra.mxu1 %v13692_v28 }
0x2eca   : > { %18054 = vmatprep.subr.mxu0 %v18315_v1  ;;  %18089 = vmatprep.subr.mxu1 %v18315_v1 }
0x2ecb   : > { %18055 = vmatpush3.msra.mxu0 %v18039_v22  ;;  %18090 = vmatpush3.msra.mxu1 %v18074_v27 }
0x2ecc   : > { %18056 = vmatprep.subr.mxu0 %v18315_v1  ;;  %18091 = vmatprep.subr.mxu1 %v18315_v1 }
0x2ecd   : > { %18057 = vmatpush3.msra.mxu0 %v13495_v54  ;;  %18092 = vmatpush3.msra.mxu1 %v13682_v38 }
0x2ece   : > { %18058 = vmatprep.subr.mxu0 %v18315_v1  ;;  %18093 = vmatprep.subr.mxu1 %v18315_v1 }
0x2ecf   : > { %18059 = vmatpush3.msra.mxu0 %v18036_v59  ;;  %18094 = vmatpush3.msra.mxu1 %v18071_v33 }
0x2ed0   : > { %18060 = vmatprep.subr.mxu0 %v18315_v1  ;;  %18095 = vmatprep.subr.mxu1 %v18315_v1 }
0x2ed1   : > { %18061 = vmatpush3.msra.mxu0 %v13485_v57  ;;  %18096 = vmatpush3.msra.mxu1 %v13672_v35 }
0x2ed2   : > { %18063 = vmatmul.mubr.msk.f32.vlgmr.msra.gmra.mxu0 %vm3685_vm4, %v15045_v11  ;;  %18098 = vmatmul.mubr.msk.f32.vlgmr.msra.gmra.mxu1 %vm3685_vm4, %v15056_v63 }
0x2f92   : > { %v13595_v0 = vpop.f32.mrf.mxu0  ;;  %v13782_v14 = vpop.f32.mrf.mxu1 }
0x2f93   : > { %v13599_v19 = vadd.f32 %v13595_v0, %v13412_v23 }
0x2f94   : > { %v18064_v62 = vpop.f32.mrf.mxu0  ;;  %v18099_v13 = vpop.f32.mrf.mxu1 }
0x2f95   : > { %v13786_v15 = vadd.f32 %v13782_v14, %v13599_v19 }
0x2f97   : > { %v13797_v1 = vadd.f32 %v13796_v60, %v13786_v15 }
0x2f99   : > { %13799 = vst.msk [vmem:[%s551_s16] sm:$0x1] %vm13798_vm9, %v13797_v1 }
0x2f9a PF: > { %s30_s20 = sadd.s32 1, %s18307_s20  }
0x2f9b   : > { %p27_p2 = scmp.ge.s32.totalorder %s30_s20, 4  }
0x2f9d   :  { %29 = sbr.rel (!%p27_p2) target bundleno = 6 (0x6), region = 247 }
0x2fa2   :  { %13817 = vsyncpa [#allocation4], 1 }
0x2fa3   :  { %13819 = vsyncpa [#allocation4 + $0x1], 1 }
0x2fa4   :  { %13820 = vsyncpa [#allocation6], 1 }
0x2fa5   :  { %13821 = vsyncpa [#allocation9], 1 }

</bundles_post_ra>
